<compile_context>
chip_gen: v7x
topology: tpu7x:2x2x1
jax: 0.10.0
libtpu: 0.0.40
codegen_flags: <defaults>
</compile_context>

<pallas_src>
import math
import jax
import jax.numpy as jnp
from jax.experimental import pallas as pl
from jax.experimental.pallas import tpu as pltpu  # noqa: F401  (imported per convention)

# ----------------------------- config ---------------------------------------
D_MODEL = 32
N_HEADS = 4
D_K = D_MODEL // N_HEADS
D_FF = 64
N_LAYERS = 2
SRC_VOCAB = 11
TGT_VOCAB = 11
MAX_LEN = 64
EPS = 1e-6
NEG_INF = -1e9


def _round_up(x, m):
    return ((x + m - 1) // m) * m


# ----------------------------- in-kernel helpers -----------------------------


def _ln(x, g, b):
    """Annotated-Transformer LayerNorm: g*(x-mean)/(std+eps)+b, unbiased std (ddof=1)."""
    d = x.shape[-1]
    mean = jnp.mean(x, axis=-1, keepdims=True)
    xc = x - mean
    var = jnp.sum(xc * xc, axis=-1, keepdims=True) * (1.0 / (d - 1))
    std = jnp.sqrt(var)
    return g * xc * pl.reciprocal(std + EPS, approx=True) + b


def _mha(q, k, v, mask_add):
    """Multi-head attention on lane-dense 2-D slabs.

    q: (B*Sq, D_MODEL), k/v: (B*Sk, D_MODEL), mask_add: (B, Sq, Sk) additive f32 mask.
    Returns (B*Sq, D_MODEL) with heads concatenated along the lane dim.
    Head/batch loops are static Python loops -> fully unrolled, static slices (free).
    """
    B, Sq, Sk = mask_add.shape
    scale = 1.0 / math.sqrt(D_K)
    rows = []
    for b in range(B):
        m = mask_add[b]  # (Sq, Sk)
        heads = []
        for h in range(N_HEADS):
            c0, c1 = h * D_K, (h + 1) * D_K
            qb = q[b * Sq:(b + 1) * Sq, c0:c1]
            kb = k[b * Sk:(b + 1) * Sk, c0:c1]
            vb = v[b * Sk:(b + 1) * Sk, c0:c1]
            s = jax.lax.dot_general(
                qb, kb, (((1,), (1,)), ((), ())),
                preferred_element_type=jnp.float32) * scale + m
            s = s - jnp.max(s, axis=-1, keepdims=True)
            p = jnp.exp(s)
            p = p * pl.reciprocal(jnp.sum(p, axis=-1, keepdims=True), approx=True)
            heads.append(jnp.dot(p, vb, preferred_element_type=jnp.float32))
        rows.append(jnp.concatenate(heads, axis=-1))  # (Sq, D_MODEL) lane-dense
    return jnp.concatenate(rows, axis=0)              # (B*Sq, D_MODEL)


# ----------------------------- fused kernels ---------------------------------


def _encoder_kernel(x_ref, mask_ref,
                    n1g_ref, n1b_ref, wqkv_ref, bqkv_ref, wo_ref, bo_ref,
                    n2g_ref, n2b_ref, w1_ref, b1_ref, w2_ref, b2_ref,
                    fg_ref, fb_ref, o_ref):
    D = D_MODEL
    x = x_ref[...]          # (B*S_pad, D)
    mask = mask_ref[...]    # (B, S_pad, S_pad)
    for l in range(N_LAYERS):
        # --- self-attention sublayer (pre-norm residual) ---
        y = _ln(x, n1g_ref[l], n1b_ref[l])
        qkv = jnp.dot(y, wqkv_ref[l], preferred_element_type=jnp.float32) + bqkv_ref[l]
        a = _mha(qkv[:, :D], qkv[:, D:2 * D], qkv[:, 2 * D:], mask)
        x = x + jnp.dot(a, wo_ref[l], preferred_element_type=jnp.float32) + bo_ref[l]
        # --- position-wise FFN sublayer ---
        y = _ln(x, n2g_ref[l], n2b_ref[l])
        h = jnp.maximum(
            jnp.dot(y, w1_ref[l], preferred_element_type=jnp.float32) + b1_ref[l], 0.0)
        x = x + jnp.dot(h, w2_ref[l], preferred_element_type=jnp.float32) + b2_ref[l]
    o_ref[...] = _ln(x, fg_ref[...], fb_ref[...])


def _decoder_kernel(x_ref, mem_ref, tmask_ref, smask_ref,
                    n1g_ref, n1b_ref, wqkv_ref, bqkv_ref, wo1_ref, bo1_ref,
                    n2g_ref, n2b_ref, wq_ref, bq_ref, wkv_ref, bkv_ref, wo2_ref, bo2_ref,
                    n3g_ref, n3b_ref, w1_ref, b1_ref, w2_ref, b2_ref,
                    fg_ref, fb_ref, o_ref):
    D = D_MODEL
    x = x_ref[...]            # (B*T_pad, D)
    mem = mem_ref[...]        # (B*S_pad, D)
    tmask = tmask_ref[...]    # (B, T_pad, T_pad)
    smask = smask_ref[...]    # (B, T_pad, S_pad)
    for l in range(N_LAYERS):
        # --- masked self-attention ---
        y = _ln(x, n1g_ref[l], n1b_ref[l])
        qkv = jnp.dot(y, wqkv_ref[l], preferred_element_type=jnp.float32) + bqkv_ref[l]
        a = _mha(qkv[:, :D], qkv[:, D:2 * D], qkv[:, 2 * D:], tmask)
        x = x + jnp.dot(a, wo1_ref[l], preferred_element_type=jnp.float32) + bo1_ref[l]
        # --- source (cross) attention over encoder memory ---
        y = _ln(x, n2g_ref[l], n2b_ref[l])
        q = jnp.dot(y, wq_ref[l], preferred_element_type=jnp.float32) + bq_ref[l]
        kv = jnp.dot(mem, wkv_ref[l], preferred_element_type=jnp.float32) + bkv_ref[l]
        a = _mha(q, kv[:, :D], kv[:, D:], smask)
        x = x + jnp.dot(a, wo2_ref[l], preferred_element_type=jnp.float32) + bo2_ref[l]
        # --- position-wise FFN ---
        y = _ln(x, n3g_ref[l], n3b_ref[l])
        h = jnp.maximum(
            jnp.dot(y, w1_ref[l], preferred_element_type=jnp.float32) + b1_ref[l], 0.0)
        x = x + jnp.dot(h, w2_ref[l], preferred_element_type=jnp.float32) + b2_ref[l]
    o_ref[...] = _ln(x, fg_ref[...], fb_ref[...])


# ----------------------------- Pallas wrappers -------------------------------
# No grid: the whole (tiny) working set — activations, masks, and all layer weights —
# is placed in VMEM once per call; everything else is a single fused kernel body.


def encode_pallas(params, x2d, enc_mask_add):
    e = params["enc"]
    return pl.pallas_call(
        _encoder_kernel,
        out_shape=jax.ShapeDtypeStruct(x2d.shape, jnp.float32),
    )(x2d, enc_mask_add,
      e["n1g"], e["n1b"], e["wqkv"], e["bqkv"], e["wo"], e["bo"],
      e["n2g"], e["n2b"], e["w1"], e["b1"], e["w2"], e["b2"],
      params["enc_norm_g"], params["enc_norm_b"])


def decode_pallas(params, x2d, memory2d, tgt_mask_add, cross_mask_add):
    d = params["dec"]
    return pl.pallas_call(
        _decoder_kernel,
        out_shape=jax.ShapeDtypeStruct(x2d.shape, jnp.float32),
    )(x2d, memory2d, tgt_mask_add, cross_mask_add,
      d["n1g"], d["n1b"], d["wqkv"], d["bqkv"], d["wo1"], d["bo1"],
      d["n2g"], d["n2b"], d["wq"], d["bq"], d["wkv"], d["bkv"], d["wo2"], d["bo2"],
      d["n3g"], d["n3b"], d["w1"], d["b1"], d["w2"], d["b2"],
      params["dec_norm_g"], params["dec_norm_b"])


# ----------------------------- model glue (plain JAX) ------------------------
# TODO(synk): token-embedding gather + positional encoding are done in plain JAX
# (tiny vocab lookup); not worth a dedicated Pallas gather kernel at this size.


def embed_and_pad(table, pe, tokens, pad_len):
    B, S = tokens.shape
    x = jnp.take(table, tokens, axis=0) * math.sqrt(D_MODEL) + pe[None, :S, :]
    x = jnp.pad(x, ((0, 0), (0, pad_len - S), (0, 0)))
    return x.reshape(B * pad_len, D_MODEL)


def build_masks(src_mask, tgt_mask, s_pad, t_pad):
    B = src_mask.shape[0]
    S = src_mask.shape[-1]
    T = tgt_mask.shape[-1]
    src_keys = jnp.pad(src_mask.astype(bool), ((0, 0), (0, 0), (0, s_pad - S)))  # (B,1,S_pad)
    enc_add = jnp.where(jnp.broadcast_to(src_keys, (B, s_pad, s_pad)),
                        0.0, NEG_INF).astype(jnp.float32)
    tm = jnp.pad(tgt_mask.astype(bool), ((0, 0), (0, t_pad - T), (0, t_pad - T)))
    tgt_add = jnp.where(tm, 0.0, NEG_INF).astype(jnp.float32)
    cross_add = jnp.where(jnp.broadcast_to(src_keys, (B, t_pad, s_pad)),
                          0.0, NEG_INF).astype(jnp.float32)
    return enc_add, tgt_add, cross_add


def encoder_decoder_forward(params, src, tgt, src_mask, tgt_mask):
    # NOTE: like the PyTorch module, forward() does NOT apply the generator.
    B, S = src.shape
    T = tgt.shape[1]
    s_pad = _round_up(S, 8)
    t_pad = _round_up(T, 8)
    enc_mask_add, tgt_mask_add, cross_mask_add = build_masks(src_mask, tgt_mask, s_pad, t_pad)

    x_src = embed_and_pad(params["src_emb"], params["pe"], src, s_pad)
    memory = encode_pallas(params, x_src, enc_mask_add)                 # (B*s_pad, D)

    x_tgt = embed_and_pad(params["tgt_emb"], params["pe"], tgt, t_pad)
    out = decode_pallas(params, x_tgt, memory, tgt_mask_add, cross_mask_add)  # (B*t_pad, D)
    return out.reshape(B, t_pad, D_MODEL)[:, :T, :]


# ----------------------------- parameter init --------------------------------


def positional_encoding(max_len, d_model):
    pos = jnp.arange(max_len, dtype=jnp.float32)[:, None]
    div = jnp.exp(jnp.arange(0, d_model, 2, dtype=jnp.float32)
                  * -(math.log(10000.0) / d_model))
    pe = jnp.zeros((max_len, d_model), jnp.float32)
    pe = pe.at[:, 0::2].set(jnp.sin(pos * div))
    pe = pe.at[:, 1::2].set(jnp.cos(pos * div))
    return pe


def _stack_w(keys, d_in, d_out):
    return jnp.stack([jax.random.normal(k, (d_in, d_out), jnp.float32) * 0.02 for k in keys])


def init_params(key):
    L, D, F = N_LAYERS, D_MODEL, D_FF
    n_keys = 2 + 4 * L + 7 * L
    keys = list(jax.random.split(key, n_keys))
    ki = iter(keys)
    nk = lambda n: [next(ki) for _ in range(n)]
    ones = lambda s: jnp.ones(s, jnp.float32)
    zeros = lambda s: jnp.zeros(s, jnp.float32)

    enc = dict(
        n1g=ones((L, 1, D)), n1b=zeros((L, 1, D)),
        wqkv=_stack_w(nk(L), D, 3 * D), bqkv=zeros((L, 1, 3 * D)),
        wo=_stack_w(nk(L), D, D), bo=zeros((L, 1, D)),
        n2g=ones((L, 1, D)), n2b=zeros((L, 1, D)),
        w1=_stack_w(nk(L), D, F), b1=zeros((L, 1, F)),
        w2=_stack_w(nk(L), F, D), b2=zeros((L, 1, D)),
    )
    dec = dict(
        n1g=ones((L, 1, D)), n1b=zeros((L, 1, D)),
        wqkv=_stack_w(nk(L), D, 3 * D), bqkv=zeros((L, 1, 3 * D)),
        wo1=_stack_w(nk(L), D, D), bo1=zeros((L, 1, D)),
        n2g=ones((L, 1, D)), n2b=zeros((L, 1, D)),
        wq=_stack_w(nk(L), D, D), bq=zeros((L, 1, D)),
        wkv=_stack_w(nk(L), D, 2 * D), bkv=zeros((L, 1, 2 * D)),
        wo2=_stack_w(nk(L), D, D), bo2=zeros((L, 1, D)),
        n3g=ones((L, 1, D)), n3b=zeros((L, 1, D)),
        w1=_stack_w(nk(L), D, F), b1=zeros((L, 1, F)),
        w2=_stack_w(nk(L), F, D), b2=zeros((L, 1, D)),
    )
    return dict(
        src_emb=jax.random.normal(next(ki), (SRC_VOCAB, D), jnp.float32) * 0.02,
        tgt_emb=jax.random.normal(next(ki), (TGT_VOCAB, D), jnp.float32) * 0.02,
        pe=positional_encoding(MAX_LEN, D),
        enc=enc, dec=dec,
        enc_norm_g=ones((1, D)), enc_norm_b=zeros((1, D)),
        dec_norm_g=ones((1, D)), dec_norm_b=zeros((1, D)),
    )


# ----------------------------- main ------------------------------------------

if __name__ == "__main__":
    key = jax.random.PRNGKey(0)
    pkey, skey, tkey = jax.random.split(key, 3)

    params = init_params(pkey)

    B, SRC_LEN, TGT_LEN = 2, 10, 9
    src = jax.random.randint(skey, (B, SRC_LEN), 1, 10, dtype=jnp.int32)
    tgt = jax.random.randint(tkey, (B, TGT_LEN), 1, 10, dtype=jnp.int32)

    src_mask = jnp.ones((B, 1, SRC_LEN), dtype=bool)
    subsequent = jnp.tril(jnp.ones((TGT_LEN, TGT_LEN), dtype=bool))
    tgt_mask = jnp.broadcast_to(subsequent[None, :, :], (B, TGT_LEN, TGT_LEN))

    fwd = jax.jit(encoder_decoder_forward)
    out = fwd(params, src, tgt, src_mask, tgt_mask)
    out = jax.block_until_ready(out)

    assert out.shape == (B, TGT_LEN, D_MODEL) and out.dtype == jnp.float32
    assert bool(jnp.all(jnp.isfinite(out)))
    print("KERNEL_OK")
</pallas_src>

<mosaic_0001>
module attributes {stable_mosaic.version = 11 : i64} {
  func.func @_encoder_kernel(%arg0: memref<32x32xf32, #tpu.memory_space<vmem>>, %arg1: memref<2x16x16xf32, #tpu.memory_space<vmem>>, %arg2: memref<2x1x32xf32, #tpu.memory_space<vmem>>, %arg3: memref<2x1x32xf32, #tpu.memory_space<vmem>>, %arg4: memref<2x32x96xf32, #tpu.memory_space<vmem>>, %arg5: memref<2x1x96xf32, #tpu.memory_space<vmem>>, %arg6: memref<2x32x32xf32, #tpu.memory_space<vmem>>, %arg7: memref<2x1x32xf32, #tpu.memory_space<vmem>>, %arg8: memref<2x1x32xf32, #tpu.memory_space<vmem>>, %arg9: memref<2x1x32xf32, #tpu.memory_space<vmem>>, %arg10: memref<2x32x64xf32, #tpu.memory_space<vmem>>, %arg11: memref<2x1x64xf32, #tpu.memory_space<vmem>>, %arg12: memref<2x64x32xf32, #tpu.memory_space<vmem>>, %arg13: memref<2x1x32xf32, #tpu.memory_space<vmem>>, %arg14: memref<1x32xf32, #tpu.memory_space<vmem>>, %arg15: memref<1x32xf32, #tpu.memory_space<vmem>>, %arg16: memref<32x32xf32, #tpu.memory_space<vmem>>) attributes {dimension_semantics = [], scalar_prefetch = 0 : i64, scratch_operands = 0 : i64, tpu.core_type = #tpu.core_type<tc>} {
    %c0 = arith.constant 0 : index
    %c0_0 = arith.constant 0 : index
    %0 = vector.load %arg0[%c0, %c0_0] : memref<32x32xf32, #tpu.memory_space<vmem>>, vector<32x32xf32>
    %c0_1 = arith.constant 0 : index
    %c0_2 = arith.constant 0 : index
    %c0_3 = arith.constant 0 : index
    %1 = vector.load %arg1[%c0_1, %c0_2, %c0_3] : memref<2x16x16xf32, #tpu.memory_space<vmem>>, vector<2x16x16xf32>
    %c0_4 = arith.constant 0 : index
    %c0_5 = arith.constant 0 : index
    %c0_6 = arith.constant 0 : index
    %2 = vector.load %arg2[%c0_4, %c0_5, %c0_6] : memref<2x1x32xf32, #tpu.memory_space<vmem>>, vector<1x1x32xf32>
    %3 = vector.shape_cast %2 : vector<1x1x32xf32> to vector<1x32xf32>
    %c0_7 = arith.constant 0 : index
    %c0_8 = arith.constant 0 : index
    %c0_9 = arith.constant 0 : index
    %4 = vector.load %arg3[%c0_7, %c0_8, %c0_9] : memref<2x1x32xf32, #tpu.memory_space<vmem>>, vector<1x1x32xf32>
    %5 = vector.shape_cast %4 : vector<1x1x32xf32> to vector<1x32xf32>
    %cst = arith.constant dense<0.000000e+00> : vector<32xf32>
    %6 = vector.multi_reduction <add>, %0, %cst [1] : vector<32x32xf32> to vector<32xf32>
    %7 = vector.shape_cast %6 : vector<32xf32> to vector<32x1xf32>
    %cst_10 = arith.constant 3.200000e+01 : f32
    %8 = vector.broadcast %cst_10 : f32 to vector<32x1xf32>
    %9 = arith.divf %7, %8 : vector<32x1xf32>
    %10 = vector.broadcast %9 : vector<32x1xf32> to vector<32x32xf32>
    %11 = arith.subf %0, %10 : vector<32x32xf32>
    %12 = arith.mulf %11, %11 : vector<32x32xf32>
    %cst_11 = arith.constant dense<0.000000e+00> : vector<32xf32>
    %13 = vector.multi_reduction <add>, %12, %cst_11 [1] : vector<32x32xf32> to vector<32xf32>
    %14 = vector.shape_cast %13 : vector<32xf32> to vector<32x1xf32>
    %cst_12 = arith.constant 0.0322580636 : f32
    %15 = vector.broadcast %cst_12 : f32 to vector<32x1xf32>
    %16 = arith.mulf %14, %15 : vector<32x1xf32>
    %17 = math.sqrt %16 : vector<32x1xf32>
    %18 = vector.broadcast %3 : vector<1x32xf32> to vector<32x32xf32>
    %19 = arith.mulf %18, %11 : vector<32x32xf32>
    %cst_13 = arith.constant 9.99999997E-7 : f32
    %20 = vector.broadcast %cst_13 : f32 to vector<32x1xf32>
    %21 = arith.addf %17, %20 : vector<32x1xf32>
    %22 = tpu.reciprocal %21 {approx = true} : vector<32x1xf32> -> vector<32x1xf32>
    %23 = vector.broadcast %22 : vector<32x1xf32> to vector<32x32xf32>
    %24 = arith.mulf %19, %23 : vector<32x32xf32>
    %25 = vector.broadcast %5 : vector<1x32xf32> to vector<32x32xf32>
    %26 = arith.addf %24, %25 : vector<32x32xf32>
    %c0_14 = arith.constant 0 : index
    %c0_15 = arith.constant 0 : index
    %c0_16 = arith.constant 0 : index
    %27 = vector.load %arg4[%c0_14, %c0_15, %c0_16] : memref<2x32x96xf32, #tpu.memory_space<vmem>>, vector<1x32x96xf32>
    %28 = vector.shape_cast %27 : vector<1x32x96xf32> to vector<32x96xf32>
    %cst_17 = arith.constant dense<0.000000e+00> : vector<32x96xf32>
    %29 = tpu.matmul %26, %28, %cst_17 {dimension_numbers = #tpu.dot_dimension_numbers<[1], [0], [0], [1], [0, 0, 1, 1], [], []>} : vector<32x32xf32>, vector<32x96xf32>, vector<32x96xf32> -> vector<32x96xf32>
    %c0_18 = arith.constant 0 : index
    %c0_19 = arith.constant 0 : index
    %c0_20 = arith.constant 0 : index
    %30 = vector.load %arg5[%c0_18, %c0_19, %c0_20] : memref<2x1x96xf32, #tpu.memory_space<vmem>>, vector<1x1x96xf32>
    %31 = vector.shape_cast %30 : vector<1x1x96xf32> to vector<1x96xf32>
    %32 = vector.broadcast %31 : vector<1x96xf32> to vector<32x96xf32>
    %33 = arith.addf %29, %32 : vector<32x96xf32>
    %34 = vector.extract_strided_slice %33 {offsets = [0, 0], sizes = [32, 32], strides = [1, 1]} : vector<32x96xf32> to vector<32x32xf32>
    %35 = vector.extract_strided_slice %33 {offsets = [0, 32], sizes = [32, 32], strides = [1, 1]} : vector<32x96xf32> to vector<32x32xf32>
    %36 = vector.extract_strided_slice %33 {offsets = [0, 64], sizes = [32, 32], strides = [1, 1]} : vector<32x96xf32> to vector<32x32xf32>
    %37 = vector.extract_strided_slice %1 {offsets = [0, 0, 0], sizes = [1, 16, 16], strides = [1, 1, 1]} : vector<2x16x16xf32> to vector<1x16x16xf32>
    %38 = vector.shape_cast %37 : vector<1x16x16xf32> to vector<16x16xf32>
    %39 = vector.extract_strided_slice %34 {offsets = [0, 0], sizes = [16, 8], strides = [1, 1]} : vector<32x32xf32> to vector<16x8xf32>
    %40 = vector.extract_strided_slice %35 {offsets = [0, 0], sizes = [16, 8], strides = [1, 1]} : vector<32x32xf32> to vector<16x8xf32>
    %41 = vector.extract_strided_slice %36 {offsets = [0, 0], sizes = [16, 8], strides = [1, 1]} : vector<32x32xf32> to vector<16x8xf32>
    %cst_21 = arith.constant dense<0.000000e+00> : vector<16x16xf32>
    %42 = tpu.matmul %39, %40, %cst_21 {dimension_numbers = #tpu.dot_dimension_numbers<[1], [1], [0], [0], [0, 0, 1, 0], [], []>} : vector<16x8xf32>, vector<16x8xf32>, vector<16x16xf32> -> vector<16x16xf32>
    %cst_22 = arith.constant 0.353553385 : f32
    %43 = vector.broadcast %cst_22 : f32 to vector<16x16xf32>
    %44 = arith.mulf %42, %43 : vector<16x16xf32>
    %45 = arith.addf %44, %38 : vector<16x16xf32>
    %cst_23 = arith.constant dense<0xFF800000> : vector<16xf32>
    %46 = vector.multi_reduction <maximumf>, %45, %cst_23 [1] : vector<16x16xf32> to vector<16xf32>
    %47 = vector.shape_cast %46 : vector<16xf32> to vector<16x1xf32>
    %48 = vector.broadcast %47 : vector<16x1xf32> to vector<16x16xf32>
    %49 = arith.subf %45, %48 : vector<16x16xf32>
    %50 = math.exp %49 : vector<16x16xf32>
    %cst_24 = arith.constant dense<0.000000e+00> : vector<16xf32>
    %51 = vector.multi_reduction <add>, %50, %cst_24 [1] : vector<16x16xf32> to vector<16xf32>
    %52 = vector.shape_cast %51 : vector<16xf32> to vector<16x1xf32>
    %53 = tpu.reciprocal %52 {approx = true} : vector<16x1xf32> -> vector<16x1xf32>
    %54 = vector.broadcast %53 : vector<16x1xf32> to vector<16x16xf32>
    %55 = arith.mulf %50, %54 : vector<16x16xf32>
    %cst_25 = arith.constant dense<0.000000e+00> : vector<16x8xf32>
    %56 = tpu.matmul %55, %41, %cst_25 {dimension_numbers = #tpu.dot_dimension_numbers<[1], [0], [0], [1], [0, 0, 1, 1], [], []>} : vector<16x16xf32>, vector<16x8xf32>, vector<16x8xf32> -> vector<16x8xf32>
    %57 = vector.extract_strided_slice %34 {offsets = [0, 8], sizes = [16, 8], strides = [1, 1]} : vector<32x32xf32> to vector<16x8xf32>
    %58 = vector.extract_strided_slice %35 {offsets = [0, 8], sizes = [16, 8], strides = [1, 1]} : vector<32x32xf32> to vector<16x8xf32>
    %59 = vector.extract_strided_slice %36 {offsets = [0, 8], sizes = [16, 8], strides = [1, 1]} : vector<32x32xf32> to vector<16x8xf32>
    %cst_26 = arith.constant dense<0.000000e+00> : vector<16x16xf32>
    %60 = tpu.matmul %57, %58, %cst_26 {dimension_numbers = #tpu.dot_dimension_numbers<[1], [1], [0], [0], [0, 0, 1, 0], [], []>} : vector<16x8xf32>, vector<16x8xf32>, vector<16x16xf32> -> vector<16x16xf32>
    %cst_27 = arith.constant 0.353553385 : f32
    %61 = vector.broadcast %cst_27 : f32 to vector<16x16xf32>
    %62 = arith.mulf %60, %61 : vector<16x16xf32>
    %63 = arith.addf %62, %38 : vector<16x16xf32>
    %cst_28 = arith.constant dense<0xFF800000> : vector<16xf32>
    %64 = vector.multi_reduction <maximumf>, %63, %cst_28 [1] : vector<16x16xf32> to vector<16xf32>
    %65 = vector.shape_cast %64 : vector<16xf32> to vector<16x1xf32>
    %66 = vector.broadcast %65 : vector<16x1xf32> to vector<16x16xf32>
    %67 = arith.subf %63, %66 : vector<16x16xf32>
    %68 = math.exp %67 : vector<16x16xf32>
    %cst_29 = arith.constant dense<0.000000e+00> : vector<16xf32>
    %69 = vector.multi_reduction <add>, %68, %cst_29 [1] : vector<16x16xf32> to vector<16xf32>
    %70 = vector.shape_cast %69 : vector<16xf32> to vector<16x1xf32>
    %71 = tpu.reciprocal %70 {approx = true} : vector<16x1xf32> -> vector<16x1xf32>
    %72 = vector.broadcast %71 : vector<16x1xf32> to vector<16x16xf32>
    %73 = arith.mulf %68, %72 : vector<16x16xf32>
    %cst_30 = arith.constant dense<0.000000e+00> : vector<16x8xf32>
    %74 = tpu.matmul %73, %59, %cst_30 {dimension_numbers = #tpu.dot_dimension_numbers<[1], [0], [0], [1], [0, 0, 1, 1], [], []>} : vector<16x16xf32>, vector<16x8xf32>, vector<16x8xf32> -> vector<16x8xf32>
    %75 = vector.extract_strided_slice %34 {offsets = [0, 16], sizes = [16, 8], strides = [1, 1]} : vector<32x32xf32> to vector<16x8xf32>
    %76 = vector.extract_strided_slice %35 {offsets = [0, 16], sizes = [16, 8], strides = [1, 1]} : vector<32x32xf32> to vector<16x8xf32>
    %77 = vector.extract_strided_slice %36 {offsets = [0, 16], sizes = [16, 8], strides = [1, 1]} : vector<32x32xf32> to vector<16x8xf32>
    %cst_31 = arith.constant dense<0.000000e+00> : vector<16x16xf32>
    %78 = tpu.matmul %75, %76, %cst_31 {dimension_numbers = #tpu.dot_dimension_numbers<[1], [1], [0], [0], [0, 0, 1, 0], [], []>} : vector<16x8xf32>, vector<16x8xf32>, vector<16x16xf32> -> vector<16x16xf32>
    %cst_32 = arith.constant 0.353553385 : f32
    %79 = vector.broadcast %cst_32 : f32 to vector<16x16xf32>
    %80 = arith.mulf %78, %79 : vector<16x16xf32>
    %81 = arith.addf %80, %38 : vector<16x16xf32>
    %cst_33 = arith.constant dense<0xFF800000> : vector<16xf32>
    %82 = vector.multi_reduction <maximumf>, %81, %cst_33 [1] : vector<16x16xf32> to vector<16xf32>
    %83 = vector.shape_cast %82 : vector<16xf32> to vector<16x1xf32>
    %84 = vector.broadcast %83 : vector<16x1xf32> to vector<16x16xf32>
    %85 = arith.subf %81, %84 : vector<16x16xf32>
    %86 = math.exp %85 : vector<16x16xf32>
    %cst_34 = arith.constant dense<0.000000e+00> : vector<16xf32>
    %87 = vector.multi_reduction <add>, %86, %cst_34 [1] : vector<16x16xf32> to vector<16xf32>
    %88 = vector.shape_cast %87 : vector<16xf32> to vector<16x1xf32>
    %89 = tpu.reciprocal %88 {approx = true} : vector<16x1xf32> -> vector<16x1xf32>
    %90 = vector.broadcast %89 : vector<16x1xf32> to vector<16x16xf32>
    %91 = arith.mulf %86, %90 : vector<16x16xf32>
    %cst_35 = arith.constant dense<0.000000e+00> : vector<16x8xf32>
    %92 = tpu.matmul %91, %77, %cst_35 {dimension_numbers = #tpu.dot_dimension_numbers<[1], [0], [0], [1], [0, 0, 1, 1], [], []>} : vector<16x16xf32>, vector<16x8xf32>, vector<16x8xf32> -> vector<16x8xf32>
    %93 = vector.extract_strided_slice %34 {offsets = [0, 24], sizes = [16, 8], strides = [1, 1]} : vector<32x32xf32> to vector<16x8xf32>
    %94 = vector.extract_strided_slice %35 {offsets = [0, 24], sizes = [16, 8], strides = [1, 1]} : vector<32x32xf32> to vector<16x8xf32>
    %95 = vector.extract_strided_slice %36 {offsets = [0, 24], sizes = [16, 8], strides = [1, 1]} : vector<32x32xf32> to vector<16x8xf32>
    %cst_36 = arith.constant dense<0.000000e+00> : vector<16x16xf32>
    %96 = tpu.matmul %93, %94, %cst_36 {dimension_numbers = #tpu.dot_dimension_numbers<[1], [1], [0], [0], [0, 0, 1, 0], [], []>} : vector<16x8xf32>, vector<16x8xf32>, vector<16x16xf32> -> vector<16x16xf32>
    %cst_37 = arith.constant 0.353553385 : f32
    %97 = vector.broadcast %cst_37 : f32 to vector<16x16xf32>
    %98 = arith.mulf %96, %97 : vector<16x16xf32>
    %99 = arith.addf %98, %38 : vector<16x16xf32>
    %cst_38 = arith.constant dense<0xFF800000> : vector<16xf32>
    %100 = vector.multi_reduction <maximumf>, %99, %cst_38 [1] : vector<16x16xf32> to vector<16xf32>
    %101 = vector.shape_cast %100 : vector<16xf32> to vector<16x1xf32>
    %102 = vector.broadcast %101 : vector<16x1xf32> to vector<16x16xf32>
    %103 = arith.subf %99, %102 : vector<16x16xf32>
    %104 = math.exp %103 : vector<16x16xf32>
    %cst_39 = arith.constant dense<0.000000e+00> : vector<16xf32>
    %105 = vector.multi_reduction <add>, %104, %cst_39 [1] : vector<16x16xf32> to vector<16xf32>
    %106 = vector.shape_cast %105 : vector<16xf32> to vector<16x1xf32>
    %107 = tpu.reciprocal %106 {approx = true} : vector<16x1xf32> -> vector<16x1xf32>
    %108 = vector.broadcast %107 : vector<16x1xf32> to vector<16x16xf32>
    %109 = arith.mulf %104, %108 : vector<16x16xf32>
    %cst_40 = arith.constant dense<0.000000e+00> : vector<16x8xf32>
    %110 = tpu.matmul %109, %95, %cst_40 {dimension_numbers = #tpu.dot_dimension_numbers<[1], [0], [0], [1], [0, 0, 1, 1], [], []>} : vector<16x16xf32>, vector<16x8xf32>, vector<16x8xf32> -> vector<16x8xf32>
    %111 = tpu.concatenate %56, %74, %92, %110 in 1 : vector<16x8xf32>, vector<16x8xf32>, vector<16x8xf32>, vector<16x8xf32> -> vector<16x32xf32>
    %112 = vector.extract_strided_slice %1 {offsets = [1, 0, 0], sizes = [1, 16, 16], strides = [1, 1, 1]} : vector<2x16x16xf32> to vector<1x16x16xf32>
    %113 = vector.shape_cast %112 : vector<1x16x16xf32> to vector<16x16xf32>
    %114 = vector.extract_strided_slice %34 {offsets = [16, 0], sizes = [16, 8], strides = [1, 1]} : vector<32x32xf32> to vector<16x8xf32>
    %115 = vector.extract_strided_slice %35 {offsets = [16, 0], sizes = [16, 8], strides = [1, 1]} : vector<32x32xf32> to vector<16x8xf32>
    %116 = vector.extract_strided_slice %36 {offsets = [16, 0], sizes = [16, 8], strides = [1, 1]} : vector<32x32xf32> to vector<16x8xf32>
    %cst_41 = arith.constant dense<0.000000e+00> : vector<16x16xf32>
    %117 = tpu.matmul %114, %115, %cst_41 {dimension_numbers = #tpu.dot_dimension_numbers<[1], [1], [0], [0], [0, 0, 1, 0], [], []>} : vector<16x8xf32>, vector<16x8xf32>, vector<16x16xf32> -> vector<16x16xf32>
    %cst_42 = arith.constant 0.353553385 : f32
    %118 = vector.broadcast %cst_42 : f32 to vector<16x16xf32>
    %119 = arith.mulf %117, %118 : vector<16x16xf32>
    %120 = arith.addf %119, %113 : vector<16x16xf32>
    %cst_43 = arith.constant dense<0xFF800000> : vector<16xf32>
    %121 = vector.multi_reduction <maximumf>, %120, %cst_43 [1] : vector<16x16xf32> to vector<16xf32>
    %122 = vector.shape_cast %121 : vector<16xf32> to vector<16x1xf32>
    %123 = vector.broadcast %122 : vector<16x1xf32> to vector<16x16xf32>
    %124 = arith.subf %120, %123 : vector<16x16xf32>
    %125 = math.exp %124 : vector<16x16xf32>
    %cst_44 = arith.constant dense<0.000000e+00> : vector<16xf32>
    %126 = vector.multi_reduction <add>, %125, %cst_44 [1] : vector<16x16xf32> to vector<16xf32>
    %127 = vector.shape_cast %126 : vector<16xf32> to vector<16x1xf32>
    %128 = tpu.reciprocal %127 {approx = true} : vector<16x1xf32> -> vector<16x1xf32>
    %129 = vector.broadcast %128 : vector<16x1xf32> to vector<16x16xf32>
    %130 = arith.mulf %125, %129 : vector<16x16xf32>
    %cst_45 = arith.constant dense<0.000000e+00> : vector<16x8xf32>
    %131 = tpu.matmul %130, %116, %cst_45 {dimension_numbers = #tpu.dot_dimension_numbers<[1], [0], [0], [1], [0, 0, 1, 1], [], []>} : vector<16x16xf32>, vector<16x8xf32>, vector<16x8xf32> -> vector<16x8xf32>
    %132 = vector.extract_strided_slice %34 {offsets = [16, 8], sizes = [16, 8], strides = [1, 1]} : vector<32x32xf32> to vector<16x8xf32>
    %133 = vector.extract_strided_slice %35 {offsets = [16, 8], sizes = [16, 8], strides = [1, 1]} : vector<32x32xf32> to vector<16x8xf32>
    %134 = vector.extract_strided_slice %36 {offsets = [16, 8], sizes = [16, 8], strides = [1, 1]} : vector<32x32xf32> to vector<16x8xf32>
    %cst_46 = arith.constant dense<0.000000e+00> : vector<16x16xf32>
    %135 = tpu.matmul %132, %133, %cst_46 {dimension_numbers = #tpu.dot_dimension_numbers<[1], [1], [0], [0], [0, 0, 1, 0], [], []>} : vector<16x8xf32>, vector<16x8xf32>, vector<16x16xf32> -> vector<16x16xf32>
    %cst_47 = arith.constant 0.353553385 : f32
    %136 = vector.broadcast %cst_47 : f32 to vector<16x16xf32>
    %137 = arith.mulf %135, %136 : vector<16x16xf32>
    %138 = arith.addf %137, %113 : vector<16x16xf32>
    %cst_48 = arith.constant dense<0xFF800000> : vector<16xf32>
    %139 = vector.multi_reduction <maximumf>, %138, %cst_48 [1] : vector<16x16xf32> to vector<16xf32>
    %140 = vector.shape_cast %139 : vector<16xf32> to vector<16x1xf32>
    %141 = vector.broadcast %140 : vector<16x1xf32> to vector<16x16xf32>
    %142 = arith.subf %138, %141 : vector<16x16xf32>
    %143 = math.exp %142 : vector<16x16xf32>
    %cst_49 = arith.constant dense<0.000000e+00> : vector<16xf32>
    %144 = vector.multi_reduction <add>, %143, %cst_49 [1] : vector<16x16xf32> to vector<16xf32>
    %145 = vector.shape_cast %144 : vector<16xf32> to vector<16x1xf32>
    %146 = tpu.reciprocal %145 {approx = true} : vector<16x1xf32> -> vector<16x1xf32>
    %147 = vector.broadcast %146 : vector<16x1xf32> to vector<16x16xf32>
    %148 = arith.mulf %143, %147 : vector<16x16xf32>
    %cst_50 = arith.constant dense<0.000000e+00> : vector<16x8xf32>
    %149 = tpu.matmul %148, %134, %cst_50 {dimension_numbers = #tpu.dot_dimension_numbers<[1], [0], [0], [1], [0, 0, 1, 1], [], []>} : vector<16x16xf32>, vector<16x8xf32>, vector<16x8xf32> -> vector<16x8xf32>
    %150 = vector.extract_strided_slice %34 {offsets = [16, 16], sizes = [16, 8], strides = [1, 1]} : vector<32x32xf32> to vector<16x8xf32>
    %151 = vector.extract_strided_slice %35 {offsets = [16, 16], sizes = [16, 8], strides = [1, 1]} : vector<32x32xf32> to vector<16x8xf32>
    %152 = vector.extract_strided_slice %36 {offsets = [16, 16], sizes = [16, 8], strides = [1, 1]} : vector<32x32xf32> to vector<16x8xf32>
    %cst_51 = arith.constant dense<0.000000e+00> : vector<16x16xf32>
    %153 = tpu.matmul %150, %151, %cst_51 {dimension_numbers = #tpu.dot_dimension_numbers<[1], [1], [0], [0], [0, 0, 1, 0], [], []>} : vector<16x8xf32>, vector<16x8xf32>, vector<16x16xf32> -> vector<16x16xf32>
    %cst_52 = arith.constant 0.353553385 : f32
    %154 = vector.broadcast %cst_52 : f32 to vector<16x16xf32>
    %155 = arith.mulf %153, %154 : vector<16x16xf32>
    %156 = arith.addf %155, %113 : vector<16x16xf32>
    %cst_53 = arith.constant dense<0xFF800000> : vector<16xf32>
    %157 = vector.multi_reduction <maximumf>, %156, %cst_53 [1] : vector<16x16xf32> to vector<16xf32>
    %158 = vector.shape_cast %157 : vector<16xf32> to vector<16x1xf32>
    %159 = vector.broadcast %158 : vector<16x1xf32> to vector<16x16xf32>
    %160 = arith.subf %156, %159 : vector<16x16xf32>
    %161 = math.exp %160 : vector<16x16xf32>
    %cst_54 = arith.constant dense<0.000000e+00> : vector<16xf32>
    %162 = vector.multi_reduction <add>, %161, %cst_54 [1] : vector<16x16xf32> to vector<16xf32>
    %163 = vector.shape_cast %162 : vector<16xf32> to vector<16x1xf32>
    %164 = tpu.reciprocal %163 {approx = true} : vector<16x1xf32> -> vector<16x1xf32>
    %165 = vector.broadcast %164 : vector<16x1xf32> to vector<16x16xf32>
    %166 = arith.mulf %161, %165 : vector<16x16xf32>
    %cst_55 = arith.constant dense<0.000000e+00> : vector<16x8xf32>
    %167 = tpu.matmul %166, %152, %cst_55 {dimension_numbers = #tpu.dot_dimension_numbers<[1], [0], [0], [1], [0, 0, 1, 1], [], []>} : vector<16x16xf32>, vector<16x8xf32>, vector<16x8xf32> -> vector<16x8xf32>
    %168 = vector.extract_strided_slice %34 {offsets = [16, 24], sizes = [16, 8], strides = [1, 1]} : vector<32x32xf32> to vector<16x8xf32>
    %169 = vector.extract_strided_slice %35 {offsets = [16, 24], sizes = [16, 8], strides = [1, 1]} : vector<32x32xf32> to vector<16x8xf32>
    %170 = vector.extract_strided_slice %36 {offsets = [16, 24], sizes = [16, 8], strides = [1, 1]} : vector<32x32xf32> to vector<16x8xf32>
    %cst_56 = arith.constant dense<0.000000e+00> : vector<16x16xf32>
    %171 = tpu.matmul %168, %169, %cst_56 {dimension_numbers = #tpu.dot_dimension_numbers<[1], [1], [0], [0], [0, 0, 1, 0], [], []>} : vector<16x8xf32>, vector<16x8xf32>, vector<16x16xf32> -> vector<16x16xf32>
    %cst_57 = arith.constant 0.353553385 : f32
    %172 = vector.broadcast %cst_57 : f32 to vector<16x16xf32>
    %173 = arith.mulf %171, %172 : vector<16x16xf32>
    %174 = arith.addf %173, %113 : vector<16x16xf32>
    %cst_58 = arith.constant dense<0xFF800000> : vector<16xf32>
    %175 = vector.multi_reduction <maximumf>, %174, %cst_58 [1] : vector<16x16xf32> to vector<16xf32>
    %176 = vector.shape_cast %175 : vector<16xf32> to vector<16x1xf32>
    %177 = vector.broadcast %176 : vector<16x1xf32> to vector<16x16xf32>
    %178 = arith.subf %174, %177 : vector<16x16xf32>
    %179 = math.exp %178 : vector<16x16xf32>
    %cst_59 = arith.constant dense<0.000000e+00> : vector<16xf32>
    %180 = vector.multi_reduction <add>, %179, %cst_59 [1] : vector<16x16xf32> to vector<16xf32>
    %181 = vector.shape_cast %180 : vector<16xf32> to vector<16x1xf32>
    %182 = tpu.reciprocal %181 {approx = true} : vector<16x1xf32> -> vector<16x1xf32>
    %183 = vector.broadcast %182 : vector<16x1xf32> to vector<16x16xf32>
    %184 = arith.mulf %179, %183 : vector<16x16xf32>
    %cst_60 = arith.constant dense<0.000000e+00> : vector<16x8xf32>
    %185 = tpu.matmul %184, %170, %cst_60 {dimension_numbers = #tpu.dot_dimension_numbers<[1], [0], [0], [1], [0, 0, 1, 1], [], []>} : vector<16x16xf32>, vector<16x8xf32>, vector<16x8xf32> -> vector<16x8xf32>
    %186 = tpu.concatenate %131, %149, %167, %185 in 1 : vector<16x8xf32>, vector<16x8xf32>, vector<16x8xf32>, vector<16x8xf32> -> vector<16x32xf32>
    %187 = tpu.concatenate %111, %186 in 0 : vector<16x32xf32>, vector<16x32xf32> -> vector<32x32xf32>
    %c0_61 = arith.constant 0 : index
    %c0_62 = arith.constant 0 : index
    %c0_63 = arith.constant 0 : index
    %188 = vector.load %arg6[%c0_61, %c0_62, %c0_63] : memref<2x32x32xf32, #tpu.memory_space<vmem>>, vector<1x32x32xf32>
    %189 = vector.shape_cast %188 : vector<1x32x32xf32> to vector<32x32xf32>
    %cst_64 = arith.constant dense<0.000000e+00> : vector<32x32xf32>
    %190 = tpu.matmul %187, %189, %cst_64 {dimension_numbers = #tpu.dot_dimension_numbers<[1], [0], [0], [1], [0, 0, 1, 1], [], []>} : vector<32x32xf32>, vector<32x32xf32>, vector<32x32xf32> -> vector<32x32xf32>
    %191 = arith.addf %0, %190 : vector<32x32xf32>
    %c0_65 = arith.constant 0 : index
    %c0_66 = arith.constant 0 : index
    %c0_67 = arith.constant 0 : index
    %192 = vector.load %arg7[%c0_65, %c0_66, %c0_67] : memref<2x1x32xf32, #tpu.memory_space<vmem>>, vector<1x1x32xf32>
    %193 = vector.shape_cast %192 : vector<1x1x32xf32> to vector<1x32xf32>
    %194 = vector.broadcast %193 : vector<1x32xf32> to vector<32x32xf32>
    %195 = arith.addf %191, %194 : vector<32x32xf32>
    %c0_68 = arith.constant 0 : index
    %c0_69 = arith.constant 0 : index
    %c0_70 = arith.constant 0 : index
    %196 = vector.load %arg8[%c0_68, %c0_69, %c0_70] : memref<2x1x32xf32, #tpu.memory_space<vmem>>, vector<1x1x32xf32>
    %197 = vector.shape_cast %196 : vector<1x1x32xf32> to vector<1x32xf32>
    %c0_71 = arith.constant 0 : index
    %c0_72 = arith.constant 0 : index
    %c0_73 = arith.constant 0 : index
    %198 = vector.load %arg9[%c0_71, %c0_72, %c0_73] : memref<2x1x32xf32, #tpu.memory_space<vmem>>, vector<1x1x32xf32>
    %199 = vector.shape_cast %198 : vector<1x1x32xf32> to vector<1x32xf32>
    %cst_74 = arith.constant dense<0.000000e+00> : vector<32xf32>
    %200 = vector.multi_reduction <add>, %195, %cst_74 [1] : vector<32x32xf32> to vector<32xf32>
    %201 = vector.shape_cast %200 : vector<32xf32> to vector<32x1xf32>
    %cst_75 = arith.constant 3.200000e+01 : f32
    %202 = vector.broadcast %cst_75 : f32 to vector<32x1xf32>
    %203 = arith.divf %201, %202 : vector<32x1xf32>
    %204 = vector.broadcast %203 : vector<32x1xf32> to vector<32x32xf32>
    %205 = arith.subf %195, %204 : vector<32x32xf32>
    %206 = arith.mulf %205, %205 : vector<32x32xf32>
    %cst_76 = arith.constant dense<0.000000e+00> : vector<32xf32>
    %207 = vector.multi_reduction <add>, %206, %cst_76 [1] : vector<32x32xf32> to vector<32xf32>
    %208 = vector.shape_cast %207 : vector<32xf32> to vector<32x1xf32>
    %cst_77 = arith.constant 0.0322580636 : f32
    %209 = vector.broadcast %cst_77 : f32 to vector<32x1xf32>
    %210 = arith.mulf %208, %209 : vector<32x1xf32>
    %211 = math.sqrt %210 : vector<32x1xf32>
    %212 = vector.broadcast %197 : vector<1x32xf32> to vector<32x32xf32>
    %213 = arith.mulf %212, %205 : vector<32x32xf32>
    %cst_78 = arith.constant 9.99999997E-7 : f32
    %214 = vector.broadcast %cst_78 : f32 to vector<32x1xf32>
    %215 = arith.addf %211, %214 : vector<32x1xf32>
    %216 = tpu.reciprocal %215 {approx = true} : vector<32x1xf32> -> vector<32x1xf32>
    %217 = vector.broadcast %216 : vector<32x1xf32> to vector<32x32xf32>
    %218 = arith.mulf %213, %217 : vector<32x32xf32>
    %219 = vector.broadcast %199 : vector<1x32xf32> to vector<32x32xf32>
    %220 = arith.addf %218, %219 : vector<32x32xf32>
    %c0_79 = arith.constant 0 : index
    %c0_80 = arith.constant 0 : index
    %c0_81 = arith.constant 0 : index
    %221 = vector.load %arg10[%c0_79, %c0_80, %c0_81] : memref<2x32x64xf32, #tpu.memory_space<vmem>>, vector<1x32x64xf32>
    %222 = vector.shape_cast %221 : vector<1x32x64xf32> to vector<32x64xf32>
    %cst_82 = arith.constant dense<0.000000e+00> : vector<32x64xf32>
    %223 = tpu.matmul %220, %222, %cst_82 {dimension_numbers = #tpu.dot_dimension_numbers<[1], [0], [0], [1], [0, 0, 1, 1], [], []>} : vector<32x32xf32>, vector<32x64xf32>, vector<32x64xf32> -> vector<32x64xf32>
    %c0_83 = arith.constant 0 : index
    %c0_84 = arith.constant 0 : index
    %c0_85 = arith.constant 0 : index
    %224 = vector.load %arg11[%c0_83, %c0_84, %c0_85] : memref<2x1x64xf32, #tpu.memory_space<vmem>>, vector<1x1x64xf32>
    %225 = vector.shape_cast %224 : vector<1x1x64xf32> to vector<1x64xf32>
    %226 = vector.broadcast %225 : vector<1x64xf32> to vector<32x64xf32>
    %227 = arith.addf %223, %226 : vector<32x64xf32>
    %cst_86 = arith.constant 0.000000e+00 : f32
    %228 = vector.broadcast %cst_86 : f32 to vector<32x64xf32>
    %229 = arith.maximumf %227, %228 : vector<32x64xf32>
    %c0_87 = arith.constant 0 : index
    %c0_88 = arith.constant 0 : index
    %c0_89 = arith.constant 0 : index
    %230 = vector.load %arg12[%c0_87, %c0_88, %c0_89] : memref<2x64x32xf32, #tpu.memory_space<vmem>>, vector<1x64x32xf32>
    %231 = vector.shape_cast %230 : vector<1x64x32xf32> to vector<64x32xf32>
    %cst_90 = arith.constant dense<0.000000e+00> : vector<32x32xf32>
    %232 = tpu.matmul %229, %231, %cst_90 {dimension_numbers = #tpu.dot_dimension_numbers<[1], [0], [0], [1], [0, 0, 1, 1], [], []>} : vector<32x64xf32>, vector<64x32xf32>, vector<32x32xf32> -> vector<32x32xf32>
    %233 = arith.addf %195, %232 : vector<32x32xf32>
    %c0_91 = arith.constant 0 : index
    %c0_92 = arith.constant 0 : index
    %c0_93 = arith.constant 0 : index
    %234 = vector.load %arg13[%c0_91, %c0_92, %c0_93] : memref<2x1x32xf32, #tpu.memory_space<vmem>>, vector<1x1x32xf32>
    %235 = vector.shape_cast %234 : vector<1x1x32xf32> to vector<1x32xf32>
    %236 = vector.broadcast %235 : vector<1x32xf32> to vector<32x32xf32>
    %237 = arith.addf %233, %236 : vector<32x32xf32>
    %c1 = arith.constant 1 : index
    %c0_94 = arith.constant 0 : index
    %c0_95 = arith.constant 0 : index
    %238 = vector.load %arg2[%c1, %c0_94, %c0_95] : memref<2x1x32xf32, #tpu.memory_space<vmem>>, vector<1x1x32xf32>
    %239 = vector.shape_cast %238 : vector<1x1x32xf32> to vector<1x32xf32>
    %c1_96 = arith.constant 1 : index
    %c0_97 = arith.constant 0 : index
    %c0_98 = arith.constant 0 : index
    %240 = vector.load %arg3[%c1_96, %c0_97, %c0_98] : memref<2x1x32xf32, #tpu.memory_space<vmem>>, vector<1x1x32xf32>
    %241 = vector.shape_cast %240 : vector<1x1x32xf32> to vector<1x32xf32>
    %cst_99 = arith.constant dense<0.000000e+00> : vector<32xf32>
    %242 = vector.multi_reduction <add>, %237, %cst_99 [1] : vector<32x32xf32> to vector<32xf32>
    %243 = vector.shape_cast %242 : vector<32xf32> to vector<32x1xf32>
    %cst_100 = arith.constant 3.200000e+01 : f32
    %244 = vector.broadcast %cst_100 : f32 to vector<32x1xf32>
    %245 = arith.divf %243, %244 : vector<32x1xf32>
    %246 = vector.broadcast %245 : vector<32x1xf32> to vector<32x32xf32>
    %247 = arith.subf %237, %246 : vector<32x32xf32>
    %248 = arith.mulf %247, %247 : vector<32x32xf32>
    %cst_101 = arith.constant dense<0.000000e+00> : vector<32xf32>
    %249 = vector.multi_reduction <add>, %248, %cst_101 [1] : vector<32x32xf32> to vector<32xf32>
    %250 = vector.shape_cast %249 : vector<32xf32> to vector<32x1xf32>
    %cst_102 = arith.constant 0.0322580636 : f32
    %251 = vector.broadcast %cst_102 : f32 to vector<32x1xf32>
    %252 = arith.mulf %250, %251 : vector<32x1xf32>
    %253 = math.sqrt %252 : vector<32x1xf32>
    %254 = vector.broadcast %239 : vector<1x32xf32> to vector<32x32xf32>
    %255 = arith.mulf %254, %247 : vector<32x32xf32>
    %cst_103 = arith.constant 9.99999997E-7 : f32
    %256 = vector.broadcast %cst_103 : f32 to vector<32x1xf32>
    %257 = arith.addf %253, %256 : vector<32x1xf32>
    %258 = tpu.reciprocal %257 {approx = true} : vector<32x1xf32> -> vector<32x1xf32>
    %259 = vector.broadcast %258 : vector<32x1xf32> to vector<32x32xf32>
    %260 = arith.mulf %255, %259 : vector<32x32xf32>
    %261 = vector.broadcast %241 : vector<1x32xf32> to vector<32x32xf32>
    %262 = arith.addf %260, %261 : vector<32x32xf32>
    %c1_104 = arith.constant 1 : index
    %c0_105 = arith.constant 0 : index
    %c0_106 = arith.constant 0 : index
    %263 = vector.load %arg4[%c1_104, %c0_105, %c0_106] : memref<2x32x96xf32, #tpu.memory_space<vmem>>, vector<1x32x96xf32>
    %264 = vector.shape_cast %263 : vector<1x32x96xf32> to vector<32x96xf32>
    %cst_107 = arith.constant dense<0.000000e+00> : vector<32x96xf32>
    %265 = tpu.matmul %262, %264, %cst_107 {dimension_numbers = #tpu.dot_dimension_numbers<[1], [0], [0], [1], [0, 0, 1, 1], [], []>} : vector<32x32xf32>, vector<32x96xf32>, vector<32x96xf32> -> vector<32x96xf32>
    %c1_108 = arith.constant 1 : index
    %c0_109 = arith.constant 0 : index
    %c0_110 = arith.constant 0 : index
    %266 = vector.load %arg5[%c1_108, %c0_109, %c0_110] : memref<2x1x96xf32, #tpu.memory_space<vmem>>, vector<1x1x96xf32>
    %267 = vector.shape_cast %266 : vector<1x1x96xf32> to vector<1x96xf32>
    %268 = vector.broadcast %267 : vector<1x96xf32> to vector<32x96xf32>
    %269 = arith.addf %265, %268 : vector<32x96xf32>
    %270 = vector.extract_strided_slice %269 {offsets = [0, 0], sizes = [32, 32], strides = [1, 1]} : vector<32x96xf32> to vector<32x32xf32>
    %271 = vector.extract_strided_slice %269 {offsets = [0, 32], sizes = [32, 32], strides = [1, 1]} : vector<32x96xf32> to vector<32x32xf32>
    %272 = vector.extract_strided_slice %269 {offsets = [0, 64], sizes = [32, 32], strides = [1, 1]} : vector<32x96xf32> to vector<32x32xf32>
    %273 = vector.extract_strided_slice %1 {offsets = [0, 0, 0], sizes = [1, 16, 16], strides = [1, 1, 1]} : vector<2x16x16xf32> to vector<1x16x16xf32>
    %274 = vector.shape_cast %273 : vector<1x16x16xf32> to vector<16x16xf32>
    %275 = vector.extract_strided_slice %270 {offsets = [0, 0], sizes = [16, 8], strides = [1, 1]} : vector<32x32xf32> to vector<16x8xf32>
    %276 = vector.extract_strided_slice %271 {offsets = [0, 0], sizes = [16, 8], strides = [1, 1]} : vector<32x32xf32> to vector<16x8xf32>
    %277 = vector.extract_strided_slice %272 {offsets = [0, 0], sizes = [16, 8], strides = [1, 1]} : vector<32x32xf32> to vector<16x8xf32>
    %cst_111 = arith.constant dense<0.000000e+00> : vector<16x16xf32>
    %278 = tpu.matmul %275, %276, %cst_111 {dimension_numbers = #tpu.dot_dimension_numbers<[1], [1], [0], [0], [0, 0, 1, 0], [], []>} : vector<16x8xf32>, vector<16x8xf32>, vector<16x16xf32> -> vector<16x16xf32>
    %cst_112 = arith.constant 0.353553385 : f32
    %279 = vector.broadcast %cst_112 : f32 to vector<16x16xf32>
    %280 = arith.mulf %278, %279 : vector<16x16xf32>
    %281 = arith.addf %280, %274 : vector<16x16xf32>
    %cst_113 = arith.constant dense<0xFF800000> : vector<16xf32>
    %282 = vector.multi_reduction <maximumf>, %281, %cst_113 [1] : vector<16x16xf32> to vector<16xf32>
    %283 = vector.shape_cast %282 : vector<16xf32> to vector<16x1xf32>
    %284 = vector.broadcast %283 : vector<16x1xf32> to vector<16x16xf32>
    %285 = arith.subf %281, %284 : vector<16x16xf32>
    %286 = math.exp %285 : vector<16x16xf32>
    %cst_114 = arith.constant dense<0.000000e+00> : vector<16xf32>
    %287 = vector.multi_reduction <add>, %286, %cst_114 [1] : vector<16x16xf32> to vector<16xf32>
    %288 = vector.shape_cast %287 : vector<16xf32> to vector<16x1xf32>
    %289 = tpu.reciprocal %288 {approx = true} : vector<16x1xf32> -> vector<16x1xf32>
    %290 = vector.broadcast %289 : vector<16x1xf32> to vector<16x16xf32>
    %291 = arith.mulf %286, %290 : vector<16x16xf32>
    %cst_115 = arith.constant dense<0.000000e+00> : vector<16x8xf32>
    %292 = tpu.matmul %291, %277, %cst_115 {dimension_numbers = #tpu.dot_dimension_numbers<[1], [0], [0], [1], [0, 0, 1, 1], [], []>} : vector<16x16xf32>, vector<16x8xf32>, vector<16x8xf32> -> vector<16x8xf32>
    %293 = vector.extract_strided_slice %270 {offsets = [0, 8], sizes = [16, 8], strides = [1, 1]} : vector<32x32xf32> to vector<16x8xf32>
    %294 = vector.extract_strided_slice %271 {offsets = [0, 8], sizes = [16, 8], strides = [1, 1]} : vector<32x32xf32> to vector<16x8xf32>
    %295 = vector.extract_strided_slice %272 {offsets = [0, 8], sizes = [16, 8], strides = [1, 1]} : vector<32x32xf32> to vector<16x8xf32>
    %cst_116 = arith.constant dense<0.000000e+00> : vector<16x16xf32>
    %296 = tpu.matmul %293, %294, %cst_116 {dimension_numbers = #tpu.dot_dimension_numbers<[1], [1], [0], [0], [0, 0, 1, 0], [], []>} : vector<16x8xf32>, vector<16x8xf32>, vector<16x16xf32> -> vector<16x16xf32>
    %cst_117 = arith.constant 0.353553385 : f32
    %297 = vector.broadcast %cst_117 : f32 to vector<16x16xf32>
    %298 = arith.mulf %296, %297 : vector<16x16xf32>
    %299 = arith.addf %298, %274 : vector<16x16xf32>
    %cst_118 = arith.constant dense<0xFF800000> : vector<16xf32>
    %300 = vector.multi_reduction <maximumf>, %299, %cst_118 [1] : vector<16x16xf32> to vector<16xf32>
    %301 = vector.shape_cast %300 : vector<16xf32> to vector<16x1xf32>
    %302 = vector.broadcast %301 : vector<16x1xf32> to vector<16x16xf32>
    %303 = arith.subf %299, %302 : vector<16x16xf32>
    %304 = math.exp %303 : vector<16x16xf32>
    %cst_119 = arith.constant dense<0.000000e+00> : vector<16xf32>
    %305 = vector.multi_reduction <add>, %304, %cst_119 [1] : vector<16x16xf32> to vector<16xf32>
    %306 = vector.shape_cast %305 : vector<16xf32> to vector<16x1xf32>
    %307 = tpu.reciprocal %306 {approx = true} : vector<16x1xf32> -> vector<16x1xf32>
    %308 = vector.broadcast %307 : vector<16x1xf32> to vector<16x16xf32>
    %309 = arith.mulf %304, %308 : vector<16x16xf32>
    %cst_120 = arith.constant dense<0.000000e+00> : vector<16x8xf32>
    %310 = tpu.matmul %309, %295, %cst_120 {dimension_numbers = #tpu.dot_dimension_numbers<[1], [0], [0], [1], [0, 0, 1, 1], [], []>} : vector<16x16xf32>, vector<16x8xf32>, vector<16x8xf32> -> vector<16x8xf32>
    %311 = vector.extract_strided_slice %270 {offsets = [0, 16], sizes = [16, 8], strides = [1, 1]} : vector<32x32xf32> to vector<16x8xf32>
    %312 = vector.extract_strided_slice %271 {offsets = [0, 16], sizes = [16, 8], strides = [1, 1]} : vector<32x32xf32> to vector<16x8xf32>
    %313 = vector.extract_strided_slice %272 {offsets = [0, 16], sizes = [16, 8], strides = [1, 1]} : vector<32x32xf32> to vector<16x8xf32>
    %cst_121 = arith.constant dense<0.000000e+00> : vector<16x16xf32>
    %314 = tpu.matmul %311, %312, %cst_121 {dimension_numbers = #tpu.dot_dimension_numbers<[1], [1], [0], [0], [0, 0, 1, 0], [], []>} : vector<16x8xf32>, vector<16x8xf32>, vector<16x16xf32> -> vector<16x16xf32>
    %cst_122 = arith.constant 0.353553385 : f32
    %315 = vector.broadcast %cst_122 : f32 to vector<16x16xf32>
    %316 = arith.mulf %314, %315 : vector<16x16xf32>
    %317 = arith.addf %316, %274 : vector<16x16xf32>
    %cst_123 = arith.constant dense<0xFF800000> : vector<16xf32>
    %318 = vector.multi_reduction <maximumf>, %317, %cst_123 [1] : vector<16x16xf32> to vector<16xf32>
    %319 = vector.shape_cast %318 : vector<16xf32> to vector<16x1xf32>
    %320 = vector.broadcast %319 : vector<16x1xf32> to vector<16x16xf32>
    %321 = arith.subf %317, %320 : vector<16x16xf32>
    %322 = math.exp %321 : vector<16x16xf32>
    %cst_124 = arith.constant dense<0.000000e+00> : vector<16xf32>
    %323 = vector.multi_reduction <add>, %322, %cst_124 [1] : vector<16x16xf32> to vector<16xf32>
    %324 = vector.shape_cast %323 : vector<16xf32> to vector<16x1xf32>
    %325 = tpu.reciprocal %324 {approx = true} : vector<16x1xf32> -> vector<16x1xf32>
    %326 = vector.broadcast %325 : vector<16x1xf32> to vector<16x16xf32>
    %327 = arith.mulf %322, %326 : vector<16x16xf32>
    %cst_125 = arith.constant dense<0.000000e+00> : vector<16x8xf32>
    %328 = tpu.matmul %327, %313, %cst_125 {dimension_numbers = #tpu.dot_dimension_numbers<[1], [0], [0], [1], [0, 0, 1, 1], [], []>} : vector<16x16xf32>, vector<16x8xf32>, vector<16x8xf32> -> vector<16x8xf32>
    %329 = vector.extract_strided_slice %270 {offsets = [0, 24], sizes = [16, 8], strides = [1, 1]} : vector<32x32xf32> to vector<16x8xf32>
    %330 = vector.extract_strided_slice %271 {offsets = [0, 24], sizes = [16, 8], strides = [1, 1]} : vector<32x32xf32> to vector<16x8xf32>
    %331 = vector.extract_strided_slice %272 {offsets = [0, 24], sizes = [16, 8], strides = [1, 1]} : vector<32x32xf32> to vector<16x8xf32>
    %cst_126 = arith.constant dense<0.000000e+00> : vector<16x16xf32>
    %332 = tpu.matmul %329, %330, %cst_126 {dimension_numbers = #tpu.dot_dimension_numbers<[1], [1], [0], [0], [0, 0, 1, 0], [], []>} : vector<16x8xf32>, vector<16x8xf32>, vector<16x16xf32> -> vector<16x16xf32>
    %cst_127 = arith.constant 0.353553385 : f32
    %333 = vector.broadcast %cst_127 : f32 to vector<16x16xf32>
    %334 = arith.mulf %332, %333 : vector<16x16xf32>
    %335 = arith.addf %334, %274 : vector<16x16xf32>
    %cst_128 = arith.constant dense<0xFF800000> : vector<16xf32>
    %336 = vector.multi_reduction <maximumf>, %335, %cst_128 [1] : vector<16x16xf32> to vector<16xf32>
    %337 = vector.shape_cast %336 : vector<16xf32> to vector<16x1xf32>
    %338 = vector.broadcast %337 : vector<16x1xf32> to vector<16x16xf32>
    %339 = arith.subf %335, %338 : vector<16x16xf32>
    %340 = math.exp %339 : vector<16x16xf32>
    %cst_129 = arith.constant dense<0.000000e+00> : vector<16xf32>
    %341 = vector.multi_reduction <add>, %340, %cst_129 [1] : vector<16x16xf32> to vector<16xf32>
    %342 = vector.shape_cast %341 : vector<16xf32> to vector<16x1xf32>
    %343 = tpu.reciprocal %342 {approx = true} : vector<16x1xf32> -> vector<16x1xf32>
    %344 = vector.broadcast %343 : vector<16x1xf32> to vector<16x16xf32>
    %345 = arith.mulf %340, %344 : vector<16x16xf32>
    %cst_130 = arith.constant dense<0.000000e+00> : vector<16x8xf32>
    %346 = tpu.matmul %345, %331, %cst_130 {dimension_numbers = #tpu.dot_dimension_numbers<[1], [0], [0], [1], [0, 0, 1, 1], [], []>} : vector<16x16xf32>, vector<16x8xf32>, vector<16x8xf32> -> vector<16x8xf32>
    %347 = tpu.concatenate %292, %310, %328, %346 in 1 : vector<16x8xf32>, vector<16x8xf32>, vector<16x8xf32>, vector<16x8xf32> -> vector<16x32xf32>
    %348 = vector.extract_strided_slice %1 {offsets = [1, 0, 0], sizes = [1, 16, 16], strides = [1, 1, 1]} : vector<2x16x16xf32> to vector<1x16x16xf32>
    %349 = vector.shape_cast %348 : vector<1x16x16xf32> to vector<16x16xf32>
    %350 = vector.extract_strided_slice %270 {offsets = [16, 0], sizes = [16, 8], strides = [1, 1]} : vector<32x32xf32> to vector<16x8xf32>
    %351 = vector.extract_strided_slice %271 {offsets = [16, 0], sizes = [16, 8], strides = [1, 1]} : vector<32x32xf32> to vector<16x8xf32>
    %352 = vector.extract_strided_slice %272 {offsets = [16, 0], sizes = [16, 8], strides = [1, 1]} : vector<32x32xf32> to vector<16x8xf32>
    %cst_131 = arith.constant dense<0.000000e+00> : vector<16x16xf32>
    %353 = tpu.matmul %350, %351, %cst_131 {dimension_numbers = #tpu.dot_dimension_numbers<[1], [1], [0], [0], [0, 0, 1, 0], [], []>} : vector<16x8xf32>, vector<16x8xf32>, vector<16x16xf32> -> vector<16x16xf32>
    %cst_132 = arith.constant 0.353553385 : f32
    %354 = vector.broadcast %cst_132 : f32 to vector<16x16xf32>
    %355 = arith.mulf %353, %354 : vector<16x16xf32>
    %356 = arith.addf %355, %349 : vector<16x16xf32>
    %cst_133 = arith.constant dense<0xFF800000> : vector<16xf32>
    %357 = vector.multi_reduction <maximumf>, %356, %cst_133 [1] : vector<16x16xf32> to vector<16xf32>
    %358 = vector.shape_cast %357 : vector<16xf32> to vector<16x1xf32>
    %359 = vector.broadcast %358 : vector<16x1xf32> to vector<16x16xf32>
    %360 = arith.subf %356, %359 : vector<16x16xf32>
    %361 = math.exp %360 : vector<16x16xf32>
    %cst_134 = arith.constant dense<0.000000e+00> : vector<16xf32>
    %362 = vector.multi_reduction <add>, %361, %cst_134 [1] : vector<16x16xf32> to vector<16xf32>
    %363 = vector.shape_cast %362 : vector<16xf32> to vector<16x1xf32>
    %364 = tpu.reciprocal %363 {approx = true} : vector<16x1xf32> -> vector<16x1xf32>
    %365 = vector.broadcast %364 : vector<16x1xf32> to vector<16x16xf32>
    %366 = arith.mulf %361, %365 : vector<16x16xf32>
    %cst_135 = arith.constant dense<0.000000e+00> : vector<16x8xf32>
    %367 = tpu.matmul %366, %352, %cst_135 {dimension_numbers = #tpu.dot_dimension_numbers<[1], [0], [0], [1], [0, 0, 1, 1], [], []>} : vector<16x16xf32>, vector<16x8xf32>, vector<16x8xf32> -> vector<16x8xf32>
    %368 = vector.extract_strided_slice %270 {offsets = [16, 8], sizes = [16, 8], strides = [1, 1]} : vector<32x32xf32> to vector<16x8xf32>
    %369 = vector.extract_strided_slice %271 {offsets = [16, 8], sizes = [16, 8], strides = [1, 1]} : vector<32x32xf32> to vector<16x8xf32>
    %370 = vector.extract_strided_slice %272 {offsets = [16, 8], sizes = [16, 8], strides = [1, 1]} : vector<32x32xf32> to vector<16x8xf32>
    %cst_136 = arith.constant dense<0.000000e+00> : vector<16x16xf32>
    %371 = tpu.matmul %368, %369, %cst_136 {dimension_numbers = #tpu.dot_dimension_numbers<[1], [1], [0], [0], [0, 0, 1, 0], [], []>} : vector<16x8xf32>, vector<16x8xf32>, vector<16x16xf32> -> vector<16x16xf32>
    %cst_137 = arith.constant 0.353553385 : f32
    %372 = vector.broadcast %cst_137 : f32 to vector<16x16xf32>
    %373 = arith.mulf %371, %372 : vector<16x16xf32>
    %374 = arith.addf %373, %349 : vector<16x16xf32>
    %cst_138 = arith.constant dense<0xFF800000> : vector<16xf32>
    %375 = vector.multi_reduction <maximumf>, %374, %cst_138 [1] : vector<16x16xf32> to vector<16xf32>
    %376 = vector.shape_cast %375 : vector<16xf32> to vector<16x1xf32>
    %377 = vector.broadcast %376 : vector<16x1xf32> to vector<16x16xf32>
    %378 = arith.subf %374, %377 : vector<16x16xf32>
    %379 = math.exp %378 : vector<16x16xf32>
    %cst_139 = arith.constant dense<0.000000e+00> : vector<16xf32>
    %380 = vector.multi_reduction <add>, %379, %cst_139 [1] : vector<16x16xf32> to vector<16xf32>
    %381 = vector.shape_cast %380 : vector<16xf32> to vector<16x1xf32>
    %382 = tpu.reciprocal %381 {approx = true} : vector<16x1xf32> -> vector<16x1xf32>
    %383 = vector.broadcast %382 : vector<16x1xf32> to vector<16x16xf32>
    %384 = arith.mulf %379, %383 : vector<16x16xf32>
    %cst_140 = arith.constant dense<0.000000e+00> : vector<16x8xf32>
    %385 = tpu.matmul %384, %370, %cst_140 {dimension_numbers = #tpu.dot_dimension_numbers<[1], [0], [0], [1], [0, 0, 1, 1], [], []>} : vector<16x16xf32>, vector<16x8xf32>, vector<16x8xf32> -> vector<16x8xf32>
    %386 = vector.extract_strided_slice %270 {offsets = [16, 16], sizes = [16, 8], strides = [1, 1]} : vector<32x32xf32> to vector<16x8xf32>
    %387 = vector.extract_strided_slice %271 {offsets = [16, 16], sizes = [16, 8], strides = [1, 1]} : vector<32x32xf32> to vector<16x8xf32>
    %388 = vector.extract_strided_slice %272 {offsets = [16, 16], sizes = [16, 8], strides = [1, 1]} : vector<32x32xf32> to vector<16x8xf32>
    %cst_141 = arith.constant dense<0.000000e+00> : vector<16x16xf32>
    %389 = tpu.matmul %386, %387, %cst_141 {dimension_numbers = #tpu.dot_dimension_numbers<[1], [1], [0], [0], [0, 0, 1, 0], [], []>} : vector<16x8xf32>, vector<16x8xf32>, vector<16x16xf32> -> vector<16x16xf32>
    %cst_142 = arith.constant 0.353553385 : f32
    %390 = vector.broadcast %cst_142 : f32 to vector<16x16xf32>
    %391 = arith.mulf %389, %390 : vector<16x16xf32>
    %392 = arith.addf %391, %349 : vector<16x16xf32>
    %cst_143 = arith.constant dense<0xFF800000> : vector<16xf32>
    %393 = vector.multi_reduction <maximumf>, %392, %cst_143 [1] : vector<16x16xf32> to vector<16xf32>
    %394 = vector.shape_cast %393 : vector<16xf32> to vector<16x1xf32>
    %395 = vector.broadcast %394 : vector<16x1xf32> to vector<16x16xf32>
    %396 = arith.subf %392, %395 : vector<16x16xf32>
    %397 = math.exp %396 : vector<16x16xf32>
    %cst_144 = arith.constant dense<0.000000e+00> : vector<16xf32>
    %398 = vector.multi_reduction <add>, %397, %cst_144 [1] : vector<16x16xf32> to vector<16xf32>
    %399 = vector.shape_cast %398 : vector<16xf32> to vector<16x1xf32>
    %400 = tpu.reciprocal %399 {approx = true} : vector<16x1xf32> -> vector<16x1xf32>
    %401 = vector.broadcast %400 : vector<16x1xf32> to vector<16x16xf32>
    %402 = arith.mulf %397, %401 : vector<16x16xf32>
    %cst_145 = arith.constant dense<0.000000e+00> : vector<16x8xf32>
    %403 = tpu.matmul %402, %388, %cst_145 {dimension_numbers = #tpu.dot_dimension_numbers<[1], [0], [0], [1], [0, 0, 1, 1], [], []>} : vector<16x16xf32>, vector<16x8xf32>, vector<16x8xf32> -> vector<16x8xf32>
    %404 = vector.extract_strided_slice %270 {offsets = [16, 24], sizes = [16, 8], strides = [1, 1]} : vector<32x32xf32> to vector<16x8xf32>
    %405 = vector.extract_strided_slice %271 {offsets = [16, 24], sizes = [16, 8], strides = [1, 1]} : vector<32x32xf32> to vector<16x8xf32>
    %406 = vector.extract_strided_slice %272 {offsets = [16, 24], sizes = [16, 8], strides = [1, 1]} : vector<32x32xf32> to vector<16x8xf32>
    %cst_146 = arith.constant dense<0.000000e+00> : vector<16x16xf32>
    %407 = tpu.matmul %404, %405, %cst_146 {dimension_numbers = #tpu.dot_dimension_numbers<[1], [1], [0], [0], [0, 0, 1, 0], [], []>} : vector<16x8xf32>, vector<16x8xf32>, vector<16x16xf32> -> vector<16x16xf32>
    %cst_147 = arith.constant 0.353553385 : f32
    %408 = vector.broadcast %cst_147 : f32 to vector<16x16xf32>
    %409 = arith.mulf %407, %408 : vector<16x16xf32>
    %410 = arith.addf %409, %349 : vector<16x16xf32>
    %cst_148 = arith.constant dense<0xFF800000> : vector<16xf32>
    %411 = vector.multi_reduction <maximumf>, %410, %cst_148 [1] : vector<16x16xf32> to vector<16xf32>
    %412 = vector.shape_cast %411 : vector<16xf32> to vector<16x1xf32>
    %413 = vector.broadcast %412 : vector<16x1xf32> to vector<16x16xf32>
    %414 = arith.subf %410, %413 : vector<16x16xf32>
    %415 = math.exp %414 : vector<16x16xf32>
    %cst_149 = arith.constant dense<0.000000e+00> : vector<16xf32>
    %416 = vector.multi_reduction <add>, %415, %cst_149 [1] : vector<16x16xf32> to vector<16xf32>
    %417 = vector.shape_cast %416 : vector<16xf32> to vector<16x1xf32>
    %418 = tpu.reciprocal %417 {approx = true} : vector<16x1xf32> -> vector<16x1xf32>
    %419 = vector.broadcast %418 : vector<16x1xf32> to vector<16x16xf32>
    %420 = arith.mulf %415, %419 : vector<16x16xf32>
    %cst_150 = arith.constant dense<0.000000e+00> : vector<16x8xf32>
    %421 = tpu.matmul %420, %406, %cst_150 {dimension_numbers = #tpu.dot_dimension_numbers<[1], [0], [0], [1], [0, 0, 1, 1], [], []>} : vector<16x16xf32>, vector<16x8xf32>, vector<16x8xf32> -> vector<16x8xf32>
    %422 = tpu.concatenate %367, %385, %403, %421 in 1 : vector<16x8xf32>, vector<16x8xf32>, vector<16x8xf32>, vector<16x8xf32> -> vector<16x32xf32>
    %423 = tpu.concatenate %347, %422 in 0 : vector<16x32xf32>, vector<16x32xf32> -> vector<32x32xf32>
    %c1_151 = arith.constant 1 : index
    %c0_152 = arith.constant 0 : index
    %c0_153 = arith.constant 0 : index
    %424 = vector.load %arg6[%c1_151, %c0_152, %c0_153] : memref<2x32x32xf32, #tpu.memory_space<vmem>>, vector<1x32x32xf32>
    %425 = vector.shape_cast %424 : vector<1x32x32xf32> to vector<32x32xf32>
    %cst_154 = arith.constant dense<0.000000e+00> : vector<32x32xf32>
    %426 = tpu.matmul %423, %425, %cst_154 {dimension_numbers = #tpu.dot_dimension_numbers<[1], [0], [0], [1], [0, 0, 1, 1], [], []>} : vector<32x32xf32>, vector<32x32xf32>, vector<32x32xf32> -> vector<32x32xf32>
    %427 = arith.addf %237, %426 : vector<32x32xf32>
    %c1_155 = arith.constant 1 : index
    %c0_156 = arith.constant 0 : index
    %c0_157 = arith.constant 0 : index
    %428 = vector.load %arg7[%c1_155, %c0_156, %c0_157] : memref<2x1x32xf32, #tpu.memory_space<vmem>>, vector<1x1x32xf32>
    %429 = vector.shape_cast %428 : vector<1x1x32xf32> to vector<1x32xf32>
    %430 = vector.broadcast %429 : vector<1x32xf32> to vector<32x32xf32>
    %431 = arith.addf %427, %430 : vector<32x32xf32>
    %c1_158 = arith.constant 1 : index
    %c0_159 = arith.constant 0 : index
    %c0_160 = arith.constant 0 : index
    %432 = vector.load %arg8[%c1_158, %c0_159, %c0_160] : memref<2x1x32xf32, #tpu.memory_space<vmem>>, vector<1x1x32xf32>
    %433 = vector.shape_cast %432 : vector<1x1x32xf32> to vector<1x32xf32>
    %c1_161 = arith.constant 1 : index
    %c0_162 = arith.constant 0 : index
    %c0_163 = arith.constant 0 : index
    %434 = vector.load %arg9[%c1_161, %c0_162, %c0_163] : memref<2x1x32xf32, #tpu.memory_space<vmem>>, vector<1x1x32xf32>
    %435 = vector.shape_cast %434 : vector<1x1x32xf32> to vector<1x32xf32>
    %cst_164 = arith.constant dense<0.000000e+00> : vector<32xf32>
    %436 = vector.multi_reduction <add>, %431, %cst_164 [1] : vector<32x32xf32> to vector<32xf32>
    %437 = vector.shape_cast %436 : vector<32xf32> to vector<32x1xf32>
    %cst_165 = arith.constant 3.200000e+01 : f32
    %438 = vector.broadcast %cst_165 : f32 to vector<32x1xf32>
    %439 = arith.divf %437, %438 : vector<32x1xf32>
    %440 = vector.broadcast %439 : vector<32x1xf32> to vector<32x32xf32>
    %441 = arith.subf %431, %440 : vector<32x32xf32>
    %442 = arith.mulf %441, %441 : vector<32x32xf32>
    %cst_166 = arith.constant dense<0.000000e+00> : vector<32xf32>
    %443 = vector.multi_reduction <add>, %442, %cst_166 [1] : vector<32x32xf32> to vector<32xf32>
    %444 = vector.shape_cast %443 : vector<32xf32> to vector<32x1xf32>
    %cst_167 = arith.constant 0.0322580636 : f32
    %445 = vector.broadcast %cst_167 : f32 to vector<32x1xf32>
    %446 = arith.mulf %444, %445 : vector<32x1xf32>
    %447 = math.sqrt %446 : vector<32x1xf32>
    %448 = vector.broadcast %433 : vector<1x32xf32> to vector<32x32xf32>
    %449 = arith.mulf %448, %441 : vector<32x32xf32>
    %cst_168 = arith.constant 9.99999997E-7 : f32
    %450 = vector.broadcast %cst_168 : f32 to vector<32x1xf32>
    %451 = arith.addf %447, %450 : vector<32x1xf32>
    %452 = tpu.reciprocal %451 {approx = true} : vector<32x1xf32> -> vector<32x1xf32>
    %453 = vector.broadcast %452 : vector<32x1xf32> to vector<32x32xf32>
    %454 = arith.mulf %449, %453 : vector<32x32xf32>
    %455 = vector.broadcast %435 : vector<1x32xf32> to vector<32x32xf32>
    %456 = arith.addf %454, %455 : vector<32x32xf32>
    %c1_169 = arith.constant 1 : index
    %c0_170 = arith.constant 0 : index
    %c0_171 = arith.constant 0 : index
    %457 = vector.load %arg10[%c1_169, %c0_170, %c0_171] : memref<2x32x64xf32, #tpu.memory_space<vmem>>, vector<1x32x64xf32>
    %458 = vector.shape_cast %457 : vector<1x32x64xf32> to vector<32x64xf32>
    %cst_172 = arith.constant dense<0.000000e+00> : vector<32x64xf32>
    %459 = tpu.matmul %456, %458, %cst_172 {dimension_numbers = #tpu.dot_dimension_numbers<[1], [0], [0], [1], [0, 0, 1, 1], [], []>} : vector<32x32xf32>, vector<32x64xf32>, vector<32x64xf32> -> vector<32x64xf32>
    %c1_173 = arith.constant 1 : index
    %c0_174 = arith.constant 0 : index
    %c0_175 = arith.constant 0 : index
    %460 = vector.load %arg11[%c1_173, %c0_174, %c0_175] : memref<2x1x64xf32, #tpu.memory_space<vmem>>, vector<1x1x64xf32>
    %461 = vector.shape_cast %460 : vector<1x1x64xf32> to vector<1x64xf32>
    %462 = vector.broadcast %461 : vector<1x64xf32> to vector<32x64xf32>
    %463 = arith.addf %459, %462 : vector<32x64xf32>
    %cst_176 = arith.constant 0.000000e+00 : f32
    %464 = vector.broadcast %cst_176 : f32 to vector<32x64xf32>
    %465 = arith.maximumf %463, %464 : vector<32x64xf32>
    %c1_177 = arith.constant 1 : index
    %c0_178 = arith.constant 0 : index
    %c0_179 = arith.constant 0 : index
    %466 = vector.load %arg12[%c1_177, %c0_178, %c0_179] : memref<2x64x32xf32, #tpu.memory_space<vmem>>, vector<1x64x32xf32>
    %467 = vector.shape_cast %466 : vector<1x64x32xf32> to vector<64x32xf32>
    %cst_180 = arith.constant dense<0.000000e+00> : vector<32x32xf32>
    %468 = tpu.matmul %465, %467, %cst_180 {dimension_numbers = #tpu.dot_dimension_numbers<[1], [0], [0], [1], [0, 0, 1, 1], [], []>} : vector<32x64xf32>, vector<64x32xf32>, vector<32x32xf32> -> vector<32x32xf32>
    %469 = arith.addf %431, %468 : vector<32x32xf32>
    %c1_181 = arith.constant 1 : index
    %c0_182 = arith.constant 0 : index
    %c0_183 = arith.constant 0 : index
    %470 = vector.load %arg13[%c1_181, %c0_182, %c0_183] : memref<2x1x32xf32, #tpu.memory_space<vmem>>, vector<1x1x32xf32>
    %471 = vector.shape_cast %470 : vector<1x1x32xf32> to vector<1x32xf32>
    %472 = vector.broadcast %471 : vector<1x32xf32> to vector<32x32xf32>
    %473 = arith.addf %469, %472 : vector<32x32xf32>
    %c0_184 = arith.constant 0 : index
    %c0_185 = arith.constant 0 : index
    %474 = vector.load %arg14[%c0_184, %c0_185] : memref<1x32xf32, #tpu.memory_space<vmem>>, vector<1x32xf32>
    %c0_186 = arith.constant 0 : index
    %c0_187 = arith.constant 0 : index
    %475 = vector.load %arg15[%c0_186, %c0_187] : memref<1x32xf32, #tpu.memory_space<vmem>>, vector<1x32xf32>
    %cst_188 = arith.constant dense<0.000000e+00> : vector<32xf32>
    %476 = vector.multi_reduction <add>, %473, %cst_188 [1] : vector<32x32xf32> to vector<32xf32>
    %477 = vector.shape_cast %476 : vector<32xf32> to vector<32x1xf32>
    %cst_189 = arith.constant 3.200000e+01 : f32
    %478 = vector.broadcast %cst_189 : f32 to vector<32x1xf32>
    %479 = arith.divf %477, %478 : vector<32x1xf32>
    %480 = vector.broadcast %479 : vector<32x1xf32> to vector<32x32xf32>
    %481 = arith.subf %473, %480 : vector<32x32xf32>
    %482 = arith.mulf %481, %481 : vector<32x32xf32>
    %cst_190 = arith.constant dense<0.000000e+00> : vector<32xf32>
    %483 = vector.multi_reduction <add>, %482, %cst_190 [1] : vector<32x32xf32> to vector<32xf32>
    %484 = vector.shape_cast %483 : vector<32xf32> to vector<32x1xf32>
    %cst_191 = arith.constant 0.0322580636 : f32
    %485 = vector.broadcast %cst_191 : f32 to vector<32x1xf32>
    %486 = arith.mulf %484, %485 : vector<32x1xf32>
    %487 = math.sqrt %486 : vector<32x1xf32>
    %488 = vector.broadcast %474 : vector<1x32xf32> to vector<32x32xf32>
    %489 = arith.mulf %488, %481 : vector<32x32xf32>
    %cst_192 = arith.constant 9.99999997E-7 : f32
    %490 = vector.broadcast %cst_192 : f32 to vector<32x1xf32>
    %491 = arith.addf %487, %490 : vector<32x1xf32>
    %492 = tpu.reciprocal %491 {approx = true} : vector<32x1xf32> -> vector<32x1xf32>
    %493 = vector.broadcast %492 : vector<32x1xf32> to vector<32x32xf32>
    %494 = arith.mulf %489, %493 : vector<32x32xf32>
    %495 = vector.broadcast %475 : vector<1x32xf32> to vector<32x32xf32>
    %496 = arith.addf %494, %495 : vector<32x32xf32>
    %c0_193 = arith.constant 0 : index
    %c0_194 = arith.constant 0 : index
    %497 = vector.load %arg16[%c0_193, %c0_194] : memref<32x32xf32, #tpu.memory_space<vmem>>, vector<32x32xf32>
    tpu.vector_store %arg16[%c0_193, %c0_194], %496 {strides = array<i32>} : memref<32x32xf32, #tpu.memory_space<vmem>>, vector<32x32xf32>,
    return
  }
}

module attributes {stable_mosaic.version = 11 : i64} {
  func.func @_decoder_kernel(%arg0: memref<32x32xf32, #tpu.memory_space<vmem>>, %arg1: memref<32x32xf32, #tpu.memory_space<vmem>>, %arg2: memref<2x16x16xf32, #tpu.memory_space<vmem>>, %arg3: memref<2x16x16xf32, #tpu.memory_space<vmem>>, %arg4: memref<2x1x32xf32, #tpu.memory_space<vmem>>, %arg5: memref<2x1x32xf32, #tpu.memory_space<vmem>>, %arg6: memref<2x32x96xf32, #tpu.memory_space<vmem>>, %arg7: memref<2x1x96xf32, #tpu.memory_space<vmem>>, %arg8: memref<2x32x32xf32, #tpu.memory_space<vmem>>, %arg9: memref<2x1x32xf32, #tpu.memory_space<vmem>>, %arg10: memref<2x1x32xf32, #tpu.memory_space<vmem>>, %arg11: memref<2x1x32xf32, #tpu.memory_space<vmem>>, %arg12: memref<2x32x32xf32, #tpu.memory_space<vmem>>, %arg13: memref<2x1x32xf32, #tpu.memory_space<vmem>>, %arg14: memref<2x32x64xf32, #tpu.memory_space<vmem>>, %arg15: memref<2x1x64xf32, #tpu.memory_space<vmem>>, %arg16: memref<2x32x32xf32, #tpu.memory_space<vmem>>, %arg17: memref<2x1x32xf32, #tpu.memory_space<vmem>>, %arg18: memref<2x1x32xf32, #tpu.memory_space<vmem>>, %arg19: memref<2x1x32xf32, #tpu.memory_space<vmem>>, %arg20: memref<2x32x64xf32, #tpu.memory_space<vmem>>, %arg21: memref<2x1x64xf32, #tpu.memory_space<vmem>>, %arg22: memref<2x64x32xf32, #tpu.memory_space<vmem>>, %arg23: memref<2x1x32xf32, #tpu.memory_space<vmem>>, %arg24: memref<1x32xf32, #tpu.memory_space<vmem>>, %arg25: memref<1x32xf32, #tpu.memory_space<vmem>>, %arg26: memref<32x32xf32, #tpu.memory_space<vmem>>) attributes {dimension_semantics = [], scalar_prefetch = 0 : i64, scratch_operands = 0 : i64, tpu.core_type = #tpu.core_type<tc>} {
    %c0 = arith.constant 0 : index
    %c0_0 = arith.constant 0 : index
    %0 = vector.load %arg0[%c0, %c0_0] : memref<32x32xf32, #tpu.memory_space<vmem>>, vector<32x32xf32>
    %c0_1 = arith.constant 0 : index
    %c0_2 = arith.constant 0 : index
    %1 = vector.load %arg1[%c0_1, %c0_2] : memref<32x32xf32, #tpu.memory_space<vmem>>, vector<32x32xf32>
    %c0_3 = arith.constant 0 : index
    %c0_4 = arith.constant 0 : index
    %c0_5 = arith.constant 0 : index
    %2 = vector.load %arg2[%c0_3, %c0_4, %c0_5] : memref<2x16x16xf32, #tpu.memory_space<vmem>>, vector<2x16x16xf32>
    %c0_6 = arith.constant 0 : index
    %c0_7 = arith.constant 0 : index
    %c0_8 = arith.constant 0 : index
    %3 = vector.load %arg3[%c0_6, %c0_7, %c0_8] : memref<2x16x16xf32, #tpu.memory_space<vmem>>, vector<2x16x16xf32>
    %c0_9 = arith.constant 0 : index
    %c0_10 = arith.constant 0 : index
    %c0_11 = arith.constant 0 : index
    %4 = vector.load %arg4[%c0_9, %c0_10, %c0_11] : memref<2x1x32xf32, #tpu.memory_space<vmem>>, vector<1x1x32xf32>
    %5 = vector.shape_cast %4 : vector<1x1x32xf32> to vector<1x32xf32>
    %c0_12 = arith.constant 0 : index
    %c0_13 = arith.constant 0 : index
    %c0_14 = arith.constant 0 : index
    %6 = vector.load %arg5[%c0_12, %c0_13, %c0_14] : memref<2x1x32xf32, #tpu.memory_space<vmem>>, vector<1x1x32xf32>
    %7 = vector.shape_cast %6 : vector<1x1x32xf32> to vector<1x32xf32>
    %cst = arith.constant dense<0.000000e+00> : vector<32xf32>
    %8 = vector.multi_reduction <add>, %0, %cst [1] : vector<32x32xf32> to vector<32xf32>
    %9 = vector.shape_cast %8 : vector<32xf32> to vector<32x1xf32>
    %cst_15 = arith.constant 3.200000e+01 : f32
    %10 = vector.broadcast %cst_15 : f32 to vector<32x1xf32>
    %11 = arith.divf %9, %10 : vector<32x1xf32>
    %12 = vector.broadcast %11 : vector<32x1xf32> to vector<32x32xf32>
    %13 = arith.subf %0, %12 : vector<32x32xf32>
    %14 = arith.mulf %13, %13 : vector<32x32xf32>
    %cst_16 = arith.constant dense<0.000000e+00> : vector<32xf32>
    %15 = vector.multi_reduction <add>, %14, %cst_16 [1] : vector<32x32xf32> to vector<32xf32>
    %16 = vector.shape_cast %15 : vector<32xf32> to vector<32x1xf32>
    %cst_17 = arith.constant 0.0322580636 : f32
    %17 = vector.broadcast %cst_17 : f32 to vector<32x1xf32>
    %18 = arith.mulf %16, %17 : vector<32x1xf32>
    %19 = math.sqrt %18 : vector<32x1xf32>
    %20 = vector.broadcast %5 : vector<1x32xf32> to vector<32x32xf32>
    %21 = arith.mulf %20, %13 : vector<32x32xf32>
    %cst_18 = arith.constant 9.99999997E-7 : f32
    %22 = vector.broadcast %cst_18 : f32 to vector<32x1xf32>
    %23 = arith.addf %19, %22 : vector<32x1xf32>
    %24 = tpu.reciprocal %23 {approx = true} : vector<32x1xf32> -> vector<32x1xf32>
    %25 = vector.broadcast %24 : vector<32x1xf32> to vector<32x32xf32>
    %26 = arith.mulf %21, %25 : vector<32x32xf32>
    %27 = vector.broadcast %7 : vector<1x32xf32> to vector<32x32xf32>
    %28 = arith.addf %26, %27 : vector<32x32xf32>
    %c0_19 = arith.constant 0 : index
    %c0_20 = arith.constant 0 : index
    %c0_21 = arith.constant 0 : index
    %29 = vector.load %arg6[%c0_19, %c0_20, %c0_21] : memref<2x32x96xf32, #tpu.memory_space<vmem>>, vector<1x32x96xf32>
    %30 = vector.shape_cast %29 : vector<1x32x96xf32> to vector<32x96xf32>
    %cst_22 = arith.constant dense<0.000000e+00> : vector<32x96xf32>
    %31 = tpu.matmul %28, %30, %cst_22 {dimension_numbers = #tpu.dot_dimension_numbers<[1], [0], [0], [1], [0, 0, 1, 1], [], []>} : vector<32x32xf32>, vector<32x96xf32>, vector<32x96xf32> -> vector<32x96xf32>
    %c0_23 = arith.constant 0 : index
    %c0_24 = arith.constant 0 : index
    %c0_25 = arith.constant 0 : index
    %32 = vector.load %arg7[%c0_23, %c0_24, %c0_25] : memref<2x1x96xf32, #tpu.memory_space<vmem>>, vector<1x1x96xf32>
    %33 = vector.shape_cast %32 : vector<1x1x96xf32> to vector<1x96xf32>
    %34 = vector.broadcast %33 : vector<1x96xf32> to vector<32x96xf32>
    %35 = arith.addf %31, %34 : vector<32x96xf32>
    %36 = vector.extract_strided_slice %35 {offsets = [0, 0], sizes = [32, 32], strides = [1, 1]} : vector<32x96xf32> to vector<32x32xf32>
    %37 = vector.extract_strided_slice %35 {offsets = [0, 32], sizes = [32, 32], strides = [1, 1]} : vector<32x96xf32> to vector<32x32xf32>
    %38 = vector.extract_strided_slice %35 {offsets = [0, 64], sizes = [32, 32], strides = [1, 1]} : vector<32x96xf32> to vector<32x32xf32>
    %39 = vector.extract_strided_slice %2 {offsets = [0, 0, 0], sizes = [1, 16, 16], strides = [1, 1, 1]} : vector<2x16x16xf32> to vector<1x16x16xf32>
    %40 = vector.shape_cast %39 : vector<1x16x16xf32> to vector<16x16xf32>
    %41 = vector.extract_strided_slice %36 {offsets = [0, 0], sizes = [16, 8], strides = [1, 1]} : vector<32x32xf32> to vector<16x8xf32>
    %42 = vector.extract_strided_slice %37 {offsets = [0, 0], sizes = [16, 8], strides = [1, 1]} : vector<32x32xf32> to vector<16x8xf32>
    %43 = vector.extract_strided_slice %38 {offsets = [0, 0], sizes = [16, 8], strides = [1, 1]} : vector<32x32xf32> to vector<16x8xf32>
    %cst_26 = arith.constant dense<0.000000e+00> : vector<16x16xf32>
    %44 = tpu.matmul %41, %42, %cst_26 {dimension_numbers = #tpu.dot_dimension_numbers<[1], [1], [0], [0], [0, 0, 1, 0], [], []>} : vector<16x8xf32>, vector<16x8xf32>, vector<16x16xf32> -> vector<16x16xf32>
    %cst_27 = arith.constant 0.353553385 : f32
    %45 = vector.broadcast %cst_27 : f32 to vector<16x16xf32>
    %46 = arith.mulf %44, %45 : vector<16x16xf32>
    %47 = arith.addf %46, %40 : vector<16x16xf32>
    %cst_28 = arith.constant dense<0xFF800000> : vector<16xf32>
    %48 = vector.multi_reduction <maximumf>, %47, %cst_28 [1] : vector<16x16xf32> to vector<16xf32>
    %49 = vector.shape_cast %48 : vector<16xf32> to vector<16x1xf32>
    %50 = vector.broadcast %49 : vector<16x1xf32> to vector<16x16xf32>
    %51 = arith.subf %47, %50 : vector<16x16xf32>
    %52 = math.exp %51 : vector<16x16xf32>
    %cst_29 = arith.constant dense<0.000000e+00> : vector<16xf32>
    %53 = vector.multi_reduction <add>, %52, %cst_29 [1] : vector<16x16xf32> to vector<16xf32>
    %54 = vector.shape_cast %53 : vector<16xf32> to vector<16x1xf32>
    %55 = tpu.reciprocal %54 {approx = true} : vector<16x1xf32> -> vector<16x1xf32>
    %56 = vector.broadcast %55 : vector<16x1xf32> to vector<16x16xf32>
    %57 = arith.mulf %52, %56 : vector<16x16xf32>
    %cst_30 = arith.constant dense<0.000000e+00> : vector<16x8xf32>
    %58 = tpu.matmul %57, %43, %cst_30 {dimension_numbers = #tpu.dot_dimension_numbers<[1], [0], [0], [1], [0, 0, 1, 1], [], []>} : vector<16x16xf32>, vector<16x8xf32>, vector<16x8xf32> -> vector<16x8xf32>
    %59 = vector.extract_strided_slice %36 {offsets = [0, 8], sizes = [16, 8], strides = [1, 1]} : vector<32x32xf32> to vector<16x8xf32>
    %60 = vector.extract_strided_slice %37 {offsets = [0, 8], sizes = [16, 8], strides = [1, 1]} : vector<32x32xf32> to vector<16x8xf32>
    %61 = vector.extract_strided_slice %38 {offsets = [0, 8], sizes = [16, 8], strides = [1, 1]} : vector<32x32xf32> to vector<16x8xf32>
    %cst_31 = arith.constant dense<0.000000e+00> : vector<16x16xf32>
    %62 = tpu.matmul %59, %60, %cst_31 {dimension_numbers = #tpu.dot_dimension_numbers<[1], [1], [0], [0], [0, 0, 1, 0], [], []>} : vector<16x8xf32>, vector<16x8xf32>, vector<16x16xf32> -> vector<16x16xf32>
    %cst_32 = arith.constant 0.353553385 : f32
    %63 = vector.broadcast %cst_32 : f32 to vector<16x16xf32>
    %64 = arith.mulf %62, %63 : vector<16x16xf32>
    %65 = arith.addf %64, %40 : vector<16x16xf32>
    %cst_33 = arith.constant dense<0xFF800000> : vector<16xf32>
    %66 = vector.multi_reduction <maximumf>, %65, %cst_33 [1] : vector<16x16xf32> to vector<16xf32>
    %67 = vector.shape_cast %66 : vector<16xf32> to vector<16x1xf32>
    %68 = vector.broadcast %67 : vector<16x1xf32> to vector<16x16xf32>
    %69 = arith.subf %65, %68 : vector<16x16xf32>
    %70 = math.exp %69 : vector<16x16xf32>
    %cst_34 = arith.constant dense<0.000000e+00> : vector<16xf32>
    %71 = vector.multi_reduction <add>, %70, %cst_34 [1] : vector<16x16xf32> to vector<16xf32>
    %72 = vector.shape_cast %71 : vector<16xf32> to vector<16x1xf32>
    %73 = tpu.reciprocal %72 {approx = true} : vector<16x1xf32> -> vector<16x1xf32>
    %74 = vector.broadcast %73 : vector<16x1xf32> to vector<16x16xf32>
    %75 = arith.mulf %70, %74 : vector<16x16xf32>
    %cst_35 = arith.constant dense<0.000000e+00> : vector<16x8xf32>
    %76 = tpu.matmul %75, %61, %cst_35 {dimension_numbers = #tpu.dot_dimension_numbers<[1], [0], [0], [1], [0, 0, 1, 1], [], []>} : vector<16x16xf32>, vector<16x8xf32>, vector<16x8xf32> -> vector<16x8xf32>
    %77 = vector.extract_strided_slice %36 {offsets = [0, 16], sizes = [16, 8], strides = [1, 1]} : vector<32x32xf32> to vector<16x8xf32>
    %78 = vector.extract_strided_slice %37 {offsets = [0, 16], sizes = [16, 8], strides = [1, 1]} : vector<32x32xf32> to vector<16x8xf32>
    %79 = vector.extract_strided_slice %38 {offsets = [0, 16], sizes = [16, 8], strides = [1, 1]} : vector<32x32xf32> to vector<16x8xf32>
    %cst_36 = arith.constant dense<0.000000e+00> : vector<16x16xf32>
    %80 = tpu.matmul %77, %78, %cst_36 {dimension_numbers = #tpu.dot_dimension_numbers<[1], [1], [0], [0], [0, 0, 1, 0], [], []>} : vector<16x8xf32>, vector<16x8xf32>, vector<16x16xf32> -> vector<16x16xf32>
    %cst_37 = arith.constant 0.353553385 : f32
    %81 = vector.broadcast %cst_37 : f32 to vector<16x16xf32>
    %82 = arith.mulf %80, %81 : vector<16x16xf32>
    %83 = arith.addf %82, %40 : vector<16x16xf32>
    %cst_38 = arith.constant dense<0xFF800000> : vector<16xf32>
    %84 = vector.multi_reduction <maximumf>, %83, %cst_38 [1] : vector<16x16xf32> to vector<16xf32>
    %85 = vector.shape_cast %84 : vector<16xf32> to vector<16x1xf32>
    %86 = vector.broadcast %85 : vector<16x1xf32> to vector<16x16xf32>
    %87 = arith.subf %83, %86 : vector<16x16xf32>
    %88 = math.exp %87 : vector<16x16xf32>
    %cst_39 = arith.constant dense<0.000000e+00> : vector<16xf32>
    %89 = vector.multi_reduction <add>, %88, %cst_39 [1] : vector<16x16xf32> to vector<16xf32>
    %90 = vector.shape_cast %89 : vector<16xf32> to vector<16x1xf32>
    %91 = tpu.reciprocal %90 {approx = true} : vector<16x1xf32> -> vector<16x1xf32>
    %92 = vector.broadcast %91 : vector<16x1xf32> to vector<16x16xf32>
    %93 = arith.mulf %88, %92 : vector<16x16xf32>
    %cst_40 = arith.constant dense<0.000000e+00> : vector<16x8xf32>
    %94 = tpu.matmul %93, %79, %cst_40 {dimension_numbers = #tpu.dot_dimension_numbers<[1], [0], [0], [1], [0, 0, 1, 1], [], []>} : vector<16x16xf32>, vector<16x8xf32>, vector<16x8xf32> -> vector<16x8xf32>
    %95 = vector.extract_strided_slice %36 {offsets = [0, 24], sizes = [16, 8], strides = [1, 1]} : vector<32x32xf32> to vector<16x8xf32>
    %96 = vector.extract_strided_slice %37 {offsets = [0, 24], sizes = [16, 8], strides = [1, 1]} : vector<32x32xf32> to vector<16x8xf32>
    %97 = vector.extract_strided_slice %38 {offsets = [0, 24], sizes = [16, 8], strides = [1, 1]} : vector<32x32xf32> to vector<16x8xf32>
    %cst_41 = arith.constant dense<0.000000e+00> : vector<16x16xf32>
    %98 = tpu.matmul %95, %96, %cst_41 {dimension_numbers = #tpu.dot_dimension_numbers<[1], [1], [0], [0], [0, 0, 1, 0], [], []>} : vector<16x8xf32>, vector<16x8xf32>, vector<16x16xf32> -> vector<16x16xf32>
    %cst_42 = arith.constant 0.353553385 : f32
    %99 = vector.broadcast %cst_42 : f32 to vector<16x16xf32>
    %100 = arith.mulf %98, %99 : vector<16x16xf32>
    %101 = arith.addf %100, %40 : vector<16x16xf32>
    %cst_43 = arith.constant dense<0xFF800000> : vector<16xf32>
    %102 = vector.multi_reduction <maximumf>, %101, %cst_43 [1] : vector<16x16xf32> to vector<16xf32>
    %103 = vector.shape_cast %102 : vector<16xf32> to vector<16x1xf32>
    %104 = vector.broadcast %103 : vector<16x1xf32> to vector<16x16xf32>
    %105 = arith.subf %101, %104 : vector<16x16xf32>
    %106 = math.exp %105 : vector<16x16xf32>
    %cst_44 = arith.constant dense<0.000000e+00> : vector<16xf32>
    %107 = vector.multi_reduction <add>, %106, %cst_44 [1] : vector<16x16xf32> to vector<16xf32>
    %108 = vector.shape_cast %107 : vector<16xf32> to vector<16x1xf32>
    %109 = tpu.reciprocal %108 {approx = true} : vector<16x1xf32> -> vector<16x1xf32>
    %110 = vector.broadcast %109 : vector<16x1xf32> to vector<16x16xf32>
    %111 = arith.mulf %106, %110 : vector<16x16xf32>
    %cst_45 = arith.constant dense<0.000000e+00> : vector<16x8xf32>
    %112 = tpu.matmul %111, %97, %cst_45 {dimension_numbers = #tpu.dot_dimension_numbers<[1], [0], [0], [1], [0, 0, 1, 1], [], []>} : vector<16x16xf32>, vector<16x8xf32>, vector<16x8xf32> -> vector<16x8xf32>
    %113 = tpu.concatenate %58, %76, %94, %112 in 1 : vector<16x8xf32>, vector<16x8xf32>, vector<16x8xf32>, vector<16x8xf32> -> vector<16x32xf32>
    %114 = vector.extract_strided_slice %2 {offsets = [1, 0, 0], sizes = [1, 16, 16], strides = [1, 1, 1]} : vector<2x16x16xf32> to vector<1x16x16xf32>
    %115 = vector.shape_cast %114 : vector<1x16x16xf32> to vector<16x16xf32>
    %116 = vector.extract_strided_slice %36 {offsets = [16, 0], sizes = [16, 8], strides = [1, 1]} : vector<32x32xf32> to vector<16x8xf32>
    %117 = vector.extract_strided_slice %37 {offsets = [16, 0], sizes = [16, 8], strides = [1, 1]} : vector<32x32xf32> to vector<16x8xf32>
    %118 = vector.extract_strided_slice %38 {offsets = [16, 0], sizes = [16, 8], strides = [1, 1]} : vector<32x32xf32> to vector<16x8xf32>
    %cst_46 = arith.constant dense<0.000000e+00> : vector<16x16xf32>
    %119 = tpu.matmul %116, %117, %cst_46 {dimension_numbers = #tpu.dot_dimension_numbers<[1], [1], [0], [0], [0, 0, 1, 0], [], []>} : vector<16x8xf32>, vector<16x8xf32>, vector<16x16xf32> -> vector<16x16xf32>
    %cst_47 = arith.constant 0.353553385 : f32
    %120 = vector.broadcast %cst_47 : f32 to vector<16x16xf32>
    %121 = arith.mulf %119, %120 : vector<16x16xf32>
    %122 = arith.addf %121, %115 : vector<16x16xf32>
    %cst_48 = arith.constant dense<0xFF800000> : vector<16xf32>
    %123 = vector.multi_reduction <maximumf>, %122, %cst_48 [1] : vector<16x16xf32> to vector<16xf32>
    %124 = vector.shape_cast %123 : vector<16xf32> to vector<16x1xf32>
    %125 = vector.broadcast %124 : vector<16x1xf32> to vector<16x16xf32>
    %126 = arith.subf %122, %125 : vector<16x16xf32>
    %127 = math.exp %126 : vector<16x16xf32>
    %cst_49 = arith.constant dense<0.000000e+00> : vector<16xf32>
    %128 = vector.multi_reduction <add>, %127, %cst_49 [1] : vector<16x16xf32> to vector<16xf32>
    %129 = vector.shape_cast %128 : vector<16xf32> to vector<16x1xf32>
    %130 = tpu.reciprocal %129 {approx = true} : vector<16x1xf32> -> vector<16x1xf32>
    %131 = vector.broadcast %130 : vector<16x1xf32> to vector<16x16xf32>
    %132 = arith.mulf %127, %131 : vector<16x16xf32>
    %cst_50 = arith.constant dense<0.000000e+00> : vector<16x8xf32>
    %133 = tpu.matmul %132, %118, %cst_50 {dimension_numbers = #tpu.dot_dimension_numbers<[1], [0], [0], [1], [0, 0, 1, 1], [], []>} : vector<16x16xf32>, vector<16x8xf32>, vector<16x8xf32> -> vector<16x8xf32>
    %134 = vector.extract_strided_slice %36 {offsets = [16, 8], sizes = [16, 8], strides = [1, 1]} : vector<32x32xf32> to vector<16x8xf32>
    %135 = vector.extract_strided_slice %37 {offsets = [16, 8], sizes = [16, 8], strides = [1, 1]} : vector<32x32xf32> to vector<16x8xf32>
    %136 = vector.extract_strided_slice %38 {offsets = [16, 8], sizes = [16, 8], strides = [1, 1]} : vector<32x32xf32> to vector<16x8xf32>
    %cst_51 = arith.constant dense<0.000000e+00> : vector<16x16xf32>
    %137 = tpu.matmul %134, %135, %cst_51 {dimension_numbers = #tpu.dot_dimension_numbers<[1], [1], [0], [0], [0, 0, 1, 0], [], []>} : vector<16x8xf32>, vector<16x8xf32>, vector<16x16xf32> -> vector<16x16xf32>
    %cst_52 = arith.constant 0.353553385 : f32
    %138 = vector.broadcast %cst_52 : f32 to vector<16x16xf32>
    %139 = arith.mulf %137, %138 : vector<16x16xf32>
    %140 = arith.addf %139, %115 : vector<16x16xf32>
    %cst_53 = arith.constant dense<0xFF800000> : vector<16xf32>
    %141 = vector.multi_reduction <maximumf>, %140, %cst_53 [1] : vector<16x16xf32> to vector<16xf32>
    %142 = vector.shape_cast %141 : vector<16xf32> to vector<16x1xf32>
    %143 = vector.broadcast %142 : vector<16x1xf32> to vector<16x16xf32>
    %144 = arith.subf %140, %143 : vector<16x16xf32>
    %145 = math.exp %144 : vector<16x16xf32>
    %cst_54 = arith.constant dense<0.000000e+00> : vector<16xf32>
    %146 = vector.multi_reduction <add>, %145, %cst_54 [1] : vector<16x16xf32> to vector<16xf32>
    %147 = vector.shape_cast %146 : vector<16xf32> to vector<16x1xf32>
    %148 = tpu.reciprocal %147 {approx = true} : vector<16x1xf32> -> vector<16x1xf32>
    %149 = vector.broadcast %148 : vector<16x1xf32> to vector<16x16xf32>
    %150 = arith.mulf %145, %149 : vector<16x16xf32>
    %cst_55 = arith.constant dense<0.000000e+00> : vector<16x8xf32>
    %151 = tpu.matmul %150, %136, %cst_55 {dimension_numbers = #tpu.dot_dimension_numbers<[1], [0], [0], [1], [0, 0, 1, 1], [], []>} : vector<16x16xf32>, vector<16x8xf32>, vector<16x8xf32> -> vector<16x8xf32>
    %152 = vector.extract_strided_slice %36 {offsets = [16, 16], sizes = [16, 8], strides = [1, 1]} : vector<32x32xf32> to vector<16x8xf32>
    %153 = vector.extract_strided_slice %37 {offsets = [16, 16], sizes = [16, 8], strides = [1, 1]} : vector<32x32xf32> to vector<16x8xf32>
    %154 = vector.extract_strided_slice %38 {offsets = [16, 16], sizes = [16, 8], strides = [1, 1]} : vector<32x32xf32> to vector<16x8xf32>
    %cst_56 = arith.constant dense<0.000000e+00> : vector<16x16xf32>
    %155 = tpu.matmul %152, %153, %cst_56 {dimension_numbers = #tpu.dot_dimension_numbers<[1], [1], [0], [0], [0, 0, 1, 0], [], []>} : vector<16x8xf32>, vector<16x8xf32>, vector<16x16xf32> -> vector<16x16xf32>
    %cst_57 = arith.constant 0.353553385 : f32
    %156 = vector.broadcast %cst_57 : f32 to vector<16x16xf32>
    %157 = arith.mulf %155, %156 : vector<16x16xf32>
    %158 = arith.addf %157, %115 : vector<16x16xf32>
    %cst_58 = arith.constant dense<0xFF800000> : vector<16xf32>
    %159 = vector.multi_reduction <maximumf>, %158, %cst_58 [1] : vector<16x16xf32> to vector<16xf32>
    %160 = vector.shape_cast %159 : vector<16xf32> to vector<16x1xf32>
    %161 = vector.broadcast %160 : vector<16x1xf32> to vector<16x16xf32>
    %162 = arith.subf %158, %161 : vector<16x16xf32>
    %163 = math.exp %162 : vector<16x16xf32>
    %cst_59 = arith.constant dense<0.000000e+00> : vector<16xf32>
    %164 = vector.multi_reduction <add>, %163, %cst_59 [1] : vector<16x16xf32> to vector<16xf32>
    %165 = vector.shape_cast %164 : vector<16xf32> to vector<16x1xf32>
    %166 = tpu.reciprocal %165 {approx = true} : vector<16x1xf32> -> vector<16x1xf32>
    %167 = vector.broadcast %166 : vector<16x1xf32> to vector<16x16xf32>
    %168 = arith.mulf %163, %167 : vector<16x16xf32>
    %cst_60 = arith.constant dense<0.000000e+00> : vector<16x8xf32>
    %169 = tpu.matmul %168, %154, %cst_60 {dimension_numbers = #tpu.dot_dimension_numbers<[1], [0], [0], [1], [0, 0, 1, 1], [], []>} : vector<16x16xf32>, vector<16x8xf32>, vector<16x8xf32> -> vector<16x8xf32>
    %170 = vector.extract_strided_slice %36 {offsets = [16, 24], sizes = [16, 8], strides = [1, 1]} : vector<32x32xf32> to vector<16x8xf32>
    %171 = vector.extract_strided_slice %37 {offsets = [16, 24], sizes = [16, 8], strides = [1, 1]} : vector<32x32xf32> to vector<16x8xf32>
    %172 = vector.extract_strided_slice %38 {offsets = [16, 24], sizes = [16, 8], strides = [1, 1]} : vector<32x32xf32> to vector<16x8xf32>
    %cst_61 = arith.constant dense<0.000000e+00> : vector<16x16xf32>
    %173 = tpu.matmul %170, %171, %cst_61 {dimension_numbers = #tpu.dot_dimension_numbers<[1], [1], [0], [0], [0, 0, 1, 0], [], []>} : vector<16x8xf32>, vector<16x8xf32>, vector<16x16xf32> -> vector<16x16xf32>
    %cst_62 = arith.constant 0.353553385 : f32
    %174 = vector.broadcast %cst_62 : f32 to vector<16x16xf32>
    %175 = arith.mulf %173, %174 : vector<16x16xf32>
    %176 = arith.addf %175, %115 : vector<16x16xf32>
    %cst_63 = arith.constant dense<0xFF800000> : vector<16xf32>
    %177 = vector.multi_reduction <maximumf>, %176, %cst_63 [1] : vector<16x16xf32> to vector<16xf32>
    %178 = vector.shape_cast %177 : vector<16xf32> to vector<16x1xf32>
    %179 = vector.broadcast %178 : vector<16x1xf32> to vector<16x16xf32>
    %180 = arith.subf %176, %179 : vector<16x16xf32>
    %181 = math.exp %180 : vector<16x16xf32>
    %cst_64 = arith.constant dense<0.000000e+00> : vector<16xf32>
    %182 = vector.multi_reduction <add>, %181, %cst_64 [1] : vector<16x16xf32> to vector<16xf32>
    %183 = vector.shape_cast %182 : vector<16xf32> to vector<16x1xf32>
    %184 = tpu.reciprocal %183 {approx = true} : vector<16x1xf32> -> vector<16x1xf32>
    %185 = vector.broadcast %184 : vector<16x1xf32> to vector<16x16xf32>
    %186 = arith.mulf %181, %185 : vector<16x16xf32>
    %cst_65 = arith.constant dense<0.000000e+00> : vector<16x8xf32>
    %187 = tpu.matmul %186, %172, %cst_65 {dimension_numbers = #tpu.dot_dimension_numbers<[1], [0], [0], [1], [0, 0, 1, 1], [], []>} : vector<16x16xf32>, vector<16x8xf32>, vector<16x8xf32> -> vector<16x8xf32>
    %188 = tpu.concatenate %133, %151, %169, %187 in 1 : vector<16x8xf32>, vector<16x8xf32>, vector<16x8xf32>, vector<16x8xf32> -> vector<16x32xf32>
    %189 = tpu.concatenate %113, %188 in 0 : vector<16x32xf32>, vector<16x32xf32> -> vector<32x32xf32>
    %c0_66 = arith.constant 0 : index
    %c0_67 = arith.constant 0 : index
    %c0_68 = arith.constant 0 : index
    %190 = vector.load %arg8[%c0_66, %c0_67, %c0_68] : memref<2x32x32xf32, #tpu.memory_space<vmem>>, vector<1x32x32xf32>
    %191 = vector.shape_cast %190 : vector<1x32x32xf32> to vector<32x32xf32>
    %cst_69 = arith.constant dense<0.000000e+00> : vector<32x32xf32>
    %192 = tpu.matmul %189, %191, %cst_69 {dimension_numbers = #tpu.dot_dimension_numbers<[1], [0], [0], [1], [0, 0, 1, 1], [], []>} : vector<32x32xf32>, vector<32x32xf32>, vector<32x32xf32> -> vector<32x32xf32>
    %193 = arith.addf %0, %192 : vector<32x32xf32>
    %c0_70 = arith.constant 0 : index
    %c0_71 = arith.constant 0 : index
    %c0_72 = arith.constant 0 : index
    %194 = vector.load %arg9[%c0_70, %c0_71, %c0_72] : memref<2x1x32xf32, #tpu.memory_space<vmem>>, vector<1x1x32xf32>
    %195 = vector.shape_cast %194 : vector<1x1x32xf32> to vector<1x32xf32>
    %196 = vector.broadcast %195 : vector<1x32xf32> to vector<32x32xf32>
    %197 = arith.addf %193, %196 : vector<32x32xf32>
    %c0_73 = arith.constant 0 : index
    %c0_74 = arith.constant 0 : index
    %c0_75 = arith.constant 0 : index
    %198 = vector.load %arg10[%c0_73, %c0_74, %c0_75] : memref<2x1x32xf32, #tpu.memory_space<vmem>>, vector<1x1x32xf32>
    %199 = vector.shape_cast %198 : vector<1x1x32xf32> to vector<1x32xf32>
    %c0_76 = arith.constant 0 : index
    %c0_77 = arith.constant 0 : index
    %c0_78 = arith.constant 0 : index
    %200 = vector.load %arg11[%c0_76, %c0_77, %c0_78] : memref<2x1x32xf32, #tpu.memory_space<vmem>>, vector<1x1x32xf32>
    %201 = vector.shape_cast %200 : vector<1x1x32xf32> to vector<1x32xf32>
    %cst_79 = arith.constant dense<0.000000e+00> : vector<32xf32>
    %202 = vector.multi_reduction <add>, %197, %cst_79 [1] : vector<32x32xf32> to vector<32xf32>
    %203 = vector.shape_cast %202 : vector<32xf32> to vector<32x1xf32>
    %cst_80 = arith.constant 3.200000e+01 : f32
    %204 = vector.broadcast %cst_80 : f32 to vector<32x1xf32>
    %205 = arith.divf %203, %204 : vector<32x1xf32>
    %206 = vector.broadcast %205 : vector<32x1xf32> to vector<32x32xf32>
    %207 = arith.subf %197, %206 : vector<32x32xf32>
    %208 = arith.mulf %207, %207 : vector<32x32xf32>
    %cst_81 = arith.constant dense<0.000000e+00> : vector<32xf32>
    %209 = vector.multi_reduction <add>, %208, %cst_81 [1] : vector<32x32xf32> to vector<32xf32>
    %210 = vector.shape_cast %209 : vector<32xf32> to vector<32x1xf32>
    %cst_82 = arith.constant 0.0322580636 : f32
    %211 = vector.broadcast %cst_82 : f32 to vector<32x1xf32>
    %212 = arith.mulf %210, %211 : vector<32x1xf32>
    %213 = math.sqrt %212 : vector<32x1xf32>
    %214 = vector.broadcast %199 : vector<1x32xf32> to vector<32x32xf32>
    %215 = arith.mulf %214, %207 : vector<32x32xf32>
    %cst_83 = arith.constant 9.99999997E-7 : f32
    %216 = vector.broadcast %cst_83 : f32 to vector<32x1xf32>
    %217 = arith.addf %213, %216 : vector<32x1xf32>
    %218 = tpu.reciprocal %217 {approx = true} : vector<32x1xf32> -> vector<32x1xf32>
    %219 = vector.broadcast %218 : vector<32x1xf32> to vector<32x32xf32>
    %220 = arith.mulf %215, %219 : vector<32x32xf32>
    %221 = vector.broadcast %201 : vector<1x32xf32> to vector<32x32xf32>
    %222 = arith.addf %220, %221 : vector<32x32xf32>
    %c0_84 = arith.constant 0 : index
    %c0_85 = arith.constant 0 : index
    %c0_86 = arith.constant 0 : index
    %223 = vector.load %arg12[%c0_84, %c0_85, %c0_86] : memref<2x32x32xf32, #tpu.memory_space<vmem>>, vector<1x32x32xf32>
    %224 = vector.shape_cast %223 : vector<1x32x32xf32> to vector<32x32xf32>
    %cst_87 = arith.constant dense<0.000000e+00> : vector<32x32xf32>
    %225 = tpu.matmul %222, %224, %cst_87 {dimension_numbers = #tpu.dot_dimension_numbers<[1], [0], [0], [1], [0, 0, 1, 1], [], []>} : vector<32x32xf32>, vector<32x32xf32>, vector<32x32xf32> -> vector<32x32xf32>
    %c0_88 = arith.constant 0 : index
    %c0_89 = arith.constant 0 : index
    %c0_90 = arith.constant 0 : index
    %226 = vector.load %arg13[%c0_88, %c0_89, %c0_90] : memref<2x1x32xf32, #tpu.memory_space<vmem>>, vector<1x1x32xf32>
    %227 = vector.shape_cast %226 : vector<1x1x32xf32> to vector<1x32xf32>
    %228 = vector.broadcast %227 : vector<1x32xf32> to vector<32x32xf32>
    %229 = arith.addf %225, %228 : vector<32x32xf32>
    %c0_91 = arith.constant 0 : index
    %c0_92 = arith.constant 0 : index
    %c0_93 = arith.constant 0 : index
    %230 = vector.load %arg14[%c0_91, %c0_92, %c0_93] : memref<2x32x64xf32, #tpu.memory_space<vmem>>, vector<1x32x64xf32>
    %231 = vector.shape_cast %230 : vector<1x32x64xf32> to vector<32x64xf32>
    %cst_94 = arith.constant dense<0.000000e+00> : vector<32x64xf32>
    %232 = tpu.matmul %1, %231, %cst_94 {dimension_numbers = #tpu.dot_dimension_numbers<[1], [0], [0], [1], [0, 0, 1, 1], [], []>} : vector<32x32xf32>, vector<32x64xf32>, vector<32x64xf32> -> vector<32x64xf32>
    %c0_95 = arith.constant 0 : index
    %c0_96 = arith.constant 0 : index
    %c0_97 = arith.constant 0 : index
    %233 = vector.load %arg15[%c0_95, %c0_96, %c0_97] : memref<2x1x64xf32, #tpu.memory_space<vmem>>, vector<1x1x64xf32>
    %234 = vector.shape_cast %233 : vector<1x1x64xf32> to vector<1x64xf32>
    %235 = vector.broadcast %234 : vector<1x64xf32> to vector<32x64xf32>
    %236 = arith.addf %232, %235 : vector<32x64xf32>
    %237 = vector.extract_strided_slice %236 {offsets = [0, 0], sizes = [32, 32], strides = [1, 1]} : vector<32x64xf32> to vector<32x32xf32>
    %238 = vector.extract_strided_slice %236 {offsets = [0, 32], sizes = [32, 32], strides = [1, 1]} : vector<32x64xf32> to vector<32x32xf32>
    %239 = vector.extract_strided_slice %3 {offsets = [0, 0, 0], sizes = [1, 16, 16], strides = [1, 1, 1]} : vector<2x16x16xf32> to vector<1x16x16xf32>
    %240 = vector.shape_cast %239 : vector<1x16x16xf32> to vector<16x16xf32>
    %241 = vector.extract_strided_slice %229 {offsets = [0, 0], sizes = [16, 8], strides = [1, 1]} : vector<32x32xf32> to vector<16x8xf32>
    %242 = vector.extract_strided_slice %237 {offsets = [0, 0], sizes = [16, 8], strides = [1, 1]} : vector<32x32xf32> to vector<16x8xf32>
    %243 = vector.extract_strided_slice %238 {offsets = [0, 0], sizes = [16, 8], strides = [1, 1]} : vector<32x32xf32> to vector<16x8xf32>
    %cst_98 = arith.constant dense<0.000000e+00> : vector<16x16xf32>
    %244 = tpu.matmul %241, %242, %cst_98 {dimension_numbers = #tpu.dot_dimension_numbers<[1], [1], [0], [0], [0, 0, 1, 0], [], []>} : vector<16x8xf32>, vector<16x8xf32>, vector<16x16xf32> -> vector<16x16xf32>
    %cst_99 = arith.constant 0.353553385 : f32
    %245 = vector.broadcast %cst_99 : f32 to vector<16x16xf32>
    %246 = arith.mulf %244, %245 : vector<16x16xf32>
    %247 = arith.addf %246, %240 : vector<16x16xf32>
    %cst_100 = arith.constant dense<0xFF800000> : vector<16xf32>
    %248 = vector.multi_reduction <maximumf>, %247, %cst_100 [1] : vector<16x16xf32> to vector<16xf32>
    %249 = vector.shape_cast %248 : vector<16xf32> to vector<16x1xf32>
    %250 = vector.broadcast %249 : vector<16x1xf32> to vector<16x16xf32>
    %251 = arith.subf %247, %250 : vector<16x16xf32>
    %252 = math.exp %251 : vector<16x16xf32>
    %cst_101 = arith.constant dense<0.000000e+00> : vector<16xf32>
    %253 = vector.multi_reduction <add>, %252, %cst_101 [1] : vector<16x16xf32> to vector<16xf32>
    %254 = vector.shape_cast %253 : vector<16xf32> to vector<16x1xf32>
    %255 = tpu.reciprocal %254 {approx = true} : vector<16x1xf32> -> vector<16x1xf32>
    %256 = vector.broadcast %255 : vector<16x1xf32> to vector<16x16xf32>
    %257 = arith.mulf %252, %256 : vector<16x16xf32>
    %cst_102 = arith.constant dense<0.000000e+00> : vector<16x8xf32>
    %258 = tpu.matmul %257, %243, %cst_102 {dimension_numbers = #tpu.dot_dimension_numbers<[1], [0], [0], [1], [0, 0, 1, 1], [], []>} : vector<16x16xf32>, vector<16x8xf32>, vector<16x8xf32> -> vector<16x8xf32>
    %259 = vector.extract_strided_slice %229 {offsets = [0, 8], sizes = [16, 8], strides = [1, 1]} : vector<32x32xf32> to vector<16x8xf32>
    %260 = vector.extract_strided_slice %237 {offsets = [0, 8], sizes = [16, 8], strides = [1, 1]} : vector<32x32xf32> to vector<16x8xf32>
    %261 = vector.extract_strided_slice %238 {offsets = [0, 8], sizes = [16, 8], strides = [1, 1]} : vector<32x32xf32> to vector<16x8xf32>
    %cst_103 = arith.constant dense<0.000000e+00> : vector<16x16xf32>
    %262 = tpu.matmul %259, %260, %cst_103 {dimension_numbers = #tpu.dot_dimension_numbers<[1], [1], [0], [0], [0, 0, 1, 0], [], []>} : vector<16x8xf32>, vector<16x8xf32>, vector<16x16xf32> -> vector<16x16xf32>
    %cst_104 = arith.constant 0.353553385 : f32
    %263 = vector.broadcast %cst_104 : f32 to vector<16x16xf32>
    %264 = arith.mulf %262, %263 : vector<16x16xf32>
    %265 = arith.addf %264, %240 : vector<16x16xf32>
    %cst_105 = arith.constant dense<0xFF800000> : vector<16xf32>
    %266 = vector.multi_reduction <maximumf>, %265, %cst_105 [1] : vector<16x16xf32> to vector<16xf32>
    %267 = vector.shape_cast %266 : vector<16xf32> to vector<16x1xf32>
    %268 = vector.broadcast %267 : vector<16x1xf32> to vector<16x16xf32>
    %269 = arith.subf %265, %268 : vector<16x16xf32>
    %270 = math.exp %269 : vector<16x16xf32>
    %cst_106 = arith.constant dense<0.000000e+00> : vector<16xf32>
    %271 = vector.multi_reduction <add>, %270, %cst_106 [1] : vector<16x16xf32> to vector<16xf32>
    %272 = vector.shape_cast %271 : vector<16xf32> to vector<16x1xf32>
    %273 = tpu.reciprocal %272 {approx = true} : vector<16x1xf32> -> vector<16x1xf32>
    %274 = vector.broadcast %273 : vector<16x1xf32> to vector<16x16xf32>
    %275 = arith.mulf %270, %274 : vector<16x16xf32>
    %cst_107 = arith.constant dense<0.000000e+00> : vector<16x8xf32>
    %276 = tpu.matmul %275, %261, %cst_107 {dimension_numbers = #tpu.dot_dimension_numbers<[1], [0], [0], [1], [0, 0, 1, 1], [], []>} : vector<16x16xf32>, vector<16x8xf32>, vector<16x8xf32> -> vector<16x8xf32>
    %277 = vector.extract_strided_slice %229 {offsets = [0, 16], sizes = [16, 8], strides = [1, 1]} : vector<32x32xf32> to vector<16x8xf32>
    %278 = vector.extract_strided_slice %237 {offsets = [0, 16], sizes = [16, 8], strides = [1, 1]} : vector<32x32xf32> to vector<16x8xf32>
    %279 = vector.extract_strided_slice %238 {offsets = [0, 16], sizes = [16, 8], strides = [1, 1]} : vector<32x32xf32> to vector<16x8xf32>
    %cst_108 = arith.constant dense<0.000000e+00> : vector<16x16xf32>
    %280 = tpu.matmul %277, %278, %cst_108 {dimension_numbers = #tpu.dot_dimension_numbers<[1], [1], [0], [0], [0, 0, 1, 0], [], []>} : vector<16x8xf32>, vector<16x8xf32>, vector<16x16xf32> -> vector<16x16xf32>
    %cst_109 = arith.constant 0.353553385 : f32
    %281 = vector.broadcast %cst_109 : f32 to vector<16x16xf32>
    %282 = arith.mulf %280, %281 : vector<16x16xf32>
    %283 = arith.addf %282, %240 : vector<16x16xf32>
    %cst_110 = arith.constant dense<0xFF800000> : vector<16xf32>
    %284 = vector.multi_reduction <maximumf>, %283, %cst_110 [1] : vector<16x16xf32> to vector<16xf32>
    %285 = vector.shape_cast %284 : vector<16xf32> to vector<16x1xf32>
    %286 = vector.broadcast %285 : vector<16x1xf32> to vector<16x16xf32>
    %287 = arith.subf %283, %286 : vector<16x16xf32>
    %288 = math.exp %287 : vector<16x16xf32>
    %cst_111 = arith.constant dense<0.000000e+00> : vector<16xf32>
    %289 = vector.multi_reduction <add>, %288, %cst_111 [1] : vector<16x16xf32> to vector<16xf32>
    %290 = vector.shape_cast %289 : vector<16xf32> to vector<16x1xf32>
    %291 = tpu.reciprocal %290 {approx = true} : vector<16x1xf32> -> vector<16x1xf32>
    %292 = vector.broadcast %291 : vector<16x1xf32> to vector<16x16xf32>
    %293 = arith.mulf %288, %292 : vector<16x16xf32>
    %cst_112 = arith.constant dense<0.000000e+00> : vector<16x8xf32>
    %294 = tpu.matmul %293, %279, %cst_112 {dimension_numbers = #tpu.dot_dimension_numbers<[1], [0], [0], [1], [0, 0, 1, 1], [], []>} : vector<16x16xf32>, vector<16x8xf32>, vector<16x8xf32> -> vector<16x8xf32>
    %295 = vector.extract_strided_slice %229 {offsets = [0, 24], sizes = [16, 8], strides = [1, 1]} : vector<32x32xf32> to vector<16x8xf32>
    %296 = vector.extract_strided_slice %237 {offsets = [0, 24], sizes = [16, 8], strides = [1, 1]} : vector<32x32xf32> to vector<16x8xf32>
    %297 = vector.extract_strided_slice %238 {offsets = [0, 24], sizes = [16, 8], strides = [1, 1]} : vector<32x32xf32> to vector<16x8xf32>
    %cst_113 = arith.constant dense<0.000000e+00> : vector<16x16xf32>
    %298 = tpu.matmul %295, %296, %cst_113 {dimension_numbers = #tpu.dot_dimension_numbers<[1], [1], [0], [0], [0, 0, 1, 0], [], []>} : vector<16x8xf32>, vector<16x8xf32>, vector<16x16xf32> -> vector<16x16xf32>
    %cst_114 = arith.constant 0.353553385 : f32
    %299 = vector.broadcast %cst_114 : f32 to vector<16x16xf32>
    %300 = arith.mulf %298, %299 : vector<16x16xf32>
    %301 = arith.addf %300, %240 : vector<16x16xf32>
    %cst_115 = arith.constant dense<0xFF800000> : vector<16xf32>
    %302 = vector.multi_reduction <maximumf>, %301, %cst_115 [1] : vector<16x16xf32> to vector<16xf32>
    %303 = vector.shape_cast %302 : vector<16xf32> to vector<16x1xf32>
    %304 = vector.broadcast %303 : vector<16x1xf32> to vector<16x16xf32>
    %305 = arith.subf %301, %304 : vector<16x16xf32>
    %306 = math.exp %305 : vector<16x16xf32>
    %cst_116 = arith.constant dense<0.000000e+00> : vector<16xf32>
    %307 = vector.multi_reduction <add>, %306, %cst_116 [1] : vector<16x16xf32> to vector<16xf32>
    %308 = vector.shape_cast %307 : vector<16xf32> to vector<16x1xf32>
    %309 = tpu.reciprocal %308 {approx = true} : vector<16x1xf32> -> vector<16x1xf32>
    %310 = vector.broadcast %309 : vector<16x1xf32> to vector<16x16xf32>
    %311 = arith.mulf %306, %310 : vector<16x16xf32>
    %cst_117 = arith.constant dense<0.000000e+00> : vector<16x8xf32>
    %312 = tpu.matmul %311, %297, %cst_117 {dimension_numbers = #tpu.dot_dimension_numbers<[1], [0], [0], [1], [0, 0, 1, 1], [], []>} : vector<16x16xf32>, vector<16x8xf32>, vector<16x8xf32> -> vector<16x8xf32>
    %313 = tpu.concatenate %258, %276, %294, %312 in 1 : vector<16x8xf32>, vector<16x8xf32>, vector<16x8xf32>, vector<16x8xf32> -> vector<16x32xf32>
    %314 = vector.extract_strided_slice %3 {offsets = [1, 0, 0], sizes = [1, 16, 16], strides = [1, 1, 1]} : vector<2x16x16xf32> to vector<1x16x16xf32>
    %315 = vector.shape_cast %314 : vector<1x16x16xf32> to vector<16x16xf32>
    %316 = vector.extract_strided_slice %229 {offsets = [16, 0], sizes = [16, 8], strides = [1, 1]} : vector<32x32xf32> to vector<16x8xf32>
    %317 = vector.extract_strided_slice %237 {offsets = [16, 0], sizes = [16, 8], strides = [1, 1]} : vector<32x32xf32> to vector<16x8xf32>
    %318 = vector.extract_strided_slice %238 {offsets = [16, 0], sizes = [16, 8], strides = [1, 1]} : vector<32x32xf32> to vector<16x8xf32>
    %cst_118 = arith.constant dense<0.000000e+00> : vector<16x16xf32>
    %319 = tpu.matmul %316, %317, %cst_118 {dimension_numbers = #tpu.dot_dimension_numbers<[1], [1], [0], [0], [0, 0, 1, 0], [], []>} : vector<16x8xf32>, vector<16x8xf32>, vector<16x16xf32> -> vector<16x16xf32>
    %cst_119 = arith.constant 0.353553385 : f32
    %320 = vector.broadcast %cst_119 : f32 to vector<16x16xf32>
    %321 = arith.mulf %319, %320 : vector<16x16xf32>
    %322 = arith.addf %321, %315 : vector<16x16xf32>
    %cst_120 = arith.constant dense<0xFF800000> : vector<16xf32>
    %323 = vector.multi_reduction <maximumf>, %322, %cst_120 [1] : vector<16x16xf32> to vector<16xf32>
    %324 = vector.shape_cast %323 : vector<16xf32> to vector<16x1xf32>
    %325 = vector.broadcast %324 : vector<16x1xf32> to vector<16x16xf32>
    %326 = arith.subf %322, %325 : vector<16x16xf32>
    %327 = math.exp %326 : vector<16x16xf32>
    %cst_121 = arith.constant dense<0.000000e+00> : vector<16xf32>
    %328 = vector.multi_reduction <add>, %327, %cst_121 [1] : vector<16x16xf32> to vector<16xf32>
    %329 = vector.shape_cast %328 : vector<16xf32> to vector<16x1xf32>
    %330 = tpu.reciprocal %329 {approx = true} : vector<16x1xf32> -> vector<16x1xf32>
    %331 = vector.broadcast %330 : vector<16x1xf32> to vector<16x16xf32>
    %332 = arith.mulf %327, %331 : vector<16x16xf32>
    %cst_122 = arith.constant dense<0.000000e+00> : vector<16x8xf32>
    %333 = tpu.matmul %332, %318, %cst_122 {dimension_numbers = #tpu.dot_dimension_numbers<[1], [0], [0], [1], [0, 0, 1, 1], [], []>} : vector<16x16xf32>, vector<16x8xf32>, vector<16x8xf32> -> vector<16x8xf32>
    %334 = vector.extract_strided_slice %229 {offsets = [16, 8], sizes = [16, 8], strides = [1, 1]} : vector<32x32xf32> to vector<16x8xf32>
    %335 = vector.extract_strided_slice %237 {offsets = [16, 8], sizes = [16, 8], strides = [1, 1]} : vector<32x32xf32> to vector<16x8xf32>
    %336 = vector.extract_strided_slice %238 {offsets = [16, 8], sizes = [16, 8], strides = [1, 1]} : vector<32x32xf32> to vector<16x8xf32>
    %cst_123 = arith.constant dense<0.000000e+00> : vector<16x16xf32>
    %337 = tpu.matmul %334, %335, %cst_123 {dimension_numbers = #tpu.dot_dimension_numbers<[1], [1], [0], [0], [0, 0, 1, 0], [], []>} : vector<16x8xf32>, vector<16x8xf32>, vector<16x16xf32> -> vector<16x16xf32>
    %cst_124 = arith.constant 0.353553385 : f32
    %338 = vector.broadcast %cst_124 : f32 to vector<16x16xf32>
    %339 = arith.mulf %337, %338 : vector<16x16xf32>
    %340 = arith.addf %339, %315 : vector<16x16xf32>
    %cst_125 = arith.constant dense<0xFF800000> : vector<16xf32>
    %341 = vector.multi_reduction <maximumf>, %340, %cst_125 [1] : vector<16x16xf32> to vector<16xf32>
    %342 = vector.shape_cast %341 : vector<16xf32> to vector<16x1xf32>
    %343 = vector.broadcast %342 : vector<16x1xf32> to vector<16x16xf32>
    %344 = arith.subf %340, %343 : vector<16x16xf32>
    %345 = math.exp %344 : vector<16x16xf32>
    %cst_126 = arith.constant dense<0.000000e+00> : vector<16xf32>
    %346 = vector.multi_reduction <add>, %345, %cst_126 [1] : vector<16x16xf32> to vector<16xf32>
    %347 = vector.shape_cast %346 : vector<16xf32> to vector<16x1xf32>
    %348 = tpu.reciprocal %347 {approx = true} : vector<16x1xf32> -> vector<16x1xf32>
    %349 = vector.broadcast %348 : vector<16x1xf32> to vector<16x16xf32>
    %350 = arith.mulf %345, %349 : vector<16x16xf32>
    %cst_127 = arith.constant dense<0.000000e+00> : vector<16x8xf32>
    %351 = tpu.matmul %350, %336, %cst_127 {dimension_numbers = #tpu.dot_dimension_numbers<[1], [0], [0], [1], [0, 0, 1, 1], [], []>} : vector<16x16xf32>, vector<16x8xf32>, vector<16x8xf32> -> vector<16x8xf32>
    %352 = vector.extract_strided_slice %229 {offsets = [16, 16], sizes = [16, 8], strides = [1, 1]} : vector<32x32xf32> to vector<16x8xf32>
    %353 = vector.extract_strided_slice %237 {offsets = [16, 16], sizes = [16, 8], strides = [1, 1]} : vector<32x32xf32> to vector<16x8xf32>
    %354 = vector.extract_strided_slice %238 {offsets = [16, 16], sizes = [16, 8], strides = [1, 1]} : vector<32x32xf32> to vector<16x8xf32>
    %cst_128 = arith.constant dense<0.000000e+00> : vector<16x16xf32>
    %355 = tpu.matmul %352, %353, %cst_128 {dimension_numbers = #tpu.dot_dimension_numbers<[1], [1], [0], [0], [0, 0, 1, 0], [], []>} : vector<16x8xf32>, vector<16x8xf32>, vector<16x16xf32> -> vector<16x16xf32>
    %cst_129 = arith.constant 0.353553385 : f32
    %356 = vector.broadcast %cst_129 : f32 to vector<16x16xf32>
    %357 = arith.mulf %355, %356 : vector<16x16xf32>
    %358 = arith.addf %357, %315 : vector<16x16xf32>
    %cst_130 = arith.constant dense<0xFF800000> : vector<16xf32>
    %359 = vector.multi_reduction <maximumf>, %358, %cst_130 [1] : vector<16x16xf32> to vector<16xf32>
    %360 = vector.shape_cast %359 : vector<16xf32> to vector<16x1xf32>
    %361 = vector.broadcast %360 : vector<16x1xf32> to vector<16x16xf32>
    %362 = arith.subf %358, %361 : vector<16x16xf32>
    %363 = math.exp %362 : vector<16x16xf32>
    %cst_131 = arith.constant dense<0.000000e+00> : vector<16xf32>
    %364 = vector.multi_reduction <add>, %363, %cst_131 [1] : vector<16x16xf32> to vector<16xf32>
    %365 = vector.shape_cast %364 : vector<16xf32> to vector<16x1xf32>
    %366 = tpu.reciprocal %365 {approx = true} : vector<16x1xf32> -> vector<16x1xf32>
    %367 = vector.broadcast %366 : vector<16x1xf32> to vector<16x16xf32>
    %368 = arith.mulf %363, %367 : vector<16x16xf32>
    %cst_132 = arith.constant dense<0.000000e+00> : vector<16x8xf32>
    %369 = tpu.matmul %368, %354, %cst_132 {dimension_numbers = #tpu.dot_dimension_numbers<[1], [0], [0], [1], [0, 0, 1, 1], [], []>} : vector<16x16xf32>, vector<16x8xf32>, vector<16x8xf32> -> vector<16x8xf32>
    %370 = vector.extract_strided_slice %229 {offsets = [16, 24], sizes = [16, 8], strides = [1, 1]} : vector<32x32xf32> to vector<16x8xf32>
    %371 = vector.extract_strided_slice %237 {offsets = [16, 24], sizes = [16, 8], strides = [1, 1]} : vector<32x32xf32> to vector<16x8xf32>
    %372 = vector.extract_strided_slice %238 {offsets = [16, 24], sizes = [16, 8], strides = [1, 1]} : vector<32x32xf32> to vector<16x8xf32>
    %cst_133 = arith.constant dense<0.000000e+00> : vector<16x16xf32>
    %373 = tpu.matmul %370, %371, %cst_133 {dimension_numbers = #tpu.dot_dimension_numbers<[1], [1], [0], [0], [0, 0, 1, 0], [], []>} : vector<16x8xf32>, vector<16x8xf32>, vector<16x16xf32> -> vector<16x16xf32>
    %cst_134 = arith.constant 0.353553385 : f32
    %374 = vector.broadcast %cst_134 : f32 to vector<16x16xf32>
    %375 = arith.mulf %373, %374 : vector<16x16xf32>
    %376 = arith.addf %375, %315 : vector<16x16xf32>
    %cst_135 = arith.constant dense<0xFF800000> : vector<16xf32>
    %377 = vector.multi_reduction <maximumf>, %376, %cst_135 [1] : vector<16x16xf32> to vector<16xf32>
    %378 = vector.shape_cast %377 : vector<16xf32> to vector<16x1xf32>
    %379 = vector.broadcast %378 : vector<16x1xf32> to vector<16x16xf32>
    %380 = arith.subf %376, %379 : vector<16x16xf32>
    %381 = math.exp %380 : vector<16x16xf32>
    %cst_136 = arith.constant dense<0.000000e+00> : vector<16xf32>
    %382 = vector.multi_reduction <add>, %381, %cst_136 [1] : vector<16x16xf32> to vector<16xf32>
    %383 = vector.shape_cast %382 : vector<16xf32> to vector<16x1xf32>
    %384 = tpu.reciprocal %383 {approx = true} : vector<16x1xf32> -> vector<16x1xf32>
    %385 = vector.broadcast %384 : vector<16x1xf32> to vector<16x16xf32>
    %386 = arith.mulf %381, %385 : vector<16x16xf32>
    %cst_137 = arith.constant dense<0.000000e+00> : vector<16x8xf32>
    %387 = tpu.matmul %386, %372, %cst_137 {dimension_numbers = #tpu.dot_dimension_numbers<[1], [0], [0], [1], [0, 0, 1, 1], [], []>} : vector<16x16xf32>, vector<16x8xf32>, vector<16x8xf32> -> vector<16x8xf32>
    %388 = tpu.concatenate %333, %351, %369, %387 in 1 : vector<16x8xf32>, vector<16x8xf32>, vector<16x8xf32>, vector<16x8xf32> -> vector<16x32xf32>
    %389 = tpu.concatenate %313, %388 in 0 : vector<16x32xf32>, vector<16x32xf32> -> vector<32x32xf32>
    %c0_138 = arith.constant 0 : index
    %c0_139 = arith.constant 0 : index
    %c0_140 = arith.constant 0 : index
    %390 = vector.load %arg16[%c0_138, %c0_139, %c0_140] : memref<2x32x32xf32, #tpu.memory_space<vmem>>, vector<1x32x32xf32>
    %391 = vector.shape_cast %390 : vector<1x32x32xf32> to vector<32x32xf32>
    %cst_141 = arith.constant dense<0.000000e+00> : vector<32x32xf32>
    %392 = tpu.matmul %389, %391, %cst_141 {dimension_numbers = #tpu.dot_dimension_numbers<[1], [0], [0], [1], [0, 0, 1, 1], [], []>} : vector<32x32xf32>, vector<32x32xf32>, vector<32x32xf32> -> vector<32x32xf32>
    %393 = arith.addf %197, %392 : vector<32x32xf32>
    %c0_142 = arith.constant 0 : index
    %c0_143 = arith.constant 0 : index
    %c0_144 = arith.constant 0 : index
    %394 = vector.load %arg17[%c0_142, %c0_143, %c0_144] : memref<2x1x32xf32, #tpu.memory_space<vmem>>, vector<1x1x32xf32>
    %395 = vector.shape_cast %394 : vector<1x1x32xf32> to vector<1x32xf32>
    %396 = vector.broadcast %395 : vector<1x32xf32> to vector<32x32xf32>
    %397 = arith.addf %393, %396 : vector<32x32xf32>
    %c0_145 = arith.constant 0 : index
    %c0_146 = arith.constant 0 : index
    %c0_147 = arith.constant 0 : index
    %398 = vector.load %arg18[%c0_145, %c0_146, %c0_147] : memref<2x1x32xf32, #tpu.memory_space<vmem>>, vector<1x1x32xf32>
    %399 = vector.shape_cast %398 : vector<1x1x32xf32> to vector<1x32xf32>
    %c0_148 = arith.constant 0 : index
    %c0_149 = arith.constant 0 : index
    %c0_150 = arith.constant 0 : index
    %400 = vector.load %arg19[%c0_148, %c0_149, %c0_150] : memref<2x1x32xf32, #tpu.memory_space<vmem>>, vector<1x1x32xf32>
    %401 = vector.shape_cast %400 : vector<1x1x32xf32> to vector<1x32xf32>
    %cst_151 = arith.constant dense<0.000000e+00> : vector<32xf32>
    %402 = vector.multi_reduction <add>, %397, %cst_151 [1] : vector<32x32xf32> to vector<32xf32>
    %403 = vector.shape_cast %402 : vector<32xf32> to vector<32x1xf32>
    %cst_152 = arith.constant 3.200000e+01 : f32
    %404 = vector.broadcast %cst_152 : f32 to vector<32x1xf32>
    %405 = arith.divf %403, %404 : vector<32x1xf32>
    %406 = vector.broadcast %405 : vector<32x1xf32> to vector<32x32xf32>
    %407 = arith.subf %397, %406 : vector<32x32xf32>
    %408 = arith.mulf %407, %407 : vector<32x32xf32>
    %cst_153 = arith.constant dense<0.000000e+00> : vector<32xf32>
    %409 = vector.multi_reduction <add>, %408, %cst_153 [1] : vector<32x32xf32> to vector<32xf32>
    %410 = vector.shape_cast %409 : vector<32xf32> to vector<32x1xf32>
    %cst_154 = arith.constant 0.0322580636 : f32
    %411 = vector.broadcast %cst_154 : f32 to vector<32x1xf32>
    %412 = arith.mulf %410, %411 : vector<32x1xf32>
    %413 = math.sqrt %412 : vector<32x1xf32>
    %414 = vector.broadcast %399 : vector<1x32xf32> to vector<32x32xf32>
    %415 = arith.mulf %414, %407 : vector<32x32xf32>
    %cst_155 = arith.constant 9.99999997E-7 : f32
    %416 = vector.broadcast %cst_155 : f32 to vector<32x1xf32>
    %417 = arith.addf %413, %416 : vector<32x1xf32>
    %418 = tpu.reciprocal %417 {approx = true} : vector<32x1xf32> -> vector<32x1xf32>
    %419 = vector.broadcast %418 : vector<32x1xf32> to vector<32x32xf32>
    %420 = arith.mulf %415, %419 : vector<32x32xf32>
    %421 = vector.broadcast %401 : vector<1x32xf32> to vector<32x32xf32>
    %422 = arith.addf %420, %421 : vector<32x32xf32>
    %c0_156 = arith.constant 0 : index
    %c0_157 = arith.constant 0 : index
    %c0_158 = arith.constant 0 : index
    %423 = vector.load %arg20[%c0_156, %c0_157, %c0_158] : memref<2x32x64xf32, #tpu.memory_space<vmem>>, vector<1x32x64xf32>
    %424 = vector.shape_cast %423 : vector<1x32x64xf32> to vector<32x64xf32>
    %cst_159 = arith.constant dense<0.000000e+00> : vector<32x64xf32>
    %425 = tpu.matmul %422, %424, %cst_159 {dimension_numbers = #tpu.dot_dimension_numbers<[1], [0], [0], [1], [0, 0, 1, 1], [], []>} : vector<32x32xf32>, vector<32x64xf32>, vector<32x64xf32> -> vector<32x64xf32>
    %c0_160 = arith.constant 0 : index
    %c0_161 = arith.constant 0 : index
    %c0_162 = arith.constant 0 : index
    %426 = vector.load %arg21[%c0_160, %c0_161, %c0_162] : memref<2x1x64xf32, #tpu.memory_space<vmem>>, vector<1x1x64xf32>
    %427 = vector.shape_cast %426 : vector<1x1x64xf32> to vector<1x64xf32>
    %428 = vector.broadcast %427 : vector<1x64xf32> to vector<32x64xf32>
    %429 = arith.addf %425, %428 : vector<32x64xf32>
    %cst_163 = arith.constant 0.000000e+00 : f32
    %430 = vector.broadcast %cst_163 : f32 to vector<32x64xf32>
    %431 = arith.maximumf %429, %430 : vector<32x64xf32>
    %c0_164 = arith.constant 0 : index
    %c0_165 = arith.constant 0 : index
    %c0_166 = arith.constant 0 : index
    %432 = vector.load %arg22[%c0_164, %c0_165, %c0_166] : memref<2x64x32xf32, #tpu.memory_space<vmem>>, vector<1x64x32xf32>
    %433 = vector.shape_cast %432 : vector<1x64x32xf32> to vector<64x32xf32>
    %cst_167 = arith.constant dense<0.000000e+00> : vector<32x32xf32>
    %434 = tpu.matmul %431, %433, %cst_167 {dimension_numbers = #tpu.dot_dimension_numbers<[1], [0], [0], [1], [0, 0, 1, 1], [], []>} : vector<32x64xf32>, vector<64x32xf32>, vector<32x32xf32> -> vector<32x32xf32>
    %435 = arith.addf %397, %434 : vector<32x32xf32>
    %c0_168 = arith.constant 0 : index
    %c0_169 = arith.constant 0 : index
    %c0_170 = arith.constant 0 : index
    %436 = vector.load %arg23[%c0_168, %c0_169, %c0_170] : memref<2x1x32xf32, #tpu.memory_space<vmem>>, vector<1x1x32xf32>
    %437 = vector.shape_cast %436 : vector<1x1x32xf32> to vector<1x32xf32>
    %438 = vector.broadcast %437 : vector<1x32xf32> to vector<32x32xf32>
    %439 = arith.addf %435, %438 : vector<32x32xf32>
    %c1 = arith.constant 1 : index
    %c0_171 = arith.constant 0 : index
    %c0_172 = arith.constant 0 : index
    %440 = vector.load %arg4[%c1, %c0_171, %c0_172] : memref<2x1x32xf32, #tpu.memory_space<vmem>>, vector<1x1x32xf32>
    %441 = vector.shape_cast %440 : vector<1x1x32xf32> to vector<1x32xf32>
    %c1_173 = arith.constant 1 : index
    %c0_174 = arith.constant 0 : index
    %c0_175 = arith.constant 0 : index
    %442 = vector.load %arg5[%c1_173, %c0_174, %c0_175] : memref<2x1x32xf32, #tpu.memory_space<vmem>>, vector<1x1x32xf32>
    %443 = vector.shape_cast %442 : vector<1x1x32xf32> to vector<1x32xf32>
    %cst_176 = arith.constant dense<0.000000e+00> : vector<32xf32>
    %444 = vector.multi_reduction <add>, %439, %cst_176 [1] : vector<32x32xf32> to vector<32xf32>
    %445 = vector.shape_cast %444 : vector<32xf32> to vector<32x1xf32>
    %cst_177 = arith.constant 3.200000e+01 : f32
    %446 = vector.broadcast %cst_177 : f32 to vector<32x1xf32>
    %447 = arith.divf %445, %446 : vector<32x1xf32>
    %448 = vector.broadcast %447 : vector<32x1xf32> to vector<32x32xf32>
    %449 = arith.subf %439, %448 : vector<32x32xf32>
    %450 = arith.mulf %449, %449 : vector<32x32xf32>
    %cst_178 = arith.constant dense<0.000000e+00> : vector<32xf32>
    %451 = vector.multi_reduction <add>, %450, %cst_178 [1] : vector<32x32xf32> to vector<32xf32>
    %452 = vector.shape_cast %451 : vector<32xf32> to vector<32x1xf32>
    %cst_179 = arith.constant 0.0322580636 : f32
    %453 = vector.broadcast %cst_179 : f32 to vector<32x1xf32>
    %454 = arith.mulf %452, %453 : vector<32x1xf32>
    %455 = math.sqrt %454 : vector<32x1xf32>
    %456 = vector.broadcast %441 : vector<1x32xf32> to vector<32x32xf32>
    %457 = arith.mulf %456, %449 : vector<32x32xf32>
    %cst_180 = arith.constant 9.99999997E-7 : f32
    %458 = vector.broadcast %cst_180 : f32 to vector<32x1xf32>
    %459 = arith.addf %455, %458 : vector<32x1xf32>
    %460 = tpu.reciprocal %459 {approx = true} : vector<32x1xf32> -> vector<32x1xf32>
    %461 = vector.broadcast %460 : vector<32x1xf32> to vector<32x32xf32>
    %462 = arith.mulf %457, %461 : vector<32x32xf32>
    %463 = vector.broadcast %443 : vector<1x32xf32> to vector<32x32xf32>
    %464 = arith.addf %462, %463 : vector<32x32xf32>
    %c1_181 = arith.constant 1 : index
    %c0_182 = arith.constant 0 : index
    %c0_183 = arith.constant 0 : index
    %465 = vector.load %arg6[%c1_181, %c0_182, %c0_183] : memref<2x32x96xf32, #tpu.memory_space<vmem>>, vector<1x32x96xf32>
    %466 = vector.shape_cast %465 : vector<1x32x96xf32> to vector<32x96xf32>
    %cst_184 = arith.constant dense<0.000000e+00> : vector<32x96xf32>
    %467 = tpu.matmul %464, %466, %cst_184 {dimension_numbers = #tpu.dot_dimension_numbers<[1], [0], [0], [1], [0, 0, 1, 1], [], []>} : vector<32x32xf32>, vector<32x96xf32>, vector<32x96xf32> -> vector<32x96xf32>
    %c1_185 = arith.constant 1 : index
    %c0_186 = arith.constant 0 : index
    %c0_187 = arith.constant 0 : index
    %468 = vector.load %arg7[%c1_185, %c0_186, %c0_187] : memref<2x1x96xf32, #tpu.memory_space<vmem>>, vector<1x1x96xf32>
    %469 = vector.shape_cast %468 : vector<1x1x96xf32> to vector<1x96xf32>
    %470 = vector.broadcast %469 : vector<1x96xf32> to vector<32x96xf32>
    %471 = arith.addf %467, %470 : vector<32x96xf32>
    %472 = vector.extract_strided_slice %471 {offsets = [0, 0], sizes = [32, 32], strides = [1, 1]} : vector<32x96xf32> to vector<32x32xf32>
    %473 = vector.extract_strided_slice %471 {offsets = [0, 32], sizes = [32, 32], strides = [1, 1]} : vector<32x96xf32> to vector<32x32xf32>
    %474 = vector.extract_strided_slice %471 {offsets = [0, 64], sizes = [32, 32], strides = [1, 1]} : vector<32x96xf32> to vector<32x32xf32>
    %475 = vector.extract_strided_slice %2 {offsets = [0, 0, 0], sizes = [1, 16, 16], strides = [1, 1, 1]} : vector<2x16x16xf32> to vector<1x16x16xf32>
    %476 = vector.shape_cast %475 : vector<1x16x16xf32> to vector<16x16xf32>
    %477 = vector.extract_strided_slice %472 {offsets = [0, 0], sizes = [16, 8], strides = [1, 1]} : vector<32x32xf32> to vector<16x8xf32>
    %478 = vector.extract_strided_slice %473 {offsets = [0, 0], sizes = [16, 8], strides = [1, 1]} : vector<32x32xf32> to vector<16x8xf32>
    %479 = vector.extract_strided_slice %474 {offsets = [0, 0], sizes = [16, 8], strides = [1, 1]} : vector<32x32xf32> to vector<16x8xf32>
    %cst_188 = arith.constant dense<0.000000e+00> : vector<16x16xf32>
    %480 = tpu.matmul %477, %478, %cst_188 {dimension_numbers = #tpu.dot_dimension_numbers<[1], [1], [0], [0], [0, 0, 1, 0], [], []>} : vector<16x8xf32>, vector<16x8xf32>, vector<16x16xf32> -> vector<16x16xf32>
    %cst_189 = arith.constant 0.353553385 : f32
    %481 = vector.broadcast %cst_189 : f32 to vector<16x16xf32>
    %482 = arith.mulf %480, %481 : vector<16x16xf32>
    %483 = arith.addf %482, %476 : vector<16x16xf32>
    %cst_190 = arith.constant dense<0xFF800000> : vector<16xf32>
    %484 = vector.multi_reduction <maximumf>, %483, %cst_190 [1] : vector<16x16xf32> to vector<16xf32>
    %485 = vector.shape_cast %484 : vector<16xf32> to vector<16x1xf32>
    %486 = vector.broadcast %485 : vector<16x1xf32> to vector<16x16xf32>
    %487 = arith.subf %483, %486 : vector<16x16xf32>
    %488 = math.exp %487 : vector<16x16xf32>
    %cst_191 = arith.constant dense<0.000000e+00> : vector<16xf32>
    %489 = vector.multi_reduction <add>, %488, %cst_191 [1] : vector<16x16xf32> to vector<16xf32>
    %490 = vector.shape_cast %489 : vector<16xf32> to vector<16x1xf32>
    %491 = tpu.reciprocal %490 {approx = true} : vector<16x1xf32> -> vector<16x1xf32>
    %492 = vector.broadcast %491 : vector<16x1xf32> to vector<16x16xf32>
    %493 = arith.mulf %488, %492 : vector<16x16xf32>
    %cst_192 = arith.constant dense<0.000000e+00> : vector<16x8xf32>
    %494 = tpu.matmul %493, %479, %cst_192 {dimension_numbers = #tpu.dot_dimension_numbers<[1], [0], [0], [1], [0, 0, 1, 1], [], []>} : vector<16x16xf32>, vector<16x8xf32>, vector<16x8xf32> -> vector<16x8xf32>
    %495 = vector.extract_strided_slice %472 {offsets = [0, 8], sizes = [16, 8], strides = [1, 1]} : vector<32x32xf32> to vector<16x8xf32>
    %496 = vector.extract_strided_slice %473 {offsets = [0, 8], sizes = [16, 8], strides = [1, 1]} : vector<32x32xf32> to vector<16x8xf32>
    %497 = vector.extract_strided_slice %474 {offsets = [0, 8], sizes = [16, 8], strides = [1, 1]} : vector<32x32xf32> to vector<16x8xf32>
    %cst_193 = arith.constant dense<0.000000e+00> : vector<16x16xf32>
    %498 = tpu.matmul %495, %496, %cst_193 {dimension_numbers = #tpu.dot_dimension_numbers<[1], [1], [0], [0], [0, 0, 1, 0], [], []>} : vector<16x8xf32>, vector<16x8xf32>, vector<16x16xf32> -> vector<16x16xf32>
    %cst_194 = arith.constant 0.353553385 : f32
    %499 = vector.broadcast %cst_194 : f32 to vector<16x16xf32>
    %500 = arith.mulf %498, %499 : vector<16x16xf32>
    %501 = arith.addf %500, %476 : vector<16x16xf32>
    %cst_195 = arith.constant dense<0xFF800000> : vector<16xf32>
    %502 = vector.multi_reduction <maximumf>, %501, %cst_195 [1] : vector<16x16xf32> to vector<16xf32>
    %503 = vector.shape_cast %502 : vector<16xf32> to vector<16x1xf32>
    %504 = vector.broadcast %503 : vector<16x1xf32> to vector<16x16xf32>
    %505 = arith.subf %501, %504 : vector<16x16xf32>
    %506 = math.exp %505 : vector<16x16xf32>
    %cst_196 = arith.constant dense<0.000000e+00> : vector<16xf32>
    %507 = vector.multi_reduction <add>, %506, %cst_196 [1] : vector<16x16xf32> to vector<16xf32>
    %508 = vector.shape_cast %507 : vector<16xf32> to vector<16x1xf32>
    %509 = tpu.reciprocal %508 {approx = true} : vector<16x1xf32> -> vector<16x1xf32>
    %510 = vector.broadcast %509 : vector<16x1xf32> to vector<16x16xf32>
    %511 = arith.mulf %506, %510 : vector<16x16xf32>
    %cst_197 = arith.constant dense<0.000000e+00> : vector<16x8xf32>
    %512 = tpu.matmul %511, %497, %cst_197 {dimension_numbers = #tpu.dot_dimension_numbers<[1], [0], [0], [1], [0, 0, 1, 1], [], []>} : vector<16x16xf32>, vector<16x8xf32>, vector<16x8xf32> -> vector<16x8xf32>
    %513 = vector.extract_strided_slice %472 {offsets = [0, 16], sizes = [16, 8], strides = [1, 1]} : vector<32x32xf32> to vector<16x8xf32>
    %514 = vector.extract_strided_slice %473 {offsets = [0, 16], sizes = [16, 8], strides = [1, 1]} : vector<32x32xf32> to vector<16x8xf32>
    %515 = vector.extract_strided_slice %474 {offsets = [0, 16], sizes = [16, 8], strides = [1, 1]} : vector<32x32xf32> to vector<16x8xf32>
    %cst_198 = arith.constant dense<0.000000e+00> : vector<16x16xf32>
    %516 = tpu.matmul %513, %514, %cst_198 {dimension_numbers = #tpu.dot_dimension_numbers<[1], [1], [0], [0], [0, 0, 1, 0], [], []>} : vector<16x8xf32>, vector<16x8xf32>, vector<16x16xf32> -> vector<16x16xf32>
    %cst_199 = arith.constant 0.353553385 : f32
    %517 = vector.broadcast %cst_199 : f32 to vector<16x16xf32>
    %518 = arith.mulf %516, %517 : vector<16x16xf32>
    %519 = arith.addf %518, %476 : vector<16x16xf32>
    %cst_200 = arith.constant dense<0xFF800000> : vector<16xf32>
    %520 = vector.multi_reduction <maximumf>, %519, %cst_200 [1] : vector<16x16xf32> to vector<16xf32>
    %521 = vector.shape_cast %520 : vector<16xf32> to vector<16x1xf32>
    %522 = vector.broadcast %521 : vector<16x1xf32> to vector<16x16xf32>
    %523 = arith.subf %519, %522 : vector<16x16xf32>
    %524 = math.exp %523 : vector<16x16xf32>
    %cst_201 = arith.constant dense<0.000000e+00> : vector<16xf32>
    %525 = vector.multi_reduction <add>, %524, %cst_201 [1] : vector<16x16xf32> to vector<16xf32>
    %526 = vector.shape_cast %525 : vector<16xf32> to vector<16x1xf32>
    %527 = tpu.reciprocal %526 {approx = true} : vector<16x1xf32> -> vector<16x1xf32>
    %528 = vector.broadcast %527 : vector<16x1xf32> to vector<16x16xf32>
    %529 = arith.mulf %524, %528 : vector<16x16xf32>
    %cst_202 = arith.constant dense<0.000000e+00> : vector<16x8xf32>
    %530 = tpu.matmul %529, %515, %cst_202 {dimension_numbers = #tpu.dot_dimension_numbers<[1], [0], [0], [1], [0, 0, 1, 1], [], []>} : vector<16x16xf32>, vector<16x8xf32>, vector<16x8xf32> -> vector<16x8xf32>
    %531 = vector.extract_strided_slice %472 {offsets = [0, 24], sizes = [16, 8], strides = [1, 1]} : vector<32x32xf32> to vector<16x8xf32>
    %532 = vector.extract_strided_slice %473 {offsets = [0, 24], sizes = [16, 8], strides = [1, 1]} : vector<32x32xf32> to vector<16x8xf32>
    %533 = vector.extract_strided_slice %474 {offsets = [0, 24], sizes = [16, 8], strides = [1, 1]} : vector<32x32xf32> to vector<16x8xf32>
    %cst_203 = arith.constant dense<0.000000e+00> : vector<16x16xf32>
    %534 = tpu.matmul %531, %532, %cst_203 {dimension_numbers = #tpu.dot_dimension_numbers<[1], [1], [0], [0], [0, 0, 1, 0], [], []>} : vector<16x8xf32>, vector<16x8xf32>, vector<16x16xf32> -> vector<16x16xf32>
    %cst_204 = arith.constant 0.353553385 : f32
    %535 = vector.broadcast %cst_204 : f32 to vector<16x16xf32>
    %536 = arith.mulf %534, %535 : vector<16x16xf32>
    %537 = arith.addf %536, %476 : vector<16x16xf32>
    %cst_205 = arith.constant dense<0xFF800000> : vector<16xf32>
    %538 = vector.multi_reduction <maximumf>, %537, %cst_205 [1] : vector<16x16xf32> to vector<16xf32>
    %539 = vector.shape_cast %538 : vector<16xf32> to vector<16x1xf32>
    %540 = vector.broadcast %539 : vector<16x1xf32> to vector<16x16xf32>
    %541 = arith.subf %537, %540 : vector<16x16xf32>
    %542 = math.exp %541 : vector<16x16xf32>
    %cst_206 = arith.constant dense<0.000000e+00> : vector<16xf32>
    %543 = vector.multi_reduction <add>, %542, %cst_206 [1] : vector<16x16xf32> to vector<16xf32>
    %544 = vector.shape_cast %543 : vector<16xf32> to vector<16x1xf32>
    %545 = tpu.reciprocal %544 {approx = true} : vector<16x1xf32> -> vector<16x1xf32>
    %546 = vector.broadcast %545 : vector<16x1xf32> to vector<16x16xf32>
    %547 = arith.mulf %542, %546 : vector<16x16xf32>
    %cst_207 = arith.constant dense<0.000000e+00> : vector<16x8xf32>
    %548 = tpu.matmul %547, %533, %cst_207 {dimension_numbers = #tpu.dot_dimension_numbers<[1], [0], [0], [1], [0, 0, 1, 1], [], []>} : vector<16x16xf32>, vector<16x8xf32>, vector<16x8xf32> -> vector<16x8xf32>
    %549 = tpu.concatenate %494, %512, %530, %548 in 1 : vector<16x8xf32>, vector<16x8xf32>, vector<16x8xf32>, vector<16x8xf32> -> vector<16x32xf32>
    %550 = vector.extract_strided_slice %2 {offsets = [1, 0, 0], sizes = [1, 16, 16], strides = [1, 1, 1]} : vector<2x16x16xf32> to vector<1x16x16xf32>
    %551 = vector.shape_cast %550 : vector<1x16x16xf32> to vector<16x16xf32>
    %552 = vector.extract_strided_slice %472 {offsets = [16, 0], sizes = [16, 8], strides = [1, 1]} : vector<32x32xf32> to vector<16x8xf32>
    %553 = vector.extract_strided_slice %473 {offsets = [16, 0], sizes = [16, 8], strides = [1, 1]} : vector<32x32xf32> to vector<16x8xf32>
    %554 = vector.extract_strided_slice %474 {offsets = [16, 0], sizes = [16, 8], strides = [1, 1]} : vector<32x32xf32> to vector<16x8xf32>
    %cst_208 = arith.constant dense<0.000000e+00> : vector<16x16xf32>
    %555 = tpu.matmul %552, %553, %cst_208 {dimension_numbers = #tpu.dot_dimension_numbers<[1], [1], [0], [0], [0, 0, 1, 0], [], []>} : vector<16x8xf32>, vector<16x8xf32>, vector<16x16xf32> -> vector<16x16xf32>
    %cst_209 = arith.constant 0.353553385 : f32
    %556 = vector.broadcast %cst_209 : f32 to vector<16x16xf32>
    %557 = arith.mulf %555, %556 : vector<16x16xf32>
    %558 = arith.addf %557, %551 : vector<16x16xf32>
    %cst_210 = arith.constant dense<0xFF800000> : vector<16xf32>
    %559 = vector.multi_reduction <maximumf>, %558, %cst_210 [1] : vector<16x16xf32> to vector<16xf32>
    %560 = vector.shape_cast %559 : vector<16xf32> to vector<16x1xf32>
    %561 = vector.broadcast %560 : vector<16x1xf32> to vector<16x16xf32>
    %562 = arith.subf %558, %561 : vector<16x16xf32>
    %563 = math.exp %562 : vector<16x16xf32>
    %cst_211 = arith.constant dense<0.000000e+00> : vector<16xf32>
    %564 = vector.multi_reduction <add>, %563, %cst_211 [1] : vector<16x16xf32> to vector<16xf32>
    %565 = vector.shape_cast %564 : vector<16xf32> to vector<16x1xf32>
    %566 = tpu.reciprocal %565 {approx = true} : vector<16x1xf32> -> vector<16x1xf32>
    %567 = vector.broadcast %566 : vector<16x1xf32> to vector<16x16xf32>
    %568 = arith.mulf %563, %567 : vector<16x16xf32>
    %cst_212 = arith.constant dense<0.000000e+00> : vector<16x8xf32>
    %569 = tpu.matmul %568, %554, %cst_212 {dimension_numbers = #tpu.dot_dimension_numbers<[1], [0], [0], [1], [0, 0, 1, 1], [], []>} : vector<16x16xf32>, vector<16x8xf32>, vector<16x8xf32> -> vector<16x8xf32>
    %570 = vector.extract_strided_slice %472 {offsets = [16, 8], sizes = [16, 8], strides = [1, 1]} : vector<32x32xf32> to vector<16x8xf32>
    %571 = vector.extract_strided_slice %473 {offsets = [16, 8], sizes = [16, 8], strides = [1, 1]} : vector<32x32xf32> to vector<16x8xf32>
    %572 = vector.extract_strided_slice %474 {offsets = [16, 8], sizes = [16, 8], strides = [1, 1]} : vector<32x32xf32> to vector<16x8xf32>
    %cst_213 = arith.constant dense<0.000000e+00> : vector<16x16xf32>
    %573 = tpu.matmul %570, %571, %cst_213 {dimension_numbers = #tpu.dot_dimension_numbers<[1], [1], [0], [0], [0, 0, 1, 0], [], []>} : vector<16x8xf32>, vector<16x8xf32>, vector<16x16xf32> -> vector<16x16xf32>
    %cst_214 = arith.constant 0.353553385 : f32
    %574 = vector.broadcast %cst_214 : f32 to vector<16x16xf32>
    %575 = arith.mulf %573, %574 : vector<16x16xf32>
    %576 = arith.addf %575, %551 : vector<16x16xf32>
    %cst_215 = arith.constant dense<0xFF800000> : vector<16xf32>
    %577 = vector.multi_reduction <maximumf>, %576, %cst_215 [1] : vector<16x16xf32> to vector<16xf32>
    %578 = vector.shape_cast %577 : vector<16xf32> to vector<16x1xf32>
    %579 = vector.broadcast %578 : vector<16x1xf32> to vector<16x16xf32>
    %580 = arith.subf %576, %579 : vector<16x16xf32>
    %581 = math.exp %580 : vector<16x16xf32>
    %cst_216 = arith.constant dense<0.000000e+00> : vector<16xf32>
    %582 = vector.multi_reduction <add>, %581, %cst_216 [1] : vector<16x16xf32> to vector<16xf32>
    %583 = vector.shape_cast %582 : vector<16xf32> to vector<16x1xf32>
    %584 = tpu.reciprocal %583 {approx = true} : vector<16x1xf32> -> vector<16x1xf32>
    %585 = vector.broadcast %584 : vector<16x1xf32> to vector<16x16xf32>
    %586 = arith.mulf %581, %585 : vector<16x16xf32>
    %cst_217 = arith.constant dense<0.000000e+00> : vector<16x8xf32>
    %587 = tpu.matmul %586, %572, %cst_217 {dimension_numbers = #tpu.dot_dimension_numbers<[1], [0], [0], [1], [0, 0, 1, 1], [], []>} : vector<16x16xf32>, vector<16x8xf32>, vector<16x8xf32> -> vector<16x8xf32>
    %588 = vector.extract_strided_slice %472 {offsets = [16, 16], sizes = [16, 8], strides = [1, 1]} : vector<32x32xf32> to vector<16x8xf32>
    %589 = vector.extract_strided_slice %473 {offsets = [16, 16], sizes = [16, 8], strides = [1, 1]} : vector<32x32xf32> to vector<16x8xf32>
    %590 = vector.extract_strided_slice %474 {offsets = [16, 16], sizes = [16, 8], strides = [1, 1]} : vector<32x32xf32> to vector<16x8xf32>
    %cst_218 = arith.constant dense<0.000000e+00> : vector<16x16xf32>
    %591 = tpu.matmul %588, %589, %cst_218 {dimension_numbers = #tpu.dot_dimension_numbers<[1], [1], [0], [0], [0, 0, 1, 0], [], []>} : vector<16x8xf32>, vector<16x8xf32>, vector<16x16xf32> -> vector<16x16xf32>
    %cst_219 = arith.constant 0.353553385 : f32
    %592 = vector.broadcast %cst_219 : f32 to vector<16x16xf32>
    %593 = arith.mulf %591, %592 : vector<16x16xf32>
    %594 = arith.addf %593, %551 : vector<16x16xf32>
    %cst_220 = arith.constant dense<0xFF800000> : vector<16xf32>
    %595 = vector.multi_reduction <maximumf>, %594, %cst_220 [1] : vector<16x16xf32> to vector<16xf32>
    %596 = vector.shape_cast %595 : vector<16xf32> to vector<16x1xf32>
    %597 = vector.broadcast %596 : vector<16x1xf32> to vector<16x16xf32>
    %598 = arith.subf %594, %597 : vector<16x16xf32>
    %599 = math.exp %598 : vector<16x16xf32>
    %cst_221 = arith.constant dense<0.000000e+00> : vector<16xf32>
    %600 = vector.multi_reduction <add>, %599, %cst_221 [1] : vector<16x16xf32> to vector<16xf32>
    %601 = vector.shape_cast %600 : vector<16xf32> to vector<16x1xf32>
    %602 = tpu.reciprocal %601 {approx = true} : vector<16x1xf32> -> vector<16x1xf32>
    %603 = vector.broadcast %602 : vector<16x1xf32> to vector<16x16xf32>
    %604 = arith.mulf %599, %603 : vector<16x16xf32>
    %cst_222 = arith.constant dense<0.000000e+00> : vector<16x8xf32>
    %605 = tpu.matmul %604, %590, %cst_222 {dimension_numbers = #tpu.dot_dimension_numbers<[1], [0], [0], [1], [0, 0, 1, 1], [], []>} : vector<16x16xf32>, vector<16x8xf32>, vector<16x8xf32> -> vector<16x8xf32>
    %606 = vector.extract_strided_slice %472 {offsets = [16, 24], sizes = [16, 8], strides = [1, 1]} : vector<32x32xf32> to vector<16x8xf32>
    %607 = vector.extract_strided_slice %473 {offsets = [16, 24], sizes = [16, 8], strides = [1, 1]} : vector<32x32xf32> to vector<16x8xf32>
    %608 = vector.extract_strided_slice %474 {offsets = [16, 24], sizes = [16, 8], strides = [1, 1]} : vector<32x32xf32> to vector<16x8xf32>
    %cst_223 = arith.constant dense<0.000000e+00> : vector<16x16xf32>
    %609 = tpu.matmul %606, %607, %cst_223 {dimension_numbers = #tpu.dot_dimension_numbers<[1], [1], [0], [0], [0, 0, 1, 0], [], []>} : vector<16x8xf32>, vector<16x8xf32>, vector<16x16xf32> -> vector<16x16xf32>
    %cst_224 = arith.constant 0.353553385 : f32
    %610 = vector.broadcast %cst_224 : f32 to vector<16x16xf32>
    %611 = arith.mulf %609, %610 : vector<16x16xf32>
    %612 = arith.addf %611, %551 : vector<16x16xf32>
    %cst_225 = arith.constant dense<0xFF800000> : vector<16xf32>
    %613 = vector.multi_reduction <maximumf>, %612, %cst_225 [1] : vector<16x16xf32> to vector<16xf32>
    %614 = vector.shape_cast %613 : vector<16xf32> to vector<16x1xf32>
    %615 = vector.broadcast %614 : vector<16x1xf32> to vector<16x16xf32>
    %616 = arith.subf %612, %615 : vector<16x16xf32>
    %617 = math.exp %616 : vector<16x16xf32>
    %cst_226 = arith.constant dense<0.000000e+00> : vector<16xf32>
    %618 = vector.multi_reduction <add>, %617, %cst_226 [1] : vector<16x16xf32> to vector<16xf32>
    %619 = vector.shape_cast %618 : vector<16xf32> to vector<16x1xf32>
    %620 = tpu.reciprocal %619 {approx = true} : vector<16x1xf32> -> vector<16x1xf32>
    %621 = vector.broadcast %620 : vector<16x1xf32> to vector<16x16xf32>
    %622 = arith.mulf %617, %621 : vector<16x16xf32>
    %cst_227 = arith.constant dense<0.000000e+00> : vector<16x8xf32>
    %623 = tpu.matmul %622, %608, %cst_227 {dimension_numbers = #tpu.dot_dimension_numbers<[1], [0], [0], [1], [0, 0, 1, 1], [], []>} : vector<16x16xf32>, vector<16x8xf32>, vector<16x8xf32> -> vector<16x8xf32>
    %624 = tpu.concatenate %569, %587, %605, %623 in 1 : vector<16x8xf32>, vector<16x8xf32>, vector<16x8xf32>, vector<16x8xf32> -> vector<16x32xf32>
    %625 = tpu.concatenate %549, %624 in 0 : vector<16x32xf32>, vector<16x32xf32> -> vector<32x32xf32>
    %c1_228 = arith.constant 1 : index
    %c0_229 = arith.constant 0 : index
    %c0_230 = arith.constant 0 : index
    %626 = vector.load %arg8[%c1_228, %c0_229, %c0_230] : memref<2x32x32xf32, #tpu.memory_space<vmem>>, vector<1x32x32xf32>
    %627 = vector.shape_cast %626 : vector<1x32x32xf32> to vector<32x32xf32>
    %cst_231 = arith.constant dense<0.000000e+00> : vector<32x32xf32>
    %628 = tpu.matmul %625, %627, %cst_231 {dimension_numbers = #tpu.dot_dimension_numbers<[1], [0], [0], [1], [0, 0, 1, 1], [], []>} : vector<32x32xf32>, vector<32x32xf32>, vector<32x32xf32> -> vector<32x32xf32>
    %629 = arith.addf %439, %628 : vector<32x32xf32>
    %c1_232 = arith.constant 1 : index
    %c0_233 = arith.constant 0 : index
    %c0_234 = arith.constant 0 : index
    %630 = vector.load %arg9[%c1_232, %c0_233, %c0_234] : memref<2x1x32xf32, #tpu.memory_space<vmem>>, vector<1x1x32xf32>
    %631 = vector.shape_cast %630 : vector<1x1x32xf32> to vector<1x32xf32>
    %632 = vector.broadcast %631 : vector<1x32xf32> to vector<32x32xf32>
    %633 = arith.addf %629, %632 : vector<32x32xf32>
    %c1_235 = arith.constant 1 : index
    %c0_236 = arith.constant 0 : index
    %c0_237 = arith.constant 0 : index
    %634 = vector.load %arg10[%c1_235, %c0_236, %c0_237] : memref<2x1x32xf32, #tpu.memory_space<vmem>>, vector<1x1x32xf32>
    %635 = vector.shape_cast %634 : vector<1x1x32xf32> to vector<1x32xf32>
    %c1_238 = arith.constant 1 : index
    %c0_239 = arith.constant 0 : index
    %c0_240 = arith.constant 0 : index
    %636 = vector.load %arg11[%c1_238, %c0_239, %c0_240] : memref<2x1x32xf32, #tpu.memory_space<vmem>>, vector<1x1x32xf32>
    %637 = vector.shape_cast %636 : vector<1x1x32xf32> to vector<1x32xf32>
    %cst_241 = arith.constant dense<0.000000e+00> : vector<32xf32>
    %638 = vector.multi_reduction <add>, %633, %cst_241 [1] : vector<32x32xf32> to vector<32xf32>
    %639 = vector.shape_cast %638 : vector<32xf32> to vector<32x1xf32>
    %cst_242 = arith.constant 3.200000e+01 : f32
    %640 = vector.broadcast %cst_242 : f32 to vector<32x1xf32>
    %641 = arith.divf %639, %640 : vector<32x1xf32>
    %642 = vector.broadcast %641 : vector<32x1xf32> to vector<32x32xf32>
    %643 = arith.subf %633, %642 : vector<32x32xf32>
    %644 = arith.mulf %643, %643 : vector<32x32xf32>
    %cst_243 = arith.constant dense<0.000000e+00> : vector<32xf32>
    %645 = vector.multi_reduction <add>, %644, %cst_243 [1] : vector<32x32xf32> to vector<32xf32>
    %646 = vector.shape_cast %645 : vector<32xf32> to vector<32x1xf32>
    %cst_244 = arith.constant 0.0322580636 : f32
    %647 = vector.broadcast %cst_244 : f32 to vector<32x1xf32>
    %648 = arith.mulf %646, %647 : vector<32x1xf32>
    %649 = math.sqrt %648 : vector<32x1xf32>
    %650 = vector.broadcast %635 : vector<1x32xf32> to vector<32x32xf32>
    %651 = arith.mulf %650, %643 : vector<32x32xf32>
    %cst_245 = arith.constant 9.99999997E-7 : f32
    %652 = vector.broadcast %cst_245 : f32 to vector<32x1xf32>
    %653 = arith.addf %649, %652 : vector<32x1xf32>
    %654 = tpu.reciprocal %653 {approx = true} : vector<32x1xf32> -> vector<32x1xf32>
    %655 = vector.broadcast %654 : vector<32x1xf32> to vector<32x32xf32>
    %656 = arith.mulf %651, %655 : vector<32x32xf32>
    %657 = vector.broadcast %637 : vector<1x32xf32> to vector<32x32xf32>
    %658 = arith.addf %656, %657 : vector<32x32xf32>
    %c1_246 = arith.constant 1 : index
    %c0_247 = arith.constant 0 : index
    %c0_248 = arith.constant 0 : index
    %659 = vector.load %arg12[%c1_246, %c0_247, %c0_248] : memref<2x32x32xf32, #tpu.memory_space<vmem>>, vector<1x32x32xf32>
    %660 = vector.shape_cast %659 : vector<1x32x32xf32> to vector<32x32xf32>
    %cst_249 = arith.constant dense<0.000000e+00> : vector<32x32xf32>
    %661 = tpu.matmul %658, %660, %cst_249 {dimension_numbers = #tpu.dot_dimension_numbers<[1], [0], [0], [1], [0, 0, 1, 1], [], []>} : vector<32x32xf32>, vector<32x32xf32>, vector<32x32xf32> -> vector<32x32xf32>
    %c1_250 = arith.constant 1 : index
    %c0_251 = arith.constant 0 : index
    %c0_252 = arith.constant 0 : index
    %662 = vector.load %arg13[%c1_250, %c0_251, %c0_252] : memref<2x1x32xf32, #tpu.memory_space<vmem>>, vector<1x1x32xf32>
    %663 = vector.shape_cast %662 : vector<1x1x32xf32> to vector<1x32xf32>
    %664 = vector.broadcast %663 : vector<1x32xf32> to vector<32x32xf32>
    %665 = arith.addf %661, %664 : vector<32x32xf32>
    %c1_253 = arith.constant 1 : index
    %c0_254 = arith.constant 0 : index
    %c0_255 = arith.constant 0 : index
    %666 = vector.load %arg14[%c1_253, %c0_254, %c0_255] : memref<2x32x64xf32, #tpu.memory_space<vmem>>, vector<1x32x64xf32>
    %667 = vector.shape_cast %666 : vector<1x32x64xf32> to vector<32x64xf32>
    %cst_256 = arith.constant dense<0.000000e+00> : vector<32x64xf32>
    %668 = tpu.matmul %1, %667, %cst_256 {dimension_numbers = #tpu.dot_dimension_numbers<[1], [0], [0], [1], [0, 0, 1, 1], [], []>} : vector<32x32xf32>, vector<32x64xf32>, vector<32x64xf32> -> vector<32x64xf32>
    %c1_257 = arith.constant 1 : index
    %c0_258 = arith.constant 0 : index
    %c0_259 = arith.constant 0 : index
    %669 = vector.load %arg15[%c1_257, %c0_258, %c0_259] : memref<2x1x64xf32, #tpu.memory_space<vmem>>, vector<1x1x64xf32>
    %670 = vector.shape_cast %669 : vector<1x1x64xf32> to vector<1x64xf32>
    %671 = vector.broadcast %670 : vector<1x64xf32> to vector<32x64xf32>
    %672 = arith.addf %668, %671 : vector<32x64xf32>
    %673 = vector.extract_strided_slice %672 {offsets = [0, 0], sizes = [32, 32], strides = [1, 1]} : vector<32x64xf32> to vector<32x32xf32>
    %674 = vector.extract_strided_slice %672 {offsets = [0, 32], sizes = [32, 32], strides = [1, 1]} : vector<32x64xf32> to vector<32x32xf32>
    %675 = vector.extract_strided_slice %3 {offsets = [0, 0, 0], sizes = [1, 16, 16], strides = [1, 1, 1]} : vector<2x16x16xf32> to vector<1x16x16xf32>
    %676 = vector.shape_cast %675 : vector<1x16x16xf32> to vector<16x16xf32>
    %677 = vector.extract_strided_slice %665 {offsets = [0, 0], sizes = [16, 8], strides = [1, 1]} : vector<32x32xf32> to vector<16x8xf32>
    %678 = vector.extract_strided_slice %673 {offsets = [0, 0], sizes = [16, 8], strides = [1, 1]} : vector<32x32xf32> to vector<16x8xf32>
    %679 = vector.extract_strided_slice %674 {offsets = [0, 0], sizes = [16, 8], strides = [1, 1]} : vector<32x32xf32> to vector<16x8xf32>
    %cst_260 = arith.constant dense<0.000000e+00> : vector<16x16xf32>
    %680 = tpu.matmul %677, %678, %cst_260 {dimension_numbers = #tpu.dot_dimension_numbers<[1], [1], [0], [0], [0, 0, 1, 0], [], []>} : vector<16x8xf32>, vector<16x8xf32>, vector<16x16xf32> -> vector<16x16xf32>
    %cst_261 = arith.constant 0.353553385 : f32
    %681 = vector.broadcast %cst_261 : f32 to vector<16x16xf32>
    %682 = arith.mulf %680, %681 : vector<16x16xf32>
    %683 = arith.addf %682, %676 : vector<16x16xf32>
    %cst_262 = arith.constant dense<0xFF800000> : vector<16xf32>
    %684 = vector.multi_reduction <maximumf>, %683, %cst_262 [1] : vector<16x16xf32> to vector<16xf32>
    %685 = vector.shape_cast %684 : vector<16xf32> to vector<16x1xf32>
    %686 = vector.broadcast %685 : vector<16x1xf32> to vector<16x16xf32>
    %687 = arith.subf %683, %686 : vector<16x16xf32>
    %688 = math.exp %687 : vector<16x16xf32>
    %cst_263 = arith.constant dense<0.000000e+00> : vector<16xf32>
    %689 = vector.multi_reduction <add>, %688, %cst_263 [1] : vector<16x16xf32> to vector<16xf32>
    %690 = vector.shape_cast %689 : vector<16xf32> to vector<16x1xf32>
    %691 = tpu.reciprocal %690 {approx = true} : vector<16x1xf32> -> vector<16x1xf32>
    %692 = vector.broadcast %691 : vector<16x1xf32> to vector<16x16xf32>
    %693 = arith.mulf %688, %692 : vector<16x16xf32>
    %cst_264 = arith.constant dense<0.000000e+00> : vector<16x8xf32>
    %694 = tpu.matmul %693, %679, %cst_264 {dimension_numbers = #tpu.dot_dimension_numbers<[1], [0], [0], [1], [0, 0, 1, 1], [], []>} : vector<16x16xf32>, vector<16x8xf32>, vector<16x8xf32> -> vector<16x8xf32>
    %695 = vector.extract_strided_slice %665 {offsets = [0, 8], sizes = [16, 8], strides = [1, 1]} : vector<32x32xf32> to vector<16x8xf32>
    %696 = vector.extract_strided_slice %673 {offsets = [0, 8], sizes = [16, 8], strides = [1, 1]} : vector<32x32xf32> to vector<16x8xf32>
    %697 = vector.extract_strided_slice %674 {offsets = [0, 8], sizes = [16, 8], strides = [1, 1]} : vector<32x32xf32> to vector<16x8xf32>
    %cst_265 = arith.constant dense<0.000000e+00> : vector<16x16xf32>
    %698 = tpu.matmul %695, %696, %cst_265 {dimension_numbers = #tpu.dot_dimension_numbers<[1], [1], [0], [0], [0, 0, 1, 0], [], []>} : vector<16x8xf32>, vector<16x8xf32>, vector<16x16xf32> -> vector<16x16xf32>
    %cst_266 = arith.constant 0.353553385 : f32
    %699 = vector.broadcast %cst_266 : f32 to vector<16x16xf32>
    %700 = arith.mulf %698, %699 : vector<16x16xf32>
    %701 = arith.addf %700, %676 : vector<16x16xf32>
    %cst_267 = arith.constant dense<0xFF800000> : vector<16xf32>
    %702 = vector.multi_reduction <maximumf>, %701, %cst_267 [1] : vector<16x16xf32> to vector<16xf32>
    %703 = vector.shape_cast %702 : vector<16xf32> to vector<16x1xf32>
    %704 = vector.broadcast %703 : vector<16x1xf32> to vector<16x16xf32>
    %705 = arith.subf %701, %704 : vector<16x16xf32>
    %706 = math.exp %705 : vector<16x16xf32>
    %cst_268 = arith.constant dense<0.000000e+00> : vector<16xf32>
    %707 = vector.multi_reduction <add>, %706, %cst_268 [1] : vector<16x16xf32> to vector<16xf32>
    %708 = vector.shape_cast %707 : vector<16xf32> to vector<16x1xf32>
    %709 = tpu.reciprocal %708 {approx = true} : vector<16x1xf32> -> vector<16x1xf32>
    %710 = vector.broadcast %709 : vector<16x1xf32> to vector<16x16xf32>
    %711 = arith.mulf %706, %710 : vector<16x16xf32>
    %cst_269 = arith.constant dense<0.000000e+00> : vector<16x8xf32>
    %712 = tpu.matmul %711, %697, %cst_269 {dimension_numbers = #tpu.dot_dimension_numbers<[1], [0], [0], [1], [0, 0, 1, 1], [], []>} : vector<16x16xf32>, vector<16x8xf32>, vector<16x8xf32> -> vector<16x8xf32>
    %713 = vector.extract_strided_slice %665 {offsets = [0, 16], sizes = [16, 8], strides = [1, 1]} : vector<32x32xf32> to vector<16x8xf32>
    %714 = vector.extract_strided_slice %673 {offsets = [0, 16], sizes = [16, 8], strides = [1, 1]} : vector<32x32xf32> to vector<16x8xf32>
    %715 = vector.extract_strided_slice %674 {offsets = [0, 16], sizes = [16, 8], strides = [1, 1]} : vector<32x32xf32> to vector<16x8xf32>
    %cst_270 = arith.constant dense<0.000000e+00> : vector<16x16xf32>
    %716 = tpu.matmul %713, %714, %cst_270 {dimension_numbers = #tpu.dot_dimension_numbers<[1], [1], [0], [0], [0, 0, 1, 0], [], []>} : vector<16x8xf32>, vector<16x8xf32>, vector<16x16xf32> -> vector<16x16xf32>
    %cst_271 = arith.constant 0.353553385 : f32
    %717 = vector.broadcast %cst_271 : f32 to vector<16x16xf32>
    %718 = arith.mulf %716, %717 : vector<16x16xf32>
    %719 = arith.addf %718, %676 : vector<16x16xf32>
    %cst_272 = arith.constant dense<0xFF800000> : vector<16xf32>
    %720 = vector.multi_reduction <maximumf>, %719, %cst_272 [1] : vector<16x16xf32> to vector<16xf32>
    %721 = vector.shape_cast %720 : vector<16xf32> to vector<16x1xf32>
    %722 = vector.broadcast %721 : vector<16x1xf32> to vector<16x16xf32>
    %723 = arith.subf %719, %722 : vector<16x16xf32>
    %724 = math.exp %723 : vector<16x16xf32>
    %cst_273 = arith.constant dense<0.000000e+00> : vector<16xf32>
    %725 = vector.multi_reduction <add>, %724, %cst_273 [1] : vector<16x16xf32> to vector<16xf32>
    %726 = vector.shape_cast %725 : vector<16xf32> to vector<16x1xf32>
    %727 = tpu.reciprocal %726 {approx = true} : vector<16x1xf32> -> vector<16x1xf32>
    %728 = vector.broadcast %727 : vector<16x1xf32> to vector<16x16xf32>
    %729 = arith.mulf %724, %728 : vector<16x16xf32>
    %cst_274 = arith.constant dense<0.000000e+00> : vector<16x8xf32>
    %730 = tpu.matmul %729, %715, %cst_274 {dimension_numbers = #tpu.dot_dimension_numbers<[1], [0], [0], [1], [0, 0, 1, 1], [], []>} : vector<16x16xf32>, vector<16x8xf32>, vector<16x8xf32> -> vector<16x8xf32>
    %731 = vector.extract_strided_slice %665 {offsets = [0, 24], sizes = [16, 8], strides = [1, 1]} : vector<32x32xf32> to vector<16x8xf32>
    %732 = vector.extract_strided_slice %673 {offsets = [0, 24], sizes = [16, 8], strides = [1, 1]} : vector<32x32xf32> to vector<16x8xf32>
    %733 = vector.extract_strided_slice %674 {offsets = [0, 24], sizes = [16, 8], strides = [1, 1]} : vector<32x32xf32> to vector<16x8xf32>
    %cst_275 = arith.constant dense<0.000000e+00> : vector<16x16xf32>
    %734 = tpu.matmul %731, %732, %cst_275 {dimension_numbers = #tpu.dot_dimension_numbers<[1], [1], [0], [0], [0, 0, 1, 0], [], []>} : vector<16x8xf32>, vector<16x8xf32>, vector<16x16xf32> -> vector<16x16xf32>
    %cst_276 = arith.constant 0.353553385 : f32
    %735 = vector.broadcast %cst_276 : f32 to vector<16x16xf32>
    %736 = arith.mulf %734, %735 : vector<16x16xf32>
    %737 = arith.addf %736, %676 : vector<16x16xf32>
    %cst_277 = arith.constant dense<0xFF800000> : vector<16xf32>
    %738 = vector.multi_reduction <maximumf>, %737, %cst_277 [1] : vector<16x16xf32> to vector<16xf32>
    %739 = vector.shape_cast %738 : vector<16xf32> to vector<16x1xf32>
    %740 = vector.broadcast %739 : vector<16x1xf32> to vector<16x16xf32>
    %741 = arith.subf %737, %740 : vector<16x16xf32>
    %742 = math.exp %741 : vector<16x16xf32>
    %cst_278 = arith.constant dense<0.000000e+00> : vector<16xf32>
    %743 = vector.multi_reduction <add>, %742, %cst_278 [1] : vector<16x16xf32> to vector<16xf32>
    %744 = vector.shape_cast %743 : vector<16xf32> to vector<16x1xf32>
    %745 = tpu.reciprocal %744 {approx = true} : vector<16x1xf32> -> vector<16x1xf32>
    %746 = vector.broadcast %745 : vector<16x1xf32> to vector<16x16xf32>
    %747 = arith.mulf %742, %746 : vector<16x16xf32>
    %cst_279 = arith.constant dense<0.000000e+00> : vector<16x8xf32>
    %748 = tpu.matmul %747, %733, %cst_279 {dimension_numbers = #tpu.dot_dimension_numbers<[1], [0], [0], [1], [0, 0, 1, 1], [], []>} : vector<16x16xf32>, vector<16x8xf32>, vector<16x8xf32> -> vector<16x8xf32>
    %749 = tpu.concatenate %694, %712, %730, %748 in 1 : vector<16x8xf32>, vector<16x8xf32>, vector<16x8xf32>, vector<16x8xf32> -> vector<16x32xf32>
    %750 = vector.extract_strided_slice %3 {offsets = [1, 0, 0], sizes = [1, 16, 16], strides = [1, 1, 1]} : vector<2x16x16xf32> to vector<1x16x16xf32>
    %751 = vector.shape_cast %750 : vector<1x16x16xf32> to vector<16x16xf32>
    %752 = vector.extract_strided_slice %665 {offsets = [16, 0], sizes = [16, 8], strides = [1, 1]} : vector<32x32xf32> to vector<16x8xf32>
    %753 = vector.extract_strided_slice %673 {offsets = [16, 0], sizes = [16, 8], strides = [1, 1]} : vector<32x32xf32> to vector<16x8xf32>
    %754 = vector.extract_strided_slice %674 {offsets = [16, 0], sizes = [16, 8], strides = [1, 1]} : vector<32x32xf32> to vector<16x8xf32>
    %cst_280 = arith.constant dense<0.000000e+00> : vector<16x16xf32>
    %755 = tpu.matmul %752, %753, %cst_280 {dimension_numbers = #tpu.dot_dimension_numbers<[1], [1], [0], [0], [0, 0, 1, 0], [], []>} : vector<16x8xf32>, vector<16x8xf32>, vector<16x16xf32> -> vector<16x16xf32>
    %cst_281 = arith.constant 0.353553385 : f32
    %756 = vector.broadcast %cst_281 : f32 to vector<16x16xf32>
    %757 = arith.mulf %755, %756 : vector<16x16xf32>
    %758 = arith.addf %757, %751 : vector<16x16xf32>
    %cst_282 = arith.constant dense<0xFF800000> : vector<16xf32>
    %759 = vector.multi_reduction <maximumf>, %758, %cst_282 [1] : vector<16x16xf32> to vector<16xf32>
    %760 = vector.shape_cast %759 : vector<16xf32> to vector<16x1xf32>
    %761 = vector.broadcast %760 : vector<16x1xf32> to vector<16x16xf32>
    %762 = arith.subf %758, %761 : vector<16x16xf32>
    %763 = math.exp %762 : vector<16x16xf32>
    %cst_283 = arith.constant dense<0.000000e+00> : vector<16xf32>
    %764 = vector.multi_reduction <add>, %763, %cst_283 [1] : vector<16x16xf32> to vector<16xf32>
    %765 = vector.shape_cast %764 : vector<16xf32> to vector<16x1xf32>
    %766 = tpu.reciprocal %765 {approx = true} : vector<16x1xf32> -> vector<16x1xf32>
    %767 = vector.broadcast %766 : vector<16x1xf32> to vector<16x16xf32>
    %768 = arith.mulf %763, %767 : vector<16x16xf32>
    %cst_284 = arith.constant dense<0.000000e+00> : vector<16x8xf32>
    %769 = tpu.matmul %768, %754, %cst_284 {dimension_numbers = #tpu.dot_dimension_numbers<[1], [0], [0], [1], [0, 0, 1, 1], [], []>} : vector<16x16xf32>, vector<16x8xf32>, vector<16x8xf32> -> vector<16x8xf32>
    %770 = vector.extract_strided_slice %665 {offsets = [16, 8], sizes = [16, 8], strides = [1, 1]} : vector<32x32xf32> to vector<16x8xf32>
    %771 = vector.extract_strided_slice %673 {offsets = [16, 8], sizes = [16, 8], strides = [1, 1]} : vector<32x32xf32> to vector<16x8xf32>
    %772 = vector.extract_strided_slice %674 {offsets = [16, 8], sizes = [16, 8], strides = [1, 1]} : vector<32x32xf32> to vector<16x8xf32>
    %cst_285 = arith.constant dense<0.000000e+00> : vector<16x16xf32>
    %773 = tpu.matmul %770, %771, %cst_285 {dimension_numbers = #tpu.dot_dimension_numbers<[1], [1], [0], [0], [0, 0, 1, 0], [], []>} : vector<16x8xf32>, vector<16x8xf32>, vector<16x16xf32> -> vector<16x16xf32>
    %cst_286 = arith.constant 0.353553385 : f32
    %774 = vector.broadcast %cst_286 : f32 to vector<16x16xf32>
    %775 = arith.mulf %773, %774 : vector<16x16xf32>
    %776 = arith.addf %775, %751 : vector<16x16xf32>
    %cst_287 = arith.constant dense<0xFF800000> : vector<16xf32>
    %777 = vector.multi_reduction <maximumf>, %776, %cst_287 [1] : vector<16x16xf32> to vector<16xf32>
    %778 = vector.shape_cast %777 : vector<16xf32> to vector<16x1xf32>
    %779 = vector.broadcast %778 : vector<16x1xf32> to vector<16x16xf32>
    %780 = arith.subf %776, %779 : vector<16x16xf32>
    %781 = math.exp %780 : vector<16x16xf32>
    %cst_288 = arith.constant dense<0.000000e+00> : vector<16xf32>
    %782 = vector.multi_reduction <add>, %781, %cst_288 [1] : vector<16x16xf32> to vector<16xf32>
    %783 = vector.shape_cast %782 : vector<16xf32> to vector<16x1xf32>
    %784 = tpu.reciprocal %783 {approx = true} : vector<16x1xf32> -> vector<16x1xf32>
    %785 = vector.broadcast %784 : vector<16x1xf32> to vector<16x16xf32>
    %786 = arith.mulf %781, %785 : vector<16x16xf32>
    %cst_289 = arith.constant dense<0.000000e+00> : vector<16x8xf32>
    %787 = tpu.matmul %786, %772, %cst_289 {dimension_numbers = #tpu.dot_dimension_numbers<[1], [0], [0], [1], [0, 0, 1, 1], [], []>} : vector<16x16xf32>, vector<16x8xf32>, vector<16x8xf32> -> vector<16x8xf32>
    %788 = vector.extract_strided_slice %665 {offsets = [16, 16], sizes = [16, 8], strides = [1, 1]} : vector<32x32xf32> to vector<16x8xf32>
    %789 = vector.extract_strided_slice %673 {offsets = [16, 16], sizes = [16, 8], strides = [1, 1]} : vector<32x32xf32> to vector<16x8xf32>
    %790 = vector.extract_strided_slice %674 {offsets = [16, 16], sizes = [16, 8], strides = [1, 1]} : vector<32x32xf32> to vector<16x8xf32>
    %cst_290 = arith.constant dense<0.000000e+00> : vector<16x16xf32>
    %791 = tpu.matmul %788, %789, %cst_290 {dimension_numbers = #tpu.dot_dimension_numbers<[1], [1], [0], [0], [0, 0, 1, 0], [], []>} : vector<16x8xf32>, vector<16x8xf32>, vector<16x16xf32> -> vector<16x16xf32>
    %cst_291 = arith.constant 0.353553385 : f32
    %792 = vector.broadcast %cst_291 : f32 to vector<16x16xf32>
    %793 = arith.mulf %791, %792 : vector<16x16xf32>
    %794 = arith.addf %793, %751 : vector<16x16xf32>
    %cst_292 = arith.constant dense<0xFF800000> : vector<16xf32>
    %795 = vector.multi_reduction <maximumf>, %794, %cst_292 [1] : vector<16x16xf32> to vector<16xf32>
    %796 = vector.shape_cast %795 : vector<16xf32> to vector<16x1xf32>
    %797 = vector.broadcast %796 : vector<16x1xf32> to vector<16x16xf32>
    %798 = arith.subf %794, %797 : vector<16x16xf32>
    %799 = math.exp %798 : vector<16x16xf32>
    %cst_293 = arith.constant dense<0.000000e+00> : vector<16xf32>
    %800 = vector.multi_reduction <add>, %799, %cst_293 [1] : vector<16x16xf32> to vector<16xf32>
    %801 = vector.shape_cast %800 : vector<16xf32> to vector<16x1xf32>
    %802 = tpu.reciprocal %801 {approx = true} : vector<16x1xf32> -> vector<16x1xf32>
    %803 = vector.broadcast %802 : vector<16x1xf32> to vector<16x16xf32>
    %804 = arith.mulf %799, %803 : vector<16x16xf32>
    %cst_294 = arith.constant dense<0.000000e+00> : vector<16x8xf32>
    %805 = tpu.matmul %804, %790, %cst_294 {dimension_numbers = #tpu.dot_dimension_numbers<[1], [0], [0], [1], [0, 0, 1, 1], [], []>} : vector<16x16xf32>, vector<16x8xf32>, vector<16x8xf32> -> vector<16x8xf32>
    %806 = vector.extract_strided_slice %665 {offsets = [16, 24], sizes = [16, 8], strides = [1, 1]} : vector<32x32xf32> to vector<16x8xf32>
    %807 = vector.extract_strided_slice %673 {offsets = [16, 24], sizes = [16, 8], strides = [1, 1]} : vector<32x32xf32> to vector<16x8xf32>
    %808 = vector.extract_strided_slice %674 {offsets = [16, 24], sizes = [16, 8], strides = [1, 1]} : vector<32x32xf32> to vector<16x8xf32>
    %cst_295 = arith.constant dense<0.000000e+00> : vector<16x16xf32>
    %809 = tpu.matmul %806, %807, %cst_295 {dimension_numbers = #tpu.dot_dimension_numbers<[1], [1], [0], [0], [0, 0, 1, 0], [], []>} : vector<16x8xf32>, vector<16x8xf32>, vector<16x16xf32> -> vector<16x16xf32>
    %cst_296 = arith.constant 0.353553385 : f32
    %810 = vector.broadcast %cst_296 : f32 to vector<16x16xf32>
    %811 = arith.mulf %809, %810 : vector<16x16xf32>
    %812 = arith.addf %811, %751 : vector<16x16xf32>
    %cst_297 = arith.constant dense<0xFF800000> : vector<16xf32>
    %813 = vector.multi_reduction <maximumf>, %812, %cst_297 [1] : vector<16x16xf32> to vector<16xf32>
    %814 = vector.shape_cast %813 : vector<16xf32> to vector<16x1xf32>
    %815 = vector.broadcast %814 : vector<16x1xf32> to vector<16x16xf32>
    %816 = arith.subf %812, %815 : vector<16x16xf32>
    %817 = math.exp %816 : vector<16x16xf32>
    %cst_298 = arith.constant dense<0.000000e+00> : vector<16xf32>
    %818 = vector.multi_reduction <add>, %817, %cst_298 [1] : vector<16x16xf32> to vector<16xf32>
    %819 = vector.shape_cast %818 : vector<16xf32> to vector<16x1xf32>
    %820 = tpu.reciprocal %819 {approx = true} : vector<16x1xf32> -> vector<16x1xf32>
    %821 = vector.broadcast %820 : vector<16x1xf32> to vector<16x16xf32>
    %822 = arith.mulf %817, %821 : vector<16x16xf32>
    %cst_299 = arith.constant dense<0.000000e+00> : vector<16x8xf32>
    %823 = tpu.matmul %822, %808, %cst_299 {dimension_numbers = #tpu.dot_dimension_numbers<[1], [0], [0], [1], [0, 0, 1, 1], [], []>} : vector<16x16xf32>, vector<16x8xf32>, vector<16x8xf32> -> vector<16x8xf32>
    %824 = tpu.concatenate %769, %787, %805, %823 in 1 : vector<16x8xf32>, vector<16x8xf32>, vector<16x8xf32>, vector<16x8xf32> -> vector<16x32xf32>
    %825 = tpu.concatenate %749, %824 in 0 : vector<16x32xf32>, vector<16x32xf32> -> vector<32x32xf32>
    %c1_300 = arith.constant 1 : index
    %c0_301 = arith.constant 0 : index
    %c0_302 = arith.constant 0 : index
    %826 = vector.load %arg16[%c1_300, %c0_301, %c0_302] : memref<2x32x32xf32, #tpu.memory_space<vmem>>, vector<1x32x32xf32>
    %827 = vector.shape_cast %826 : vector<1x32x32xf32> to vector<32x32xf32>
    %cst_303 = arith.constant dense<0.000000e+00> : vector<32x32xf32>
    %828 = tpu.matmul %825, %827, %cst_303 {dimension_numbers = #tpu.dot_dimension_numbers<[1], [0], [0], [1], [0, 0, 1, 1], [], []>} : vector<32x32xf32>, vector<32x32xf32>, vector<32x32xf32> -> vector<32x32xf32>
    %829 = arith.addf %633, %828 : vector<32x32xf32>
    %c1_304 = arith.constant 1 : index
    %c0_305 = arith.constant 0 : index
    %c0_306 = arith.constant 0 : index
    %830 = vector.load %arg17[%c1_304, %c0_305, %c0_306] : memref<2x1x32xf32, #tpu.memory_space<vmem>>, vector<1x1x32xf32>
    %831 = vector.shape_cast %830 : vector<1x1x32xf32> to vector<1x32xf32>
    %832 = vector.broadcast %831 : vector<1x32xf32> to vector<32x32xf32>
    %833 = arith.addf %829, %832 : vector<32x32xf32>
    %c1_307 = arith.constant 1 : index
    %c0_308 = arith.constant 0 : index
    %c0_309 = arith.constant 0 : index
    %834 = vector.load %arg18[%c1_307, %c0_308, %c0_309] : memref<2x1x32xf32, #tpu.memory_space<vmem>>, vector<1x1x32xf32>
    %835 = vector.shape_cast %834 : vector<1x1x32xf32> to vector<1x32xf32>
    %c1_310 = arith.constant 1 : index
    %c0_311 = arith.constant 0 : index
    %c0_312 = arith.constant 0 : index
    %836 = vector.load %arg19[%c1_310, %c0_311, %c0_312] : memref<2x1x32xf32, #tpu.memory_space<vmem>>, vector<1x1x32xf32>
    %837 = vector.shape_cast %836 : vector<1x1x32xf32> to vector<1x32xf32>
    %cst_313 = arith.constant dense<0.000000e+00> : vector<32xf32>
    %838 = vector.multi_reduction <add>, %833, %cst_313 [1] : vector<32x32xf32> to vector<32xf32>
    %839 = vector.shape_cast %838 : vector<32xf32> to vector<32x1xf32>
    %cst_314 = arith.constant 3.200000e+01 : f32
    %840 = vector.broadcast %cst_314 : f32 to vector<32x1xf32>
    %841 = arith.divf %839, %840 : vector<32x1xf32>
    %842 = vector.broadcast %841 : vector<32x1xf32> to vector<32x32xf32>
    %843 = arith.subf %833, %842 : vector<32x32xf32>
    %844 = arith.mulf %843, %843 : vector<32x32xf32>
    %cst_315 = arith.constant dense<0.000000e+00> : vector<32xf32>
    %845 = vector.multi_reduction <add>, %844, %cst_315 [1] : vector<32x32xf32> to vector<32xf32>
    %846 = vector.shape_cast %845 : vector<32xf32> to vector<32x1xf32>
    %cst_316 = arith.constant 0.0322580636 : f32
    %847 = vector.broadcast %cst_316 : f32 to vector<32x1xf32>
    %848 = arith.mulf %846, %847 : vector<32x1xf32>
    %849 = math.sqrt %848 : vector<32x1xf32>
    %850 = vector.broadcast %835 : vector<1x32xf32> to vector<32x32xf32>
    %851 = arith.mulf %850, %843 : vector<32x32xf32>
    %cst_317 = arith.constant 9.99999997E-7 : f32
    %852 = vector.broadcast %cst_317 : f32 to vector<32x1xf32>
    %853 = arith.addf %849, %852 : vector<32x1xf32>
    %854 = tpu.reciprocal %853 {approx = true} : vector<32x1xf32> -> vector<32x1xf32>
    %855 = vector.broadcast %854 : vector<32x1xf32> to vector<32x32xf32>
    %856 = arith.mulf %851, %855 : vector<32x32xf32>
    %857 = vector.broadcast %837 : vector<1x32xf32> to vector<32x32xf32>
    %858 = arith.addf %856, %857 : vector<32x32xf32>
    %c1_318 = arith.constant 1 : index
    %c0_319 = arith.constant 0 : index
    %c0_320 = arith.constant 0 : index
    %859 = vector.load %arg20[%c1_318, %c0_319, %c0_320] : memref<2x32x64xf32, #tpu.memory_space<vmem>>, vector<1x32x64xf32>
    %860 = vector.shape_cast %859 : vector<1x32x64xf32> to vector<32x64xf32>
    %cst_321 = arith.constant dense<0.000000e+00> : vector<32x64xf32>
    %861 = tpu.matmul %858, %860, %cst_321 {dimension_numbers = #tpu.dot_dimension_numbers<[1], [0], [0], [1], [0, 0, 1, 1], [], []>} : vector<32x32xf32>, vector<32x64xf32>, vector<32x64xf32> -> vector<32x64xf32>
    %c1_322 = arith.constant 1 : index
    %c0_323 = arith.constant 0 : index
    %c0_324 = arith.constant 0 : index
    %862 = vector.load %arg21[%c1_322, %c0_323, %c0_324] : memref<2x1x64xf32, #tpu.memory_space<vmem>>, vector<1x1x64xf32>
    %863 = vector.shape_cast %862 : vector<1x1x64xf32> to vector<1x64xf32>
    %864 = vector.broadcast %863 : vector<1x64xf32> to vector<32x64xf32>
    %865 = arith.addf %861, %864 : vector<32x64xf32>
    %cst_325 = arith.constant 0.000000e+00 : f32
    %866 = vector.broadcast %cst_325 : f32 to vector<32x64xf32>
    %867 = arith.maximumf %865, %866 : vector<32x64xf32>
    %c1_326 = arith.constant 1 : index
    %c0_327 = arith.constant 0 : index
    %c0_328 = arith.constant 0 : index
    %868 = vector.load %arg22[%c1_326, %c0_327, %c0_328] : memref<2x64x32xf32, #tpu.memory_space<vmem>>, vector<1x64x32xf32>
    %869 = vector.shape_cast %868 : vector<1x64x32xf32> to vector<64x32xf32>
    %cst_329 = arith.constant dense<0.000000e+00> : vector<32x32xf32>
    %870 = tpu.matmul %867, %869, %cst_329 {dimension_numbers = #tpu.dot_dimension_numbers<[1], [0], [0], [1], [0, 0, 1, 1], [], []>} : vector<32x64xf32>, vector<64x32xf32>, vector<32x32xf32> -> vector<32x32xf32>
    %871 = arith.addf %833, %870 : vector<32x32xf32>
    %c1_330 = arith.constant 1 : index
    %c0_331 = arith.constant 0 : index
    %c0_332 = arith.constant 0 : index
    %872 = vector.load %arg23[%c1_330, %c0_331, %c0_332] : memref<2x1x32xf32, #tpu.memory_space<vmem>>, vector<1x1x32xf32>
    %873 = vector.shape_cast %872 : vector<1x1x32xf32> to vector<1x32xf32>
    %874 = vector.broadcast %873 : vector<1x32xf32> to vector<32x32xf32>
    %875 = arith.addf %871, %874 : vector<32x32xf32>
    %c0_333 = arith.constant 0 : index
    %c0_334 = arith.constant 0 : index
    %876 = vector.load %arg24[%c0_333, %c0_334] : memref<1x32xf32, #tpu.memory_space<vmem>>, vector<1x32xf32>
    %c0_335 = arith.constant 0 : index
    %c0_336 = arith.constant 0 : index
    %877 = vector.load %arg25[%c0_335, %c0_336] : memref<1x32xf32, #tpu.memory_space<vmem>>, vector<1x32xf32>
    %cst_337 = arith.constant dense<0.000000e+00> : vector<32xf32>
    %878 = vector.multi_reduction <add>, %875, %cst_337 [1] : vector<32x32xf32> to vector<32xf32>
    %879 = vector.shape_cast %878 : vector<32xf32> to vector<32x1xf32>
    %cst_338 = arith.constant 3.200000e+01 : f32
    %880 = vector.broadcast %cst_338 : f32 to vector<32x1xf32>
    %881 = arith.divf %879, %880 : vector<32x1xf32>
    %882 = vector.broadcast %881 : vector<32x1xf32> to vector<32x32xf32>
    %883 = arith.subf %875, %882 : vector<32x32xf32>
    %884 = arith.mulf %883, %883 : vector<32x32xf32>
    %cst_339 = arith.constant dense<0.000000e+00> : vector<32xf32>
    %885 = vector.multi_reduction <add>, %884, %cst_339 [1] : vector<32x32xf32> to vector<32xf32>
    %886 = vector.shape_cast %885 : vector<32xf32> to vector<32x1xf32>
    %cst_340 = arith.constant 0.0322580636 : f32
    %887 = vector.broadcast %cst_340 : f32 to vector<32x1xf32>
    %888 = arith.mulf %886, %887 : vector<32x1xf32>
    %889 = math.sqrt %888 : vector<32x1xf32>
    %890 = vector.broadcast %876 : vector<1x32xf32> to vector<32x32xf32>
    %891 = arith.mulf %890, %883 : vector<32x32xf32>
    %cst_341 = arith.constant 9.99999997E-7 : f32
    %892 = vector.broadcast %cst_341 : f32 to vector<32x1xf32>
    %893 = arith.addf %889, %892 : vector<32x1xf32>
    %894 = tpu.reciprocal %893 {approx = true} : vector<32x1xf32> -> vector<32x1xf32>
    %895 = vector.broadcast %894 : vector<32x1xf32> to vector<32x32xf32>
    %896 = arith.mulf %891, %895 : vector<32x32xf32>
    %897 = vector.broadcast %877 : vector<1x32xf32> to vector<32x32xf32>
    %898 = arith.addf %896, %897 : vector<32x32xf32>
    %c0_342 = arith.constant 0 : index
    %c0_343 = arith.constant 0 : index
    %899 = vector.load %arg26[%c0_342, %c0_343] : memref<32x32xf32, #tpu.memory_space<vmem>>, vector<32x32xf32>
    tpu.vector_store %arg26[%c0_342, %c0_343], %898 {strides = array<i32>} : memref<32x32xf32, #tpu.memory_space<vmem>>, vector<32x32xf32>,
    return
  }
}

</mosaic_0001>

<bundles_post_ra>
// kernel: encoder_decoder_forward.2
= control target key start
LH: loop header
LB: loop body
LE: loop exit
PB: predicated region body
PF: predicated region fallthrough
CT: control target
= control target key end

     0   :  { %vm63_vm0 = vcmask 261120   ;;  %vm279_vm9 = vcmask 64512   ;;  %s6241_s30 = smov 88   ;;  %s6243_s17 = smov 120   ;;  %vm367_vm11 = vcmask 130048   ;;  %vm1117_vm12 = vcmask 195584   ;;  %s7350_s0 = inlined_call_operand.vmem [shape: f32[32,32], index: 0, kind: input, shape index: {}]   ;;  %s7351_s4 = inlined_call_operand.vmem [shape: f32[2,32,96], index: 4, kind: input, shape index: {}]   ;;  %s7352_s2 = inlined_call_operand.vmem [shape: f32[2,1,32], index: 2, kind: input, shape index: {}]   ;;  %s7353_s3 = inlined_call_operand.vmem [shape: f32[2,1,32], index: 3, kind: input, shape index: {}]   ;;  %s7354_s5 = inlined_call_operand.vmem [shape: f32[2,1,96], index: 5, kind: input, shape index: {}]   ;;  %s7355_s1 = inlined_call_operand.vmem [shape: f32[2,16,16], index: 1, kind: input, shape index: {}]   ;;  %s7356_s6 = inlined_call_operand.vmem [shape: f32[2,32,32], index: 6, kind: input, shape index: {}]   ;;  %s7357_s7 = inlined_call_operand.vmem [shape: f32[2,1,32], index: 7, kind: input, shape index: {}]   ;;  %s7358_s10 = inlined_call_operand.vmem [shape: f32[2,32,64], index: 10, kind: input, shape index: {}]   ;;  %s7359_s8 = inlined_call_operand.vmem [shape: f32[2,1,32], index: 8, kind: input, shape index: {}]   ;;  %s7360_s9 = inlined_call_operand.vmem [shape: f32[2,1,32], index: 9, kind: input, shape index: {}]   ;;  %s7361_s12 = inlined_call_operand.vmem [shape: f32[2,64,32], index: 12, kind: input, shape index: {}]   ;;  %s7362_s11 = inlined_call_operand.vmem [shape: f32[2,1,64], index: 11, kind: input, shape index: {}]   ;;  %s7363_s13 = inlined_call_operand.vmem [shape: f32[2,1,32], index: 13, kind: input, shape index: {}]   ;;  %s7364_s14 = inlined_call_operand.vmem [shape: f32[1,32], index: 14, kind: input, shape index: {}]   ;;  %s7365_s15 = inlined_call_operand.vmem [shape: f32[1,32], index: 15, kind: input, shape index: {}]   ;;  %s7366_s16 = inlined_call_operand.vmem [shape: f32[32,32], index: 16, kind: output, shape index: {}]  }
   0x1   :  { %7386 = sst [smem:[#allocation2_spill]] %s7350_s0  ;;  %v165_v20 = vld [vmem:[%s7351_s4] sm:$0xff]  ;;  %v166_v21 = vld [vmem:[%s7351_s4 + $0x8] sm:$0xff]  ;;  %v167_v22 = vld [vmem:[%s7351_s4 + $0x10] sm:$0xff]  ;;  %s7368_s0 = smov 96  }
   0x2   :  { %s7387_s23 = sld [smem:[#allocation2_spill]]  ;;  %v5611_v23 = vpack.c.bf16 %v166_v21, %v165_v20  ;;  %v168_v24 = vld [vmem:[%s7351_s4 + $0x18] sm:$0xff]  ;;  %v4885_v50 = vld [vmem:[%s7352_s2] ss:$0 sm:$0xff]  ;;  %s6244_s18 = smov 80   ;;  %vm6435_vm10 = vmpackc.low %vm279_vm9, %vm279_vm9 }
   0x3   :  { %v5615_v26 = vpack.c.bf16 %v168_v24, %v167_v22  ;;  %v4886_v53 = vld [vmem:[%s7353_s3] ss:$0 sm:$0xff]  ;;  %s6245_s19 = smov 112   ;;  %s7384_s25 = smov 64  }
   0x4   :  { %5612 = vmatprep.subr.bf16.mxu1 %v5611_v23  ;;  %v6405_v20 = vld [vmem:[%s7354_s5] ss:$0 sm:$0xff]  ;;  %s7382_s26 = smov 48   ;;  %s7374_s27 = smov 72  }
   0x5   :  { %5614 = vmatpush3.bf16.msra.mxu1 %v5611_v23  ;;  %s6249_s28 = smov 56   ;;  %s7372_s29 = smov 104  }
   0x6   :  { %5616 = vmatprep.subr.bf16.mxu1 %v5615_v26  ;;  %s7370_s20 = smov 40   ;;  %s7376_s21 = smov 16  }
   0x7   :  { %s7380_s22 = smov 24  }
   0x8   :  { %v53_v0 = vld [vmem:[%s7387_s23] sm:$0xff]  ;;  %v54_v1 = vld [vmem:[%s7387_s23 + $0x8] sm:$0xff]  ;;  %v55_v4 = vld [vmem:[%s7387_s23 + $0x10] sm:$0xff] }
   0x9   :  { %v64_v2 = vsel %vm63_vm0, %v53_v0, 0.0  ;;  %v67_v3 = vsel %vm63_vm0, %v54_v1, 0.0  ;;  %v70_v5 = vsel %vm63_vm0, %v55_v4, 0.0  ;;  %v56_v15 = vld [vmem:[%s7387_s23 + $0x18] sm:$0xff]  ;;  %5618 = vmatpush3.bf16.msra.mxu1 %v5615_v26 }
   0xa   :  { %65 = vadd.xlane.f32.xlu0 %v64_v2  ;;  %v73_v17 = vsel %vm63_vm0, %v56_v15, 0.0 }
   0xe   :  { %68 = vadd.xlane.f32.xlu0 %v67_v3 }
  0x12   :  { %71 = vadd.xlane.f32.xlu0 %v70_v5 }
  0x97   :  { %v66_v6 = vpop.xlane.xlu0 %65 }
  0x98   :  { %v77_v7 = vmul.f32 0.03125, %v66_v6 }
  0x9a   :  { %v6352_v8 = vsub.f32 %v53_v0, %v77_v7 }
  0x9b   :  { %v69_v9 = vpop.xlane.xlu0 %68 }
  0x9c   :  { %v78_v10 = vmul.f32 0.03125, %v69_v9  ;;  %v85_v11 = vmul.f32 %v6352_v8, %v6352_v8  ;;  %v139_v51 = vmul.f32 %v4885_v50, %v6352_v8 }
  0x9e   :  { %v6356_v12 = vsub.f32 %v54_v1, %v78_v10  ;;  %v89_v13 = vsel %vm63_vm0, %v85_v11, 0.0 }
  0x9f   :  { %90 = vadd.xlane.f32.xlu1 %v89_v13  ;;  %v72_v18 = vpop.xlane.xlu0 %71 }
  0xa0   :  { %v86_v14 = vmul.f32 %v6356_v12, %v6356_v12  ;;  %v79_v19 = vmul.f32 0.03125, %v72_v18  ;;  %v140_v55 = vmul.f32 %v4885_v50, %v6356_v12 }
  0xa2   :  { %v92_v16 = vsel %vm63_vm0, %v86_v14, 0.0  ;;  %v6378_v25 = vsub.f32 %v55_v4, %v79_v19 }
  0xa3   :  { %93 = vadd.xlane.f32.xlu1 %v92_v16 }
  0xa4   :  { %v87_v27 = vmul.f32 %v6378_v25, %v6378_v25  ;;  %v141_v4 = vmul.f32 %v4885_v50, %v6378_v25 }
  0xa6   :  { %v95_v28 = vsel %vm63_vm0, %v87_v27, 0.0 }
  0xa7   :  { %74 = vadd.xlane.f32.xlu1 %v73_v17  ;;  %96 = vadd.xlane.f32.xlu0 %v95_v28 }
 0x12c   :  { %v91_v29 = vpop.xlane.xlu1 %90 }
 0x12d   :  { %v101_v30 = vmul.f32 0.032258064, %v91_v29 }
 0x12f   :  { %6025 = vrsqrt.f32 %v101_v30  ;;  %vm107_vm1 = vcmp.eq.f32.partialorder %v101_v30, inf  ;;  %v110_v40 = vand.u32 2147483648, %v101_v30  ;;  %vm109_vm2 = vcmp.eq.f32.partialorder %v101_v30, 0.0 }
 0x130   :  { %v94_v31 = vpop.xlane.xlu1 %93 }
 0x131   :  { %v102_v32 = vmul.f32 0.032258064, %v94_v31 }
 0x133   :  { %6027 = vrsqrt.f32 %v102_v32  ;;  %vm114_vm3 = vcmp.eq.f32.partialorder %v102_v32, inf  ;;  %v117_v46 = vand.u32 2147483648, %v102_v32  ;;  %vm116_vm4 = vcmp.eq.f32.partialorder %v102_v32, 0.0 }
 0x134   :  { %v75_v33 = vpop.xlane.xlu1 %74  ;;  %v97_v60 = vpop.xlane.xlu0 %96 }
 0x135   :  { %v80_v34 = vmul.f32 0.03125, %v75_v33  ;;  %v103_v61 = vmul.f32 0.032258064, %v97_v60 }
 0x137   :  { %v6383_v35 = vsub.f32 %v56_v15, %v80_v34  ;;  %vm121_vm5 = vcmp.eq.f32.partialorder %v103_v61, inf  ;;  %v124_v63 = vand.u32 2147483648, %v103_v61  ;;  %vm123_vm6 = vcmp.eq.f32.partialorder %v103_v61, 0.0 }
 0x139   :  { %v6026_v36 = vpop.eup %6025  ;;  %v88_v37 = vmul.f32 %v6383_v35, %v6383_v35  ;;  %v142_v16 = vmul.f32 %v4885_v50, %v6383_v35  ;;  %v6469_v50 = vld [vmem:[%s7355_s1] sm:$0xff] }
 0x13a   :  { %v106_v38 = vmul.f32 %v6026_v36, %v101_v30 }
 0x13b   :  { %v98_v39 = vsel %vm63_vm0, %v88_v37, 0.0 }
 0x13c   :  { %99 = vadd.xlane.f32.xlu1 %v98_v39  ;;  %v108_v41 = vsel %vm107_vm1, %v101_v30, %v106_v38 }
 0x13d   :  { %v6028_v42 = vpop.eup %6027  ;;  %v111_v43 = vsel %vm109_vm2, %v110_v40, %v108_v41  ;;  %vm2302_vm2 = vcmask 523264  }
 0x13e   :  { %v113_v44 = vmul.f32 %v6028_v42, %v102_v32  ;;  %v143_v45 = vadd.f32 1e-06, %v111_v43 }
 0x140   :  { %v115_v47 = vsel %vm114_vm3, %v102_v32, %v113_v44  ;;  %6029 = vrcp.f32 %v143_v45 }
 0x141   :  { %v118_v48 = vsel %vm116_vm4, %v117_v46, %v115_v47  ;;  %v6464_v46 = vld [vmem:[%s7355_s1 + $0x8] sm:$0xff] }
 0x142   :  { %v144_v49 = vadd.f32 1e-06, %v118_v48 }
 0x144   :  { %6031 = vrcp.f32 %v144_v49 }
 0x145   :  { %6033 = vrsqrt.f32 %v103_v61 }
 0x14a   :  { %v6030_v52 = vpop.eup %6029 }
 0x14b   :  { %v151_v54 = vmul.f32 %v6030_v52, %v139_v51 }
 0x14d   :  { %v161_v56 = vadd.f32 %v4886_v53, %v151_v54 }
 0x14e   :  { %v6032_v57 = vpop.eup %6031 }
 0x14f   :  { %5267 = vmatprep.mubr.msk.f32.mxu1 %vm63_vm0, %v161_v56  ;;  %v152_v58 = vmul.f32 %v6032_v57, %v140_v55  ;;  %v6034_v62 = vpop.eup %6033 }
 0x150   :  { %v120_v0 = vmul.f32 %v6034_v62, %v103_v61 }
 0x151   :  { %v162_v59 = vadd.f32 %v4886_v53, %v152_v58 }
 0x152   :  { %v122_v1 = vsel %vm121_vm5, %v103_v61, %v120_v0 }
 0x153   :  { %5268 = vmatmul.mubr.msk.f32.vlgmr.msra.gmra.mrb[0].mxu1 %vm63_vm0, %v162_v59  ;;  %v125_v2 = vsel %vm123_vm6, %v124_v63, %v122_v1 }
 0x154   :  { %v145_v3 = vadd.f32 1e-06, %v125_v2 }
 0x156   :  { %6035 = vrcp.f32 %v145_v3 }
 0x160   :  { %v6036_v5 = vpop.eup %6035 }
 0x161   :  { %v153_v6 = vmul.f32 %v6036_v5, %v141_v4 }
 0x163   :  { %v163_v7 = vadd.f32 %v4886_v53, %v153_v6 }
 0x165   :  { %5270 = vmatprep.mubr.msk.f32.mxu1 %vm63_vm0, %v163_v7 }
 0x1c9   :  { %v100_v8 = vpop.xlane.xlu1 %99 }
 0x1ca   :  { %v104_v9 = vmul.f32 0.032258064, %v100_v8 }
 0x1cc   :  { %6037 = vrsqrt.f32 %v104_v9  ;;  %vm128_vm7 = vcmp.eq.f32.partialorder %v104_v9, inf  ;;  %v131_v11 = vand.u32 2147483648, %v104_v9  ;;  %vm130_vm8 = vcmp.eq.f32.partialorder %v104_v9, 0.0 }
 0x1d6   :  { %v6038_v10 = vpop.eup %6037 }
 0x1d7   :  { %v127_v12 = vmul.f32 %v6038_v10, %v104_v9 }
 0x1d9   :  { %v129_v13 = vsel %vm128_vm7, %v104_v9, %v127_v12 }
 0x1da   :  { %v132_v14 = vsel %vm130_vm8, %v131_v11, %v129_v13 }
 0x1db   :  { %v146_v15 = vadd.f32 1e-06, %v132_v14 }
 0x1dd   :  { %6039 = vrcp.f32 %v146_v15 }
 0x1e7   :  { %v6040_v17 = vpop.eup %6039 }
 0x1e8   :  { %v154_v18 = vmul.f32 %v6040_v17, %v142_v16 }
 0x1ea   :  { %v164_v19 = vadd.f32 %v4886_v53, %v154_v18 }
 0x1ec   :  { %5271 = vmatmul.mubr.msk.f32.gmra.mrb[2].mxu1 %vm63_vm0, %v164_v19 }
 0x226   :  { %v5269_v21 = vpop.f32.mrb[0].mxu1 }
 0x227   :  { %v6408_v22 = vadd.f32 %v5269_v21, %v6405_v20  ;;  %v254_v23 = vpop.f32.mrb[1].mxu1 }
 0x228   :  { %v6411_v24 = vadd.f32 %v6405_v20, %v254_v23 }
 0x22a   :  { %5277 = vmatprep.mubr.msk.f32.mxu1 %vm279_vm9, %v6411_v24  ;;  %v6417_v25 = vpack.i.bf16 %v6408_v22, %v6411_v24 }
 0x22c   :  { %5871 = vrot.lane.b32.xlu1 %v6417_v25, %s6241_s30  ;;  %5866 = vrot.lane.b32.xlu0 %v6417_v25, %s7368_s0 }
 0x230   :  { %477 = vrot.lane.b32.xlu1 %v6411_v24, %s6243_s17  ;;  %479 = vrot.lane.b32.xlu0 %v6408_v22, %s6243_s17 }
 0x234   :  { %5876 = vrot.lane.b32.xlu1 %v6417_v25, %s6244_s18  ;;  %683 = vrot.lane.b32.xlu0 %v6408_v22, %s6245_s19 }
 0x238   :  { %681 = vrot.lane.b32.xlu1 %v6411_v24, %s6245_s19 }
 0x29e   :  { %v5872_v26 = vpop.permute.xlu1 %5871  ;;  %v5867_v27 = vpop.permute.xlu0 %5866 }
 0x29f   :  { %v5869_v28 = vunpack.i.h.bf16 %v5867_v27  ;;  %v5868_v29 = vunpack.i.l.bf16 %v5867_v27  ;;  %v5874_v30 = vunpack.i.h.bf16 %v5872_v26  ;;  %v5873_v31 = vunpack.i.l.bf16 %v5872_v26 }
 0x2a1   :  { %v5619_v33 = vpack.c.bf16 %v5869_v28, %v5868_v29  ;;  %v5629_v34 = vpack.c.bf16 %v5874_v30, %v5873_v31 }
 0x2a2   :  { %v478_v35 = vpop.permute.xlu1 %477  ;;  %v480_v41 = vpop.permute.xlu0 %479 }
 0x2a3   :  { %5621 = vmatprep.subr.msk.bf16.mxu1 %vm6435_vm10, %v5619_v33  ;;  %5631 = vmatprep.subr.msk.bf16.mxu0 %vm6435_vm10, %v5629_v34 }
 0x2a4   :  { %5291 = vmatprep.mubr.msk.f32.mxu0 %vm279_vm9, %v478_v35  ;;  %5624 = vmatpush3.bf16.xpose.msk.msra.mxu1 %vm6435_vm10, %v5619_v33 }
 0x2a5   :  { %5634 = vmatpush3.bf16.xpose.msk.msra.mxu0 %vm6435_vm10, %v5629_v34 }
 0x2a6   :  { %v5877_v36 = vpop.permute.xlu1 %5876  ;;  %v684_v42 = vpop.permute.xlu0 %683 }
 0x2a7   :  { %v5879_v37 = vunpack.i.h.bf16 %v5877_v36  ;;  %v5878_v38 = vunpack.i.l.bf16 %v5877_v36 }
 0x2a9   :  { %v5639_v39 = vpack.c.bf16 %v5879_v37, %v5878_v38 }
 0x2aa   :  { %v682_v40 = vpop.permute.xlu1 %681 }
 0x2ab   :  { %5278 = vmatmul.mubr.msk.f32.vlgmr.msra.gmra.mrb[4].mxu1 %vm279_vm9, %v6408_v22  ;;  %5641 = vmatprep.subr.msk.bf16.mxu0 %vm6435_vm10, %v5639_v39 }
 0x2ac   :  { %5292 = vmatmul.mubr.msk.f32.vlgmr.msra.gmra.mrb[0].mxu0 %vm279_vm9, %v480_v41 }
 0x2ad   :  { %5644 = vmatpush3.bf16.xpose.msk.msra.mxu0 %vm6435_vm10, %v5639_v39  ;;  %5305 = vmatprep.mubr.msk.f32.mxu0 %vm279_vm9, %v682_v40 }
 0x2b4   :  { %5306 = vmatmul.mubr.msk.f32.vlgmr.msra.gmra.mrb[2].mxu0 %vm279_vm9, %v684_v42 }
 0x2bf   :  { %v6457_v43 = vpop.f32.mrb[2].mxu1 }
 0x2c0   :  { %v6459_v44 = vpop.f32.mrb[3].mxu1 }
 0x37e   :  { %v5279_v45 = vpop.f32.mrb[4].mxu1 }
 0x37f   :  { %v364_v47 = vmul.f32 0.35355338, %v5279_v45  ;;  %v5293_v48 = vpop.f32.mrb[0].mxu0  ;;  %v354_v49 = vpop.f32.mrb[5].mxu1 }
 0x380   :  { %v363_v51 = vmul.f32 0.35355338, %v354_v49  ;;  %v559_v52 = vpop.f32.mrb[1].mxu0  ;;  %v569_v56 = vmul.f32 0.35355338, %v5293_v48 }
 0x381   :  { %v568_v53 = vmul.f32 0.35355338, %v559_v52  ;;  %v366_v54 = vadd.f32 %v364_v47, %v6464_v46 }
 0x382   :  { %v365_v55 = vadd.f32 %v363_v51, %v6469_v50  ;;  %v571_v62 = vadd.f32 %v569_v56, %v6464_v46 }
 0x383   :  { %v371_v57 = vsel %vm367_vm11, %v366_v54, -inf  ;;  %v570_v58 = vadd.f32 %v568_v53, %v6469_v50 }
 0x384   :  { %372 = vmax.xlane.f32.xlu0 %v371_v57  ;;  %v368_v59 = vsel %vm367_vm11, %v365_v55, -inf  ;;  %v575_v2 = vsel %vm367_vm11, %v571_v62, -inf }
 0x385   :  { %369 = vmax.xlane.f32.xlu1 %v368_v59  ;;  %v572_v61 = vsel %vm367_vm11, %v570_v58, -inf }
 0x387   :  { %v5307_v60 = vpop.f32.mrb[2].mxu0 }
 0x388   :  { %v773_v63 = vmul.f32 0.35355338, %v5307_v60  ;;  %v763_v0 = vpop.f32.mrb[3].mxu0  ;;  %573 = vmax.xlane.f32.xlu0 %v572_v61 }
 0x389   :  { %v772_v1 = vmul.f32 0.35355338, %v763_v0 }
 0x38a   :  { %v775_v4 = vadd.f32 %v773_v63, %v6464_v46 }
 0x38b   :  { %v774_v3 = vadd.f32 %v772_v1, %v6469_v50 }
 0x38c   :  { %576 = vmax.xlane.f32.xlu0 %v575_v2  ;;  %v779_v6 = vsel %vm367_vm11, %v775_v4, -inf }
 0x38d   :  { %v776_v5 = vsel %vm367_vm11, %v774_v3, -inf }
 0x38e   :  { %777 = vmax.xlane.f32.xlu1 %v776_v5 }
 0x390   :  { %780 = vmax.xlane.f32.xlu0 %v779_v6 }
 0x39f   :  { %5881 = vrot.lane.b32.xlu1 %v6417_v25, %s7384_s25 }
 0x411   :  { %v373_v7 = vpop.xlane.xlu0 %372 }
 0x412   :  { %v375_v8 = vsub.f32 %v366_v54, %v373_v7  ;;  %v370_v9 = vpop.xlane.xlu1 %369 }
 0x413   :  { %v374_v10 = vsub.f32 %v365_v55, %v370_v9 }
 0x414   :  { %v378_v11 = vmul.f32 1.442695, %v375_v8 }
 0x415   :  { %v376_v12 = vmul.f32 1.442695, %v374_v10  ;;  %v574_v13 = vpop.xlane.xlu0 %573 }
 0x416   :  { %6041 = vpow2.f32 %v378_v11  ;;  %v578_v14 = vsub.f32 %v570_v58, %v574_v13 }
 0x417   :  { %6043 = vpow2.f32 %v376_v12 }
 0x418   :  { %v580_v15 = vmul.f32 1.442695, %v578_v14 }
 0x419   :  { %v577_v16 = vpop.xlane.xlu0 %576 }
 0x41a   :  { %6045 = vpow2.f32 %v580_v15  ;;  %v579_v17 = vsub.f32 %v571_v62, %v577_v16 }
 0x41b   :  { %v778_v18 = vpop.xlane.xlu1 %777 }
 0x41c   :  { %v582_v19 = vmul.f32 1.442695, %v579_v17  ;;  %v782_v42 = vsub.f32 %v774_v3, %v778_v18 }
 0x41d   :  { %v781_v21 = vpop.xlane.xlu0 %780 }
 0x41e   :  { %6047 = vpow2.f32 %v582_v19  ;;  %v783_v23 = vsub.f32 %v775_v4, %v781_v21  ;;  %v784_v45 = vmul.f32 1.442695, %v782_v42 }
 0x41f   :  { %v5882_v26 = vpop.permute.xlu1 %5881 }
 0x420   :  { %v6042_v27 = vpop.eup %6041  ;;  %v786_v28 = vmul.f32 1.442695, %v783_v23  ;;  %v5884_v29 = vunpack.i.h.bf16 %v5882_v26  ;;  %v5883_v30 = vunpack.i.l.bf16 %v5882_v26 }
 0x421   :  { %v6044_v31 = vpop.eup %6043  ;;  %v383_v33 = vsel %vm367_vm11, %v6042_v27, 0.0 }
 0x422   :  { %6049 = vpow2.f32 %v786_v28  ;;  %384 = vadd.xlane.f32.xlu0 %v383_v33  ;;  %v380_v34 = vsel %vm367_vm11, %v6044_v31, 0.0  ;;  %v5625_v35 = vpack.c.bf16 %v5884_v29, %v5883_v30 }
 0x423   :  { %381 = vadd.xlane.f32.xlu1 %v380_v34  ;;  %6051 = vpow2.f32 %v784_v45 }
 0x424   :  { %v6046_v36 = vpop.eup %6045  ;;  %5626 = vmatprep.subr.bf16.mxu1 %v5625_v35 }
 0x425   :  { %5628 = vmatpush3.bf16.msra.mxu1 %v5625_v35  ;;  %v584_v37 = vsel %vm367_vm11, %v6046_v36, 0.0 }
 0x427   :  { %585 = vadd.xlane.f32.xlu1 %v584_v37 }
 0x428   :  { %v6048_v38 = vpop.eup %6047 }
 0x429   :  { %v587_v39 = vsel %vm367_vm11, %v6048_v38, 0.0 }
 0x42a   :  { %588 = vadd.xlane.f32.xlu0 %v587_v39 }
 0x42c   :  { %v6050_v40 = vpop.eup %6049 }
 0x42d   :  { %v791_v41 = vsel %vm367_vm11, %v6050_v40, 0.0  ;;  %v6052_v47 = vpop.eup %6051 }
 0x42e   :  { %792 = vadd.xlane.f32.xlu0 %v791_v41  ;;  %v788_v48 = vsel %vm367_vm11, %v6052_v47, 0.0 }
 0x438   :  { %5891 = vrot.lane.b32.xlu1 %v6417_v25, %s7382_s26 }
 0x43c   :  { %5896 = vrot.lane.b32.xlu1 %v6417_v25, %s7374_s27 }
 0x444   :  { %5886 = vrot.lane.b32.xlu0 %v6417_v25, %s6249_s28 }
 0x448   :  { %887 = vrot.lane.b32.xlu0 %v6408_v22, %s7372_s29 }
 0x460   :  { %789 = vadd.xlane.f32.xlu1 %v788_v48 }
 0x471   :  { %885 = vrot.lane.b32.xlu1 %v6411_v24, %s7372_s29 }
 0x4af   :  { %v385_v49 = vpop.xlane.xlu0 %384 }
 0x4b0   :  { %6053 = vrcp.f32 %v385_v49  ;;  %v382_v51 = vpop.xlane.xlu1 %381  ;;  %v6535_v49 = vadd.f32 %v6457_v43, %v6405_v20 }
 0x4b1   :  { %6055 = vrcp.f32 %v382_v51  ;;  %v6539_v51 = vadd.f32 %v6405_v20, %v6459_v44 }
 0x4b4   :  { %v586_v52 = vpop.xlane.xlu1 %585 }
 0x4b5   :  { %6057 = vrcp.f32 %v586_v52  ;;  %v6543_v52 = vpack.i.bf16 %v6535_v49, %v6539_v51 }
 0x4b7   :  { %v589_v53 = vpop.xlane.xlu0 %588 }
 0x4b8   :  { %6059 = vrcp.f32 %v589_v53  ;;  %v5892_v55 = vpop.permute.xlu1 %5891 }
 0x4b9   :  { %v5894_v60 = vunpack.i.h.bf16 %v5892_v55  ;;  %v5893_v24 = vunpack.i.l.bf16 %v5892_v55 }
 0x4ba   :  { %v6054_v54 = vpop.eup %6053 }
 0x4bb   :  { %v6056_v22 = vpop.eup %6055  ;;  %v793_v56 = vpop.xlane.xlu0 %792  ;;  %v389_v58 = vmul.f32 %v6054_v54, %v6042_v27  ;;  %v5645_v6 = vpack.c.bf16 %v5894_v60, %v5893_v24  ;;  %v6564_v24 = vld [vmem:[%s7355_s1 + $0x18] sm:$0xff] }
 0x4bc   :  { %v388_v57 = vmul.f32 %v6056_v22, %v6044_v31  ;;  %v5897_v1 = vpop.permute.xlu1 %5896  ;;  %6061 = vrcp.f32 %v793_v56 }
 0x4bd   :  { %v5899_v4 = vunpack.i.h.bf16 %v5897_v1  ;;  %v5898_v5 = vunpack.i.l.bf16 %v5897_v1 }
 0x4be   :  { %5284 = vmatprep.mubr.msk.f32.mxu1 %vm367_vm11, %v388_v57 }
 0x4bf   :  { %v6058_v59 = vpop.eup %6057  ;;  %v5887_v61 = vpop.permute.xlu0 %5886  ;;  %5285 = vmatmul.mubr.msk.f32.vlgmr.msra.gmra.mrb[6].mxu1 %vm367_vm11, %v389_v58  ;;  %v5649_v8 = vpack.c.bf16 %v5899_v4, %v5898_v5 }
 0x4c0   :  { %v5889_v62 = vunpack.i.h.bf16 %v5887_v61  ;;  %v5888_v63 = vunpack.i.l.bf16 %v5887_v61  ;;  %v592_v0 = vmul.f32 %v6058_v59, %v6046_v36 }
 0x4c2   :  { %5298 = vmatprep.mubr.msk.f32.mxu1 %vm367_vm11, %v592_v0  ;;  %v5635_v2 = vpack.c.bf16 %v5889_v62, %v5888_v63  ;;  %v6060_v3 = vpop.eup %6059  ;;  %v6569_v0 = vld [vmem:[%s7355_s1 + $0x10] sm:$0xff] }
 0x4c3   :  { %v593_v7 = vmul.f32 %v6060_v3, %v6048_v38  ;;  %v888_v15 = vpop.permute.xlu0 %887 }
 0x4c4   :  { %5636 = vmatprep.subr.bf16.mxu1 %v5635_v2 }
 0x4c5   :  { %5638 = vmatpush3.bf16.msra.mxu1 %v5635_v2 }
 0x4c6   :  { %5646 = vmatprep.subr.bf16.mxu1 %v5645_v6  ;;  %v6062_v10 = vpop.eup %6061 }
 0x4c7   :  { %v797_v13 = vmul.f32 %v6062_v10, %v6050_v40 }
 0x4c8   :  { %5299 = vmatmul.mubr.msk.f32.vlgmr.msra.gmra.mrb[8].mxu1 %vm367_vm11, %v593_v7 }
 0x4c9   :  { %5648 = vmatpush3.bf16.msra.mxu1 %v5645_v6 }
 0x4ca   :  { %5651 = vmatprep.subr.msk.bf16.mxu1 %vm6435_vm10, %v5649_v8 }
 0x4ed   :  { %v790_v9 = vpop.xlane.xlu1 %789 }
 0x4ee   :  { %6063 = vrcp.f32 %v790_v9 }
 0x4f1   :  { %v886_v14 = vpop.permute.xlu1 %885 }
 0x4f8   :  { %v6064_v11 = vpop.eup %6063 }
 0x4f9   :  { %v796_v12 = vmul.f32 %v6064_v11, %v6052_v47 }
 0x4fb   :  { %5312 = vmatprep.mubr.msk.f32.mxu1 %vm367_vm11, %v796_v12 }
 0x4fc   :  { %5313 = vmatmul.mubr.msk.f32.vlgmr.msra.gmra.mrb[10].mxu1 %vm367_vm11, %v797_v13 }
 0x4fd   :  { %5654 = vmatpush3.bf16.xpose.msk.msra.mxu1 %vm6435_vm10, %v5649_v8  ;;  %5319 = vmatprep.mubr.msk.f32.mxu1 %vm279_vm9, %v886_v14 }
 0x504   :  { %5320 = vmatmul.mubr.msk.f32.vlgmr.msra.gmra.mrb[12].mxu1 %vm279_vm9, %v888_v15 }
 0x592   :  { %v6513_v16 = vpop.f32.mrb[6].mxu1 }
 0x593   :  { %v6515_v17 = vpop.f32.mrb[7].mxu1 }
 0x59b   :  { %v6517_v18 = vpop.f32.mrb[8].mxu1 }
 0x59c   :  { %v6519_v19 = vpop.f32.mrb[9].mxu1 }
 0x5cf   :  { %v6521_v21 = vpop.f32.mrb[10].mxu1 }
 0x5d0   :  { %v6523_v23 = vpop.f32.mrb[11].mxu1 }
 0x5d7   :  { %v5321_v26 = vpop.f32.mrb[12].mxu1 }
 0x5d8   :  { %v977_v27 = vmul.f32 0.35355338, %v5321_v26  ;;  %v967_v28 = vpop.f32.mrb[13].mxu1 }
 0x5d9   :  { %v976_v29 = vmul.f32 0.35355338, %v967_v28 }
 0x5da   :  { %v979_v30 = vadd.f32 %v977_v27, %v6464_v46 }
 0x5db   :  { %v978_v31 = vadd.f32 %v976_v29, %v6469_v50 }
 0x5dc   :  { %v983_v33 = vsel %vm367_vm11, %v979_v30, -inf }
 0x5dd   :  { %984 = vmax.xlane.f32.xlu0 %v983_v33  ;;  %v980_v34 = vsel %vm367_vm11, %v978_v31, -inf }
 0x5de   :  { %981 = vmax.xlane.f32.xlu1 %v980_v34 }
 0x5ef   :  { %5901 = vrot.lane.b32.xlu1 %v6417_v25, %s7370_s20 }
 0x66a   :  { %v985_v35 = vpop.xlane.xlu0 %984 }
 0x66b   :  { %v987_v36 = vsub.f32 %v979_v30, %v985_v35  ;;  %v982_v37 = vpop.xlane.xlu1 %981 }
 0x66c   :  { %v986_v38 = vsub.f32 %v978_v31, %v982_v37 }
 0x66d   :  { %v990_v39 = vmul.f32 1.442695, %v987_v36 }
 0x66e   :  { %v988_v40 = vmul.f32 1.442695, %v986_v38 }
 0x66f   :  { %6065 = vpow2.f32 %v990_v39  ;;  %v5902_v46 = vpop.permute.xlu1 %5901 }
 0x670   :  { %v5904_v41 = vunpack.i.h.bf16 %v5902_v46  ;;  %v5903_v50 = vunpack.i.l.bf16 %v5902_v46  ;;  %6067 = vpow2.f32 %v988_v40 }
 0x672   :  { %v5655_v42 = vpack.c.bf16 %v5904_v41, %v5903_v50 }
 0x674   :  { %5656 = vmatprep.subr.bf16.mxu0 %v5655_v42 }
 0x675   :  { %5658 = vmatpush3.bf16.msra.mxu0 %v5655_v42 }
 0x679   :  { %v6066_v45 = vpop.eup %6065 }
 0x67a   :  { %v995_v47 = vsel %vm367_vm11, %v6066_v45, 0.0  ;;  %v6068_v48 = vpop.eup %6067 }
 0x67b   :  { %996 = vadd.xlane.f32.xlu0 %v995_v47  ;;  %v992_v25 = vsel %vm367_vm11, %v6068_v48, 0.0 }
 0x67f   :  { %993 = vadd.xlane.f32.xlu0 %v992_v25 }
 0x695   :  { %5906 = vrot.lane.b32.xlu0 %v6543_v52, %s7368_s0  ;;  %s7378_s0 = smov 8  }
 0x708   :  { %v997_v53 = vpop.xlane.xlu0 %996 }
 0x709   :  { %6069 = vrcp.f32 %v997_v53 }
 0x70c   :  { %v994_v54 = vpop.xlane.xlu0 %993 }
 0x70d   :  { %6071 = vrcp.f32 %v994_v54 }
 0x710   :  { %v5907_v22 = vpop.permute.xlu0 %5906 }
 0x711   :  { %v5909_v55 = vunpack.i.h.bf16 %v5907_v22  ;;  %v5908_v56 = vunpack.i.l.bf16 %v5907_v22 }
 0x713   :  { %v5659_v43 = vpack.c.bf16 %v5909_v55, %v5908_v56  ;;  %v6070_v20 = vpop.eup %6069 }
 0x714   :  { %v1001_v58 = vmul.f32 %v6070_v20, %v6066_v45 }
 0x715   :  { %5661 = vmatprep.subr.msk.bf16.mxu0 %vm6435_vm10, %v5659_v43 }
 0x717   :  { %v6072_v44 = vpop.eup %6071 }
 0x718   :  { %v1000_v57 = vmul.f32 %v6072_v44, %v6068_v48 }
 0x71a   :  { %5326 = vmatprep.mubr.msk.f32.mxu0 %vm367_vm11, %v1000_v57 }
 0x71b   :  { %5327 = vmatmul.mubr.msk.f32.vlgmr.msra.gmra.mrb[4].mxu0 %vm367_vm11, %v1001_v58 }
 0x71c   :  { %5664 = vmatpush3.bf16.xpose.msk.msra.mxu0 %vm6435_vm10, %v5659_v43  ;;  %5333 = vmatprep.mubr.msk.f32.mxu0 %vm279_vm9, %v6539_v51 }
 0x723   :  { %5334 = vmatmul.mubr.msk.f32.vlgmr.msra.gmra.mrb[6].mxu0 %vm279_vm9, %v6535_v49 }
 0x7ee   :  { %v6557_v59 = vpop.f32.mrb[4].mxu0 }
 0x7ef   :  { %v6559_v60 = vpop.f32.mrb[5].mxu0 }
 0x7f6   :  { %v5335_v61 = vpop.f32.mrb[6].mxu0 }
 0x7f7   :  { %v1210_v62 = vmul.f32 0.35355338, %v5335_v61  ;;  %v1200_v63 = vpop.f32.mrb[7].mxu0 }
 0x7f8   :  { %v1209_v1 = vmul.f32 0.35355338, %v1200_v63 }
 0x7f9   :  { %v1212_v2 = vadd.f32 %v1210_v62, %v6564_v24 }
 0x7fa   :  { %v1211_v3 = vadd.f32 %v1209_v1, %v6569_v0 }
 0x7fb   :  { %v1216_v4 = vsel %vm367_vm11, %v1212_v2, -inf }
 0x7fc   :  { %1217 = vmax.xlane.f32.xlu0 %v1216_v4  ;;  %v1213_v5 = vsel %vm367_vm11, %v1211_v3, -inf }
 0x7fd   :  { %1214 = vmax.xlane.f32.xlu1 %v1213_v5 }
 0x80e   :  { %5911 = vrot.lane.b32.xlu1 %v6543_v52, %s7384_s25  ;;  %s7392_s25 = smov 48  }
 0x812   :  { %1322 = vrot.lane.b32.xlu1 %v6539_v51, %s6243_s17 }
 0x889   :  { %v1218_v6 = vpop.xlane.xlu0 %1217 }
 0x88a   :  { %v1220_v7 = vsub.f32 %v1212_v2, %v1218_v6  ;;  %v1215_v8 = vpop.xlane.xlu1 %1214 }
 0x88b   :  { %v1219_v9 = vsub.f32 %v1211_v3, %v1215_v8 }
 0x88c   :  { %v1223_v10 = vmul.f32 1.442695, %v1220_v7 }
 0x88d   :  { %v1221_v11 = vmul.f32 1.442695, %v1219_v9 }
 0x88e   :  { %6073 = vpow2.f32 %v1223_v10  ;;  %v5912_v12 = vpop.permute.xlu1 %5911 }
 0x88f   :  { %6075 = vpow2.f32 %v1221_v11  ;;  %v5914_v13 = vunpack.i.h.bf16 %v5912_v12  ;;  %v5913_v14 = vunpack.i.l.bf16 %v5912_v12 }
 0x891   :  { %v5665_v15 = vpack.c.bf16 %v5914_v13, %v5913_v14 }
 0x892   :  { %v1323_v30 = vpop.permute.xlu1 %1322 }
 0x893   :  { %5666 = vmatprep.subr.bf16.mxu1 %v5665_v15 }
 0x894   :  { %5668 = vmatpush3.bf16.msra.mxu1 %v5665_v15 }
 0x898   :  { %v6074_v26 = vpop.eup %6073 }
 0x899   :  { %v6076_v27 = vpop.eup %6075  ;;  %v1228_v28 = vsel %vm367_vm11, %v6074_v26, 0.0 }
 0x89a   :  { %1229 = vadd.xlane.f32.xlu0 %v1228_v28  ;;  %v1225_v29 = vsel %vm367_vm11, %v6076_v27, 0.0 }
 0x89b   :  { %1226 = vadd.xlane.f32.xlu1 %v1225_v29 }
 0x8ac   :  { %1324 = vrot.lane.b32.xlu1 %v6535_v49, %s6243_s17 }
 0x8b0   :  { %5916 = vrot.lane.b32.xlu0 %v6543_v52, %s6241_s30 }
 0x927   :  { %v1230_v31 = vpop.xlane.xlu0 %1229 }
 0x928   :  { %6077 = vrcp.f32 %v1230_v31  ;;  %v1227_v33 = vpop.xlane.xlu1 %1226 }
 0x929   :  { %6079 = vrcp.f32 %v1227_v33 }
 0x92b   :  { %v5917_v34 = vpop.permute.xlu0 %5916 }
 0x92c   :  { %v5919_v35 = vunpack.i.h.bf16 %v5917_v34  ;;  %v5918_v36 = vunpack.i.l.bf16 %v5917_v34  ;;  %v1325_v41 = vpop.permute.xlu1 %1324 }
 0x92e   :  { %v5669_v37 = vpack.c.bf16 %v5919_v35, %v5918_v36 }
 0x930   :  { %5671 = vmatprep.subr.msk.bf16.mxu1 %vm6435_vm10, %v5669_v37 }
 0x932   :  { %v6078_v38 = vpop.eup %6077 }
 0x933   :  { %v6080_v39 = vpop.eup %6079  ;;  %v1234_v46 = vmul.f32 %v6078_v38, %v6074_v26 }
 0x934   :  { %v1233_v40 = vmul.f32 %v6080_v39, %v6076_v27 }
 0x936   :  { %5340 = vmatprep.mubr.msk.f32.mxu1 %vm367_vm11, %v1233_v40 }
 0x937   :  { %5341 = vmatmul.mubr.msk.f32.vlgmr.msra.gmra.mrb[14].mxu1 %vm367_vm11, %v1234_v46 }
 0x938   :  { %5674 = vmatpush3.bf16.xpose.msk.msra.mxu1 %vm6435_vm10, %v5669_v37  ;;  %5347 = vmatprep.mubr.msk.f32.mxu1 %vm279_vm9, %v1323_v30 }
 0x93f   :  { %5348 = vmatmul.mubr.msk.f32.vlgmr.msra.gmra.mrb[16].mxu1 %vm279_vm9, %v1325_v41 }
 0xa0a   :  { %v6593_v50 = vpop.f32.mrb[14].mxu1 }
 0xa0b   :  { %v6595_v42 = vpop.f32.mrb[15].mxu1 }
 0xa12   :  { %v5349_v45 = vpop.f32.mrb[16].mxu1 }
 0xa13   :  { %v1414_v47 = vmul.f32 0.35355338, %v5349_v45  ;;  %v1404_v48 = vpop.f32.mrb[17].mxu1 }
 0xa14   :  { %v1413_v25 = vmul.f32 0.35355338, %v1404_v48 }
 0xa15   :  { %v1416_v53 = vadd.f32 %v1414_v47, %v6564_v24 }
 0xa16   :  { %v1415_v54 = vadd.f32 %v1413_v25, %v6569_v0 }
 0xa17   :  { %v1420_v22 = vsel %vm367_vm11, %v1416_v53, -inf }
 0xa18   :  { %1421 = vmax.xlane.f32.xlu0 %v1420_v22  ;;  %v1417_v55 = vsel %vm367_vm11, %v1415_v54, -inf }
 0xa19   :  { %1418 = vmax.xlane.f32.xlu1 %v1417_v55 }
 0xa2a   :  { %5921 = vrot.lane.b32.xlu1 %v6543_v52, %s6249_s28 }
 0xa2e   :  { %1526 = vrot.lane.b32.xlu1 %v6539_v51, %s6245_s19 }
 0xa32   :  { %1528 = vrot.lane.b32.xlu1 %v6535_v49, %s6245_s19 }
 0xaa5   :  { %v1422_v56 = vpop.xlane.xlu0 %1421 }
 0xaa6   :  { %v1424_v43 = vsub.f32 %v1416_v53, %v1422_v56  ;;  %v1419_v20 = vpop.xlane.xlu1 %1418 }
 0xaa7   :  { %v1423_v44 = vsub.f32 %v1415_v54, %v1419_v20 }
 0xaa8   :  { %v1427_v57 = vmul.f32 1.442695, %v1424_v43 }
 0xaa9   :  { %v1425_v58 = vmul.f32 1.442695, %v1423_v44 }
 0xaaa   :  { %6081 = vpow2.f32 %v1427_v57  ;;  %v5922_v61 = vpop.permute.xlu1 %5921 }
 0xaab   :  { %v5924_v62 = vunpack.i.h.bf16 %v5922_v61  ;;  %v5923_v63 = vunpack.i.l.bf16 %v5922_v61  ;;  %6083 = vpow2.f32 %v1425_v58 }
 0xaad   :  { %v5675_v1 = vpack.c.bf16 %v5924_v62, %v5923_v63 }
 0xaae   :  { %v1527_v26 = vpop.permute.xlu1 %1526 }
 0xaaf   :  { %5676 = vmatprep.subr.bf16.mxu0 %v5675_v1 }
 0xab0   :  { %5678 = vmatpush3.bf16.msra.mxu0 %v5675_v1 }
 0xab2   :  { %v1529_v27 = vpop.permute.xlu1 %1528 }
 0xab4   :  { %v6082_v2 = vpop.eup %6081 }
 0xab5   :  { %v1432_v3 = vsel %vm367_vm11, %v6082_v2, 0.0  ;;  %v6084_v4 = vpop.eup %6083 }
 0xab6   :  { %1433 = vadd.xlane.f32.xlu0 %v1432_v3  ;;  %v1429_v5 = vsel %vm367_vm11, %v6084_v4, 0.0 }
 0xaba   :  { %1430 = vadd.xlane.f32.xlu0 %v1429_v5 }
 0xad0   :  { %5926 = vrot.lane.b32.xlu0 %v6543_v52, %s6244_s18 }
 0xb43   :  { %v1434_v6 = vpop.xlane.xlu0 %1433 }
 0xb44   :  { %6085 = vrcp.f32 %v1434_v6 }
 0xb47   :  { %v1431_v7 = vpop.xlane.xlu0 %1430 }
 0xb48   :  { %6087 = vrcp.f32 %v1431_v7 }
 0xb4b   :  { %v5927_v8 = vpop.permute.xlu0 %5926 }
 0xb4c   :  { %v5929_v9 = vunpack.i.h.bf16 %v5927_v8  ;;  %v5928_v10 = vunpack.i.l.bf16 %v5927_v8 }
 0xb4e   :  { %v5679_v11 = vpack.c.bf16 %v5929_v9, %v5928_v10  ;;  %v6086_v12 = vpop.eup %6085 }
 0xb4f   :  { %v1438_v15 = vmul.f32 %v6086_v12, %v6082_v2 }
 0xb50   :  { %5681 = vmatprep.subr.msk.bf16.mxu0 %vm6435_vm10, %v5679_v11 }
 0xb52   :  { %v6088_v13 = vpop.eup %6087 }
 0xb53   :  { %v1437_v14 = vmul.f32 %v6088_v13, %v6084_v4 }
 0xb55   :  { %5354 = vmatprep.mubr.msk.f32.mxu0 %vm367_vm11, %v1437_v14 }
 0xb56   :  { %5355 = vmatmul.mubr.msk.f32.vlgmr.msra.gmra.mrb[8].mxu0 %vm367_vm11, %v1438_v15 }
 0xb57   :  { %5684 = vmatpush3.bf16.xpose.msk.msra.mxu0 %vm6435_vm10, %v5679_v11  ;;  %5361 = vmatprep.mubr.msk.f32.mxu0 %vm279_vm9, %v1527_v26 }
 0xb5e   :  { %5362 = vmatmul.mubr.msk.f32.vlgmr.msra.gmra.mrb[10].mxu0 %vm279_vm9, %v1529_v27 }
 0xc29   :  { %v6619_v28 = vpop.f32.mrb[8].mxu0 }
 0xc2a   :  { %v6621_v29 = vpop.f32.mrb[9].mxu0 }
 0xc31   :  { %v5363_v30 = vpop.f32.mrb[10].mxu0 }
 0xc32   :  { %v1618_v31 = vmul.f32 0.35355338, %v5363_v30  ;;  %v1608_v33 = vpop.f32.mrb[11].mxu0 }
 0xc33   :  { %v1617_v34 = vmul.f32 0.35355338, %v1608_v33  ;;  %v1964_v33 = vld [vmem:[%s7356_s6] sm:$0xff] }
 0xc34   :  { %v1620_v35 = vadd.f32 %v1618_v31, %v6564_v24 }
 0xc35   :  { %v1619_v36 = vadd.f32 %v1617_v34, %v6569_v0  ;;  %v1965_v34 = vld [vmem:[%s7356_s6 + $0x8] sm:$0xff] }
 0xc36   :  { %v1624_v37 = vsel %vm367_vm11, %v1620_v35, -inf }
 0xc37   :  { %1625 = vmax.xlane.f32.xlu0 %v1624_v37  ;;  %v1621_v38 = vsel %vm367_vm11, %v1619_v36, -inf }
 0xc38   :  { %1622 = vmax.xlane.f32.xlu1 %v1621_v38 }
 0xc49   :  { %5931 = vrot.lane.b32.xlu1 %v6543_v52, %s7382_s26 }
 0xc4d   :  { %1730 = vrot.lane.b32.xlu1 %v6539_v51, %s7372_s29 }
 0xc51   :  { %1732 = vrot.lane.b32.xlu1 %v6535_v49, %s7372_s29  ;;  %s7393_s29 = smov 72  }
 0xcc4   :  { %v1626_v39 = vpop.xlane.xlu0 %1625 }
 0xcc5   :  { %v1628_v40 = vsub.f32 %v1620_v35, %v1626_v39  ;;  %v1623_v46 = vpop.xlane.xlu1 %1622  ;;  %v5699_v35 = vpack.c.bf16 %v1965_v34, %v1964_v33  ;;  %v2185_v33 = vld [vmem:[%s7358_s10 + $0x18] sm:$0xff] }
 0xcc6   :  { %v1627_v41 = vsub.f32 %v1619_v36, %v1623_v46 }
 0xcc7   :  { %v1631_v45 = vmul.f32 1.442695, %v1628_v40 }
 0xcc8   :  { %v1629_v47 = vmul.f32 1.442695, %v1627_v41 }
 0xcc9   :  { %6089 = vpow2.f32 %v1631_v45  ;;  %v5932_v48 = vpop.permute.xlu1 %5931 }
 0xcca   :  { %v5934_v25 = vunpack.i.h.bf16 %v5932_v48  ;;  %v5933_v53 = vunpack.i.l.bf16 %v5932_v48  ;;  %6091 = vpow2.f32 %v1629_v47 }
 0xccc   :  { %v5685_v54 = vpack.c.bf16 %v5934_v25, %v5933_v53 }
 0xccd   :  { %v1731_v2 = vpop.permute.xlu1 %1730 }
 0xcce   :  { %5686 = vmatprep.subr.bf16.mxu1 %v5685_v54 }
 0xccf   :  { %5688 = vmatpush3.bf16.msra.mxu1 %v5685_v54 }
 0xcd1   :  { %v1733_v3 = vpop.permute.xlu1 %1732 }
 0xcd3   :  { %v6090_v22 = vpop.eup %6089 }
 0xcd4   :  { %v1636_v51 = vsel %vm367_vm11, %v6090_v22, 0.0  ;;  %v6092_v55 = vpop.eup %6091 }
 0xcd5   :  { %1637 = vadd.xlane.f32.xlu0 %v1636_v51  ;;  %v1633_v49 = vsel %vm367_vm11, %v6092_v55, 0.0 }
 0xcd9   :  { %1634 = vadd.xlane.f32.xlu0 %v1633_v49 }
 0xcef   :  { %5936 = vrot.lane.b32.xlu0 %v6543_v52, %s7374_s27  ;;  %s7391_s27 = smov 64  }
 0xd62   :  { %v1638_v56 = vpop.xlane.xlu0 %1637 }
 0xd63   :  { %6093 = vrcp.f32 %v1638_v56 }
 0xd66   :  { %v1635_v43 = vpop.xlane.xlu0 %1634 }
 0xd67   :  { %6095 = vrcp.f32 %v1635_v43 }
 0xd6a   :  { %v5937_v20 = vpop.permute.xlu0 %5936 }
 0xd6b   :  { %v5939_v44 = vunpack.i.h.bf16 %v5937_v20  ;;  %v5938_v57 = vunpack.i.l.bf16 %v5937_v20 }
 0xd6d   :  { %v5689_v58 = vpack.c.bf16 %v5939_v44, %v5938_v57  ;;  %v6094_v61 = vpop.eup %6093  ;;  %v6699_v44 = vld [vmem:[%s7357_s7] ss:$0 sm:$0xff] }
 0xd6e   :  { %v1642_v1 = vmul.f32 %v6094_v61, %v6090_v22 }
 0xd6f   :  { %5691 = vmatprep.subr.msk.bf16.mxu1 %vm6435_vm10, %v5689_v58 }
 0xd71   :  { %v6096_v62 = vpop.eup %6095 }
 0xd72   :  { %v1641_v63 = vmul.f32 %v6096_v62, %v6092_v55 }
 0xd74   :  { %5368 = vmatprep.mubr.msk.f32.mxu1 %vm367_vm11, %v1641_v63  ;;  %v6234_v63 = vld [vmem:[%s7387_s23 + $0x8] sm:$0xff] }
 0xd75   :  { %5369 = vmatmul.mubr.msk.f32.vlgmr.msra.gmra.mrb[18].mxu1 %vm367_vm11, %v1642_v1 }
 0xd76   :  { %5694 = vmatpush3.bf16.xpose.msk.msra.mxu1 %vm6435_vm10, %v5689_v58  ;;  %5375 = vmatprep.mubr.msk.f32.mxu1 %vm279_vm9, %v1731_v2 }
 0xd7d   :  { %5376 = vmatmul.mubr.msk.f32.vlgmr.msra.gmra.mrb[20].mxu1 %vm279_vm9, %v1733_v3 }
 0xe48   :  { %v5370_v4 = vpop.f32.mrb[18].mxu1 }
 0xe49   :  { %v1721_v5 = vpop.f32.mrb[19].mxu1 }
 0xe50   :  { %v5377_v6 = vpop.f32.mrb[20].mxu1 }
 0xe51   :  { %v1822_v7 = vmul.f32 0.35355338, %v5377_v6  ;;  %v1812_v8 = vpop.f32.mrb[21].mxu1 }
 0xe52   :  { %v1821_v9 = vmul.f32 0.35355338, %v1812_v8 }
 0xe53   :  { %v1824_v10 = vadd.f32 %v1822_v7, %v6564_v24 }
 0xe54   :  { %v1823_v11 = vadd.f32 %v1821_v9, %v6569_v0 }
 0xe55   :  { %v1828_v12 = vsel %vm367_vm11, %v1824_v10, -inf }
 0xe56   :  { %1829 = vmax.xlane.f32.xlu0 %v1828_v12  ;;  %v1825_v13 = vsel %vm367_vm11, %v1823_v11, -inf }
 0xe57   :  { %1826 = vmax.xlane.f32.xlu1 %v1825_v13 }
 0xe68   :  { %5941 = vrot.lane.b32.xlu1 %v6543_v52, %s7370_s20  ;;  %s7395_s20 = smov 40  }
 0xe6c   :  { %1093 = vrot.lane.b32.xlu1 %v6517_v18, %s7378_s0 }
 0xe70   :  { %1099 = vrot.lane.b32.xlu1 %v6523_v23, %s7376_s21 }
 0xe74   :  { %1101 = vrot.lane.b32.xlu1 %v6521_v21, %s7376_s21 }
 0xe78   :  { %1109 = vrot.lane.b32.xlu1 %v6557_v59, %s7380_s22 }
 0xe7c   :  { %1938 = vrot.lane.b32.xlu1 %v6619_v28, %s7378_s0 }
 0xee3   :  { %v1830_v24 = vpop.xlane.xlu0 %1829 }
 0xee4   :  { %v1832_v52 = vsub.f32 %v1824_v10, %v1830_v24  ;;  %v1827_v0 = vpop.xlane.xlu1 %1826 }
 0xee5   :  { %v1831_v14 = vsub.f32 %v1823_v11, %v1827_v0 }
 0xee6   :  { %v1835_v15 = vmul.f32 1.442695, %v1832_v52 }
 0xee7   :  { %v1833_v18 = vmul.f32 1.442695, %v1831_v14 }
 0xee8   :  { %6097 = vpow2.f32 %v1835_v15  ;;  %v5942_v26 = vpop.permute.xlu1 %5941 }
 0xee9   :  { %v5944_v27 = vunpack.i.h.bf16 %v5942_v26  ;;  %v5943_v23 = vunpack.i.l.bf16 %v5942_v26  ;;  %6099 = vpow2.f32 %v1833_v18 }
 0xeeb   :  { %v5695_v30 = vpack.c.bf16 %v5944_v27, %v5943_v23 }
 0xeec   :  { %v1094_v37 = vpop.permute.xlu1 %1093 }
 0xeed   :  { %5696 = vmatprep.subr.bf16.mxu0 %v5695_v30 }
 0xeee   :  { %5698 = vmatpush3.bf16.msra.mxu0 %v5695_v30 }
 0xeef   :  { %5700 = vmatprep.subr.bf16.mxu0 %v5699_v35 }
 0xef0   :  { %v1100_v39 = vpop.permute.xlu1 %1099 }
 0xef2   :  { %v6098_v21 = vpop.eup %6097 }
 0xef3   :  { %v1840_v59 = vsel %vm367_vm11, %v6098_v21, 0.0  ;;  %v6100_v31 = vpop.eup %6099 }
 0xef4   :  { %1841 = vadd.xlane.f32.xlu0 %v1840_v59  ;;  %v1837_v28 = vsel %vm367_vm11, %v6100_v31, 0.0  ;;  %v1102_v48 = vpop.permute.xlu1 %1101  ;;  %v2183_v59 = vld [vmem:[%s7358_s10 + $0x8] sm:$0xff] }
 0xef8   :  { %1838 = vadd.xlane.f32.xlu0 %v1837_v28  ;;  %v1110_v51 = vpop.permute.xlu1 %1109 }
 0xefc   :  { %v1939_v11 = vpop.permute.xlu1 %1938 }
 0xefd   :  { %v1959_v24 = vsel %vm279_vm9, %v6593_v50, %v1939_v11  ;;  %v2297_v11 = vld [vmem:[%s7361_s12 + $0x18] sm:$0xff] }
 0xf0e   :  { %1091 = vrot.lane.b32.xlu0 %v6519_v19, %s7378_s0 }
 0xf12   :  { %1107 = vrot.lane.b32.xlu0 %v6559_v60, %s7380_s22  ;;  %v1966_v60 = vld [vmem:[%s7356_s6 + $0x10] sm:$0xff] }
 0xf16   :  { %1936 = vrot.lane.b32.xlu0 %v6621_v29, %s7378_s0  ;;  %v1967_v29 = vld [vmem:[%s7356_s6 + $0x18] sm:$0xff] }
 0xf17   :  { %v5703_v53 = vpack.c.bf16 %v1967_v29, %v1966_v60 }
 0xf1a   :  { %1944 = vrot.lane.b32.xlu0 %v1721_v5, %s7376_s21 }
 0xf1e   :  { %1946 = vrot.lane.b32.xlu0 %v5370_v4, %s7376_s21 }
 0xf81   :  { %v1842_v19 = vpop.xlane.xlu0 %1841 }
 0xf82   :  { %6101 = vrcp.f32 %v1842_v19 }
 0xf85   :  { %v1839_v36 = vpop.xlane.xlu0 %1838 }
 0xf86   :  { %6103 = vrcp.f32 %v1839_v36 }
 0xf89   :  { %v1092_v38 = vpop.permute.xlu0 %1091 }
 0xf8a   :  { %v1113_v41 = vsel %vm279_vm9, %v6515_v17, %v1092_v38  ;;  %v1114_v17 = vsel %vm279_vm9, %v6513_v16, %v1094_v37  ;;  %v6233_v16 = vld [vmem:[%s7387_s23] sm:$0xff] }
 0xf8b   :  { %v1115_v54 = vsel %vm367_vm11, %v1113_v41, %v1100_v39  ;;  %v1116_v55 = vsel %vm367_vm11, %v1114_v17, %v1102_v48  ;;  %v6747_v41 = vld [vmem:[%s7359_s8] ss:$0 sm:$0xff] }
 0xf8c   :  { %v6102_v40 = vpop.eup %6101  ;;  %v1119_v49 = vsel %vm1117_vm12, %v1116_v55, %v1110_v51  ;;  %v6753_v48 = vld [vmem:[%s7360_s9] ss:$0 sm:$0xff] }
 0xf8d   :  { %v1108_v45 = vpop.permute.xlu0 %1107  ;;  %v1846_v25 = vmul.f32 %v6102_v40, %v6098_v21  ;;  %v2182_v21 = vld [vmem:[%s7358_s10] sm:$0xff] }
 0xf8e   :  { %v1118_v22 = vsel %vm1117_vm12, %v1115_v54, %v1108_v45  ;;  %v5707_v28 = vpack.c.bf16 %v2183_v59, %v2182_v21 }
 0xf90   :  { %v6104_v46 = vpop.eup %6103  ;;  %5708 = vmatprep.subr.bf16.mxu1 %v5707_v28 }
 0xf91   :  { %v1845_v47 = vmul.f32 %v6104_v46, %v6100_v31  ;;  %v1937_v4 = vpop.permute.xlu0 %1936  ;;  %v2184_v31 = vld [vmem:[%s7358_s10 + $0x10] sm:$0xff]  ;;  %5710 = vmatpush3.bf16.msra.mxu1 %v5707_v28  ;;  %v4947_v28 = vld [vmem:[%s7362_s11] ss:$0 sm:$0xff] }
 0xf92   :  { %v1958_v7 = vsel %vm279_vm9, %v6595_v42, %v1937_v4  ;;  %v5711_v34 = vpack.c.bf16 %v2185_v33, %v2184_v31 }
 0xf93   :  { %5382 = vmatprep.mubr.msk.f32.mxu0 %vm367_vm11, %v1845_v47 }
 0xf94   :  { %5383 = vmatmul.mubr.msk.f32.vlgmr.msra.gmra.mrb[12].mxu0 %vm367_vm11, %v1846_v25  ;;  %5712 = vmatprep.subr.bf16.mxu1 %v5711_v34 }
 0xf95   :  { %5702 = vmatpush3.bf16.msra.mxu0 %v5699_v35  ;;  %5393 = vmatprep.mubr.msk.f32.mxu0 %vm63_vm0, %v1118_v22  ;;  %v1945_v5 = vpop.permute.xlu0 %1944 }
 0xf96   :  { %5704 = vmatprep.subr.bf16.mxu0 %v5703_v53  ;;  %v1960_v8 = vsel %vm367_vm11, %v1958_v7, %v1945_v5  ;;  %5714 = vmatpush3.bf16.msra.mxu1 %v5711_v34 }
 0xf99   :  { %5706 = vmatpush3.bf16.msra.mxu0 %v5703_v53  ;;  %v1947_v6 = vpop.permute.xlu0 %1946 }
 0xf9a   :  { %v1961_v0 = vsel %vm367_vm11, %v1959_v24, %v1947_v6  ;;  %v2299_v24 = vld [vmem:[%s7361_s12 + $0x28] sm:$0xff] }
 0xf9c   :  { %5394 = vmatmul.mubr.msk.f32.vlgmr.msra.gmra.mrb[14].mxu0 %vm63_vm0, %v1119_v49 }
0x1067   :  { %v5384_v56 = vpop.f32.mrb[12].mxu0 }
0x1068   :  { %v1925_v43 = vpop.f32.mrb[13].mxu0 }
0x1069   :  { %1952 = vrot.lane.b32.xlu0 %v1925_v43, %s7380_s22 }
0x106f   :  { %v5395_v20 = vpop.f32.mrb[14].mxu0 }
0x1070   :  { %v2046_v57 = vpop.f32.mrb[15].mxu0  ;;  %v2066_v1 = vadd.f32 %v6234_v63, %v5395_v20 }
0x1071   :  { %v2065_v58 = vadd.f32 %v6233_v16, %v2046_v57 }
0x1072   :  { %v6713_v2 = vadd.f32 %v6699_v44, %v2066_v1  ;;  %v6236_v1 = vld [vmem:[%s7387_s23 + $0x10] sm:$0xff] }
0x1073   :  { %v6705_v61 = vadd.f32 %v6699_v44, %v2065_v58 }
0x1074   :  { %v2085_v3 = vsel %vm63_vm0, %v6713_v2, 0.0 }
0x1075   :  { %v2082_v62 = vsel %vm63_vm0, %v6705_v61, 0.0 }
0x1076   :  { %2083 = vadd.xlane.f32.xlu1 %v2082_v62  ;;  %v6235_v62 = vld [vmem:[%s7387_s23 + $0x18] sm:$0xff] }
0x1087   :  { %1954 = vrot.lane.b32.xlu1 %v5384_v56, %s7380_s22  ;;  %s7390_s22 = smov 96  }
0x1088   :  { %2086 = vadd.xlane.f32.xlu0 %v2085_v3 }
0x10db   :  { %v1953_v9 = vpop.permute.xlu0 %1952 }
0x10dc   :  { %v1962_v10 = vsel %vm1117_vm12, %v1960_v8, %v1953_v9  ;;  %v2294_v8 = vld [vmem:[%s7361_s12] sm:$0xff]  ;;  %v2295_v9 = vld [vmem:[%s7361_s12 + $0x8] sm:$0xff] }
0x10dd   :  { %5396 = vmatprep.mubr.msk.f32.mxu0 %vm63_vm0, %v1962_v10  ;;  %v5715_v10 = vpack.c.bf16 %v2295_v9, %v2294_v8 }
0x10df   :  { %5716 = vmatprep.subr.bf16.mxu0 %v5715_v10 }
0x10e0   :  { %5718 = vmatpush3.bf16.msra.mxu0 %v5715_v10 }
0x1103   :  { %v2084_v12 = vpop.xlane.xlu1 %2083 }
0x1104   :  { %v2094_v13 = vmul.f32 0.03125, %v2084_v12 }
0x1106   :  { %v2098_v52 = vsub.f32 %v6705_v61, %v2094_v13  ;;  %v2298_v13 = vld [vmem:[%s7361_s12 + $0x20] sm:$0xff] }
0x1107   :  { %v1955_v14 = vpop.permute.xlu1 %1954 }
0x1108   :  { %v1963_v42 = vsel %vm1117_vm12, %v1961_v0, %v1955_v14  ;;  %v2102_v15 = vmul.f32 %v2098_v52, %v2098_v52  ;;  %v2156_v45 = vmul.f32 %v6747_v41, %v2098_v52  ;;  %v5723_v52 = vpack.c.bf16 %v2299_v24, %v2298_v13  ;;  %v2300_v0 = vld [vmem:[%s7361_s12 + $0x30] sm:$0xff]  ;;  %v2301_v14 = vld [vmem:[%s7361_s12 + $0x38] sm:$0xff] }
0x1109   :  { %5397 = vmatmul.mubr.msk.f32.gmra.mrb[16].mxu0 %vm63_vm0, %v1963_v42  ;;  %v5727_v42 = vpack.c.bf16 %v2301_v14, %v2300_v0 }
0x110a   :  { %v2106_v18 = vsel %vm63_vm0, %v2102_v15, 0.0 }
0x110b   :  { %2107 = vadd.xlane.f32.xlu0 %v2106_v18 }
0x1115   :  { %v2087_v26 = vpop.xlane.xlu0 %2086 }
0x1116   :  { %v2095_v27 = vmul.f32 0.03125, %v2087_v26 }
0x1118   :  { %v2099_v23 = vsub.f32 %v6713_v2, %v2095_v27 }
0x111a   :  { %v2103_v30 = vmul.f32 %v2099_v23, %v2099_v23  ;;  %v2157_v56 = vmul.f32 %v6747_v41, %v2099_v23 }
0x111c   :  { %v2109_v50 = vsel %vm63_vm0, %v2103_v30, 0.0 }
0x111d   :  { %2110 = vadd.xlane.f32.xlu0 %v2109_v50 }
0x1198   :  { %v2108_v35 = vpop.xlane.xlu0 %2107 }
0x1199   :  { %v2118_v19 = vmul.f32 0.032258064, %v2108_v35 }
0x119b   :  { %6105 = vrsqrt.f32 %v2118_v19  ;;  %vm2124_vm13 = vcmp.eq.f32.partialorder %v2118_v19, inf  ;;  %v2127_v38 = vand.u32 2147483648, %v2118_v19  ;;  %vm2126_vm14 = vcmp.eq.f32.partialorder %v2118_v19, 0.0 }
0x11a5   :  { %v6106_v36 = vpop.eup %6105 }
0x11a6   :  { %v2123_v37 = vmul.f32 %v6106_v36, %v2118_v19 }
0x11a8   :  { %v2125_v39 = vsel %vm2124_vm13, %v2118_v19, %v2123_v37 }
0x11a9   :  { %v2128_v40 = vsel %vm2126_vm14, %v2127_v38, %v2125_v39 }
0x11aa   :  { %v2111_v60 = vpop.xlane.xlu0 %2110  ;;  %v2160_v29 = vadd.f32 1e-06, %v2128_v40 }
0x11ab   :  { %v2119_v46 = vmul.f32 0.032258064, %v2111_v60 }
0x11ac   :  { %6107 = vrcp.f32 %v2160_v29 }
0x11ad   :  { %6109 = vrsqrt.f32 %v2119_v46  ;;  %vm2131_vm15 = vcmp.eq.f32.partialorder %v2119_v46, inf  ;;  %v2134_v22 = vand.u32 2147483648, %v2119_v46  ;;  %vm2133_vm1 = vcmp.eq.f32.partialorder %v2119_v46, 0.0 }
0x11b6   :  { %v6108_v47 = vpop.eup %6107 }
0x11b7   :  { %v6110_v25 = vpop.eup %6109  ;;  %v2168_v53 = vmul.f32 %v6108_v47, %v2156_v45 }
0x11b8   :  { %v2130_v54 = vmul.f32 %v6110_v25, %v2119_v46 }
0x11b9   :  { %v2178_v51 = vadd.f32 %v6753_v48, %v2168_v53 }
0x11ba   :  { %v2132_v17 = vsel %vm2131_vm15, %v2119_v46, %v2130_v54 }
0x11bb   :  { %v2135_v55 = vsel %vm2133_vm1, %v2134_v22, %v2132_v17  ;;  %5407 = vmatprep.mubr.msk.f32.mxu1 %vm63_vm0, %v2178_v51 }
0x11bc   :  { %v2161_v49 = vadd.f32 1e-06, %v2135_v55 }
0x11be   :  { %6111 = vrcp.f32 %v2161_v49 }
0x11c8   :  { %v6112_v43 = vpop.eup %6111 }
0x11c9   :  { %v2169_v20 = vmul.f32 %v6112_v43, %v2157_v56 }
0x11cb   :  { %v2179_v57 = vadd.f32 %v6753_v48, %v2169_v20 }
0x11cd   :  { %5408 = vmatmul.mubr.msk.f32.vlgmr.msra.gmra.mrb[22].mxu1 %vm63_vm0, %v2179_v57 }
0x11dc   :  { %v5398_v16 = vpop.f32.mrb[16].mxu0 }
0x11dd   :  { %v2056_v58 = vpop.f32.mrb[17].mxu0  ;;  %v2068_v63 = vadd.f32 %v6235_v62, %v5398_v16 }
0x11de   :  { %v2067_v3 = vadd.f32 %v6236_v1, %v2056_v58 }
0x11df   :  { %v6770_v5 = vadd.f32 %v6699_v44, %v2068_v63 }
0x11e0   :  { %v6767_v4 = vadd.f32 %v6699_v44, %v2067_v3  ;;  %v2296_v44 = vld [vmem:[%s7361_s12 + $0x10] sm:$0xff]  ;;  %v6818_v3 = vld [vmem:[%s7363_s13] ss:$0 sm:$0xff] }
0x11e1   :  { %v2091_v7 = vsel %vm63_vm0, %v6770_v5, 0.0  ;;  %v5719_v12 = vpack.c.bf16 %v2297_v11, %v2296_v44 }
0x11e2   :  { %v2088_v6 = vsel %vm63_vm0, %v6767_v4, 0.0 }
0x11e3   :  { %2089 = vadd.xlane.f32.xlu0 %v2088_v6  ;;  %5720 = vmatprep.subr.bf16.mxu0 %v5719_v12 }
0x11e4   :  { %5722 = vmatpush3.bf16.msra.mxu0 %v5719_v12 }
0x11e5   :  { %5724 = vmatprep.subr.bf16.mxu0 %v5723_v52 }
0x11e7   :  { %2092 = vadd.xlane.f32.xlu0 %v2091_v7 }
0x11e8   :  { %5726 = vmatpush3.bf16.msra.mxu0 %v5723_v52 }
0x11e9   :  { %5728 = vmatprep.subr.bf16.mxu0 %v5727_v42 }
0x11ec   :  { %5730 = vmatpush3.bf16.msra.mxu0 %v5727_v42 }
0x1270   :  { %v2090_v15 = vpop.xlane.xlu0 %2089 }
0x1271   :  { %v2096_v18 = vmul.f32 0.03125, %v2090_v15 }
0x1273   :  { %v2100_v26 = vsub.f32 %v6767_v4, %v2096_v18 }
0x1274   :  { %v2093_v27 = vpop.xlane.xlu0 %2092 }
0x1275   :  { %v2097_v23 = vmul.f32 0.03125, %v2093_v27  ;;  %v2104_v30 = vmul.f32 %v2100_v26, %v2100_v26  ;;  %v2158_v56 = vmul.f32 %v6747_v41, %v2100_v26 }
0x1277   :  { %v2101_v50 = vsub.f32 %v6770_v5, %v2097_v23  ;;  %v2112_v21 = vsel %vm63_vm0, %v2104_v30, 0.0  ;;  %v4961_v30 = vld [vmem:[%s7351_s4 + $0x20] sm:$0xff] }
0x1278   :  { %2113 = vadd.xlane.f32.xlu1 %v2112_v21  ;;  %v4963_v21 = vld [vmem:[%s7351_s4 + $0x30] sm:$0xff] }
0x1279   :  { %v2105_v59 = vmul.f32 %v2101_v50, %v2101_v50  ;;  %v2159_v57 = vmul.f32 %v6747_v41, %v2101_v50  ;;  %v4962_v50 = vld [vmem:[%s7351_s4 + $0x28] sm:$0xff] }
0x127b   :  { %v2115_v31 = vsel %vm63_vm0, %v2105_v59, 0.0  ;;  %v5731_v59 = vpack.c.bf16 %v4962_v50, %v4961_v30 }
0x127c   :  { %2116 = vadd.xlane.f32.xlu0 %v2115_v31  ;;  %v4964_v31 = vld [vmem:[%s7351_s4 + $0x38] sm:$0xff]  ;;  %s7394_s4 = smov 104  }
0x127d   :  { %5732 = vmatprep.subr.bf16.mxu1 %v5731_v59 }
0x127e   :  { %5734 = vmatpush3.bf16.msra.mxu1 %v5731_v59 }
0x12a0   :  { %v5409_v33 = vpop.f32.mrb[22].mxu1 }
0x12a1   :  { %v2277_v34 = vadd.f32 %v5409_v33, %v4947_v28  ;;  %v2271_v35 = vpop.f32.mrb[23].mxu1 }
0x12a2   :  { %v2272_v19 = vadd.f32 %v4947_v28, %v2271_v35 }
0x12a3   :  { %v2291_v37 = vmax.f32 %v2277_v34, 0.0 }
0x12a4   :  { %v2290_v36 = vmax.f32 %v2272_v19, 0.0 }
0x12a6   :  { %5429 = vmatprep.mubr.msk.f32.mxu0 %vm2302_vm2, %v2290_v36 }
0x12a7   :  { %5430 = vmatmul.mubr.msk.f32.vlgmr.msra.gmra.mrb[18].mxu0 %vm2302_vm2, %v2291_v37 }
0x1305   :  { %v2114_v38 = vpop.xlane.xlu1 %2113 }
0x1306   :  { %v2120_v39 = vmul.f32 0.032258064, %v2114_v38 }
0x1308   :  { %6113 = vrsqrt.f32 %v2120_v39  ;;  %vm2138_vm3 = vcmp.eq.f32.partialorder %v2120_v39, inf  ;;  %v2141_v45 = vand.u32 2147483648, %v2120_v39  ;;  %vm2140_vm4 = vcmp.eq.f32.partialorder %v2120_v39, 0.0 }
0x1309   :  { %v2117_v40 = vpop.xlane.xlu0 %2116 }
0x130a   :  { %v2121_v60 = vmul.f32 0.032258064, %v2117_v40 }
0x130c   :  { %6115 = vrsqrt.f32 %v2121_v60  ;;  %vm2145_vm5 = vcmp.eq.f32.partialorder %v2121_v60, inf  ;;  %v2148_v51 = vand.u32 2147483648, %v2121_v60  ;;  %vm2147_vm6 = vcmp.eq.f32.partialorder %v2121_v60, 0.0 }
0x1312   :  { %v6114_v29 = vpop.eup %6113 }
0x1313   :  { %v2137_v46 = vmul.f32 %v6114_v29, %v2120_v39 }
0x1315   :  { %v2139_v47 = vsel %vm2138_vm3, %v2120_v39, %v2137_v46 }
0x1316   :  { %v6116_v25 = vpop.eup %6115  ;;  %v2142_v53 = vsel %vm2140_vm4, %v2141_v45, %v2139_v47 }
0x1317   :  { %v2144_v54 = vmul.f32 %v6116_v25, %v2121_v60  ;;  %v2162_v22 = vadd.f32 1e-06, %v2142_v53 }
0x1319   :  { %v2146_v17 = vsel %vm2145_vm5, %v2121_v60, %v2144_v54  ;;  %6117 = vrcp.f32 %v2162_v22  ;;  %v6853_v54 = vld [vmem:[%s7352_s2 + $0x1] ss:$0 sm:$0xff] }
0x131a   :  { %v2149_v55 = vsel %vm2147_vm6, %v2148_v51, %v2146_v17  ;;  %v6859_v17 = vld [vmem:[%s7353_s3 + $0x1] ss:$0 sm:$0xff] }
0x131b   :  { %v2163_v49 = vadd.f32 1e-06, %v2149_v55 }
0x131d   :  { %6119 = vrcp.f32 %v2163_v49 }
0x1323   :  { %v6118_v43 = vpop.eup %6117 }
0x1324   :  { %v2170_v20 = vmul.f32 %v6118_v43, %v2158_v56 }
0x1326   :  { %v2180_v16 = vadd.f32 %v6753_v48, %v2170_v20 }
0x1327   :  { %v6120_v58 = vpop.eup %6119 }
0x1328   :  { %5410 = vmatprep.mubr.msk.f32.mxu1 %vm63_vm0, %v2180_v16  ;;  %v2171_v62 = vmul.f32 %v6120_v58, %v2159_v57 }
0x132a   :  { %v2181_v63 = vadd.f32 %v6753_v48, %v2171_v62 }
0x132c   :  { %5411 = vmatmul.mubr.msk.f32.gmra.mrb[24].mxu1 %vm63_vm0, %v2181_v63 }
0x137a   :  { %v5431_v1 = vpop.f32.mrb[18].mxu0 }
0x137b   :  { %v2381_v6 = vpop.f32.mrb[19].mxu0  ;;  %v2401_v7 = vadd.f32 %v5431_v1, %v6713_v2 }
0x137c   :  { %v2400_v41 = vadd.f32 %v2381_v6, %v6705_v61 }
0x137d   :  { %v6826_v9 = vadd.f32 %v6818_v3, %v2401_v7 }
0x137e   :  { %v6823_v8 = vadd.f32 %v6818_v3, %v2400_v41 }
0x137f   :  { %v2422_v44 = vsel %vm63_vm0, %v6826_v9, 0.0 }
0x1380   :  { %v2419_v48 = vsel %vm63_vm0, %v6823_v8, 0.0 }
0x1381   :  { %2420 = vadd.xlane.f32.xlu0 %v2419_v48 }
0x1385   :  { %2423 = vadd.xlane.f32.xlu0 %v2422_v44 }
0x13ff   :  { %v5412_v10 = vpop.f32.mrb[24].mxu1 }
0x1400   :  { %v2287_v11 = vadd.f32 %v5412_v10, %v4947_v28  ;;  %v2281_v12 = vpop.f32.mrb[25].mxu1 }
0x1401   :  { %v2282_v2 = vadd.f32 %v4947_v28, %v2281_v12  ;;  %v5735_v28 = vpack.c.bf16 %v4964_v31, %v4963_v21 }
0x1402   :  { %v2293_v61 = vmax.f32 %v2287_v11, 0.0 }
0x1403   :  { %v2292_v13 = vmax.f32 %v2282_v2, 0.0  ;;  %5736 = vmatprep.subr.bf16.mxu1 %v5735_v28 }
0x1404   :  { %5738 = vmatpush3.bf16.msra.mxu1 %v5735_v28 }
0x1405   :  { %5432 = vmatprep.mubr.msk.f32.mxu0 %vm2302_vm2, %v2292_v13 }
0x1406   :  { %5433 = vmatmul.mubr.msk.f32.gmra.mrb[20].mxu0 %vm2302_vm2, %v2293_v61  ;;  %v6893_v61 = vld [vmem:[%s7354_s5 + $0x1] ss:$0 sm:$0xff] }
0x140e   :  { %v2421_v24 = vpop.xlane.xlu0 %2420 }
0x140f   :  { %v2431_v52 = vmul.f32 0.03125, %v2421_v24 }
0x1411   :  { %v2435_v0 = vsub.f32 %v6823_v8, %v2431_v52 }
0x1412   :  { %v2424_v14 = vpop.xlane.xlu0 %2423 }
0x1413   :  { %v2432_v42 = vmul.f32 0.03125, %v2424_v14  ;;  %v2439_v15 = vmul.f32 %v2435_v0, %v2435_v0  ;;  %v2493_v22 = vmul.f32 %v6853_v54, %v2435_v0 }
0x1415   :  { %v2436_v18 = vsub.f32 %v6826_v9, %v2432_v42  ;;  %v2443_v26 = vsel %vm63_vm0, %v2439_v15, 0.0 }
0x1416   :  { %2444 = vadd.xlane.f32.xlu0 %v2443_v26 }
0x1417   :  { %v2440_v27 = vmul.f32 %v2436_v18, %v2436_v18  ;;  %v2494_v49 = vmul.f32 %v6853_v54, %v2436_v18 }
0x1419   :  { %v2446_v23 = vsel %vm63_vm0, %v2440_v27, 0.0 }
0x141a   :  { %2447 = vadd.xlane.f32.xlu0 %v2446_v23 }
0x14a3   :  { %v2445_v33 = vpop.xlane.xlu0 %2444 }
0x14a4   :  { %v2455_v34 = vmul.f32 0.032258064, %v2445_v33 }
0x14a6   :  { %6121 = vrsqrt.f32 %v2455_v34  ;;  %vm2461_vm7 = vcmp.eq.f32.partialorder %v2455_v34, inf  ;;  %v2464_v38 = vand.u32 2147483648, %v2455_v34  ;;  %vm2463_vm8 = vcmp.eq.f32.partialorder %v2455_v34, 0.0 }
0x14a7   :  { %v2448_v35 = vpop.xlane.xlu0 %2447 }
0x14a8   :  { %v2456_v19 = vmul.f32 0.032258064, %v2448_v35 }
0x14aa   :  { %6123 = vrsqrt.f32 %v2456_v19  ;;  %vm2468_vm13 = vcmp.eq.f32.partialorder %v2456_v19, inf  ;;  %v2471_v45 = vand.u32 2147483648, %v2456_v19  ;;  %vm2470_vm14 = vcmp.eq.f32.partialorder %v2456_v19, 0.0 }
0x14b0   :  { %v6122_v36 = vpop.eup %6121 }
0x14b1   :  { %v2460_v37 = vmul.f32 %v6122_v36, %v2455_v34 }
0x14b3   :  { %v2462_v39 = vsel %vm2461_vm7, %v2455_v34, %v2460_v37 }
0x14b4   :  { %v6124_v40 = vpop.eup %6123  ;;  %v2465_v60 = vsel %vm2463_vm8, %v2464_v38, %v2462_v39 }
0x14b5   :  { %v2467_v29 = vmul.f32 %v6124_v40, %v2456_v19  ;;  %v2497_v46 = vadd.f32 1e-06, %v2465_v60 }
0x14b7   :  { %v2469_v47 = vsel %vm2468_vm13, %v2456_v19, %v2467_v29  ;;  %6125 = vrcp.f32 %v2497_v46 }
0x14b8   :  { %v2472_v25 = vsel %vm2470_vm14, %v2471_v45, %v2469_v47 }
0x14b9   :  { %v2498_v53 = vadd.f32 1e-06, %v2472_v25 }
0x14bb   :  { %6127 = vrcp.f32 %v2498_v53 }
0x14c1   :  { %v6126_v51 = vpop.eup %6125 }
0x14c2   :  { %v2505_v55 = vmul.f32 %v6126_v51, %v2493_v22 }
0x14c4   :  { %v2515_v56 = vadd.f32 %v6859_v17, %v2505_v55 }
0x14c5   :  { %v6128_v43 = vpop.eup %6127 }
0x14c6   :  { %5443 = vmatprep.mubr.msk.f32.mxu1 %vm63_vm0, %v2515_v56  ;;  %v2506_v20 = vmul.f32 %v6128_v43, %v2494_v49 }
0x14c8   :  { %v2516_v57 = vadd.f32 %v6859_v17, %v2506_v20 }
0x14ca   :  { %5444 = vmatmul.mubr.msk.f32.vlgmr.msra.gmra.mrb[26].mxu1 %vm63_vm0, %v2516_v57 }
0x14d9   :  { %v5434_v16 = vpop.f32.mrb[20].mxu0 }
0x14da   :  { %v2391_v58 = vpop.f32.mrb[21].mxu0  ;;  %v2403_v62 = vadd.f32 %v5434_v16, %v6770_v5 }
0x14db   :  { %v2402_v63 = vadd.f32 %v2391_v58, %v6767_v4 }
0x14dc   :  { %v6872_v6 = vadd.f32 %v6818_v3, %v2403_v62 }
0x14dd   :  { %v6869_v1 = vadd.f32 %v6818_v3, %v2402_v63 }
0x14de   :  { %v2428_v41 = vsel %vm63_vm0, %v6872_v6, 0.0 }
0x14df   :  { %v2425_v7 = vsel %vm63_vm0, %v6869_v1, 0.0 }
0x14e0   :  { %2426 = vadd.xlane.f32.xlu0 %v2425_v7 }
0x14e4   :  { %2429 = vadd.xlane.f32.xlu0 %v2428_v41 }
0x156d   :  { %v2427_v48 = vpop.xlane.xlu0 %2426 }
0x156e   :  { %v2433_v44 = vmul.f32 0.03125, %v2427_v48 }
0x1570   :  { %v6879_v5 = vsub.f32 %v6869_v1, %v2433_v44 }
0x1571   :  { %v2430_v4 = vpop.xlane.xlu0 %2429 }
0x1572   :  { %v2434_v10 = vmul.f32 0.03125, %v2430_v4  ;;  %v2441_v11 = vmul.f32 %v6879_v5, %v6879_v5  ;;  %v2495_v51 = vmul.f32 %v6853_v54, %v6879_v5 }
0x1574   :  { %v6884_v3 = vsub.f32 %v6872_v6, %v2434_v10  ;;  %v2449_v12 = vsel %vm63_vm0, %v2441_v11, 0.0 }
0x1575   :  { %2450 = vadd.xlane.f32.xlu0 %v2449_v12 }
0x1576   :  { %v2442_v2 = vmul.f32 %v6884_v3, %v6884_v3  ;;  %v2496_v57 = vmul.f32 %v6853_v54, %v6884_v3 }
0x1578   :  { %v2452_v13 = vsel %vm63_vm0, %v2442_v2, 0.0 }
0x1579   :  { %2453 = vadd.xlane.f32.xlu0 %v2452_v13  ;;  %v6954_v13 = vld [vmem:[%s7355_s1 + $0x8] sm:$0xff] }
0x159d   :  { %v5445_v24 = vpop.f32.mrb[26].mxu1 }
0x159e   :  { %v6896_v52 = vadd.f32 %v5445_v24, %v6893_v61  ;;  %v2610_v0 = vpop.f32.mrb[27].mxu1 }
0x159f   :  { %v6899_v14 = vadd.f32 %v6893_v61, %v2610_v0  ;;  %v6960_v0 = vld [vmem:[%s7355_s1] sm:$0xff] }
0x15a1   :  { %v6903_v42 = vpack.i.bf16 %v6896_v52, %v6899_v14 }
0x15a3   :  { %5946 = vrot.lane.b32.xlu1 %v6903_v42, %s7390_s22  ;;  %5951 = vrot.lane.b32.xlu0 %v6903_v42, %s6241_s30 }
0x15a7   :  { %2831 = vrot.lane.b32.xlu1 %v6899_v14, %s6243_s17  ;;  %2833 = vrot.lane.b32.xlu0 %v6896_v52, %s6243_s17 }
0x15ab   :  { %5956 = vrot.lane.b32.xlu1 %v6903_v42, %s6244_s18  ;;  %3037 = vrot.lane.b32.xlu0 %v6896_v52, %s6245_s19 }
0x15af   :  { %3035 = vrot.lane.b32.xlu1 %v6899_v14, %s6245_s19 }
0x1602   :  { %v2451_v15 = vpop.xlane.xlu0 %2450 }
0x1603   :  { %v2457_v18 = vmul.f32 0.032258064, %v2451_v15 }
0x1605   :  { %6129 = vrsqrt.f32 %v2457_v18  ;;  %vm2475_vm15 = vcmp.eq.f32.partialorder %v2457_v18, inf  ;;  %v2478_v50 = vand.u32 2147483648, %v2457_v18  ;;  %vm2477_vm1 = vcmp.eq.f32.partialorder %v2457_v18, 0.0 }
0x1606   :  { %v2454_v26 = vpop.xlane.xlu0 %2453 }
0x1607   :  { %v2458_v27 = vmul.f32 0.032258064, %v2454_v26 }
0x1609   :  { %6131 = vrsqrt.f32 %v2458_v27  ;;  %vm2482_vm3 = vcmp.eq.f32.partialorder %v2458_v27, inf  ;;  %vm2484_vm4 = vcmp.eq.f32.partialorder %v2458_v27, 0.0  ;;  %v2485_v34 = vand.u32 2147483648, %v2458_v27 }
0x160f   :  { %v6130_v23 = vpop.eup %6129 }
0x1610   :  { %v2474_v30 = vmul.f32 %v6130_v23, %v2457_v18 }
0x1612   :  { %v2476_v21 = vsel %vm2475_vm15, %v2457_v18, %v2474_v30 }
0x1613   :  { %v6132_v59 = vpop.eup %6131  ;;  %v2479_v31 = vsel %vm2477_vm1, %v2478_v50, %v2476_v21 }
0x1614   :  { %v2481_v28 = vmul.f32 %v6132_v59, %v2458_v27  ;;  %v2499_v33 = vadd.f32 1e-06, %v2479_v31 }
0x1615   :  { %v5947_v35 = vpop.permute.xlu1 %5946  ;;  %v5952_v19 = vpop.permute.xlu0 %5951 }
0x1616   :  { %v2483_v36 = vsel %vm2482_vm3, %v2458_v27, %v2481_v28  ;;  %v5949_v37 = vunpack.i.h.bf16 %v5947_v35  ;;  %v5948_v38 = vunpack.i.l.bf16 %v5947_v35  ;;  %v5954_v39 = vunpack.i.h.bf16 %v5952_v19 }
0x1617   :  { %v2486_v40 = vsel %vm2484_vm4, %v2485_v34, %v2483_v36  ;;  %v5953_v60 = vunpack.i.l.bf16 %v5952_v19  ;;  %6133 = vrcp.f32 %v2499_v33 }
0x1618   :  { %v5739_v29 = vpack.c.bf16 %v5949_v37, %v5948_v38  ;;  %v2500_v46 = vadd.f32 1e-06, %v2486_v40 }
0x1619   :  { %v5749_v45 = vpack.c.bf16 %v5954_v39, %v5953_v60  ;;  %v2832_v47 = vpop.permute.xlu1 %2831  ;;  %v2834_v43 = vpop.permute.xlu0 %2833 }
0x161a   :  { %5741 = vmatprep.subr.msk.bf16.mxu1 %vm6435_vm10, %v5739_v29  ;;  %5467 = vmatprep.mubr.msk.f32.mxu0 %vm279_vm9, %v2832_v47  ;;  %6135 = vrcp.f32 %v2500_v46 }
0x161b   :  { %5751 = vmatprep.subr.msk.bf16.mxu0 %vm6435_vm10, %v5749_v45  ;;  %5744 = vmatpush3.bf16.xpose.msk.msra.mxu1 %vm6435_vm10, %v5739_v29 }
0x161c   :  { %5754 = vmatpush3.bf16.xpose.msk.msra.mxu0 %vm6435_vm10, %v5749_v45 }
0x161d   :  { %v5957_v25 = vpop.permute.xlu1 %5956  ;;  %v3038_v7 = vpop.permute.xlu0 %3037 }
0x161e   :  { %v5959_v53 = vunpack.i.h.bf16 %v5957_v25  ;;  %v5958_v22 = vunpack.i.l.bf16 %v5957_v25 }
0x1620   :  { %v5759_v55 = vpack.c.bf16 %v5959_v53, %v5958_v22 }
0x1621   :  { %v6134_v49 = vpop.eup %6133  ;;  %v3036_v56 = vpop.permute.xlu1 %3035 }
0x1622   :  { %5761 = vmatprep.subr.msk.bf16.mxu0 %vm6435_vm10, %v5759_v55  ;;  %v2507_v20 = vmul.f32 %v6134_v49, %v2495_v51 }
0x1623   :  { %5468 = vmatmul.mubr.msk.f32.vlgmr.msra.gmra.mrb[22].mxu0 %vm279_vm9, %v2834_v43 }
0x1624   :  { %v6136_v16 = vpop.eup %6135  ;;  %5764 = vmatpush3.bf16.xpose.msk.msra.mxu0 %vm6435_vm10, %v5759_v55  ;;  %5481 = vmatprep.mubr.msk.f32.mxu0 %vm279_vm9, %v3036_v56  ;;  %v2517_v58 = vadd.f32 %v6859_v17, %v2507_v20 }
0x1625   :  { %v2508_v62 = vmul.f32 %v6136_v16, %v2496_v57 }
0x1626   :  { %5446 = vmatprep.mubr.msk.f32.mxu1 %vm63_vm0, %v2517_v58 }
0x1627   :  { %v2518_v63 = vadd.f32 %v6859_v17, %v2508_v62 }
0x1629   :  { %5447 = vmatmul.mubr.msk.f32.gmra.mrb[28].mxu1 %vm63_vm0, %v2518_v63 }
0x162a   :  { %5453 = vmatprep.mubr.msk.f32.mxu1 %vm279_vm9, %v6899_v14 }
0x162b   :  { %5482 = vmatmul.mubr.msk.f32.vlgmr.msra.gmra.mrb[24].mxu0 %vm279_vm9, %v3038_v7 }
0x162d   :  { %5454 = vmatmul.mubr.msk.f32.vlgmr.msra.gmra.mrb[30].mxu1 %vm279_vm9, %v6896_v52 }
0x16f6   :  { %v5469_v54 = vpop.f32.mrb[22].mxu0 }
0x16f7   :  { %v2913_v41 = vpop.f32.mrb[23].mxu0  ;;  %v2923_v12 = vmul.f32 0.35355338, %v5469_v54 }
0x16f8   :  { %v2922_v10 = vmul.f32 0.35355338, %v2913_v41 }
0x16f9   :  { %v2925_v50 = vadd.f32 %v6954_v13, %v2923_v12 }
0x16fa   :  { %v2924_v18 = vadd.f32 %v6960_v0, %v2922_v10 }
0x16fb   :  { %v2929_v31 = vsel %vm367_vm11, %v2925_v50, -inf }
0x16fc   :  { %v6947_v48 = vpop.f32.mrb[28].mxu1  ;;  %v2926_v59 = vsel %vm367_vm11, %v2924_v18, -inf }
0x16fd   :  { %v6949_v44 = vpop.f32.mrb[29].mxu1 }
0x16fe   :  { %v5483_v5 = vpop.f32.mrb[24].mxu0 }
0x16ff   :  { %v3117_v4 = vpop.f32.mrb[25].mxu0  ;;  %v3127_v23 = vmul.f32 0.35355338, %v5483_v5 }
0x1700   :  { %v5455_v17 = vpop.f32.mrb[30].mxu1  ;;  %v3126_v26 = vmul.f32 0.35355338, %v3117_v4 }
0x1701   :  { %v2719_v11 = vmul.f32 0.35355338, %v5455_v17  ;;  %v2709_v3 = vpop.f32.mrb[31].mxu1  ;;  %v3129_v28 = vadd.f32 %v6954_v13, %v3127_v23 }
0x1702   :  { %v2718_v2 = vmul.f32 0.35355338, %v2709_v3  ;;  %v3128_v21 = vadd.f32 %v6960_v0, %v3126_v26 }
0x1703   :  { %v2721_v24 = vadd.f32 %v6954_v13, %v2719_v11  ;;  %v3133_v34 = vsel %vm367_vm11, %v3129_v28, -inf }
0x1704   :  { %v2720_v15 = vadd.f32 %v6960_v0, %v2718_v2  ;;  %v3130_v33 = vsel %vm367_vm11, %v3128_v21, -inf }
0x1705   :  { %v2725_v27 = vsel %vm367_vm11, %v2721_v24, -inf }
0x1706   :  { %2726 = vmax.xlane.f32.xlu0 %v2725_v27  ;;  %v2722_v30 = vsel %vm367_vm11, %v2720_v15, -inf }
0x1707   :  { %2723 = vmax.xlane.f32.xlu1 %v2722_v30 }
0x170a   :  { %2927 = vmax.xlane.f32.xlu0 %v2926_v59 }
0x170b   :  { %2930 = vmax.xlane.f32.xlu1 %v2929_v31 }
0x170e   :  { %3131 = vmax.xlane.f32.xlu0 %v3130_v33 }
0x170f   :  { %3134 = vmax.xlane.f32.xlu1 %v3133_v34 }
0x1720   :  { %5966 = vrot.lane.b32.xlu1 %v6903_v42, %s6249_s28 }
0x1724   :  { %5961 = vrot.lane.b32.xlu0 %v6903_v42, %s7391_s27 }
0x1793   :  { %v2727_v35 = vpop.xlane.xlu0 %2726 }
0x1794   :  { %v2729_v19 = vsub.f32 %v2721_v24, %v2727_v35  ;;  %v2724_v36 = vpop.xlane.xlu1 %2723 }
0x1795   :  { %v2728_v37 = vsub.f32 %v2720_v15, %v2724_v36 }
0x1796   :  { %v2732_v38 = vmul.f32 1.442695, %v2729_v19 }
0x1797   :  { %v2730_v39 = vmul.f32 1.442695, %v2728_v37  ;;  %v2928_v40 = vpop.xlane.xlu0 %2927 }
0x1798   :  { %6137 = vpow2.f32 %v2732_v38  ;;  %v2932_v60 = vsub.f32 %v2924_v18, %v2928_v40  ;;  %v2931_v29 = vpop.xlane.xlu1 %2930 }
0x1799   :  { %6139 = vpow2.f32 %v2730_v39  ;;  %v2933_v46 = vsub.f32 %v2925_v50, %v2931_v29 }
0x179a   :  { %v2934_v45 = vmul.f32 1.442695, %v2932_v60 }
0x179b   :  { %v2936_v47 = vmul.f32 1.442695, %v2933_v46  ;;  %v3132_v25 = vpop.xlane.xlu0 %3131 }
0x179c   :  { %6141 = vpow2.f32 %v2934_v45  ;;  %v3136_v53 = vsub.f32 %v3128_v21, %v3132_v25  ;;  %v3135_v22 = vpop.xlane.xlu1 %3134 }
0x179d   :  { %6143 = vpow2.f32 %v2936_v47  ;;  %v3137_v3 = vsub.f32 %v3129_v28, %v3135_v22 }
0x179e   :  { %v3138_v51 = vmul.f32 1.442695, %v3136_v53 }
0x179f   :  { %v5962_v55 = vpop.permute.xlu0 %5961  ;;  %v3140_v12 = vmul.f32 1.442695, %v3137_v3 }
0x17a0   :  { %6145 = vpow2.f32 %v3138_v51  ;;  %v5964_v49 = vunpack.i.h.bf16 %v5962_v55  ;;  %v5963_v56 = vunpack.i.l.bf16 %v5962_v55  ;;  %v5967_v43 = vpop.permute.xlu1 %5966 }
0x17a1   :  { %v5969_v20 = vunpack.i.h.bf16 %v5967_v43  ;;  %v5968_v57 = vunpack.i.l.bf16 %v5967_v43  ;;  %6147 = vpow2.f32 %v3140_v12  ;;  %v7023_v12 = vadd.f32 %v6947_v48, %v6893_v61 }
0x17a2   :  { %v6138_v16 = vpop.eup %6137  ;;  %v5745_v58 = vpack.c.bf16 %v5964_v49, %v5963_v56 }
0x17a3   :  { %v6140_v62 = vpop.eup %6139  ;;  %v5755_v63 = vpack.c.bf16 %v5969_v20, %v5968_v57  ;;  %v2737_v7 = vsel %vm367_vm11, %v6138_v16, 0.0 }
0x17a4   :  { %2738 = vadd.xlane.f32.xlu1 %v2737_v7  ;;  %5746 = vmatprep.subr.bf16.mxu1 %v5745_v58  ;;  %v2734_v54 = vsel %vm367_vm11, %v6140_v62, 0.0 }
0x17a5   :  { %2735 = vadd.xlane.f32.xlu0 %v2734_v54  ;;  %5748 = vmatpush3.bf16.msra.mxu1 %v5745_v58 }
0x17a6   :  { %v6142_v41 = vpop.eup %6141  ;;  %5756 = vmatprep.subr.bf16.mxu1 %v5755_v63 }
0x17a7   :  { %v6144_v5 = vpop.eup %6143  ;;  %v2938_v4 = vsel %vm367_vm11, %v6142_v41, 0.0 }
0x17a8   :  { %v2941_v17 = vsel %vm367_vm11, %v6144_v5, 0.0 }
0x17a9   :  { %2942 = vadd.xlane.f32.xlu1 %v2941_v17  ;;  %2939 = vadd.xlane.f32.xlu0 %v2938_v4 }
0x17aa   :  { %v6146_v10 = vpop.eup %6145 }
0x17ab   :  { %v3142_v11 = vsel %vm367_vm11, %v6146_v10, 0.0  ;;  %v6148_v2 = vpop.eup %6147 }
0x17ac   :  { %v3145_v24 = vsel %vm367_vm11, %v6148_v2, 0.0 }
0x17ad   :  { %3143 = vadd.xlane.f32.xlu0 %v3142_v11 }
0x17ba   :  { %5971 = vrot.lane.b32.xlu1 %v6903_v42, %s7392_s25 }
0x17c3   :  { %5976 = vrot.lane.b32.xlu0 %v6903_v42, %s7393_s29 }
0x17c7   :  { %3241 = vrot.lane.b32.xlu0 %v6896_v52, %s7394_s4 }
0x17de   :  { %3146 = vadd.xlane.f32.xlu1 %v3145_v24 }
0x17ef   :  { %3239 = vrot.lane.b32.xlu1 %v6899_v14, %s7394_s4 }
0x1831   :  { %v2739_v15 = vpop.xlane.xlu1 %2738 }
0x1832   :  { %6149 = vrcp.f32 %v2739_v15  ;;  %v2736_v18 = vpop.xlane.xlu0 %2735 }
0x1833   :  { %6151 = vrcp.f32 %v2736_v18 }
0x1836   :  { %v2943_v26 = vpop.xlane.xlu1 %2942  ;;  %v2940_v27 = vpop.xlane.xlu0 %2939 }
0x1837   :  { %6153 = vrcp.f32 %v2943_v26 }
0x1838   :  { %6155 = vrcp.f32 %v2940_v27 }
0x183a   :  { %v5972_v23 = vpop.permute.xlu1 %5971  ;;  %v3144_v52 = vpop.xlane.xlu0 %3143 }
0x183b   :  { %6157 = vrcp.f32 %v3144_v52  ;;  %v5974_v21 = vunpack.i.h.bf16 %v5972_v23  ;;  %v5973_v59 = vunpack.i.l.bf16 %v5972_v23 }
0x183c   :  { %v6150_v30 = vpop.eup %6149 }
0x183d   :  { %v6152_v50 = vpop.eup %6151  ;;  %v2743_v28 = vmul.f32 %v6150_v30, %v6138_v16  ;;  %v5765_v34 = vpack.c.bf16 %v5974_v21, %v5973_v59 }
0x183e   :  { %v2742_v31 = vmul.f32 %v6152_v50, %v6140_v62  ;;  %v5977_v33 = vpop.permute.xlu0 %5976 }
0x183f   :  { %v5979_v36 = vunpack.i.h.bf16 %v5977_v33  ;;  %v5978_v37 = vunpack.i.l.bf16 %v5977_v33 }
0x1840   :  { %5460 = vmatprep.mubr.msk.f32.mxu1 %vm367_vm11, %v2742_v31 }
0x1841   :  { %v6154_v14 = vpop.eup %6153  ;;  %5461 = vmatmul.mubr.msk.f32.vlgmr.msra.gmra.mrb[32].mxu1 %vm367_vm11, %v2743_v28  ;;  %v5769_v40 = vpack.c.bf16 %v5979_v36, %v5978_v37  ;;  %v7060_v37 = vld [vmem:[%s7355_s1 + $0x10] sm:$0xff] }
0x1842   :  { %v6156_v35 = vpop.eup %6155  ;;  %v2947_v19 = vmul.f32 %v6154_v14, %v6144_v5  ;;  %5758 = vmatpush3.bf16.msra.mxu1 %v5755_v63  ;;  %v3242_v25 = vpop.permute.xlu0 %3241 }
0x1843   :  { %5766 = vmatprep.subr.bf16.mxu1 %v5765_v34  ;;  %v2946_v38 = vmul.f32 %v6156_v35, %v6142_v41 }
0x1845   :  { %v6158_v39 = vpop.eup %6157  ;;  %5474 = vmatprep.mubr.msk.f32.mxu1 %vm367_vm11, %v2946_v38 }
0x1846   :  { %5475 = vmatmul.mubr.msk.f32.vlgmr.msra.gmra.mrb[34].mxu1 %vm367_vm11, %v2947_v19  ;;  %v3150_v60 = vmul.f32 %v6158_v39, %v6146_v10  ;;  %v7054_v19 = vld [vmem:[%s7355_s1 + $0x18] sm:$0xff]  ;;  %s7396_s1 = smov 8  }
0x1847   :  { %5768 = vmatpush3.bf16.msra.mxu1 %v5765_v34 }
0x1848   :  { %5771 = vmatprep.subr.msk.bf16.mxu1 %vm6435_vm10, %v5769_v40  ;;  %5488 = vmatprep.mubr.msk.f32.mxu1 %vm367_vm11, %v3150_v60 }
0x186b   :  { %v3147_v29 = vpop.xlane.xlu1 %3146 }
0x186c   :  { %6159 = vrcp.f32 %v3147_v29 }
0x186f   :  { %v3240_v47 = vpop.permute.xlu1 %3239 }
0x1876   :  { %v6160_v46 = vpop.eup %6159 }
0x1877   :  { %v3151_v45 = vmul.f32 %v6160_v46, %v6148_v2  ;;  %v7027_v2 = vadd.f32 %v6893_v61, %v6949_v44 }
0x1879   :  { %5489 = vmatmul.mubr.msk.f32.vlgmr.msra.gmra.mrb[36].mxu1 %vm367_vm11, %v3151_v45  ;;  %v7031_v24 = vpack.i.bf16 %v7023_v12, %v7027_v2 }
0x187a   :  { %5774 = vmatpush3.bf16.xpose.msk.msra.mxu1 %vm6435_vm10, %v5769_v40  ;;  %5495 = vmatprep.mubr.msk.f32.mxu1 %vm279_vm9, %v3240_v47 }
0x1881   :  { %5496 = vmatmul.mubr.msk.f32.vlgmr.msra.gmra.mrb[38].mxu1 %vm279_vm9, %v3242_v25 }
0x1914   :  { %v7003_v53 = vpop.f32.mrb[32].mxu1 }
0x1915   :  { %v7005_v22 = vpop.f32.mrb[33].mxu1 }
0x1919   :  { %v7007_v51 = vpop.f32.mrb[34].mxu1 }
0x191a   :  { %v7009_v55 = vpop.f32.mrb[35].mxu1 }
0x194c   :  { %v7011_v49 = vpop.f32.mrb[36].mxu1 }
0x194d   :  { %v7013_v56 = vpop.f32.mrb[37].mxu1 }
0x1954   :  { %v5497_v43 = vpop.f32.mrb[38].mxu1 }
0x1955   :  { %v3331_v20 = vmul.f32 0.35355338, %v5497_v43  ;;  %v3321_v57 = vpop.f32.mrb[39].mxu1 }
0x1956   :  { %v3330_v16 = vmul.f32 0.35355338, %v3321_v57 }
0x1957   :  { %v3333_v58 = vadd.f32 %v6954_v13, %v3331_v20 }
0x1958   :  { %v3332_v62 = vadd.f32 %v6960_v0, %v3330_v16 }
0x1959   :  { %v3337_v63 = vsel %vm367_vm11, %v3333_v58, -inf }
0x195a   :  { %3338 = vmax.xlane.f32.xlu0 %v3337_v63  ;;  %v3334_v7 = vsel %vm367_vm11, %v3332_v62, -inf }
0x195b   :  { %3335 = vmax.xlane.f32.xlu1 %v3334_v7 }
0x19e7   :  { %v3339_v54 = vpop.xlane.xlu0 %3338 }
0x19e8   :  { %v3341_v41 = vsub.f32 %v3333_v58, %v3339_v54  ;;  %v3336_v5 = vpop.xlane.xlu1 %3335 }
0x19e9   :  { %v3340_v4 = vsub.f32 %v3332_v62, %v3336_v5 }
0x19ea   :  { %v3344_v17 = vmul.f32 1.442695, %v3341_v41 }
0x19eb   :  { %v3342_v10 = vmul.f32 1.442695, %v3340_v4 }
0x19ec   :  { %6161 = vpow2.f32 %v3344_v17 }
0x19ed   :  { %6163 = vpow2.f32 %v3342_v10 }
0x19f6   :  { %v6162_v11 = vpop.eup %6161 }
0x19f7   :  { %v6164_v3 = vpop.eup %6163  ;;  %v3349_v13 = vsel %vm367_vm11, %v6162_v11, 0.0 }
0x19f8   :  { %3350 = vadd.xlane.f32.xlu1 %v3349_v13  ;;  %v3346_v0 = vsel %vm367_vm11, %v6164_v3, 0.0 }
0x19f9   :  { %3347 = vadd.xlane.f32.xlu0 %v3346_v0 }
0x1a09   :  { %5986 = vrot.lane.b32.xlu1 %v7031_v24, %s7390_s22 }
0x1a0f   :  { %5981 = vrot.lane.b32.xlu0 %v6903_v42, %s7395_s20 }
0x1a85   :  { %v3351_v15 = vpop.xlane.xlu1 %3350 }
0x1a86   :  { %6165 = vrcp.f32 %v3351_v15  ;;  %v3348_v18 = vpop.xlane.xlu0 %3347 }
0x1a87   :  { %6167 = vrcp.f32 %v3348_v18 }
0x1a89   :  { %v5987_v48 = vpop.permute.xlu1 %5986 }
0x1a8a   :  { %v5982_v26 = vpop.permute.xlu0 %5981  ;;  %v5989_v27 = vunpack.i.h.bf16 %v5987_v48  ;;  %v5988_v23 = vunpack.i.l.bf16 %v5987_v48 }
0x1a8b   :  { %v5984_v61 = vunpack.i.h.bf16 %v5982_v26  ;;  %v5983_v44 = vunpack.i.l.bf16 %v5982_v26 }
0x1a8c   :  { %v5779_v30 = vpack.c.bf16 %v5989_v27, %v5988_v23 }
0x1a8d   :  { %v5775_v52 = vpack.c.bf16 %v5984_v61, %v5983_v44 }
0x1a8f   :  { %5776 = vmatprep.subr.bf16.mxu0 %v5775_v52 }
0x1a90   :  { %v6166_v50 = vpop.eup %6165  ;;  %5778 = vmatpush3.bf16.msra.mxu0 %v5775_v52 }
0x1a91   :  { %v6168_v21 = vpop.eup %6167  ;;  %5781 = vmatprep.subr.msk.bf16.mxu0 %vm6435_vm10, %v5779_v30  ;;  %v3355_v59 = vmul.f32 %v6166_v50, %v6162_v11 }
0x1a92   :  { %v3354_v42 = vmul.f32 %v6168_v21, %v6164_v3 }
0x1a94   :  { %5502 = vmatprep.mubr.msk.f32.mxu0 %vm367_vm11, %v3354_v42 }
0x1a95   :  { %5503 = vmatmul.mubr.msk.f32.vlgmr.msra.gmra.mrb[26].mxu0 %vm367_vm11, %v3355_v59 }
0x1a96   :  { %5509 = vmatprep.mubr.msk.f32.mxu0 %vm279_vm9, %v7027_v2 }
0x1a99   :  { %5784 = vmatpush3.bf16.xpose.msk.msra.mxu0 %vm6435_vm10, %v5779_v30 }
0x1aa0   :  { %5510 = vmatmul.mubr.msk.f32.vlgmr.msra.gmra.mrb[28].mxu0 %vm279_vm9, %v7023_v12 }
0x1b68   :  { %v7047_v31 = vpop.f32.mrb[26].mxu0 }
0x1b69   :  { %v7049_v28 = vpop.f32.mrb[27].mxu0 }
0x1b73   :  { %v5511_v33 = vpop.f32.mrb[28].mxu0 }
0x1b74   :  { %v3563_v14 = vmul.f32 0.35355338, %v5511_v33  ;;  %v3553_v34 = vpop.f32.mrb[29].mxu0 }
0x1b75   :  { %v3562_v35 = vmul.f32 0.35355338, %v3553_v34 }
0x1b76   :  { %v3565_v36 = vadd.f32 %v7054_v19, %v3563_v14 }
0x1b77   :  { %v3564_v38 = vadd.f32 %v7060_v37, %v3562_v35 }
0x1b78   :  { %v3569_v39 = vsel %vm367_vm11, %v3565_v36, -inf }
0x1b79   :  { %3570 = vmax.xlane.f32.xlu0 %v3569_v39  ;;  %v3566_v40 = vsel %vm367_vm11, %v3564_v38, -inf }
0x1b7a   :  { %3567 = vmax.xlane.f32.xlu1 %v3566_v40 }
0x1c06   :  { %v3571_v60 = vpop.xlane.xlu0 %3570 }
0x1c07   :  { %v3573_v29 = vsub.f32 %v3565_v36, %v3571_v60  ;;  %v3568_v46 = vpop.xlane.xlu1 %3567 }
0x1c08   :  { %v3572_v45 = vsub.f32 %v3564_v38, %v3568_v46 }
0x1c09   :  { %v3576_v47 = vmul.f32 1.442695, %v3573_v29 }
0x1c0a   :  { %v3574_v25 = vmul.f32 1.442695, %v3572_v45 }
0x1c0b   :  { %6169 = vpow2.f32 %v3576_v47 }
0x1c0c   :  { %6171 = vpow2.f32 %v3574_v25 }
0x1c15   :  { %v6170_v43 = vpop.eup %6169 }
0x1c16   :  { %v6172_v20 = vpop.eup %6171  ;;  %v3581_v57 = vsel %vm367_vm11, %v6170_v43, 0.0 }
0x1c17   :  { %3582 = vadd.xlane.f32.xlu1 %v3581_v57  ;;  %v3578_v16 = vsel %vm367_vm11, %v6172_v20, 0.0 }
0x1c18   :  { %3579 = vadd.xlane.f32.xlu0 %v3578_v16 }
0x1c28   :  { %5996 = vrot.lane.b32.xlu1 %v7031_v24, %s6241_s30  ;;  %s7397_s30 = smov 16  }
0x1c2c   :  { %3675 = vrot.lane.b32.xlu1 %v7027_v2, %s6243_s17 }
0x1c2e   :  { %5991 = vrot.lane.b32.xlu0 %v7031_v24, %s7391_s27 }
0x1c32   :  { %3677 = vrot.lane.b32.xlu0 %v7023_v12, %s6243_s17  ;;  %s7398_s17 = smov 24  }
0x1ca4   :  { %v3583_v58 = vpop.xlane.xlu1 %3582 }
0x1ca5   :  { %6173 = vrcp.f32 %v3583_v58  ;;  %v3580_v62 = vpop.xlane.xlu0 %3579 }
0x1ca6   :  { %6175 = vrcp.f32 %v3580_v62 }
0x1ca8   :  { %v5997_v63 = vpop.permute.xlu1 %5996 }
0x1ca9   :  { %v5992_v7 = vpop.permute.xlu0 %5991  ;;  %v5999_v54 = vunpack.i.h.bf16 %v5997_v63  ;;  %v5998_v41 = vunpack.i.l.bf16 %v5997_v63 }
0x1caa   :  { %v5994_v5 = vunpack.i.h.bf16 %v5992_v7  ;;  %v5993_v4 = vunpack.i.l.bf16 %v5992_v7 }
0x1cab   :  { %v5789_v10 = vpack.c.bf16 %v5999_v54, %v5998_v41 }
0x1cac   :  { %v5785_v17 = vpack.c.bf16 %v5994_v5, %v5993_v4  ;;  %v3676_v15 = vpop.permute.xlu1 %3675 }
0x1cad   :  { %v3678_v18 = vpop.permute.xlu0 %3677 }
0x1cae   :  { %5786 = vmatprep.subr.bf16.mxu1 %v5785_v17 }
0x1caf   :  { %v6174_v11 = vpop.eup %6173  ;;  %5788 = vmatpush3.bf16.msra.mxu1 %v5785_v17 }
0x1cb0   :  { %v6176_v3 = vpop.eup %6175  ;;  %5791 = vmatprep.subr.msk.bf16.mxu1 %vm6435_vm10, %v5789_v10  ;;  %v3587_v0 = vmul.f32 %v6174_v11, %v6170_v43 }
0x1cb1   :  { %v3586_v13 = vmul.f32 %v6176_v3, %v6172_v20 }
0x1cb3   :  { %5516 = vmatprep.mubr.msk.f32.mxu1 %vm367_vm11, %v3586_v13 }
0x1cb4   :  { %5517 = vmatmul.mubr.msk.f32.vlgmr.msra.gmra.mrb[40].mxu1 %vm367_vm11, %v3587_v0 }
0x1cb5   :  { %5523 = vmatprep.mubr.msk.f32.mxu1 %vm279_vm9, %v3676_v15 }
0x1cb8   :  { %5794 = vmatpush3.bf16.xpose.msk.msra.mxu1 %vm6435_vm10, %v5789_v10 }
0x1cbf   :  { %5524 = vmatmul.mubr.msk.f32.vlgmr.msra.gmra.mrb[42].mxu1 %vm279_vm9, %v3678_v18 }
0x1d87   :  { %v7083_v48 = vpop.f32.mrb[40].mxu1 }
0x1d88   :  { %v7085_v26 = vpop.f32.mrb[41].mxu1 }
0x1d92   :  { %v5525_v27 = vpop.f32.mrb[42].mxu1 }
0x1d93   :  { %v3767_v23 = vmul.f32 0.35355338, %v5525_v27  ;;  %v3757_v61 = vpop.f32.mrb[43].mxu1 }
0x1d94   :  { %v3766_v44 = vmul.f32 0.35355338, %v3757_v61 }
0x1d95   :  { %v3769_v52 = vadd.f32 %v7054_v19, %v3767_v23 }
0x1d96   :  { %v3768_v30 = vadd.f32 %v7060_v37, %v3766_v44 }
0x1d97   :  { %v3773_v50 = vsel %vm367_vm11, %v3769_v52, -inf }
0x1d98   :  { %3774 = vmax.xlane.f32.xlu0 %v3773_v50  ;;  %v3770_v21 = vsel %vm367_vm11, %v3768_v30, -inf }
0x1d99   :  { %3771 = vmax.xlane.f32.xlu1 %v3770_v21 }
0x1e25   :  { %v3775_v42 = vpop.xlane.xlu0 %3774 }
0x1e26   :  { %v3777_v59 = vsub.f32 %v3769_v52, %v3775_v42  ;;  %v3772_v33 = vpop.xlane.xlu1 %3771 }
0x1e27   :  { %v3776_v14 = vsub.f32 %v3768_v30, %v3772_v33 }
0x1e28   :  { %v3780_v34 = vmul.f32 1.442695, %v3777_v59 }
0x1e29   :  { %v3778_v35 = vmul.f32 1.442695, %v3776_v14 }
0x1e2a   :  { %6177 = vpow2.f32 %v3780_v34 }
0x1e2b   :  { %6179 = vpow2.f32 %v3778_v35 }
0x1e34   :  { %v6178_v36 = vpop.eup %6177 }
0x1e35   :  { %v6180_v38 = vpop.eup %6179  ;;  %v3785_v39 = vsel %vm367_vm11, %v6178_v36, 0.0 }
0x1e36   :  { %3786 = vadd.xlane.f32.xlu1 %v3785_v39  ;;  %v3782_v40 = vsel %vm367_vm11, %v6180_v38, 0.0 }
0x1e37   :  { %3783 = vadd.xlane.f32.xlu0 %v3782_v40 }
0x1e47   :  { %6006 = vrot.lane.b32.xlu1 %v7031_v24, %s6244_s18 }
0x1e4b   :  { %3879 = vrot.lane.b32.xlu1 %v7027_v2, %s6245_s19 }
0x1e4d   :  { %6001 = vrot.lane.b32.xlu0 %v7031_v24, %s6249_s28 }
0x1e51   :  { %3881 = vrot.lane.b32.xlu0 %v7023_v12, %s6245_s19 }
0x1ec3   :  { %v3787_v60 = vpop.xlane.xlu1 %3786 }
0x1ec4   :  { %6181 = vrcp.f32 %v3787_v60  ;;  %v3784_v29 = vpop.xlane.xlu0 %3783 }
0x1ec5   :  { %6183 = vrcp.f32 %v3784_v29 }
0x1ec7   :  { %v6007_v46 = vpop.permute.xlu1 %6006 }
0x1ec8   :  { %v6002_v45 = vpop.permute.xlu0 %6001  ;;  %v6009_v47 = vunpack.i.h.bf16 %v6007_v46  ;;  %v6008_v25 = vunpack.i.l.bf16 %v6007_v46 }
0x1ec9   :  { %v6004_v43 = vunpack.i.h.bf16 %v6002_v45  ;;  %v6003_v20 = vunpack.i.l.bf16 %v6002_v45 }
0x1eca   :  { %v5799_v16 = vpack.c.bf16 %v6009_v47, %v6008_v25 }
0x1ecb   :  { %v5795_v57 = vpack.c.bf16 %v6004_v43, %v6003_v20  ;;  %v3880_v54 = vpop.permute.xlu1 %3879 }
0x1ecc   :  { %v3882_v41 = vpop.permute.xlu0 %3881 }
0x1ecd   :  { %5796 = vmatprep.subr.bf16.mxu0 %v5795_v57 }
0x1ece   :  { %v6182_v58 = vpop.eup %6181  ;;  %5798 = vmatpush3.bf16.msra.mxu0 %v5795_v57 }
0x1ecf   :  { %v6184_v62 = vpop.eup %6183  ;;  %5801 = vmatprep.subr.msk.bf16.mxu0 %vm6435_vm10, %v5799_v16  ;;  %v3791_v7 = vmul.f32 %v6182_v58, %v6178_v36 }
0x1ed0   :  { %v3790_v63 = vmul.f32 %v6184_v62, %v6180_v38 }
0x1ed2   :  { %5530 = vmatprep.mubr.msk.f32.mxu0 %vm367_vm11, %v3790_v63 }
0x1ed3   :  { %5531 = vmatmul.mubr.msk.f32.vlgmr.msra.gmra.mrb[30].mxu0 %vm367_vm11, %v3791_v7 }
0x1ed4   :  { %5537 = vmatprep.mubr.msk.f32.mxu0 %vm279_vm9, %v3880_v54 }
0x1ed7   :  { %5804 = vmatpush3.bf16.xpose.msk.msra.mxu0 %vm6435_vm10, %v5799_v16 }
0x1ede   :  { %5538 = vmatmul.mubr.msk.f32.vlgmr.msra.gmra.mrb[32].mxu0 %vm279_vm9, %v3882_v41 }
0x1fa6   :  { %v7109_v5 = vpop.f32.mrb[30].mxu0 }
0x1fa7   :  { %v7111_v4 = vpop.f32.mrb[31].mxu0 }
0x1fb1   :  { %v5539_v17 = vpop.f32.mrb[32].mxu0 }
0x1fb2   :  { %v3971_v10 = vmul.f32 0.35355338, %v5539_v17  ;;  %v3961_v11 = vpop.f32.mrb[33].mxu0 }
0x1fb3   :  { %v3970_v3 = vmul.f32 0.35355338, %v3961_v11 }
0x1fb4   :  { %v3973_v13 = vadd.f32 %v7054_v19, %v3971_v10 }
0x1fb5   :  { %v3972_v0 = vadd.f32 %v7060_v37, %v3970_v3 }
0x1fb6   :  { %v3977_v15 = vsel %vm367_vm11, %v3973_v13, -inf }
0x1fb7   :  { %3978 = vmax.xlane.f32.xlu0 %v3977_v15  ;;  %v3974_v18 = vsel %vm367_vm11, %v3972_v0, -inf }
0x1fb8   :  { %3975 = vmax.xlane.f32.xlu1 %v3974_v18 }
0x2044   :  { %v3979_v27 = vpop.xlane.xlu0 %3978 }
0x2045   :  { %v3981_v23 = vsub.f32 %v3973_v13, %v3979_v27  ;;  %v3976_v61 = vpop.xlane.xlu1 %3975 }
0x2046   :  { %v3980_v44 = vsub.f32 %v3972_v0, %v3976_v61 }
0x2047   :  { %v3984_v52 = vmul.f32 1.442695, %v3981_v23 }
0x2048   :  { %v3982_v30 = vmul.f32 1.442695, %v3980_v44  ;;  %v5021_v44 = vld [vmem:[%s7356_s6 + $0x30] sm:$0xff] }
0x2049   :  { %6185 = vpow2.f32 %v3984_v52  ;;  %v5022_v52 = vld [vmem:[%s7356_s6 + $0x38] sm:$0xff] }
0x204a   :  { %6187 = vpow2.f32 %v3982_v30 }
0x2053   :  { %v6186_v50 = vpop.eup %6185 }
0x2054   :  { %v6188_v21 = vpop.eup %6187  ;;  %v3989_v42 = vsel %vm367_vm11, %v6186_v50, 0.0 }
0x2055   :  { %3990 = vadd.xlane.f32.xlu1 %v3989_v42  ;;  %v3986_v59 = vsel %vm367_vm11, %v6188_v21, 0.0 }
0x2056   :  { %3987 = vadd.xlane.f32.xlu0 %v3986_v59 }
0x2066   :  { %6016 = vrot.lane.b32.xlu1 %v7031_v24, %s7393_s29 }
0x206a   :  { %4083 = vrot.lane.b32.xlu1 %v7027_v2, %s7394_s4 }
0x206c   :  { %6011 = vrot.lane.b32.xlu0 %v7031_v24, %s7392_s25 }
0x2070   :  { %4085 = vrot.lane.b32.xlu0 %v7023_v12, %s7394_s4 }
0x20e2   :  { %v3991_v33 = vpop.xlane.xlu1 %3990 }
0x20e3   :  { %6189 = vrcp.f32 %v3991_v33  ;;  %v3988_v14 = vpop.xlane.xlu0 %3987 }
0x20e4   :  { %6191 = vrcp.f32 %v3988_v14  ;;  %v5823_v14 = vpack.c.bf16 %v5022_v52, %v5021_v44  ;;  %v7227_v44 = vld [vmem:[%s7359_s8 + $0x1] ss:$0 sm:$0xff] }
0x20e6   :  { %v6017_v34 = vpop.permute.xlu1 %6016 }
0x20e7   :  { %v6012_v35 = vpop.permute.xlu0 %6011  ;;  %v6019_v36 = vunpack.i.h.bf16 %v6017_v34  ;;  %v6018_v38 = vunpack.i.l.bf16 %v6017_v34 }
0x20e8   :  { %v6014_v39 = vunpack.i.h.bf16 %v6012_v35  ;;  %v6013_v40 = vunpack.i.l.bf16 %v6012_v35 }
0x20e9   :  { %v5809_v29 = vpack.c.bf16 %v6019_v36, %v6018_v38 }
0x20ea   :  { %v5805_v60 = vpack.c.bf16 %v6014_v39, %v6013_v40  ;;  %v4084_v47 = vpop.permute.xlu1 %4083 }
0x20eb   :  { %v4086_v25 = vpop.permute.xlu0 %4085 }
0x20ec   :  { %5806 = vmatprep.subr.bf16.mxu1 %v5805_v60 }
0x20ed   :  { %v6190_v2 = vpop.eup %6189  ;;  %5808 = vmatpush3.bf16.msra.mxu1 %v5805_v60 }
0x20ee   :  { %v6192_v46 = vpop.eup %6191  ;;  %5811 = vmatprep.subr.msk.bf16.mxu1 %vm6435_vm10, %v5809_v29  ;;  %v3995_v45 = vmul.f32 %v6190_v2, %v6186_v50 }
0x20ef   :  { %v3994_v12 = vmul.f32 %v6192_v46, %v6188_v21 }
0x20f1   :  { %5544 = vmatprep.mubr.msk.f32.mxu1 %vm367_vm11, %v3994_v12 }
0x20f2   :  { %5545 = vmatmul.mubr.msk.f32.vlgmr.msra.gmra.mrb[44].mxu1 %vm367_vm11, %v3995_v45 }
0x20f3   :  { %5551 = vmatprep.mubr.msk.f32.mxu1 %vm279_vm9, %v4084_v47 }
0x20f6   :  { %5814 = vmatpush3.bf16.xpose.msk.msra.mxu1 %vm6435_vm10, %v5809_v29 }
0x20fd   :  { %5552 = vmatmul.mubr.msk.f32.vlgmr.msra.gmra.mrb[46].mxu1 %vm279_vm9, %v4086_v25 }
0x21c5   :  { %v5546_v43 = vpop.f32.mrb[44].mxu1 }
0x21c6   :  { %v4074_v20 = vpop.f32.mrb[45].mxu1 }
0x21d0   :  { %v5553_v57 = vpop.f32.mrb[46].mxu1 }
0x21d1   :  { %v4175_v16 = vmul.f32 0.35355338, %v5553_v57  ;;  %v4165_v58 = vpop.f32.mrb[47].mxu1 }
0x21d2   :  { %v4174_v62 = vmul.f32 0.35355338, %v4165_v58 }
0x21d3   :  { %v4177_v63 = vadd.f32 %v7054_v19, %v4175_v16 }
0x21d4   :  { %v4176_v7 = vadd.f32 %v7060_v37, %v4174_v62 }
0x21d5   :  { %v4181_v54 = vsel %vm367_vm11, %v4177_v63, -inf }
0x21d6   :  { %4182 = vmax.xlane.f32.xlu0 %v4181_v54  ;;  %v4178_v41 = vsel %vm367_vm11, %v4176_v7, -inf }
0x21d7   :  { %4179 = vmax.xlane.f32.xlu1 %v4178_v41 }
0x2263   :  { %v4183_v32 = vpop.xlane.xlu0 %4182 }
0x2264   :  { %v4185_v17 = vsub.f32 %v4177_v63, %v4183_v32  ;;  %v4180_v10 = vpop.xlane.xlu1 %4179 }
0x2265   :  { %v4184_v11 = vsub.f32 %v4176_v7, %v4180_v10 }
0x2266   :  { %v4188_v3 = vmul.f32 1.442695, %v4185_v17 }
0x2267   :  { %v4186_v13 = vmul.f32 1.442695, %v4184_v11 }
0x2268   :  { %6193 = vpow2.f32 %v4188_v3 }
0x2269   :  { %6195 = vpow2.f32 %v4186_v13 }
0x2272   :  { %v6194_v0 = vpop.eup %6193 }
0x2273   :  { %v6196_v15 = vpop.eup %6195  ;;  %v4193_v19 = vsel %vm367_vm11, %v6194_v0, 0.0 }
0x2274   :  { %4194 = vadd.xlane.f32.xlu1 %v4193_v19  ;;  %v4190_v37 = vsel %vm367_vm11, %v6196_v15, 0.0 }
0x2275   :  { %4191 = vadd.xlane.f32.xlu0 %v4190_v37 }
0x2285   :  { %3445 = vrot.lane.b32.xlu1 %v7009_v55, %s7396_s1 }
0x2289   :  { %3447 = vrot.lane.b32.xlu1 %v7007_v51, %s7396_s1 }
0x228b   :  { %6021 = vrot.lane.b32.xlu0 %v7031_v24, %s7395_s20  ;;  %v5019_v24 = vld [vmem:[%s7356_s6 + $0x20] sm:$0xff] }
0x228d   :  { %3455 = vrot.lane.b32.xlu1 %v7011_v49, %s7397_s30 }
0x228f   :  { %3453 = vrot.lane.b32.xlu0 %v7013_v56, %s7397_s30 }
0x2291   :  { %3463 = vrot.lane.b32.xlu1 %v7047_v31, %s7398_s17  ;;  %v5020_v31 = vld [vmem:[%s7356_s6 + $0x28] sm:$0xff] }
0x2292   :  { %v5819_v27 = vpack.c.bf16 %v5020_v31, %v5019_v24 }
0x2293   :  { %3461 = vrot.lane.b32.xlu0 %v7049_v28, %s7398_s17 }
0x2295   :  { %4291 = vrot.lane.b32.xlu1 %v7109_v5, %s7396_s1 }
0x2297   :  { %4289 = vrot.lane.b32.xlu0 %v7111_v4, %s7396_s1 }
0x2299   :  { %4299 = vrot.lane.b32.xlu1 %v5546_v43, %s7397_s30 }
0x229b   :  { %4297 = vrot.lane.b32.xlu0 %v4074_v20, %s7397_s30 }
0x2301   :  { %v4195_v51 = vpop.xlane.xlu1 %4194 }
0x2302   :  { %6197 = vrcp.f32 %v4195_v51  ;;  %v4192_v55 = vpop.xlane.xlu0 %4191 }
0x2303   :  { %6199 = vrcp.f32 %v4192_v55 }
0x2305   :  { %v3446_v49 = vpop.permute.xlu1 %3445 }
0x2306   :  { %v6022_v56 = vpop.permute.xlu0 %6021  ;;  %v3467_v59 = vsel %vm279_vm9, %v7005_v22, %v3446_v49 }
0x2307   :  { %v6024_v28 = vunpack.i.h.bf16 %v6022_v56  ;;  %v6023_v5 = vunpack.i.l.bf16 %v6022_v56 }
0x2309   :  { %v5815_v4 = vpack.c.bf16 %v6024_v28, %v6023_v5  ;;  %v3448_v18 = vpop.permute.xlu1 %3447 }
0x230a   :  { %v3454_v23 = vpop.permute.xlu0 %3453  ;;  %v3468_v38 = vsel %vm279_vm9, %v7003_v53, %v3448_v18  ;;  %v5028_v53 = vld [vmem:[%s7357_s7 + $0x1] ss:$0 sm:$0xff] }
0x230b   :  { %5816 = vmatprep.subr.bf16.mxu0 %v5815_v4  ;;  %v3469_v34 = vsel %vm367_vm11, %v3467_v59, %v3454_v23  ;;  %v5033_v59 = vld [vmem:[%s7358_s10 + $0x20] sm:$0xff] }
0x230c   :  { %v6198_v61 = vpop.eup %6197  ;;  %5818 = vmatpush3.bf16.msra.mxu0 %v5815_v4 }
0x230d   :  { %v6200_v30 = vpop.eup %6199  ;;  %5820 = vmatprep.subr.bf16.mxu0 %v5819_v27  ;;  %v4199_v42 = vmul.f32 %v6198_v61, %v6194_v0  ;;  %v3456_v33 = vpop.permute.xlu1 %3455 }
0x230e   :  { %v3462_v50 = vpop.permute.xlu0 %3461  ;;  %v4198_v21 = vmul.f32 %v6200_v30, %v6196_v15  ;;  %v3470_v22 = vsel %vm367_vm11, %v3468_v38, %v3456_v33  ;;  %v5034_v33 = vld [vmem:[%s7358_s10 + $0x28] sm:$0xff] }
0x230f   :  { %v3471_v35 = vsel %vm1117_vm12, %v3469_v34, %v3462_v50  ;;  %v7233_v50 = vld [vmem:[%s7360_s9 + $0x1] ss:$0 sm:$0xff]  ;;  %v5827_v34 = vpack.c.bf16 %v5034_v33, %v5033_v59 }
0x2310   :  { %5558 = vmatprep.mubr.msk.f32.mxu0 %vm367_vm11, %v4198_v21 }
0x2311   :  { %5559 = vmatmul.mubr.msk.f32.vlgmr.msra.gmra.mrb[34].mxu0 %vm367_vm11, %v4199_v42  ;;  %v3464_v36 = vpop.permute.xlu1 %3463  ;;  %5828 = vmatprep.subr.bf16.mxu1 %v5827_v34 }
0x2312   :  { %5822 = vmatpush3.bf16.msra.mxu0 %v5819_v27  ;;  %5569 = vmatprep.mubr.msk.f32.mxu0 %vm63_vm0, %v3471_v35  ;;  %v3472_v39 = vsel %vm1117_vm12, %v3470_v22, %v3464_v36  ;;  %v5036_v35 = vld [vmem:[%s7358_s10 + $0x38] sm:$0xff] }
0x2313   :  { %5824 = vmatprep.subr.bf16.mxu0 %v5823_v14  ;;  %5830 = vmatpush3.bf16.msra.mxu1 %v5827_v34 }
0x2315   :  { %v4292_v20 = vpop.permute.xlu1 %4291 }
0x2316   :  { %5826 = vmatpush3.bf16.msra.mxu0 %v5823_v14  ;;  %v4312_v62 = vsel %vm279_vm9, %v7083_v48, %v4292_v20  ;;  %v5035_v14 = vld [vmem:[%s7358_s10 + $0x30] sm:$0xff] }
0x2317   :  { %v5831_v36 = vpack.c.bf16 %v5036_v35, %v5035_v14 }
0x2319   :  { %5570 = vmatmul.mubr.msk.f32.vlgmr.msra.gmra.mrb[36].mxu0 %vm63_vm0, %v3472_v39  ;;  %v4300_v57 = vpop.permute.xlu1 %4299  ;;  %5832 = vmatprep.subr.bf16.mxu1 %v5831_v36 }
0x231a   :  { %v4314_v54 = vsel %vm367_vm11, %v4312_v62, %v4300_v57  ;;  %5834 = vmatpush3.bf16.msra.mxu1 %v5831_v36 }
0x23e4   :  { %v5560_v40 = vpop.f32.mrb[34].mxu0 }
0x23e5   :  { %4307 = vrot.lane.b32.xlu1 %v5560_v40, %s7398_s17  ;;  %v4278_v60 = vpop.f32.mrb[35].mxu0 }
0x23e6   :  { %4305 = vrot.lane.b32.xlu0 %v4278_v60, %s7398_s17 }
0x23ec   :  { %v5571_v29 = vpop.f32.mrb[36].mxu0 }
0x23ed   :  { %v4400_v2 = vpop.f32.mrb[37].mxu0  ;;  %v4420_v12 = vadd.f32 %v5571_v29, %v6826_v9 }
0x23ee   :  { %v4419_v46 = vadd.f32 %v4400_v2, %v6823_v8  ;;  %v4290_v8 = vpop.permute.xlu0 %4289 }
0x23ef   :  { %v7194_v47 = vadd.f32 %v5028_v53, %v4420_v12  ;;  %v4311_v58 = vsel %vm279_vm9, %v7085_v26, %v4290_v8 }
0x23f0   :  { %v7192_v45 = vadd.f32 %v5028_v53, %v4419_v46 }
0x23f1   :  { %v4442_v43 = vsel %vm63_vm0, %v7194_v47, 0.0 }
0x23f2   :  { %v4439_v25 = vsel %vm63_vm0, %v7192_v45, 0.0  ;;  %v4298_v16 = vpop.permute.xlu0 %4297 }
0x23f3   :  { %v4313_v63 = vsel %vm367_vm11, %v4311_v58, %v4298_v16 }
0x2405   :  { %4440 = vadd.xlane.f32.xlu0 %v4439_v25 }
0x2409   :  { %4443 = vadd.xlane.f32.xlu1 %v4442_v43 }
0x2457   :  { %v4308_v9 = vpop.permute.xlu1 %4307 }
0x2458   :  { %v4306_v7 = vpop.permute.xlu0 %4305  ;;  %v4316_v32 = vsel %vm1117_vm12, %v4314_v54, %v4308_v9 }
0x2459   :  { %v4315_v41 = vsel %vm1117_vm12, %v4313_v63, %v4306_v7 }
0x245a   :  { %5572 = vmatprep.mubr.msk.f32.mxu0 %vm63_vm0, %v4315_v41  ;;  %v5043_v41 = vld [vmem:[%s7361_s12 + $0x40] sm:$0xff] }
0x245b   :  { %5573 = vmatmul.mubr.msk.f32.gmra.mrb[38].mxu0 %vm63_vm0, %v4316_v32  ;;  %v5044_v32 = vld [vmem:[%s7361_s12 + $0x48] sm:$0xff] }
0x2492   :  { %v4441_v17 = vpop.xlane.xlu0 %4440 }
0x2493   :  { %v4451_v10 = vmul.f32 0.03125, %v4441_v17  ;;  %v5045_v17 = vld [vmem:[%s7361_s12 + $0x50] sm:$0xff] }
0x2495   :  { %v4455_v26 = vsub.f32 %v7192_v45, %v4451_v10  ;;  %v5835_v10 = vpack.c.bf16 %v5044_v32, %v5043_v41 }
0x2496   :  { %v4444_v3 = vpop.xlane.xlu1 %4443 }
0x2497   :  { %v4459_v11 = vmul.f32 %v4455_v26, %v4455_v26  ;;  %v4452_v37 = vmul.f32 0.03125, %v4444_v3  ;;  %v4513_v52 = vmul.f32 %v7227_v44, %v4455_v26  ;;  %v5046_v26 = vld [vmem:[%s7361_s12 + $0x58] sm:$0xff]  ;;  %v5048_v3 = vld [vmem:[%s7361_s12 + $0x68] sm:$0xff]  ;;  %5836 = vmatprep.subr.bf16.mxu0 %v5835_v10 }
0x2498   :  { %5838 = vmatpush3.bf16.msra.mxu0 %v5835_v10 }
0x2499   :  { %v4463_v48 = vsel %vm63_vm0, %v4459_v11, 0.0  ;;  %v4456_v24 = vsub.f32 %v7194_v47, %v4452_v37  ;;  %v5839_v11 = vpack.c.bf16 %v5046_v26, %v5045_v17 }
0x249a   :  { %4464 = vadd.xlane.f32.xlu1 %v4463_v48  ;;  %v5047_v48 = vld [vmem:[%s7361_s12 + $0x60] sm:$0xff] }
0x249b   :  { %v4514_v62 = vmul.f32 %v7227_v44, %v4456_v24  ;;  %5840 = vmatprep.subr.bf16.mxu0 %v5839_v11 }
0x249c   :  { %5842 = vmatpush3.bf16.msra.mxu0 %v5839_v11 }
0x2527   :  { %v4465_v13 = vpop.xlane.xlu1 %4464 }
0x2528   :  { %v4475_v0 = vmul.f32 0.032258064, %v4465_v13  ;;  %v5843_v13 = vpack.c.bf16 %v5048_v3, %v5047_v48 }
0x252a   :  { %6201 = vrsqrt.f32 %v4475_v0  ;;  %vm4481_vm9 = vcmp.eq.f32.partialorder %v4475_v0, inf  ;;  %v4484_v4 = vand.u32 2147483648, %v4475_v0  ;;  %vm4483_vm10 = vcmp.eq.f32.partialorder %v4475_v0, 0.0  ;;  %5844 = vmatprep.subr.bf16.mxu0 %v5843_v13 }
0x252b   :  { %5846 = vmatpush3.bf16.msra.mxu0 %v5843_v13 }
0x252e   :  { %v5574_v15 = vpop.f32.mrb[38].mxu0 }
0x252f   :  { %v4410_v19 = vpop.f32.mrb[39].mxu0  ;;  %v4422_v51 = vadd.f32 %v5574_v15, %v6872_v6  ;;  %v4460_v6 = vmul.f32 %v4456_v24, %v4456_v24  ;;  %v5050_v15 = vld [vmem:[%s7361_s12 + $0x78] sm:$0xff] }
0x2530   :  { %v4421_v55 = vadd.f32 %v4410_v19, %v6869_v1 }
0x2531   :  { %v7217_v31 = vadd.f32 %v5028_v53, %v4422_v51  ;;  %v4466_v61 = vsel %vm63_vm0, %v4460_v6, 0.0 }
0x2532   :  { %v7214_v49 = vadd.f32 %v5028_v53, %v4421_v55 }
0x2533   :  { %v4448_v1 = vsel %vm63_vm0, %v7217_v31, 0.0 }
0x2534   :  { %v6202_v56 = vpop.eup %6201  ;;  %v4445_v28 = vsel %vm63_vm0, %v7214_v49, 0.0 }
0x2535   :  { %v4480_v5 = vmul.f32 %v6202_v56, %v4475_v0  ;;  %4446 = vadd.xlane.f32.xlu0 %v4445_v28 }
0x2537   :  { %v4482_v18 = vsel %vm4481_vm9, %v4475_v0, %v4480_v5  ;;  %v5049_v0 = vld [vmem:[%s7361_s12 + $0x70] sm:$0xff] }
0x2538   :  { %v4485_v27 = vsel %vm4483_vm10, %v4484_v4, %v4482_v18  ;;  %v5847_v19 = vpack.c.bf16 %v5050_v15, %v5049_v0 }
0x2539   :  { %4449 = vadd.xlane.f32.xlu0 %v4448_v1  ;;  %v4517_v23 = vadd.f32 1e-06, %v4485_v27 }
0x253a   :  { %5848 = vmatprep.subr.bf16.mxu0 %v5847_v19 }
0x253b   :  { %6203 = vrcp.f32 %v4517_v23  ;;  %5850 = vmatpush3.bf16.msra.mxu0 %v5847_v19 }
0x253d   :  { %4467 = vadd.xlane.f32.xlu0 %v4466_v61 }
0x2545   :  { %v6204_v30 = vpop.eup %6203 }
0x2546   :  { %v4525_v21 = vmul.f32 %v6204_v30, %v4513_v52 }
0x2548   :  { %v4535_v42 = vadd.f32 %v7233_v50, %v4525_v21 }
0x254a   :  { %5583 = vmatprep.mubr.msk.f32.mxu1 %vm63_vm0, %v4535_v42 }
0x25c2   :  { %v4447_v38 = vpop.xlane.xlu0 %4446 }
0x25c3   :  { %v4453_v22 = vmul.f32 0.03125, %v4447_v38  ;;  %v5038_v38 = vld [vmem:[%s7362_s11 + $0x1] ss:$0 sm:$0xff] }
0x25c5   :  { %v7250_v39 = vsub.f32 %v7214_v49, %v4453_v22 }
0x25c6   :  { %v4450_v40 = vpop.xlane.xlu0 %4449 }
0x25c7   :  { %v4454_v60 = vmul.f32 0.03125, %v4450_v40  ;;  %v4461_v29 = vmul.f32 %v7250_v39, %v7250_v39  ;;  %v4515_v21 = vmul.f32 %v7227_v44, %v7250_v39 }
0x25c9   :  { %v7255_v2 = vsub.f32 %v7217_v31, %v4454_v60  ;;  %v4469_v46 = vsel %vm63_vm0, %v4461_v29, 0.0 }
0x25ca   :  { %4470 = vadd.xlane.f32.xlu1 %v4469_v46  ;;  %v4468_v53 = vpop.xlane.xlu0 %4467 }
0x25cb   :  { %v4476_v12 = vmul.f32 0.032258064, %v4468_v53  ;;  %v4462_v25 = vmul.f32 %v7255_v2, %v7255_v2  ;;  %v4516_v14 = vmul.f32 %v7227_v44, %v7255_v2 }
0x25cd   :  { %6205 = vrsqrt.f32 %v4476_v12  ;;  %v4472_v43 = vsel %vm63_vm0, %v4462_v25, 0.0  ;;  %vm4488_vm11 = vcmp.eq.f32.partialorder %v4476_v12, inf  ;;  %v4491_v57 = vand.u32 2147483648, %v4476_v12 }
0x25ce   :  { %4473 = vadd.xlane.f32.xlu0 %v4472_v43  ;;  %vm4490_vm12 = vcmp.eq.f32.partialorder %v4476_v12, 0.0 }
0x25d7   :  { %v6206_v20 = vpop.eup %6205 }
0x25d8   :  { %v4487_v8 = vmul.f32 %v6206_v20, %v4476_v12  ;;  %v5056_v20 = vld [vmem:[%s7363_s13 + $0x1] ss:$0 sm:$0xff] }
0x25da   :  { %v4489_v16 = vsel %vm4488_vm11, %v4476_v12, %v4487_v8 }
0x25db   :  { %v4492_v58 = vsel %vm4490_vm12, %v4491_v57, %v4489_v16 }
0x25dc   :  { %v4518_v9 = vadd.f32 1e-06, %v4492_v58 }
0x25de   :  { %6207 = vrcp.f32 %v4518_v9 }
0x25e8   :  { %v6208_v63 = vpop.eup %6207 }
0x25e9   :  { %v4526_v7 = vmul.f32 %v6208_v63, %v4514_v62 }
0x25eb   :  { %v4536_v54 = vadd.f32 %v7233_v50, %v4526_v7 }
0x25ed   :  { %5584 = vmatmul.mubr.msk.f32.vlgmr.msra.gmra.mrb[48].mxu1 %vm63_vm0, %v4536_v54 }
0x2657   :  { %v4471_v37 = vpop.xlane.xlu1 %4470 }
0x2658   :  { %v4477_v51 = vmul.f32 0.032258064, %v4471_v37 }
0x265a   :  { %6209 = vrsqrt.f32 %v4477_v51  ;;  %vm4495_vm5 = vcmp.eq.f32.partialorder %v4477_v51, inf  ;;  %v4498_v5 = vand.u32 2147483648, %v4477_v51  ;;  %vm4497_vm6 = vcmp.eq.f32.partialorder %v4477_v51, 0.0 }
0x265b   :  { %v4474_v55 = vpop.xlane.xlu0 %4473 }
0x265c   :  { %v4478_v56 = vmul.f32 0.032258064, %v4474_v55 }
0x265e   :  { %6211 = vrsqrt.f32 %v4478_v56  ;;  %vm4502_vm7 = vcmp.eq.f32.partialorder %v4478_v56, inf  ;;  %v4505_v23 = vand.u32 2147483648, %v4478_v56  ;;  %vm4504_vm8 = vcmp.eq.f32.partialorder %v4478_v56, 0.0 }
0x2664   :  { %v6210_v24 = vpop.eup %6209 }
0x2665   :  { %v4494_v28 = vmul.f32 %v6210_v24, %v4477_v51 }
0x2667   :  { %v4496_v4 = vsel %vm4495_vm5, %v4477_v51, %v4494_v28 }
0x2668   :  { %v4499_v18 = vsel %vm4497_vm6, %v4498_v5, %v4496_v4  ;;  %v6212_v27 = vpop.eup %6211 }
0x2669   :  { %v4519_v1 = vadd.f32 1e-06, %v4499_v18  ;;  %v4501_v6 = vmul.f32 %v6212_v27, %v4478_v56 }
0x266b   :  { %6213 = vrcp.f32 %v4519_v1  ;;  %v4503_v61 = vsel %vm4502_vm7, %v4478_v56, %v4501_v6 }
0x266c   :  { %v4506_v52 = vsel %vm4504_vm8, %v4505_v23, %v4503_v61 }
0x266d   :  { %v4520_v30 = vadd.f32 1e-06, %v4506_v52 }
0x266f   :  { %6215 = vrcp.f32 %v4520_v30 }
0x2675   :  { %v6214_v42 = vpop.eup %6213 }
0x2676   :  { %v4527_v59 = vmul.f32 %v6214_v42, %v4515_v21 }
0x2678   :  { %v4537_v33 = vadd.f32 %v7233_v50, %v4527_v59 }
0x2679   :  { %v6216_v34 = vpop.eup %6215 }
0x267a   :  { %5586 = vmatprep.mubr.msk.f32.mxu1 %vm63_vm0, %v4537_v33  ;;  %v4528_v35 = vmul.f32 %v6216_v34, %v4516_v14 }
0x267c   :  { %v4538_v36 = vadd.f32 %v7233_v50, %v4528_v35 }
0x267e   :  { %5587 = vmatmul.mubr.msk.f32.gmra.mrb[50].mxu1 %vm63_vm0, %v4538_v36 }
0x26c0   :  { %v5585_v22 = vpop.f32.mrb[48].mxu1 }
0x26c1   :  { %v4636_v39 = vadd.f32 %v5585_v22, %v5038_v38  ;;  %v4630_v40 = vpop.f32.mrb[49].mxu1 }
0x26c2   :  { %v4631_v60 = vadd.f32 %v5038_v38, %v4630_v40 }
0x26c3   :  { %v4650_v46 = vmax.f32 %v4636_v39, 0.0  ;;  %v5057_v39 = vld [vmem:[%s7364_s14] ss:$0 sm:$0xff] }
0x26c4   :  { %v4649_v29 = vmax.f32 %v4631_v60, 0.0 }
0x26c6   :  { %5605 = vmatprep.mubr.msk.f32.mxu0 %vm2302_vm2, %v4649_v29 }
0x26c7   :  { %5606 = vmatmul.mubr.msk.f32.vlgmr.msra.gmra.mrb[40].mxu0 %vm2302_vm2, %v4650_v46  ;;  %v5058_v46 = vld [vmem:[%s7365_s15] ss:$0 sm:$0xff] }
0x2751   :  { %v5588_v44 = vpop.f32.mrb[50].mxu1 }
0x2752   :  { %v4646_v2 = vadd.f32 %v5588_v44, %v5038_v38  ;;  %v4640_v53 = vpop.f32.mrb[51].mxu1 }
0x2753   :  { %v4641_v50 = vadd.f32 %v5038_v38, %v4640_v53 }
0x2754   :  { %v4652_v25 = vmax.f32 %v4646_v2, 0.0 }
0x2755   :  { %v4651_v12 = vmax.f32 %v4641_v50, 0.0 }
0x2757   :  { %5608 = vmatprep.mubr.msk.f32.mxu0 %vm2302_vm2, %v4651_v12 }
0x2758   :  { %5609 = vmatmul.mubr.msk.f32.gmra.mrb[42].mxu0 %vm2302_vm2, %v4652_v25 }
0x279a   :  { %v5607_v43 = vpop.f32.mrb[40].mxu0 }
0x279b   :  { %v4760_v8 = vadd.f32 %v5607_v43, %v7194_v47  ;;  %v4740_v57 = vpop.f32.mrb[41].mxu0 }
0x279c   :  { %v4759_v16 = vadd.f32 %v4740_v57, %v7192_v45 }
0x279d   :  { %v4772_v58 = vadd.f32 %v5056_v20, %v4760_v8 }
0x279e   :  { %v4771_v9 = vadd.f32 %v5056_v20, %v4759_v16 }
0x279f   :  { %v4780_v62 = vsel %vm63_vm0, %v4772_v58, 0.0 }
0x27a0   :  { %4781 = vadd.xlane.f32.xlu0 %v4780_v62  ;;  %v4777_v63 = vsel %vm63_vm0, %v4771_v9, 0.0 }
0x27a1   :  { %4778 = vadd.xlane.f32.xlu1 %v4777_v63 }
0x282b   :  { %v5610_v7 = vpop.f32.mrb[42].mxu0 }
0x282c   :  { %v4762_v54 = vadd.f32 %v5610_v7, %v7217_v31  ;;  %v4750_v41 = vpop.f32.mrb[43].mxu0 }
0x282d   :  { %v4782_v32 = vpop.xlane.xlu0 %4781  ;;  %v4761_v17 = vadd.f32 %v4750_v41, %v7214_v49 }
0x282e   :  { %v4790_v10 = vmul.f32 0.03125, %v4782_v32  ;;  %v4779_v47 = vpop.xlane.xlu1 %4778  ;;  %v4774_v26 = vadd.f32 %v5056_v20, %v4762_v54 }
0x282f   :  { %v4789_v11 = vmul.f32 0.03125, %v4779_v47  ;;  %v4773_v45 = vadd.f32 %v5056_v20, %v4761_v17 }
0x2830   :  { %v4794_v48 = vsub.f32 %v4772_v58, %v4790_v10  ;;  %v4786_v13 = vsel %vm63_vm0, %v4774_v26, 0.0 }
0x2831   :  { %v4793_v3 = vsub.f32 %v4771_v9, %v4789_v11  ;;  %4787 = vadd.xlane.f32.xlu0 %v4786_v13  ;;  %v4783_v0 = vsel %vm63_vm0, %v4773_v45, 0.0 }
0x2832   :  { %v4798_v15 = vmul.f32 %v4794_v48, %v4794_v48  ;;  %4784 = vadd.xlane.f32.xlu1 %v4783_v0  ;;  %v4852_v40 = vmul.f32 %v5057_v39, %v4794_v48 }
0x2833   :  { %v4797_v19 = vmul.f32 %v4793_v3, %v4793_v3  ;;  %v4851_v29 = vmul.f32 %v5057_v39, %v4793_v3 }
0x2834   :  { %v4804_v31 = vsel %vm63_vm0, %v4798_v15, 0.0 }
0x2835   :  { %v4801_v37 = vsel %vm63_vm0, %v4797_v19, 0.0  ;;  %4805 = vadd.xlane.f32.xlu0 %v4804_v31 }
0x2836   :  { %4802 = vadd.xlane.f32.xlu1 %v4801_v37 }
0x28be   :  { %v4788_v49 = vpop.xlane.xlu0 %4787 }
0x28bf   :  { %v4792_v51 = vmul.f32 0.03125, %v4788_v49  ;;  %v4785_v55 = vpop.xlane.xlu1 %4784 }
0x28c0   :  { %v4791_v56 = vmul.f32 0.03125, %v4785_v55 }
0x28c1   :  { %v7316_v24 = vsub.f32 %v4774_v26, %v4792_v51 }
0x28c2   :  { %v7318_v28 = vsub.f32 %v4773_v45, %v4791_v56  ;;  %v4806_v5 = vpop.xlane.xlu0 %4805 }
0x28c3   :  { %v4814_v4 = vmul.f32 0.032258064, %v4806_v5  ;;  %v4803_v18 = vpop.xlane.xlu1 %4802  ;;  %v4800_v27 = vmul.f32 %v7316_v24, %v7316_v24  ;;  %v4854_v47 = vmul.f32 %v5057_v39, %v7316_v24 }
0x28c4   :  { %v4813_v1 = vmul.f32 0.032258064, %v4803_v18  ;;  %v4799_v6 = vmul.f32 %v7318_v28, %v7318_v28  ;;  %v4853_v11 = vmul.f32 %v5057_v39, %v7318_v28 }
0x28c5   :  { %6217 = vrsqrt.f32 %v4814_v4  ;;  %v4810_v23 = vsel %vm63_vm0, %v4800_v27, 0.0  ;;  %vm4826_vm2 = vcmp.eq.f32.partialorder %v4814_v4, inf  ;;  %v4829_v42 = vand.u32 2147483648, %v4814_v4 }
0x28c6   :  { %6219 = vrsqrt.f32 %v4813_v1  ;;  %v4807_v61 = vsel %vm63_vm0, %v4799_v6, 0.0  ;;  %4811 = vadd.xlane.f32.xlu0 %v4810_v23  ;;  %vm4828_vm13 = vcmp.eq.f32.partialorder %v4814_v4, 0.0  ;;  %vm4819_vm14 = vcmp.eq.f32.partialorder %v4813_v1, inf }
0x28c7   :  { %4808 = vadd.xlane.f32.xlu1 %v4807_v61  ;;  %v4822_v14 = vand.u32 2147483648, %v4813_v1  ;;  %vm4821_vm15 = vcmp.eq.f32.partialorder %v4813_v1, 0.0 }
0x28cf   :  { %v6218_v52 = vpop.eup %6217 }
0x28d0   :  { %v6220_v30 = vpop.eup %6219  ;;  %v4825_v21 = vmul.f32 %v6218_v52, %v4814_v4 }
0x28d1   :  { %v4818_v59 = vmul.f32 %v6220_v30, %v4813_v1 }
0x28d2   :  { %v4827_v33 = vsel %vm4826_vm2, %v4814_v4, %v4825_v21 }
0x28d3   :  { %v4830_v34 = vsel %vm4828_vm13, %v4829_v42, %v4827_v33  ;;  %v4820_v35 = vsel %vm4819_vm14, %v4813_v1, %v4818_v59 }
0x28d4   :  { %v4856_v36 = vadd.f32 1e-06, %v4830_v34  ;;  %v4823_v38 = vsel %vm4821_vm15, %v4822_v14, %v4820_v35 }
0x28d5   :  { %v4855_v22 = vadd.f32 1e-06, %v4823_v38 }
0x28d6   :  { %6221 = vrcp.f32 %v4856_v36 }
0x28d7   :  { %6223 = vrcp.f32 %v4855_v22 }
0x28e0   :  { %v6222_v60 = vpop.eup %6221 }
0x28e1   :  { %v6224_v44 = vpop.eup %6223  ;;  %v4864_v2 = vmul.f32 %v6222_v60, %v4852_v40 }
0x28e2   :  { %v4863_v53 = vmul.f32 %v6224_v44, %v4851_v29 }
0x28e3   :  { %v4874_v50 = vadd.f32 %v5058_v46, %v4864_v2 }
0x28e4   :  { %v4873_v12 = vadd.f32 %v5058_v46, %v4863_v53 }
0x28e5   :  { %4878 = vst.msk [vmem:[%s7366_s16 + $0x8] sm:$0xff] %vm63_vm0, %v4874_v50 }
0x28e6   :  { %4877 = vst.msk [vmem:[%s7366_s16] sm:$0xff] %vm63_vm0, %v4873_v12 }
0x2953   :  { %v4812_v25 = vpop.xlane.xlu0 %4811 }
0x2954   :  { %v4809_v43 = vpop.xlane.xlu1 %4808  ;;  %v4816_v20 = vmul.f32 0.032258064, %v4812_v25 }
0x2955   :  { %v4815_v8 = vmul.f32 0.032258064, %v4809_v43 }
0x2956   :  { %6225 = vrsqrt.f32 %v4816_v20  ;;  %vm4840_vm1 = vcmp.eq.f32.partialorder %v4816_v20, inf  ;;  %v4843_v9 = vand.u32 2147483648, %v4816_v20  ;;  %vm4842_vm3 = vcmp.eq.f32.partialorder %v4816_v20, 0.0 }
0x2957   :  { %6227 = vrsqrt.f32 %v4815_v8  ;;  %vm4833_vm4 = vcmp.eq.f32.partialorder %v4815_v8, inf  ;;  %v4836_v7 = vand.u32 2147483648, %v4815_v8  ;;  %vm4835_vm9 = vcmp.eq.f32.partialorder %v4815_v8, 0.0 }
0x2960   :  { %v6226_v57 = vpop.eup %6225 }
0x2961   :  { %v6228_v16 = vpop.eup %6227  ;;  %v4839_v58 = vmul.f32 %v6226_v57, %v4816_v20 }
0x2962   :  { %v4832_v62 = vmul.f32 %v6228_v16, %v4815_v8 }
0x2963   :  { %v4841_v63 = vsel %vm4840_vm1, %v4816_v20, %v4839_v58 }
0x2964   :  { %v4844_v54 = vsel %vm4842_vm3, %v4843_v9, %v4841_v63  ;;  %v4834_v41 = vsel %vm4833_vm4, %v4815_v8, %v4832_v62 }
0x2965   :  { %v4858_v32 = vadd.f32 1e-06, %v4844_v54  ;;  %v4837_v17 = vsel %vm4835_vm9, %v4836_v7, %v4834_v41 }
0x2966   :  { %v4857_v10 = vadd.f32 1e-06, %v4837_v17 }
0x2967   :  { %6229 = vrcp.f32 %v4858_v32 }
0x2968   :  { %6231 = vrcp.f32 %v4857_v10 }
0x2971   :  { %v6230_v26 = vpop.eup %6229 }
0x2972   :  { %v6232_v45 = vpop.eup %6231  ;;  %v4866_v48 = vmul.f32 %v6230_v26, %v4854_v47 }
0x2973   :  { %v4865_v3 = vmul.f32 %v6232_v45, %v4853_v11 }
0x2974   :  { %v4876_v13 = vadd.f32 %v5058_v46, %v4866_v48 }
0x2975   :  { %v4875_v0 = vadd.f32 %v5058_v46, %v4865_v3 }
0x2976   :  { %4880 = vst.msk [vmem:[%s7366_s16 + $0x18] sm:$0xff] %vm63_vm0, %v4876_v13 }
0x2977   :  { %4879 = vst.msk [vmem:[%s7366_s16 + $0x10] sm:$0xff] %vm63_vm0, %v4875_v0 }

// kernel: encoder_decoder_forward.3
= control target key start
LH: loop header
LB: loop body
LE: loop exit
PB: predicated region body
PF: predicated region fallthrough
CT: control target
= control target key end

     0   :  { %vm101_vm0 = vcmask 261120   ;;  %vm317_vm9 = vcmask 64512   ;;  %s13693_s27 = smov 96   ;;  %s13689_s28 = smov 80   ;;  %vm405_vm11 = vcmask 130048   ;;  %vm1155_vm12 = vcmask 195584   ;;  %s13651_s0 = inlined_call_operand.vmem [shape: f32[32,32], index: 0, kind: input, shape index: {}]   ;;  %s13652_s6 = inlined_call_operand.vmem [shape: f32[2,32,96], index: 6, kind: input, shape index: {}]   ;;  %s13653_s4 = inlined_call_operand.vmem [shape: f32[2,1,32], index: 4, kind: input, shape index: {}]   ;;  %s13654_s5 = inlined_call_operand.vmem [shape: f32[2,1,32], index: 5, kind: input, shape index: {}]   ;;  %s13655_s7 = inlined_call_operand.vmem [shape: f32[2,1,96], index: 7, kind: input, shape index: {}]   ;;  %s13656_s2 = inlined_call_operand.vmem [shape: f32[2,16,16], index: 2, kind: input, shape index: {}]   ;;  %s13657_s8 = inlined_call_operand.vmem [shape: f32[2,32,32], index: 8, kind: input, shape index: {}]   ;;  %s13658_s9 = inlined_call_operand.vmem [shape: f32[2,1,32], index: 9, kind: input, shape index: {}]   ;;  %s13659_s14 = inlined_call_operand.vmem [shape: f32[2,32,64], index: 14, kind: input, shape index: {}]   ;;  %s13660_s1 = inlined_call_operand.vmem [shape: f32[32,32], index: 1, kind: input, shape index: {}]   ;;  %s13661_s12 = inlined_call_operand.vmem [shape: f32[2,32,32], index: 12, kind: input, shape index: {}]   ;;  %s13662_s10 = inlined_call_operand.vmem [shape: f32[2,1,32], index: 10, kind: input, shape index: {}]   ;;  %s13663_s11 = inlined_call_operand.vmem [shape: f32[2,1,32], index: 11, kind: input, shape index: {}]   ;;  %s13664_s15 = inlined_call_operand.vmem [shape: f32[2,1,64], index: 15, kind: input, shape index: {}]   ;;  %s13665_s13 = inlined_call_operand.vmem [shape: f32[2,1,32], index: 13, kind: input, shape index: {}]   ;;  %s13666_s3 = inlined_call_operand.vmem [shape: f32[2,16,16], index: 3, kind: input, shape index: {}]   ;;  %s13667_s16 = inlined_call_operand.vmem [shape: f32[2,32,32], index: 16, kind: input, shape index: {}]   ;;  %s13668_s17 = inlined_call_operand.vmem [shape: f32[2,1,32], index: 17, kind: input, shape index: {}]   ;;  %s13669_s20 = inlined_call_operand.vmem [shape: f32[2,32,64], index: 20, kind: input, shape index: {}]   ;;  %s13670_s18 = inlined_call_operand.vmem [shape: f32[2,1,32], index: 18, kind: input, shape index: {}]   ;;  %s13671_s19 = inlined_call_operand.vmem [shape: f32[2,1,32], index: 19, kind: input, shape index: {}]   ;;  %s13672_s22 = inlined_call_operand.vmem [shape: f32[2,64,32], index: 22, kind: input, shape index: {}]   ;;  %s13673_s21 = inlined_call_operand.vmem [shape: f32[2,1,64], index: 21, kind: input, shape index: {}]   ;;  %s13674_s23 = inlined_call_operand.vmem [shape: f32[2,1,32], index: 23, kind: input, shape index: {}]   ;;  %s13675_s24 = inlined_call_operand.vmem [shape: f32[1,32], index: 24, kind: input, shape index: {}]   ;;  %s13676_s25 = inlined_call_operand.vmem [shape: f32[1,32], index: 25, kind: input, shape index: {}]   ;;  %s13677_s26 = inlined_call_operand.vmem [shape: f32[32,32], index: 26, kind: output, shape index: {}]  }
   0x1   :  { %13728 = sst [smem:[#allocation2_spill]] %s13651_s0  ;;  %vm11902_vm10 = vmpackc.low %vm317_vm9, %vm317_vm9  ;;  %s13699_s0 = smov 48  }
   0x2   :  { %13729 = sst [smem:[#allocation3_spill]] %s13652_s6  ;;  %s13707_s6 = smov 120  }
   0x3   :  { %13730 = sst [smem:[#allocation4_spill]] %s13653_s4  ;;  %s13748_s4 = sld [smem:[#allocation3_spill]] }
   0x4   :  { %13731 = sst [smem:[#allocation5_spill]] %s13654_s5  ;;  %s13749_s29 = sld [smem:[#allocation4_spill]] }
   0x5   :  { %13732 = sst [smem:[#allocation6_spill]] %s13655_s7  ;;  %s13750_s30 = sld [smem:[#allocation5_spill]] }
   0x6   :  { %13733 = sst [smem:[#allocation7_spill]] %s13656_s2  ;;  %s13705_s5 = smov 88  }
   0x7   :  { %13734 = sst [smem:[#allocation8_spill]] %s13657_s8  ;;  %s13751_s8 = sld [smem:[#allocation6_spill]] }
   0x8   :  { %13735 = sst [smem:[#allocation9_spill]] %s13658_s9  ;;  %s13747_s9 = sld [smem:[#allocation2_spill]] }
   0x9   :  { %13736 = sst [smem:[#allocation10_spill]] %s13659_s14  ;;  %v203_v20 = vld [vmem:[%s13748_s4] sm:$0xff]  ;;  %v204_v21 = vld [vmem:[%s13748_s4 + $0x8] sm:$0xff]  ;;  %v205_v22 = vld [vmem:[%s13748_s4 + $0x10] sm:$0xff]  ;;  %s13709_s14 = smov 112  }
   0xa   :  { %13737 = sst [smem:[#allocation11_spill]] %s13660_s1  ;;  %v10512_v23 = vpack.c.bf16 %v204_v21, %v203_v20  ;;  %v206_v24 = vld [vmem:[%s13748_s4 + $0x18] sm:$0xff]  ;;  %v9155_v50 = vld [vmem:[%s13749_s29] ss:$0 sm:$0xff]  ;;  %s13754_s1 = sld [smem:[#allocation7_spill]] }
   0xb   :  { %13738 = sst [smem:[#allocation12_spill]] %s13661_s12  ;;  %v10516_v26 = vpack.c.bf16 %v206_v24, %v205_v22  ;;  %v9156_v53 = vld [vmem:[%s13750_s30] ss:$0 sm:$0xff]  ;;  %s13701_s7 = smov 64  }
   0xc   :  { %13739 = sst [smem:[#allocation13_spill]] %s13667_s16  ;;  %10513 = vmatprep.subr.bf16.mxu1 %v10512_v23  ;;  %s13691_s2 = smov 72  }
   0xd   :  { %13740 = sst [smem:[#allocation14_spill]] %s13668_s17  ;;  %10515 = vmatpush3.bf16.msra.mxu1 %v10512_v23  ;;  %v11872_v20 = vld [vmem:[%s13751_s8] ss:$0 sm:$0xff]  ;;  %s13703_s12 = smov 56  }
   0xe   :  { %13741 = sst [smem:[#allocation15_spill]] %s13669_s20  ;;  %v83_v0 = vld [vmem:[%s13747_s9] sm:$0xff]  ;;  %v84_v1 = vld [vmem:[%s13747_s9 + $0x8] sm:$0xff]  ;;  %v85_v4 = vld [vmem:[%s13747_s9 + $0x10] sm:$0xff]  ;;  %10517 = vmatprep.subr.bf16.mxu1 %v10516_v26  ;;  %s13765_s30 = sld [smem:[#allocation11_spill]] }
   0xf   :  { %13742 = sst [smem:[#allocation16_spill]] %s13671_s19  ;;  %v102_v2 = vsel %vm101_vm0, %v83_v0, 0.0  ;;  %v105_v3 = vsel %vm101_vm0, %v84_v1, 0.0  ;;  %v108_v5 = vsel %vm101_vm0, %v85_v4, 0.0  ;;  %v86_v15 = vld [vmem:[%s13747_s9 + $0x18] sm:$0xff]  ;;  %s13768_s4 = smov 120  }
  0x10   :  { %13743 = sst [smem:[#allocation17_spill]] %s13674_s23  ;;  %103 = vadd.xlane.f32.xlu0 %v102_v2  ;;  %v111_v17 = vsel %vm101_vm0, %v86_v15, 0.0  ;;  %s13766_s23 = sld [smem:[#allocation12_spill]] }
  0x11   :  { %13744 = sst [smem:[#allocation18_spill]] %s13675_s24  ;;  %10519 = vmatpush3.bf16.msra.mxu1 %v10516_v26  ;;  %s13761_s24 = smov 24  }
  0x12   :  { %13745 = sst [smem:[#allocation19_spill]] %s13676_s25  ;;  %s13764_s25 = sld [smem:[#allocation10_spill]] }
  0x13   :  { %13746 = sst [smem:[#allocation20_spill]] %s13677_s26  ;;  %s13769_s26 = smov 88  }
  0x14   :  { %106 = vadd.xlane.f32.xlu0 %v105_v3  ;;  %s13780_s8 = smov 48  }
  0x18   :  { %109 = vadd.xlane.f32.xlu0 %v108_v5 }
  0x9d   :  { %v104_v6 = vpop.xlane.xlu0 %103 }
  0x9e   :  { %v115_v7 = vmul.f32 0.03125, %v104_v6 }
  0xa0   :  { %v11819_v8 = vsub.f32 %v83_v0, %v115_v7 }
  0xa1   :  { %v107_v9 = vpop.xlane.xlu0 %106 }
  0xa2   :  { %v116_v10 = vmul.f32 0.03125, %v107_v9  ;;  %v123_v11 = vmul.f32 %v11819_v8, %v11819_v8  ;;  %v177_v51 = vmul.f32 %v9155_v50, %v11819_v8 }
  0xa4   :  { %v11823_v12 = vsub.f32 %v84_v1, %v116_v10  ;;  %v127_v13 = vsel %vm101_vm0, %v123_v11, 0.0 }
  0xa5   :  { %128 = vadd.xlane.f32.xlu1 %v127_v13  ;;  %v110_v18 = vpop.xlane.xlu0 %109 }
  0xa6   :  { %v124_v14 = vmul.f32 %v11823_v12, %v11823_v12  ;;  %v117_v19 = vmul.f32 0.03125, %v110_v18  ;;  %v178_v55 = vmul.f32 %v9155_v50, %v11823_v12 }
  0xa8   :  { %v130_v16 = vsel %vm101_vm0, %v124_v14, 0.0  ;;  %v11845_v25 = vsub.f32 %v85_v4, %v117_v19 }
  0xa9   :  { %131 = vadd.xlane.f32.xlu1 %v130_v16 }
  0xaa   :  { %v125_v27 = vmul.f32 %v11845_v25, %v11845_v25  ;;  %v179_v4 = vmul.f32 %v9155_v50, %v11845_v25 }
  0xac   :  { %v133_v28 = vsel %vm101_vm0, %v125_v27, 0.0 }
  0xad   :  { %112 = vadd.xlane.f32.xlu1 %v111_v17  ;;  %134 = vadd.xlane.f32.xlu0 %v133_v28 }
 0x132   :  { %v129_v29 = vpop.xlane.xlu1 %128 }
 0x133   :  { %v139_v30 = vmul.f32 0.032258064, %v129_v29 }
 0x135   :  { %11274 = vrsqrt.f32 %v139_v30  ;;  %vm145_vm1 = vcmp.eq.f32.partialorder %v139_v30, inf  ;;  %v148_v40 = vand.u32 2147483648, %v139_v30  ;;  %vm147_vm2 = vcmp.eq.f32.partialorder %v139_v30, 0.0 }
 0x136   :  { %v132_v31 = vpop.xlane.xlu1 %131 }
 0x137   :  { %v140_v32 = vmul.f32 0.032258064, %v132_v31 }
 0x139   :  { %11276 = vrsqrt.f32 %v140_v32  ;;  %vm152_vm3 = vcmp.eq.f32.partialorder %v140_v32, inf  ;;  %v155_v46 = vand.u32 2147483648, %v140_v32  ;;  %vm154_vm4 = vcmp.eq.f32.partialorder %v140_v32, 0.0 }
 0x13a   :  { %v113_v33 = vpop.xlane.xlu1 %112  ;;  %v135_v60 = vpop.xlane.xlu0 %134 }
 0x13b   :  { %v118_v34 = vmul.f32 0.03125, %v113_v33  ;;  %v141_v61 = vmul.f32 0.032258064, %v135_v60 }
 0x13d   :  { %v11850_v35 = vsub.f32 %v86_v15, %v118_v34  ;;  %vm159_vm5 = vcmp.eq.f32.partialorder %v141_v61, inf  ;;  %v162_v63 = vand.u32 2147483648, %v141_v61  ;;  %vm161_vm6 = vcmp.eq.f32.partialorder %v141_v61, 0.0 }
 0x13f   :  { %v11275_v36 = vpop.eup %11274  ;;  %v126_v37 = vmul.f32 %v11850_v35, %v11850_v35  ;;  %v180_v16 = vmul.f32 %v9155_v50, %v11850_v35  ;;  %v11936_v50 = vld [vmem:[%s13754_s1] sm:$0xff] }
 0x140   :  { %v144_v38 = vmul.f32 %v11275_v36, %v139_v30 }
 0x141   :  { %v136_v39 = vsel %vm101_vm0, %v126_v37, 0.0 }
 0x142   :  { %137 = vadd.xlane.f32.xlu1 %v136_v39  ;;  %v146_v41 = vsel %vm145_vm1, %v139_v30, %v144_v38 }
 0x143   :  { %v11277_v42 = vpop.eup %11276  ;;  %v149_v43 = vsel %vm147_vm2, %v148_v40, %v146_v41 }
 0x144   :  { %v151_v44 = vmul.f32 %v11277_v42, %v140_v32  ;;  %v181_v45 = vadd.f32 1e-06, %v149_v43 }
 0x146   :  { %v153_v47 = vsel %vm152_vm3, %v140_v32, %v151_v44  ;;  %11278 = vrcp.f32 %v181_v45 }
 0x147   :  { %v156_v48 = vsel %vm154_vm4, %v155_v46, %v153_v47  ;;  %v11931_v46 = vld [vmem:[%s13754_s1 + $0x8] sm:$0xff] }
 0x148   :  { %v182_v49 = vadd.f32 1e-06, %v156_v48 }
 0x14a   :  { %11280 = vrcp.f32 %v182_v49 }
 0x14b   :  { %11282 = vrsqrt.f32 %v141_v61 }
 0x150   :  { %v11279_v52 = vpop.eup %11278 }
 0x151   :  { %v189_v54 = vmul.f32 %v11279_v52, %v177_v51 }
 0x153   :  { %v199_v56 = vadd.f32 %v9156_v53, %v189_v54 }
 0x154   :  { %v11281_v57 = vpop.eup %11280 }
 0x155   :  { %9860 = vmatprep.mubr.msk.f32.mxu1 %vm101_vm0, %v199_v56  ;;  %v190_v58 = vmul.f32 %v11281_v57, %v178_v55  ;;  %v11283_v62 = vpop.eup %11282 }
 0x156   :  { %v158_v0 = vmul.f32 %v11283_v62, %v141_v61 }
 0x157   :  { %v200_v59 = vadd.f32 %v9156_v53, %v190_v58 }
 0x158   :  { %v160_v1 = vsel %vm159_vm5, %v141_v61, %v158_v0 }
 0x159   :  { %9861 = vmatmul.mubr.msk.f32.vlgmr.msra.gmra.mrb[0].mxu1 %vm101_vm0, %v200_v59  ;;  %v163_v2 = vsel %vm161_vm6, %v162_v63, %v160_v1 }
 0x15a   :  { %v183_v3 = vadd.f32 1e-06, %v163_v2 }
 0x15c   :  { %11284 = vrcp.f32 %v183_v3 }
 0x166   :  { %v11285_v5 = vpop.eup %11284 }
 0x167   :  { %v191_v6 = vmul.f32 %v11285_v5, %v179_v4 }
 0x169   :  { %v201_v7 = vadd.f32 %v9156_v53, %v191_v6 }
 0x16b   :  { %9863 = vmatprep.mubr.msk.f32.mxu1 %vm101_vm0, %v201_v7 }
 0x1cf   :  { %v138_v8 = vpop.xlane.xlu1 %137 }
 0x1d0   :  { %v142_v9 = vmul.f32 0.032258064, %v138_v8 }
 0x1d2   :  { %11286 = vrsqrt.f32 %v142_v9  ;;  %vm166_vm7 = vcmp.eq.f32.partialorder %v142_v9, inf  ;;  %v169_v11 = vand.u32 2147483648, %v142_v9  ;;  %vm168_vm8 = vcmp.eq.f32.partialorder %v142_v9, 0.0 }
 0x1dc   :  { %v11287_v10 = vpop.eup %11286 }
 0x1dd   :  { %v165_v12 = vmul.f32 %v11287_v10, %v142_v9 }
 0x1df   :  { %v167_v13 = vsel %vm166_vm7, %v142_v9, %v165_v12 }
 0x1e0   :  { %v170_v14 = vsel %vm168_vm8, %v169_v11, %v167_v13 }
 0x1e1   :  { %v184_v15 = vadd.f32 1e-06, %v170_v14 }
 0x1e3   :  { %11288 = vrcp.f32 %v184_v15 }
 0x1ed   :  { %v11289_v17 = vpop.eup %11288 }
 0x1ee   :  { %v192_v18 = vmul.f32 %v11289_v17, %v180_v16 }
 0x1f0   :  { %v202_v19 = vadd.f32 %v9156_v53, %v192_v18 }
 0x1f2   :  { %9864 = vmatmul.mubr.msk.f32.gmra.mrb[2].mxu1 %vm101_vm0, %v202_v19 }
 0x22c   :  { %v9862_v21 = vpop.f32.mrb[0].mxu1 }
 0x22d   :  { %v11875_v22 = vadd.f32 %v9862_v21, %v11872_v20  ;;  %v292_v23 = vpop.f32.mrb[1].mxu1 }
 0x22e   :  { %v11878_v24 = vadd.f32 %v11872_v20, %v292_v23 }
 0x230   :  { %9870 = vmatprep.mubr.msk.f32.mxu1 %vm317_vm9, %v11878_v24  ;;  %v11884_v25 = vpack.i.bf16 %v11875_v22, %v11878_v24 }
 0x232   :  { %10980 = vrot.lane.b32.xlu1 %v11884_v25, %s13705_s5  ;;  %10975 = vrot.lane.b32.xlu0 %v11884_v25, %s13693_s27 }
 0x236   :  { %515 = vrot.lane.b32.xlu1 %v11878_v24, %s13707_s6  ;;  %517 = vrot.lane.b32.xlu0 %v11875_v22, %s13707_s6 }
 0x23a   :  { %10985 = vrot.lane.b32.xlu1 %v11884_v25, %s13689_s28  ;;  %721 = vrot.lane.b32.xlu0 %v11875_v22, %s13709_s14  ;;  %s13697_s28 = smov 104  }
 0x23e   :  { %719 = vrot.lane.b32.xlu1 %v11878_v24, %s13709_s14 }
 0x2a4   :  { %v10981_v26 = vpop.permute.xlu1 %10980  ;;  %v10976_v27 = vpop.permute.xlu0 %10975 }
 0x2a5   :  { %v10978_v28 = vunpack.i.h.bf16 %v10976_v27  ;;  %v10977_v29 = vunpack.i.l.bf16 %v10976_v27  ;;  %v10983_v30 = vunpack.i.h.bf16 %v10981_v26  ;;  %v10982_v31 = vunpack.i.l.bf16 %v10981_v26 }
 0x2a7   :  { %v10520_v33 = vpack.c.bf16 %v10978_v28, %v10977_v29  ;;  %v10530_v34 = vpack.c.bf16 %v10983_v30, %v10982_v31 }
 0x2a8   :  { %v516_v35 = vpop.permute.xlu1 %515  ;;  %v518_v41 = vpop.permute.xlu0 %517 }
 0x2a9   :  { %10522 = vmatprep.subr.msk.bf16.mxu1 %vm11902_vm10, %v10520_v33  ;;  %10532 = vmatprep.subr.msk.bf16.mxu0 %vm11902_vm10, %v10530_v34 }
 0x2aa   :  { %9884 = vmatprep.mubr.msk.f32.mxu0 %vm317_vm9, %v516_v35  ;;  %10525 = vmatpush3.bf16.xpose.msk.msra.mxu1 %vm11902_vm10, %v10520_v33 }
 0x2ab   :  { %10535 = vmatpush3.bf16.xpose.msk.msra.mxu0 %vm11902_vm10, %v10530_v34 }
 0x2ac   :  { %v10986_v36 = vpop.permute.xlu1 %10985  ;;  %v722_v42 = vpop.permute.xlu0 %721 }
 0x2ad   :  { %v10988_v37 = vunpack.i.h.bf16 %v10986_v36  ;;  %v10987_v38 = vunpack.i.l.bf16 %v10986_v36 }
 0x2af   :  { %v10540_v39 = vpack.c.bf16 %v10988_v37, %v10987_v38 }
 0x2b0   :  { %v720_v40 = vpop.permute.xlu1 %719 }
 0x2b1   :  { %9871 = vmatmul.mubr.msk.f32.vlgmr.msra.gmra.mrb[4].mxu1 %vm317_vm9, %v11875_v22  ;;  %10542 = vmatprep.subr.msk.bf16.mxu0 %vm11902_vm10, %v10540_v39 }
 0x2b2   :  { %9885 = vmatmul.mubr.msk.f32.vlgmr.msra.gmra.mrb[0].mxu0 %vm317_vm9, %v518_v41 }
 0x2b3   :  { %10545 = vmatpush3.bf16.xpose.msk.msra.mxu0 %vm11902_vm10, %v10540_v39  ;;  %9898 = vmatprep.mubr.msk.f32.mxu0 %vm317_vm9, %v720_v40 }
 0x2ba   :  { %9899 = vmatmul.mubr.msk.f32.vlgmr.msra.gmra.mrb[2].mxu0 %vm317_vm9, %v722_v42 }
 0x2c5   :  { %v11924_v43 = vpop.f32.mrb[2].mxu1 }
 0x2c6   :  { %v11926_v44 = vpop.f32.mrb[3].mxu1 }
 0x384   :  { %v9872_v45 = vpop.f32.mrb[4].mxu1 }
 0x385   :  { %v402_v47 = vmul.f32 0.35355338, %v9872_v45  ;;  %v9886_v48 = vpop.f32.mrb[0].mxu0  ;;  %v392_v49 = vpop.f32.mrb[5].mxu1 }
 0x386   :  { %v401_v51 = vmul.f32 0.35355338, %v392_v49  ;;  %v597_v52 = vpop.f32.mrb[1].mxu0  ;;  %v607_v56 = vmul.f32 0.35355338, %v9886_v48 }
 0x387   :  { %v606_v53 = vmul.f32 0.35355338, %v597_v52  ;;  %v404_v54 = vadd.f32 %v402_v47, %v11931_v46 }
 0x388   :  { %v403_v55 = vadd.f32 %v401_v51, %v11936_v50  ;;  %v609_v62 = vadd.f32 %v607_v56, %v11931_v46 }
 0x389   :  { %v409_v57 = vsel %vm405_vm11, %v404_v54, -inf  ;;  %v608_v58 = vadd.f32 %v606_v53, %v11936_v50 }
 0x38a   :  { %410 = vmax.xlane.f32.xlu0 %v409_v57  ;;  %v406_v59 = vsel %vm405_vm11, %v403_v55, -inf  ;;  %v613_v2 = vsel %vm405_vm11, %v609_v62, -inf }
 0x38b   :  { %407 = vmax.xlane.f32.xlu1 %v406_v59  ;;  %v610_v61 = vsel %vm405_vm11, %v608_v58, -inf }
 0x38d   :  { %v9900_v60 = vpop.f32.mrb[2].mxu0 }
 0x38e   :  { %v811_v63 = vmul.f32 0.35355338, %v9900_v60  ;;  %v801_v0 = vpop.f32.mrb[3].mxu0  ;;  %611 = vmax.xlane.f32.xlu0 %v610_v61 }
 0x38f   :  { %v810_v1 = vmul.f32 0.35355338, %v801_v0 }
 0x390   :  { %v813_v4 = vadd.f32 %v811_v63, %v11931_v46 }
 0x391   :  { %v812_v3 = vadd.f32 %v810_v1, %v11936_v50 }
 0x392   :  { %614 = vmax.xlane.f32.xlu0 %v613_v2  ;;  %v817_v6 = vsel %vm405_vm11, %v813_v4, -inf }
 0x393   :  { %v814_v5 = vsel %vm405_vm11, %v812_v3, -inf }
 0x394   :  { %815 = vmax.xlane.f32.xlu1 %v814_v5 }
 0x396   :  { %818 = vmax.xlane.f32.xlu0 %v817_v6 }
 0x3a5   :  { %10990 = vrot.lane.b32.xlu1 %v11884_v25, %s13701_s7 }
 0x417   :  { %v411_v7 = vpop.xlane.xlu0 %410 }
 0x418   :  { %v413_v8 = vsub.f32 %v404_v54, %v411_v7  ;;  %v408_v9 = vpop.xlane.xlu1 %407 }
 0x419   :  { %v412_v10 = vsub.f32 %v403_v55, %v408_v9 }
 0x41a   :  { %v416_v11 = vmul.f32 1.442695, %v413_v8 }
 0x41b   :  { %v414_v12 = vmul.f32 1.442695, %v412_v10  ;;  %v612_v13 = vpop.xlane.xlu0 %611 }
 0x41c   :  { %11290 = vpow2.f32 %v416_v11  ;;  %v616_v14 = vsub.f32 %v608_v58, %v612_v13 }
 0x41d   :  { %11292 = vpow2.f32 %v414_v12 }
 0x41e   :  { %v618_v15 = vmul.f32 1.442695, %v616_v14 }
 0x41f   :  { %v615_v16 = vpop.xlane.xlu0 %614 }
 0x420   :  { %11294 = vpow2.f32 %v618_v15  ;;  %v617_v17 = vsub.f32 %v609_v62, %v615_v16 }
 0x421   :  { %v816_v18 = vpop.xlane.xlu1 %815 }
 0x422   :  { %v620_v19 = vmul.f32 1.442695, %v617_v17  ;;  %v820_v42 = vsub.f32 %v812_v3, %v816_v18 }
 0x423   :  { %v819_v21 = vpop.xlane.xlu0 %818 }
 0x424   :  { %11296 = vpow2.f32 %v620_v19  ;;  %v821_v23 = vsub.f32 %v813_v4, %v819_v21  ;;  %v822_v45 = vmul.f32 1.442695, %v820_v42 }
 0x425   :  { %v10991_v26 = vpop.permute.xlu1 %10990 }
 0x426   :  { %v11291_v27 = vpop.eup %11290  ;;  %v824_v28 = vmul.f32 1.442695, %v821_v23  ;;  %v10993_v29 = vunpack.i.h.bf16 %v10991_v26  ;;  %v10992_v30 = vunpack.i.l.bf16 %v10991_v26 }
 0x427   :  { %v11293_v31 = vpop.eup %11292  ;;  %v421_v33 = vsel %vm405_vm11, %v11291_v27, 0.0 }
 0x428   :  { %11298 = vpow2.f32 %v824_v28  ;;  %422 = vadd.xlane.f32.xlu0 %v421_v33  ;;  %v418_v34 = vsel %vm405_vm11, %v11293_v31, 0.0  ;;  %v10526_v35 = vpack.c.bf16 %v10993_v29, %v10992_v30 }
 0x429   :  { %419 = vadd.xlane.f32.xlu1 %v418_v34  ;;  %11300 = vpow2.f32 %v822_v45 }
 0x42a   :  { %v11295_v36 = vpop.eup %11294  ;;  %10527 = vmatprep.subr.bf16.mxu1 %v10526_v35 }
 0x42b   :  { %10529 = vmatpush3.bf16.msra.mxu1 %v10526_v35  ;;  %v622_v37 = vsel %vm405_vm11, %v11295_v36, 0.0 }
 0x42d   :  { %623 = vadd.xlane.f32.xlu1 %v622_v37 }
 0x42e   :  { %v11297_v38 = vpop.eup %11296 }
 0x42f   :  { %v625_v39 = vsel %vm405_vm11, %v11297_v38, 0.0 }
 0x430   :  { %626 = vadd.xlane.f32.xlu0 %v625_v39 }
 0x432   :  { %v11299_v40 = vpop.eup %11298 }
 0x433   :  { %v829_v41 = vsel %vm405_vm11, %v11299_v40, 0.0  ;;  %v11301_v47 = vpop.eup %11300 }
 0x434   :  { %830 = vadd.xlane.f32.xlu0 %v829_v41  ;;  %v826_v48 = vsel %vm405_vm11, %v11301_v47, 0.0 }
 0x43e   :  { %11000 = vrot.lane.b32.xlu1 %v11884_v25, %s13699_s0  ;;  %s13757_s0 = smov 104  }
 0x442   :  { %11005 = vrot.lane.b32.xlu1 %v11884_v25, %s13691_s2  ;;  %s13695_s2 = smov 40  }
 0x44a   :  { %10995 = vrot.lane.b32.xlu0 %v11884_v25, %s13703_s12 }
 0x44e   :  { %925 = vrot.lane.b32.xlu0 %v11875_v22, %s13697_s28 }
 0x466   :  { %827 = vadd.xlane.f32.xlu1 %v826_v48 }
 0x477   :  { %923 = vrot.lane.b32.xlu1 %v11878_v24, %s13697_s28  ;;  %s13756_s28 = smov 48  }
 0x4b5   :  { %v423_v49 = vpop.xlane.xlu0 %422 }
 0x4b6   :  { %11302 = vrcp.f32 %v423_v49  ;;  %v420_v51 = vpop.xlane.xlu1 %419  ;;  %v12002_v49 = vadd.f32 %v11924_v43, %v11872_v20 }
 0x4b7   :  { %11304 = vrcp.f32 %v420_v51  ;;  %v12006_v51 = vadd.f32 %v11872_v20, %v11926_v44 }
 0x4ba   :  { %v624_v52 = vpop.xlane.xlu1 %623 }
 0x4bb   :  { %11306 = vrcp.f32 %v624_v52  ;;  %v12010_v52 = vpack.i.bf16 %v12002_v49, %v12006_v51 }
 0x4bd   :  { %v627_v53 = vpop.xlane.xlu0 %626 }
 0x4be   :  { %11308 = vrcp.f32 %v627_v53  ;;  %v11001_v55 = vpop.permute.xlu1 %11000 }
 0x4bf   :  { %v11003_v60 = vunpack.i.h.bf16 %v11001_v55  ;;  %v11002_v24 = vunpack.i.l.bf16 %v11001_v55 }
 0x4c0   :  { %v11303_v54 = vpop.eup %11302 }
 0x4c1   :  { %v11305_v22 = vpop.eup %11304  ;;  %v831_v56 = vpop.xlane.xlu0 %830  ;;  %v427_v58 = vmul.f32 %v11303_v54, %v11291_v27  ;;  %v10546_v6 = vpack.c.bf16 %v11003_v60, %v11002_v24  ;;  %v12031_v24 = vld [vmem:[%s13754_s1 + $0x18] sm:$0xff] }
 0x4c2   :  { %v426_v57 = vmul.f32 %v11305_v22, %v11293_v31  ;;  %v11006_v1 = vpop.permute.xlu1 %11005  ;;  %11310 = vrcp.f32 %v831_v56 }
 0x4c3   :  { %v11008_v4 = vunpack.i.h.bf16 %v11006_v1  ;;  %v11007_v5 = vunpack.i.l.bf16 %v11006_v1 }
 0x4c4   :  { %9877 = vmatprep.mubr.msk.f32.mxu1 %vm405_vm11, %v426_v57 }
 0x4c5   :  { %v11307_v59 = vpop.eup %11306  ;;  %v10996_v61 = vpop.permute.xlu0 %10995  ;;  %9878 = vmatmul.mubr.msk.f32.vlgmr.msra.gmra.mrb[6].mxu1 %vm405_vm11, %v427_v58  ;;  %v10550_v8 = vpack.c.bf16 %v11008_v4, %v11007_v5 }
 0x4c6   :  { %v10998_v62 = vunpack.i.h.bf16 %v10996_v61  ;;  %v10997_v63 = vunpack.i.l.bf16 %v10996_v61  ;;  %v630_v0 = vmul.f32 %v11307_v59, %v11295_v36 }
 0x4c8   :  { %9891 = vmatprep.mubr.msk.f32.mxu1 %vm405_vm11, %v630_v0  ;;  %v10536_v2 = vpack.c.bf16 %v10998_v62, %v10997_v63  ;;  %v11309_v3 = vpop.eup %11308  ;;  %v12036_v0 = vld [vmem:[%s13754_s1 + $0x10] sm:$0xff]  ;;  %s13776_s1 = sld [smem:[#allocation6_spill]] }
 0x4c9   :  { %v631_v7 = vmul.f32 %v11309_v3, %v11297_v38  ;;  %v926_v15 = vpop.permute.xlu0 %925 }
 0x4ca   :  { %10537 = vmatprep.subr.bf16.mxu1 %v10536_v2 }
 0x4cb   :  { %10539 = vmatpush3.bf16.msra.mxu1 %v10536_v2 }
 0x4cc   :  { %10547 = vmatprep.subr.bf16.mxu1 %v10546_v6  ;;  %v11311_v10 = vpop.eup %11310 }
 0x4cd   :  { %v835_v13 = vmul.f32 %v11311_v10, %v11299_v40 }
 0x4ce   :  { %9892 = vmatmul.mubr.msk.f32.vlgmr.msra.gmra.mrb[8].mxu1 %vm405_vm11, %v631_v7 }
 0x4cf   :  { %10549 = vmatpush3.bf16.msra.mxu1 %v10546_v6 }
 0x4d0   :  { %10552 = vmatprep.subr.msk.bf16.mxu1 %vm11902_vm10, %v10550_v8 }
 0x4f3   :  { %v828_v9 = vpop.xlane.xlu1 %827 }
 0x4f4   :  { %11312 = vrcp.f32 %v828_v9 }
 0x4f7   :  { %v924_v14 = vpop.permute.xlu1 %923 }
 0x4fe   :  { %v11313_v11 = vpop.eup %11312 }
 0x4ff   :  { %v834_v12 = vmul.f32 %v11313_v11, %v11301_v47 }
 0x501   :  { %9905 = vmatprep.mubr.msk.f32.mxu1 %vm405_vm11, %v834_v12 }
 0x502   :  { %9906 = vmatmul.mubr.msk.f32.vlgmr.msra.gmra.mrb[10].mxu1 %vm405_vm11, %v835_v13 }
 0x503   :  { %10555 = vmatpush3.bf16.xpose.msk.msra.mxu1 %vm11902_vm10, %v10550_v8  ;;  %9912 = vmatprep.mubr.msk.f32.mxu1 %vm317_vm9, %v924_v14 }
 0x50a   :  { %9913 = vmatmul.mubr.msk.f32.vlgmr.msra.gmra.mrb[12].mxu1 %vm317_vm9, %v926_v15 }
 0x598   :  { %v11980_v16 = vpop.f32.mrb[6].mxu1 }
 0x599   :  { %v11982_v17 = vpop.f32.mrb[7].mxu1 }
 0x5a1   :  { %v11984_v18 = vpop.f32.mrb[8].mxu1 }
 0x5a2   :  { %v11986_v19 = vpop.f32.mrb[9].mxu1 }
 0x5d5   :  { %v11988_v21 = vpop.f32.mrb[10].mxu1 }
 0x5d6   :  { %v11990_v23 = vpop.f32.mrb[11].mxu1 }
 0x5dd   :  { %v9914_v26 = vpop.f32.mrb[12].mxu1 }
 0x5de   :  { %v1015_v27 = vmul.f32 0.35355338, %v9914_v26  ;;  %v1005_v28 = vpop.f32.mrb[13].mxu1 }
 0x5df   :  { %v1014_v29 = vmul.f32 0.35355338, %v1005_v28 }
 0x5e0   :  { %v1017_v30 = vadd.f32 %v1015_v27, %v11931_v46 }
 0x5e1   :  { %v1016_v31 = vadd.f32 %v1014_v29, %v11936_v50 }
 0x5e2   :  { %v1021_v33 = vsel %vm405_vm11, %v1017_v30, -inf }
 0x5e3   :  { %1022 = vmax.xlane.f32.xlu0 %v1021_v33  ;;  %v1018_v34 = vsel %vm405_vm11, %v1016_v31, -inf }
 0x5e4   :  { %1019 = vmax.xlane.f32.xlu1 %v1018_v34 }
 0x5f5   :  { %11010 = vrot.lane.b32.xlu1 %v11884_v25, %s13695_s2  ;;  %s13758_s2 = smov 72  }
 0x670   :  { %v1023_v35 = vpop.xlane.xlu0 %1022 }
 0x671   :  { %v1025_v36 = vsub.f32 %v1017_v30, %v1023_v35  ;;  %v1020_v37 = vpop.xlane.xlu1 %1019 }
 0x672   :  { %v1024_v38 = vsub.f32 %v1016_v31, %v1020_v37 }
 0x673   :  { %v1028_v39 = vmul.f32 1.442695, %v1025_v36 }
 0x674   :  { %v1026_v40 = vmul.f32 1.442695, %v1024_v38 }
 0x675   :  { %11314 = vpow2.f32 %v1028_v39  ;;  %v11011_v46 = vpop.permute.xlu1 %11010 }
 0x676   :  { %v11013_v41 = vunpack.i.h.bf16 %v11011_v46  ;;  %v11012_v50 = vunpack.i.l.bf16 %v11011_v46  ;;  %11316 = vpow2.f32 %v1026_v40 }
 0x678   :  { %v10556_v42 = vpack.c.bf16 %v11013_v41, %v11012_v50 }
 0x67a   :  { %10557 = vmatprep.subr.bf16.mxu0 %v10556_v42 }
 0x67b   :  { %10559 = vmatpush3.bf16.msra.mxu0 %v10556_v42 }
 0x67f   :  { %v11315_v45 = vpop.eup %11314 }
 0x680   :  { %v1033_v47 = vsel %vm405_vm11, %v11315_v45, 0.0  ;;  %v11317_v48 = vpop.eup %11316 }
 0x681   :  { %1034 = vadd.xlane.f32.xlu0 %v1033_v47  ;;  %v1030_v25 = vsel %vm405_vm11, %v11317_v48, 0.0 }
 0x685   :  { %1031 = vadd.xlane.f32.xlu0 %v1030_v25 }
 0x69b   :  { %11015 = vrot.lane.b32.xlu0 %v12010_v52, %s13693_s27  ;;  %s13755_s27 = smov 80  }
 0x70e   :  { %v1035_v53 = vpop.xlane.xlu0 %1034 }
 0x70f   :  { %11318 = vrcp.f32 %v1035_v53 }
 0x712   :  { %v1032_v54 = vpop.xlane.xlu0 %1031 }
 0x713   :  { %11320 = vrcp.f32 %v1032_v54 }
 0x716   :  { %v11016_v22 = vpop.permute.xlu0 %11015 }
 0x717   :  { %v11018_v55 = vunpack.i.h.bf16 %v11016_v22  ;;  %v11017_v56 = vunpack.i.l.bf16 %v11016_v22 }
 0x719   :  { %v10560_v43 = vpack.c.bf16 %v11018_v55, %v11017_v56  ;;  %v11319_v20 = vpop.eup %11318 }
 0x71a   :  { %v1039_v58 = vmul.f32 %v11319_v20, %v11315_v45 }
 0x71b   :  { %10562 = vmatprep.subr.msk.bf16.mxu0 %vm11902_vm10, %v10560_v43 }
 0x71d   :  { %v11321_v44 = vpop.eup %11320 }
 0x71e   :  { %v1038_v57 = vmul.f32 %v11321_v44, %v11317_v48 }
 0x720   :  { %9919 = vmatprep.mubr.msk.f32.mxu0 %vm405_vm11, %v1038_v57 }
 0x721   :  { %9920 = vmatmul.mubr.msk.f32.vlgmr.msra.gmra.mrb[4].mxu0 %vm405_vm11, %v1039_v58 }
 0x722   :  { %10565 = vmatpush3.bf16.xpose.msk.msra.mxu0 %vm11902_vm10, %v10560_v43  ;;  %9926 = vmatprep.mubr.msk.f32.mxu0 %vm317_vm9, %v12006_v51 }
 0x729   :  { %9927 = vmatmul.mubr.msk.f32.vlgmr.msra.gmra.mrb[6].mxu0 %vm317_vm9, %v12002_v49 }
 0x7f4   :  { %v12024_v59 = vpop.f32.mrb[4].mxu0 }
 0x7f5   :  { %v12026_v60 = vpop.f32.mrb[5].mxu0 }
 0x7fc   :  { %v9928_v61 = vpop.f32.mrb[6].mxu0 }
 0x7fd   :  { %v1248_v62 = vmul.f32 0.35355338, %v9928_v61  ;;  %v1238_v63 = vpop.f32.mrb[7].mxu0 }
 0x7fe   :  { %v1247_v1 = vmul.f32 0.35355338, %v1238_v63 }
 0x7ff   :  { %v1250_v2 = vadd.f32 %v1248_v62, %v12031_v24 }
 0x800   :  { %v1249_v3 = vadd.f32 %v1247_v1, %v12036_v0 }
 0x801   :  { %v1254_v4 = vsel %vm405_vm11, %v1250_v2, -inf }
 0x802   :  { %1255 = vmax.xlane.f32.xlu0 %v1254_v4  ;;  %v1251_v5 = vsel %vm405_vm11, %v1249_v3, -inf }
 0x803   :  { %1252 = vmax.xlane.f32.xlu1 %v1251_v5 }
 0x814   :  { %11020 = vrot.lane.b32.xlu1 %v12010_v52, %s13701_s7  ;;  %s13759_s7 = smov 40  }
 0x818   :  { %1360 = vrot.lane.b32.xlu1 %v12006_v51, %s13707_s6 }
 0x88f   :  { %v1256_v6 = vpop.xlane.xlu0 %1255 }
 0x890   :  { %v1258_v7 = vsub.f32 %v1250_v2, %v1256_v6  ;;  %v1253_v8 = vpop.xlane.xlu1 %1252 }
 0x891   :  { %v1257_v9 = vsub.f32 %v1249_v3, %v1253_v8 }
 0x892   :  { %v1261_v10 = vmul.f32 1.442695, %v1258_v7 }
 0x893   :  { %v1259_v11 = vmul.f32 1.442695, %v1257_v9 }
 0x894   :  { %11322 = vpow2.f32 %v1261_v10  ;;  %v11021_v12 = vpop.permute.xlu1 %11020 }
 0x895   :  { %11324 = vpow2.f32 %v1259_v11  ;;  %v11023_v13 = vunpack.i.h.bf16 %v11021_v12  ;;  %v11022_v14 = vunpack.i.l.bf16 %v11021_v12 }
 0x897   :  { %v10566_v15 = vpack.c.bf16 %v11023_v13, %v11022_v14 }
 0x898   :  { %v1361_v30 = vpop.permute.xlu1 %1360 }
 0x899   :  { %10567 = vmatprep.subr.bf16.mxu1 %v10566_v15 }
 0x89a   :  { %10569 = vmatpush3.bf16.msra.mxu1 %v10566_v15 }
 0x89e   :  { %v11323_v26 = vpop.eup %11322 }
 0x89f   :  { %v11325_v27 = vpop.eup %11324  ;;  %v1266_v28 = vsel %vm405_vm11, %v11323_v26, 0.0 }
 0x8a0   :  { %1267 = vadd.xlane.f32.xlu0 %v1266_v28  ;;  %v1263_v29 = vsel %vm405_vm11, %v11325_v27, 0.0 }
 0x8a1   :  { %1264 = vadd.xlane.f32.xlu1 %v1263_v29 }
 0x8b2   :  { %1362 = vrot.lane.b32.xlu1 %v12002_v49, %s13707_s6  ;;  %s13713_s6 = smov 24  }
 0x8b6   :  { %11025 = vrot.lane.b32.xlu0 %v12010_v52, %s13705_s5  ;;  %s13711_s5 = smov 16  }
 0x92d   :  { %v1268_v31 = vpop.xlane.xlu0 %1267 }
 0x92e   :  { %11326 = vrcp.f32 %v1268_v31  ;;  %v1265_v33 = vpop.xlane.xlu1 %1264 }
 0x92f   :  { %11328 = vrcp.f32 %v1265_v33 }
 0x931   :  { %v11026_v34 = vpop.permute.xlu0 %11025 }
 0x932   :  { %v11028_v35 = vunpack.i.h.bf16 %v11026_v34  ;;  %v11027_v36 = vunpack.i.l.bf16 %v11026_v34  ;;  %v1363_v41 = vpop.permute.xlu1 %1362 }
 0x934   :  { %v10570_v37 = vpack.c.bf16 %v11028_v35, %v11027_v36 }
 0x936   :  { %10572 = vmatprep.subr.msk.bf16.mxu1 %vm11902_vm10, %v10570_v37 }
 0x938   :  { %v11327_v38 = vpop.eup %11326 }
 0x939   :  { %v11329_v39 = vpop.eup %11328  ;;  %v1272_v46 = vmul.f32 %v11327_v38, %v11323_v26 }
 0x93a   :  { %v1271_v40 = vmul.f32 %v11329_v39, %v11325_v27 }
 0x93c   :  { %9933 = vmatprep.mubr.msk.f32.mxu1 %vm405_vm11, %v1271_v40 }
 0x93d   :  { %9934 = vmatmul.mubr.msk.f32.vlgmr.msra.gmra.mrb[14].mxu1 %vm405_vm11, %v1272_v46 }
 0x93e   :  { %10575 = vmatpush3.bf16.xpose.msk.msra.mxu1 %vm11902_vm10, %v10570_v37  ;;  %9940 = vmatprep.mubr.msk.f32.mxu1 %vm317_vm9, %v1361_v30 }
 0x945   :  { %9941 = vmatmul.mubr.msk.f32.vlgmr.msra.gmra.mrb[16].mxu1 %vm317_vm9, %v1363_v41 }
 0xa10   :  { %v12060_v50 = vpop.f32.mrb[14].mxu1 }
 0xa11   :  { %v12062_v42 = vpop.f32.mrb[15].mxu1 }
 0xa18   :  { %v9942_v45 = vpop.f32.mrb[16].mxu1 }
 0xa19   :  { %v1452_v47 = vmul.f32 0.35355338, %v9942_v45  ;;  %v1442_v48 = vpop.f32.mrb[17].mxu1 }
 0xa1a   :  { %v1451_v25 = vmul.f32 0.35355338, %v1442_v48 }
 0xa1b   :  { %v1454_v53 = vadd.f32 %v1452_v47, %v12031_v24 }
 0xa1c   :  { %v1453_v54 = vadd.f32 %v1451_v25, %v12036_v0 }
 0xa1d   :  { %v1458_v22 = vsel %vm405_vm11, %v1454_v53, -inf }
 0xa1e   :  { %1459 = vmax.xlane.f32.xlu0 %v1458_v22  ;;  %v1455_v55 = vsel %vm405_vm11, %v1453_v54, -inf }
 0xa1f   :  { %1456 = vmax.xlane.f32.xlu1 %v1455_v55 }
 0xa30   :  { %11030 = vrot.lane.b32.xlu1 %v12010_v52, %s13703_s12  ;;  %s13716_s12 = smov 8  }
 0xa34   :  { %1564 = vrot.lane.b32.xlu1 %v12006_v51, %s13709_s14 }
 0xa38   :  { %1566 = vrot.lane.b32.xlu1 %v12002_v49, %s13709_s14  ;;  %s13771_s14 = smov 8  }
 0xaab   :  { %v1460_v56 = vpop.xlane.xlu0 %1459 }
 0xaac   :  { %v1462_v43 = vsub.f32 %v1454_v53, %v1460_v56  ;;  %v1457_v20 = vpop.xlane.xlu1 %1456 }
 0xaad   :  { %v1461_v44 = vsub.f32 %v1453_v54, %v1457_v20 }
 0xaae   :  { %v1465_v57 = vmul.f32 1.442695, %v1462_v43 }
 0xaaf   :  { %v1463_v58 = vmul.f32 1.442695, %v1461_v44 }
 0xab0   :  { %11330 = vpow2.f32 %v1465_v57  ;;  %v11031_v61 = vpop.permute.xlu1 %11030 }
 0xab1   :  { %v11033_v62 = vunpack.i.h.bf16 %v11031_v61  ;;  %v11032_v63 = vunpack.i.l.bf16 %v11031_v61  ;;  %11332 = vpow2.f32 %v1463_v58 }
 0xab3   :  { %v10576_v1 = vpack.c.bf16 %v11033_v62, %v11032_v63 }
 0xab4   :  { %v1565_v26 = vpop.permute.xlu1 %1564 }
 0xab5   :  { %10577 = vmatprep.subr.bf16.mxu0 %v10576_v1 }
 0xab6   :  { %10579 = vmatpush3.bf16.msra.mxu0 %v10576_v1 }
 0xab8   :  { %v1567_v27 = vpop.permute.xlu1 %1566 }
 0xaba   :  { %v11331_v2 = vpop.eup %11330 }
 0xabb   :  { %v1470_v3 = vsel %vm405_vm11, %v11331_v2, 0.0  ;;  %v11333_v4 = vpop.eup %11332 }
 0xabc   :  { %1471 = vadd.xlane.f32.xlu0 %v1470_v3  ;;  %v1467_v5 = vsel %vm405_vm11, %v11333_v4, 0.0 }
 0xac0   :  { %1468 = vadd.xlane.f32.xlu0 %v1467_v5 }
 0xad6   :  { %11035 = vrot.lane.b32.xlu0 %v12010_v52, %s13755_s27 }
 0xb49   :  { %v1472_v6 = vpop.xlane.xlu0 %1471 }
 0xb4a   :  { %11334 = vrcp.f32 %v1472_v6 }
 0xb4d   :  { %v1469_v7 = vpop.xlane.xlu0 %1468 }
 0xb4e   :  { %11336 = vrcp.f32 %v1469_v7 }
 0xb51   :  { %v11036_v8 = vpop.permute.xlu0 %11035 }
 0xb52   :  { %v11038_v9 = vunpack.i.h.bf16 %v11036_v8  ;;  %v11037_v10 = vunpack.i.l.bf16 %v11036_v8 }
 0xb54   :  { %v10580_v11 = vpack.c.bf16 %v11038_v9, %v11037_v10  ;;  %v11335_v12 = vpop.eup %11334 }
 0xb55   :  { %v1476_v15 = vmul.f32 %v11335_v12, %v11331_v2 }
 0xb56   :  { %10582 = vmatprep.subr.msk.bf16.mxu0 %vm11902_vm10, %v10580_v11 }
 0xb58   :  { %v11337_v13 = vpop.eup %11336 }
 0xb59   :  { %v1475_v14 = vmul.f32 %v11337_v13, %v11333_v4 }
 0xb5b   :  { %9947 = vmatprep.mubr.msk.f32.mxu0 %vm405_vm11, %v1475_v14 }
 0xb5c   :  { %9948 = vmatmul.mubr.msk.f32.vlgmr.msra.gmra.mrb[8].mxu0 %vm405_vm11, %v1476_v15 }
 0xb5d   :  { %10585 = vmatpush3.bf16.xpose.msk.msra.mxu0 %vm11902_vm10, %v10580_v11  ;;  %9954 = vmatprep.mubr.msk.f32.mxu0 %vm317_vm9, %v1565_v26 }
 0xb64   :  { %9955 = vmatmul.mubr.msk.f32.vlgmr.msra.gmra.mrb[10].mxu0 %vm317_vm9, %v1567_v27 }
 0xc2f   :  { %v12086_v28 = vpop.f32.mrb[8].mxu0 }
 0xc30   :  { %v12088_v29 = vpop.f32.mrb[9].mxu0 }
 0xc37   :  { %v9956_v30 = vpop.f32.mrb[10].mxu0 }
 0xc38   :  { %v1656_v31 = vmul.f32 0.35355338, %v9956_v30  ;;  %v1646_v33 = vpop.f32.mrb[11].mxu0 }
 0xc39   :  { %v1655_v34 = vmul.f32 0.35355338, %v1646_v33 }
 0xc3a   :  { %v1658_v35 = vadd.f32 %v1656_v31, %v12031_v24 }
 0xc3b   :  { %v1657_v36 = vadd.f32 %v1655_v34, %v12036_v0 }
 0xc3c   :  { %v1662_v37 = vsel %vm405_vm11, %v1658_v35, -inf }
 0xc3d   :  { %1663 = vmax.xlane.f32.xlu0 %v1662_v37  ;;  %v1659_v38 = vsel %vm405_vm11, %v1657_v36, -inf }
 0xc3e   :  { %1660 = vmax.xlane.f32.xlu1 %v1659_v38 }
 0xc4f   :  { %11040 = vrot.lane.b32.xlu1 %v12010_v52, %s13756_s28  ;;  %s13767_s28 = smov 112  }
 0xc53   :  { %1768 = vrot.lane.b32.xlu1 %v12006_v51, %s13757_s0 }
 0xc57   :  { %1770 = vrot.lane.b32.xlu1 %v12002_v49, %s13757_s0 }
 0xcca   :  { %v1664_v39 = vpop.xlane.xlu0 %1663 }
 0xccb   :  { %v1666_v40 = vsub.f32 %v1658_v35, %v1664_v39  ;;  %v1661_v46 = vpop.xlane.xlu1 %1660 }
 0xccc   :  { %v1665_v41 = vsub.f32 %v1657_v36, %v1661_v46 }
 0xccd   :  { %v1669_v45 = vmul.f32 1.442695, %v1666_v40 }
 0xcce   :  { %v1667_v47 = vmul.f32 1.442695, %v1665_v41 }
 0xccf   :  { %11338 = vpow2.f32 %v1669_v45  ;;  %v11041_v48 = vpop.permute.xlu1 %11040 }
 0xcd0   :  { %v11043_v25 = vunpack.i.h.bf16 %v11041_v48  ;;  %v11042_v53 = vunpack.i.l.bf16 %v11041_v48  ;;  %11340 = vpow2.f32 %v1667_v47 }
 0xcd2   :  { %v10586_v54 = vpack.c.bf16 %v11043_v25, %v11042_v53 }
 0xcd3   :  { %v1769_v2 = vpop.permute.xlu1 %1768 }
 0xcd4   :  { %10587 = vmatprep.subr.bf16.mxu1 %v10586_v54 }
 0xcd5   :  { %10589 = vmatpush3.bf16.msra.mxu1 %v10586_v54 }
 0xcd7   :  { %v1771_v3 = vpop.permute.xlu1 %1770 }
 0xcd9   :  { %v11339_v22 = vpop.eup %11338 }
 0xcda   :  { %v1674_v51 = vsel %vm405_vm11, %v11339_v22, 0.0  ;;  %v11341_v55 = vpop.eup %11340 }
 0xcdb   :  { %1675 = vadd.xlane.f32.xlu0 %v1674_v51  ;;  %v1671_v49 = vsel %vm405_vm11, %v11341_v55, 0.0 }
 0xcdf   :  { %1672 = vadd.xlane.f32.xlu0 %v1671_v49 }
 0xcf5   :  { %11045 = vrot.lane.b32.xlu0 %v12010_v52, %s13758_s2 }
 0xd68   :  { %v1676_v56 = vpop.xlane.xlu0 %1675 }
 0xd69   :  { %11342 = vrcp.f32 %v1676_v56 }
 0xd6c   :  { %v1673_v43 = vpop.xlane.xlu0 %1672 }
 0xd6d   :  { %11344 = vrcp.f32 %v1673_v43 }
 0xd70   :  { %v11046_v20 = vpop.permute.xlu0 %11045 }
 0xd71   :  { %v11048_v44 = vunpack.i.h.bf16 %v11046_v20  ;;  %v11047_v57 = vunpack.i.l.bf16 %v11046_v20 }
 0xd73   :  { %v10590_v58 = vpack.c.bf16 %v11048_v44, %v11047_v57  ;;  %v11343_v61 = vpop.eup %11342  ;;  %v11642_v57 = vld [vmem:[%s13747_s9] sm:$0xff] }
 0xd74   :  { %v1680_v1 = vmul.f32 %v11343_v61, %v11339_v22  ;;  %v11643_v61 = vld [vmem:[%s13747_s9 + $0x8] sm:$0xff] }
 0xd75   :  { %10592 = vmatprep.subr.msk.bf16.mxu1 %vm11902_vm10, %v10590_v58 }
 0xd77   :  { %v11345_v62 = vpop.eup %11344 }
 0xd78   :  { %v1679_v63 = vmul.f32 %v11345_v62, %v11341_v55 }
 0xd7a   :  { %9961 = vmatprep.mubr.msk.f32.mxu1 %vm405_vm11, %v1679_v63 }
 0xd7b   :  { %9962 = vmatmul.mubr.msk.f32.vlgmr.msra.gmra.mrb[18].mxu1 %vm405_vm11, %v1680_v1 }
 0xd7c   :  { %10595 = vmatpush3.bf16.xpose.msk.msra.mxu1 %vm11902_vm10, %v10590_v58  ;;  %9968 = vmatprep.mubr.msk.f32.mxu1 %vm317_vm9, %v1769_v2 }
 0xd83   :  { %9969 = vmatmul.mubr.msk.f32.vlgmr.msra.gmra.mrb[20].mxu1 %vm317_vm9, %v1771_v3 }
 0xe4e   :  { %v9963_v4 = vpop.f32.mrb[18].mxu1 }
 0xe4f   :  { %v1759_v5 = vpop.f32.mrb[19].mxu1 }
 0xe56   :  { %v9970_v6 = vpop.f32.mrb[20].mxu1 }
 0xe57   :  { %v1860_v7 = vmul.f32 0.35355338, %v9970_v6  ;;  %v1850_v8 = vpop.f32.mrb[21].mxu1 }
 0xe58   :  { %v1859_v9 = vmul.f32 0.35355338, %v1850_v8 }
 0xe59   :  { %v1862_v10 = vadd.f32 %v1860_v7, %v12031_v24 }
 0xe5a   :  { %v1861_v11 = vadd.f32 %v1859_v9, %v12036_v0 }
 0xe5b   :  { %v1866_v12 = vsel %vm405_vm11, %v1862_v10, -inf }
 0xe5c   :  { %1867 = vmax.xlane.f32.xlu0 %v1866_v12  ;;  %v1863_v13 = vsel %vm405_vm11, %v1861_v11, -inf }
 0xe5d   :  { %1864 = vmax.xlane.f32.xlu1 %v1863_v13 }
 0xe6e   :  { %11050 = vrot.lane.b32.xlu1 %v12010_v52, %s13759_s7  ;;  %s13762_s7 = smov 16  }
 0xe72   :  { %1131 = vrot.lane.b32.xlu1 %v11984_v18, %s13716_s12 }
 0xe76   :  { %1137 = vrot.lane.b32.xlu1 %v11990_v23, %s13711_s5 }
 0xe7a   :  { %1139 = vrot.lane.b32.xlu1 %v11988_v21, %s13711_s5 }
 0xe7e   :  { %1147 = vrot.lane.b32.xlu1 %v12024_v59, %s13713_s6  ;;  %s13760_s6 = sld [smem:[#allocation8_spill]] }
 0xe82   :  { %1976 = vrot.lane.b32.xlu1 %v12086_v28, %s13716_s12 }
 0xe84   :  { %v2002_v33 = vld [vmem:[%s13760_s6] sm:$0xff]  ;;  %v2003_v34 = vld [vmem:[%s13760_s6 + $0x8] sm:$0xff]  ;;  %v2004_v46 = vld [vmem:[%s13760_s6 + $0x10] sm:$0xff] }
 0xe85   :  { %v10600_v35 = vpack.c.bf16 %v2003_v34, %v2002_v33  ;;  %v2331_v33 = vld [vmem:[%s13764_s25 + $0x18] sm:$0xff] }
 0xe86   :  { %1984 = vrot.lane.b32.xlu1 %v9963_v4, %s13711_s5  ;;  %s13770_s5 = smov 96  }
 0xee9   :  { %v1868_v52 = vpop.xlane.xlu0 %1867 }
 0xeea   :  { %v1870_v24 = vsub.f32 %v1862_v10, %v1868_v52  ;;  %v1865_v0 = vpop.xlane.xlu1 %1864 }
 0xeeb   :  { %v1869_v18 = vsub.f32 %v1861_v11, %v1865_v0 }
 0xeec   :  { %v1873_v14 = vmul.f32 1.442695, %v1870_v24 }
 0xeed   :  { %v1871_v15 = vmul.f32 1.442695, %v1869_v18 }
 0xeee   :  { %11346 = vpow2.f32 %v1873_v14  ;;  %v11051_v23 = vpop.permute.xlu1 %11050 }
 0xeef   :  { %v11053_v26 = vunpack.i.h.bf16 %v11051_v23  ;;  %v11052_v27 = vunpack.i.l.bf16 %v11051_v23  ;;  %11348 = vpow2.f32 %v1871_v15 }
 0xef1   :  { %v10596_v21 = vpack.c.bf16 %v11053_v26, %v11052_v27 }
 0xef2   :  { %v1132_v37 = vpop.permute.xlu1 %1131 }
 0xef3   :  { %10597 = vmatprep.subr.bf16.mxu0 %v10596_v21 }
 0xef4   :  { %10599 = vmatpush3.bf16.msra.mxu0 %v10596_v21 }
 0xef5   :  { %10601 = vmatprep.subr.bf16.mxu0 %v10600_v35 }
 0xef6   :  { %v1138_v39 = vpop.permute.xlu1 %1137 }
 0xef8   :  { %v11347_v59 = vpop.eup %11346 }
 0xef9   :  { %v1878_v30 = vsel %vm405_vm11, %v11347_v59, 0.0  ;;  %v11349_v28 = vpop.eup %11348 }
 0xefa   :  { %1879 = vadd.xlane.f32.xlu0 %v1878_v30  ;;  %v1875_v31 = vsel %vm405_vm11, %v11349_v28, 0.0  ;;  %v1140_v48 = vpop.permute.xlu1 %1139  ;;  %v2329_v30 = vld [vmem:[%s13764_s25 + $0x8] sm:$0xff] }
 0xefe   :  { %1876 = vadd.xlane.f32.xlu0 %v1875_v31  ;;  %v1148_v51 = vpop.permute.xlu1 %1147  ;;  %v2330_v31 = vld [vmem:[%s13764_s25 + $0x10] sm:$0xff] }
 0xeff   :  { %v10620_v34 = vpack.c.bf16 %v2331_v33, %v2330_v31 }
 0xf02   :  { %v1977_v4 = vpop.permute.xlu1 %1976 }
 0xf03   :  { %v1997_v10 = vsel %vm317_vm9, %v12060_v50, %v1977_v4 }
 0xf06   :  { %v1985_v6 = vpop.permute.xlu1 %1984 }
 0xf07   :  { %v1999_v13 = vsel %vm405_vm11, %v1997_v10, %v1985_v6 }
 0xf14   :  { %1129 = vrot.lane.b32.xlu0 %v11986_v19, %s13716_s12 }
 0xf18   :  { %1145 = vrot.lane.b32.xlu0 %v12026_v60, %s13761_s24  ;;  %v2005_v60 = vld [vmem:[%s13760_s6 + $0x18] sm:$0xff]  ;;  %s13772_s6 = sld [smem:[#allocation17_spill]] }
 0xf19   :  { %v10604_v53 = vpack.c.bf16 %v2005_v60, %v2004_v46 }
 0xf1c   :  { %1974 = vrot.lane.b32.xlu0 %v12088_v29, %s13716_s12  ;;  %s13763_s12 = sld [smem:[#allocation9_spill]] }
 0xf20   :  { %1982 = vrot.lane.b32.xlu0 %v1759_v5, %s13762_s7 }
 0xf22   :  { %v12170_v58 = vld [vmem:[%s13763_s12] ss:$0 sm:$0xff]  ;;  %s13773_s12 = sld [smem:[#allocation3_spill]] }
 0xf87   :  { %v1880_v36 = vpop.xlane.xlu0 %1879 }
 0xf88   :  { %11350 = vrcp.f32 %v1880_v36  ;;  %v88_v36 = vld [vmem:[%s13765_s30 + $0x8] sm:$0xff] }
 0xf8b   :  { %v1877_v19 = vpop.xlane.xlu0 %1876 }
 0xf8c   :  { %11352 = vrcp.f32 %v1877_v19  ;;  %v2220_v19 = vld [vmem:[%s13766_s23] sm:$0xff] }
 0xf8f   :  { %v1130_v38 = vpop.permute.xlu0 %1129 }
 0xf90   :  { %v1151_v29 = vsel %vm317_vm9, %v11982_v17, %v1130_v38  ;;  %v1152_v17 = vsel %vm317_vm9, %v11980_v16, %v1132_v37  ;;  %v2221_v37 = vld [vmem:[%s13766_s23 + $0x8] sm:$0xff]  ;;  %v2222_v38 = vld [vmem:[%s13766_s23 + $0x10] sm:$0xff] }
 0xf91   :  { %v1153_v54 = vsel %vm405_vm11, %v1151_v29, %v1138_v39  ;;  %v1154_v55 = vsel %vm405_vm11, %v1152_v17, %v1140_v48  ;;  %v2223_v39 = vld [vmem:[%s13766_s23 + $0x18] sm:$0xff] }
 0xf92   :  { %v11351_v40 = vpop.eup %11350  ;;  %v1157_v49 = vsel %vm1155_vm12, %v1154_v55, %v1148_v51  ;;  %v10612_v46 = vpack.c.bf16 %v2223_v39, %v2222_v38  ;;  %v11644_v48 = vld [vmem:[%s13747_s9 + $0x18] sm:$0xff] }
 0xf93   :  { %v1146_v45 = vpop.permute.xlu0 %1145  ;;  %v1884_v25 = vmul.f32 %v11351_v40, %v11347_v59  ;;  %v2328_v59 = vld [vmem:[%s13764_s25] sm:$0xff]  ;;  %v10608_v40 = vpack.c.bf16 %v2221_v37, %v2220_v19 }
 0xf94   :  { %v1156_v22 = vsel %vm1155_vm12, %v1153_v54, %v1146_v45  ;;  %v11645_v54 = vld [vmem:[%s13747_s9 + $0x10] sm:$0xff]  ;;  %v12305_v19 = vld [vmem:[%s13665_s13] ss:$0 sm:$0xff] }
 0xf95   :  { %10609 = vmatprep.subr.bf16.mxu1 %v10608_v40 }
 0xf96   :  { %v11353_v41 = vpop.eup %11352  ;;  %10611 = vmatpush3.bf16.msra.mxu1 %v10608_v40 }
 0xf97   :  { %v1883_v47 = vmul.f32 %v11353_v41, %v11349_v28  ;;  %v1975_v5 = vpop.permute.xlu0 %1974  ;;  %v10616_v28 = vpack.c.bf16 %v2329_v30, %v2328_v59  ;;  %10613 = vmatprep.subr.bf16.mxu1 %v10612_v46 }
 0xf98   :  { %v1996_v8 = vsel %vm317_vm9, %v12062_v42, %v1975_v5  ;;  %v12258_v5 = vld [vmem:[%s13662_s10] ss:$0 sm:$0xff] }
 0xf99   :  { %9975 = vmatprep.mubr.msk.f32.mxu0 %vm405_vm11, %v1883_v47 }
 0xf9a   :  { %9976 = vmatmul.mubr.msk.f32.vlgmr.msra.gmra.mrb[12].mxu0 %vm405_vm11, %v1884_v25  ;;  %10615 = vmatpush3.bf16.msra.mxu1 %v10612_v46 }
 0xf9b   :  { %10603 = vmatpush3.bf16.msra.mxu0 %v10600_v35  ;;  %9986 = vmatprep.mubr.msk.f32.mxu0 %vm101_vm0, %v1156_v22  ;;  %v1983_v7 = vpop.permute.xlu0 %1982  ;;  %v87_v35 = vld [vmem:[%s13765_s30] sm:$0xff] }
 0xf9c   :  { %10605 = vmatprep.subr.bf16.mxu0 %v10604_v53  ;;  %v1998_v11 = vsel %vm405_vm11, %v1996_v8, %v1983_v7  ;;  %v12265_v8 = vld [vmem:[%s13663_s11] ss:$0 sm:$0xff] }
 0xf9f   :  { %10607 = vmatpush3.bf16.msra.mxu0 %v10604_v53 }
 0xfa0   :  { %10617 = vmatprep.subr.bf16.mxu0 %v10616_v28 }
 0xfa2   :  { %9987 = vmatmul.mubr.msk.f32.vlgmr.msra.gmra.mrb[14].mxu0 %vm101_vm0, %v1157_v49 }
 0xfa3   :  { %10619 = vmatpush3.bf16.msra.mxu0 %v10616_v28 }
 0xfa4   :  { %10621 = vmatprep.subr.bf16.mxu0 %v10620_v34 }
 0xfa7   :  { %10623 = vmatpush3.bf16.msra.mxu0 %v10620_v34 }
0x106d   :  { %v9977_v56 = vpop.f32.mrb[12].mxu0 }
0x106e   :  { %1992 = vrot.lane.b32.xlu1 %v9977_v56, %s13761_s24  ;;  %v1963_v43 = vpop.f32.mrb[13].mxu0 }
0x106f   :  { %1990 = vrot.lane.b32.xlu0 %v1963_v43, %s13761_s24 }
0x1075   :  { %v9988_v20 = vpop.f32.mrb[14].mxu0 }
0x1076   :  { %v2084_v44 = vpop.f32.mrb[15].mxu0  ;;  %v2104_v62 = vadd.f32 %v11643_v61, %v9988_v20 }
0x1077   :  { %v2103_v16 = vadd.f32 %v11642_v57, %v2084_v44 }
0x1078   :  { %v12179_v1 = vadd.f32 %v12170_v58, %v2104_v62 }
0x1079   :  { %v12176_v63 = vadd.f32 %v12170_v58, %v2103_v16 }
0x107a   :  { %v2123_v3 = vsel %vm101_vm0, %v12179_v1, 0.0 }
0x107b   :  { %v2120_v2 = vsel %vm101_vm0, %v12176_v63, 0.0 }
0x108e   :  { %2121 = vadd.xlane.f32.xlu0 %v2120_v2 }
0x1092   :  { %2124 = vadd.xlane.f32.xlu1 %v2123_v3 }
0x10e0   :  { %v1993_v9 = vpop.permute.xlu1 %1992 }
0x10e1   :  { %v1991_v12 = vpop.permute.xlu0 %1990  ;;  %v2001_v24 = vsel %vm1155_vm12, %v1999_v13, %v1993_v9 }
0x10e2   :  { %v2000_v52 = vsel %vm1155_vm12, %v1998_v11, %v1991_v12 }
0x10e3   :  { %9989 = vmatprep.mubr.msk.f32.mxu0 %vm101_vm0, %v2000_v52 }
0x10e4   :  { %9990 = vmatmul.mubr.msk.f32.gmra.mrb[16].mxu0 %vm101_vm0, %v2001_v24  ;;  %v12276_v24 = vld [vmem:[%s13664_s15] ss:$0 sm:$0xff] }
0x10e5   :  { %10014 = vmatprep.mubr.msk.f32.mxu0 %vm101_vm0, %v87_v35  ;;  %v89_v35 = vld [vmem:[%s13765_s30 + $0x10] sm:$0xff] }
0x10e8   :  { %10015 = vmatmul.mubr.msk.f32.vlgmr.msra.gmra.mrb[18].mxu0 %vm101_vm0, %v88_v36  ;;  %v90_v36 = vld [vmem:[%s13765_s30 + $0x18] sm:$0xff] }
0x10e9   :  { %10017 = vmatprep.mubr.msk.f32.mxu0 %vm101_vm0, %v89_v35 }
0x10ec   :  { %10018 = vmatmul.mubr.msk.f32.gmra.mrb[20].mxu0 %vm101_vm0, %v90_v36 }
0x111b   :  { %v2122_v0 = vpop.xlane.xlu0 %2121 }
0x111c   :  { %v2132_v18 = vmul.f32 0.03125, %v2122_v0 }
0x111e   :  { %v12196_v42 = vsub.f32 %v12176_v63, %v2132_v18 }
0x111f   :  { %v2125_v14 = vpop.xlane.xlu1 %2124 }
0x1120   :  { %v2133_v50 = vmul.f32 0.03125, %v2125_v14  ;;  %v2140_v15 = vmul.f32 %v12196_v42, %v12196_v42  ;;  %v2194_v6 = vmul.f32 %v12258_v5, %v12196_v42 }
0x1122   :  { %v12201_v23 = vsub.f32 %v12179_v1, %v2133_v50  ;;  %v2144_v26 = vsel %vm101_vm0, %v2140_v15, 0.0 }
0x1123   :  { %2145 = vadd.xlane.f32.xlu0 %v2144_v26 }
0x1124   :  { %v2141_v27 = vmul.f32 %v12201_v23, %v12201_v23  ;;  %v2195_v10 = vmul.f32 %v12258_v5, %v12201_v23 }
0x1126   :  { %v2147_v21 = vsel %vm101_vm0, %v2141_v27, 0.0 }
0x1127   :  { %2148 = vadd.xlane.f32.xlu0 %v2147_v21 }
0x11b0   :  { %v2146_v60 = vpop.xlane.xlu0 %2145 }
0x11b1   :  { %v2156_v41 = vmul.f32 0.032258064, %v2146_v60 }
0x11b3   :  { %11354 = vrsqrt.f32 %v2156_v41  ;;  %vm2162_vm13 = vcmp.eq.f32.partialorder %v2156_v41, inf  ;;  %v2165_v20 = vand.u32 2147483648, %v2156_v41  ;;  %vm2164_vm14 = vcmp.eq.f32.partialorder %v2156_v41, 0.0 }
0x11b4   :  { %v2149_v29 = vpop.xlane.xlu0 %2148 }
0x11b5   :  { %v2157_v45 = vmul.f32 0.032258064, %v2149_v29 }
0x11b7   :  { %11356 = vrsqrt.f32 %v2157_v45  ;;  %v9991_v47 = vpop.f32.mrb[16].mxu0  ;;  %vm2169_vm15 = vcmp.eq.f32.partialorder %v2157_v45, inf  ;;  %vm2171_vm1 = vcmp.eq.f32.partialorder %v2157_v45, 0.0 }
0x11b8   :  { %v2106_v25 = vadd.f32 %v11644_v48, %v9991_v47  ;;  %v2094_v53 = vpop.f32.mrb[17].mxu0 }
0x11b9   :  { %v2105_v22 = vadd.f32 %v11645_v54, %v2094_v53 }
0x11ba   :  { %v12246_v51 = vadd.f32 %v12170_v58, %v2106_v25 }
0x11bb   :  { %v12249_v17 = vadd.f32 %v12170_v58, %v2105_v22  ;;  %v2172_v58 = vand.u32 2147483648, %v2157_v45  ;;  %v10016_v0 = vpop.f32.mrb[18].mxu0 }
0x11bc   :  { %v2129_v55 = vsel %vm101_vm0, %v12246_v51, 0.0  ;;  %v2423_v18 = vadd.f32 %v10016_v0, %v12276_v24  ;;  %v2417_v42 = vpop.f32.mrb[19].mxu0 }
0x11bd   :  { %v11355_v49 = vpop.eup %11354  ;;  %2130 = vadd.xlane.f32.xlu1 %v2129_v55  ;;  %v2126_v56 = vsel %vm101_vm0, %v12249_v17, 0.0  ;;  %v2418_v14 = vadd.f32 %v12276_v24, %v2417_v42 }
0x11be   :  { %v2161_v43 = vmul.f32 %v11355_v49, %v2156_v41  ;;  %2127 = vadd.xlane.f32.xlu0 %v2126_v56 }
0x11bf   :  { %v12280_v50 = vpack.i.bf16 %v2423_v18, %v2418_v14  ;;  %v10624_v15 = vpack.c.bf16 %v2423_v18, %v2418_v14  ;;  %v10019_v18 = vpop.f32.mrb[20].mxu0 }
0x11c0   :  { %v2163_v44 = vsel %vm2162_vm13, %v2156_v41, %v2161_v43  ;;  %v2427_v42 = vpop.f32.mrb[21].mxu0  ;;  %v2433_v14 = vadd.f32 %v10019_v18, %v12276_v24 }
0x11c1   :  { %v11357_v57 = vpop.eup %11356  ;;  %v2166_v16 = vsel %vm2164_vm14, %v2165_v20, %v2163_v44  ;;  %10626 = vmatprep.subr.msk.bf16.mxu1 %vm11902_vm10, %v10624_v15  ;;  %vm4458_vm14 = vcmask 523264  }
0x11c2   :  { %v2168_v61 = vmul.f32 %v11357_v57, %v2157_v45  ;;  %v2198_v62 = vadd.f32 1e-06, %v2166_v16 }
0x11c4   :  { %v2170_v2 = vsel %vm2169_vm15, %v2157_v45, %v2168_v61  ;;  %11358 = vrcp.f32 %v2198_v62 }
0x11c5   :  { %v2173_v3 = vsel %vm2171_vm1, %v2172_v58, %v2170_v2 }
0x11c6   :  { %v2199_v4 = vadd.f32 1e-06, %v2173_v3 }
0x11c8   :  { %11360 = vrcp.f32 %v2199_v4 }
0x11ce   :  { %v11359_v7 = vpop.eup %11358 }
0x11cf   :  { %v2206_v9 = vmul.f32 %v11359_v7, %v2194_v6 }
0x11d1   :  { %v2216_v11 = vadd.f32 %v12265_v8, %v2206_v9 }
0x11d2   :  { %v11361_v12 = vpop.eup %11360 }
0x11d3   :  { %10000 = vmatprep.mubr.msk.f32.mxu1 %vm101_vm0, %v2216_v11  ;;  %v2207_v13 = vmul.f32 %v11361_v12, %v2195_v10 }
0x11d5   :  { %v2217_v52 = vadd.f32 %v12265_v8, %v2207_v13 }
0x11d7   :  { %10001 = vmatmul.mubr.msk.f32.vlgmr.msra.gmra.mrb[22].mxu1 %vm101_vm0, %v2217_v52 }
0x11d8   :  { %10629 = vmatpush3.bf16.xpose.msk.msra.mxu1 %vm11902_vm10, %v10624_v15  ;;  %v2428_v15 = vadd.f32 %v12276_v24, %v2427_v42  ;;  %v12361_v24 = vld [vmem:[%s13666_s3] sm:$0xff] }
0x124a   :  { %v2131_v23 = vpop.xlane.xlu1 %2130 }
0x124b   :  { %v2135_v26 = vmul.f32 0.03125, %v2131_v23  ;;  %v2128_v27 = vpop.xlane.xlu0 %2127  ;;  %v12345_v23 = vpack.i.bf16 %v2433_v14, %v2428_v15 }
0x124c   :  { %v2134_v21 = vmul.f32 0.03125, %v2128_v27 }
0x124d   :  { %v2139_v59 = vsub.f32 %v12246_v51, %v2135_v26  ;;  %v12347_v26 = vpack.c.bf16 %v2433_v14, %v2428_v15 }
0x124e   :  { %v2138_v30 = vsub.f32 %v12249_v17, %v2134_v21 }
0x124f   :  { %v2143_v28 = vmul.f32 %v2139_v59, %v2139_v59  ;;  %v2197_v4 = vmul.f32 %v12258_v5, %v2139_v59 }
0x1250   :  { %v2142_v31 = vmul.f32 %v2138_v30, %v2138_v30  ;;  %v2196_v7 = vmul.f32 %v12258_v5, %v2138_v30  ;;  %v12356_v30 = vld [vmem:[%s13666_s3 + $0x8] sm:$0xff] }
0x1251   :  { %v2153_v33 = vsel %vm101_vm0, %v2143_v28, 0.0 }
0x1252   :  { %2154 = vadd.xlane.f32.xlu1 %v2153_v33  ;;  %v2150_v34 = vsel %vm101_vm0, %v2142_v31, 0.0 }
0x1253   :  { %2151 = vadd.xlane.f32.xlu0 %v2150_v34 }
0x1263   :  { %11060 = vrot.lane.b32.xlu1 %v12280_v50, %s13767_s28 }
0x1269   :  { %11055 = vrot.lane.b32.xlu0 %v12280_v50, %s13768_s4 }
0x12aa   :  { %v10002_v37 = vpop.f32.mrb[22].mxu1 }
0x12ab   :  { %v2309_v38 = vpop.f32.mrb[23].mxu1  ;;  %v12315_v40 = vadd.f32 %v10002_v37, %v12305_v19 }
0x12ac   :  { %v12308_v39 = vadd.f32 %v12305_v19, %v2309_v38 }
0x12ae   :  { %2636 = vrot.lane.b32.xlu1 %v12308_v39, %s13768_s4  ;;  %2840 = vrot.lane.b32.xlu0 %v12308_v39, %s13767_s28 }
0x12b2   :  { %2638 = vrot.lane.b32.xlu1 %v12315_v40, %s13768_s4 }
0x12b6   :  { %2842 = vrot.lane.b32.xlu1 %v12315_v40, %s13767_s28 }
0x12df   :  { %v2155_v46 = vpop.xlane.xlu1 %2154 }
0x12e0   :  { %v2159_v60 = vmul.f32 0.032258064, %v2155_v46  ;;  %v2152_v41 = vpop.xlane.xlu0 %2151 }
0x12e1   :  { %v2158_v29 = vmul.f32 0.032258064, %v2152_v41 }
0x12e2   :  { %11362 = vrsqrt.f32 %v2159_v60  ;;  %vm2183_vm2 = vcmp.eq.f32.partialorder %v2159_v60, inf  ;;  %v2186_v20 = vand.u32 2147483648, %v2159_v60  ;;  %vm2185_vm3 = vcmp.eq.f32.partialorder %v2159_v60, 0.0 }
0x12e3   :  { %11364 = vrsqrt.f32 %v2158_v29  ;;  %v11061_v45 = vpop.permute.xlu1 %11060  ;;  %vm2176_vm4 = vcmp.eq.f32.partialorder %v2158_v29, inf  ;;  %v2179_v16 = vand.u32 2147483648, %v2158_v29  ;;  %vm2178_vm5 = vcmp.eq.f32.partialorder %v2158_v29, 0.0 }
0x12e4   :  { %v11056_v47 = vpop.permute.xlu0 %11055  ;;  %v11063_v48 = vunpack.i.h.bf16 %v11061_v45  ;;  %v11062_v25 = vunpack.i.l.bf16 %v11061_v45 }
0x12e5   :  { %v11058_v53 = vunpack.i.h.bf16 %v11056_v47  ;;  %v11057_v54 = vunpack.i.l.bf16 %v11056_v47 }
0x12e6   :  { %v10644_v55 = vpack.c.bf16 %v11063_v48, %v11062_v25 }
0x12e7   :  { %v10634_v22 = vpack.c.bf16 %v11058_v53, %v11057_v54 }
0x12e9   :  { %10636 = vmatprep.subr.msk.bf16.mxu0 %vm11902_vm10, %v10634_v22 }
0x12ea   :  { %10639 = vmatpush3.bf16.xpose.msk.msra.mxu0 %vm11902_vm10, %v10634_v22 }
0x12eb   :  { %10646 = vmatprep.subr.msk.bf16.mxu0 %vm11902_vm10, %v10644_v55 }
0x12ec   :  { %v11363_v49 = vpop.eup %11362 }
0x12ed   :  { %v11365_v56 = vpop.eup %11364  ;;  %v2182_v43 = vmul.f32 %v11363_v49, %v2159_v60 }
0x12ee   :  { %v2175_v44 = vmul.f32 %v11365_v56, %v2158_v29 }
0x12ef   :  { %v2184_v57 = vsel %vm2183_vm2, %v2159_v60, %v2182_v43 }
0x12f0   :  { %v2177_v61 = vsel %vm2176_vm4, %v2158_v29, %v2175_v44  ;;  %v2187_v62 = vsel %vm2185_vm3, %v2186_v20, %v2184_v57 }
0x12f1   :  { %v2180_v58 = vsel %vm2178_vm5, %v2179_v16, %v2177_v61  ;;  %v2201_v2 = vadd.f32 1e-06, %v2187_v62 }
0x12f2   :  { %v2200_v3 = vadd.f32 1e-06, %v2180_v58 }
0x12f3   :  { %11366 = vrcp.f32 %v2201_v2 }
0x12f4   :  { %11368 = vrcp.f32 %v2200_v3 }
0x12fd   :  { %v11367_v6 = vpop.eup %11366 }
0x12fe   :  { %v11369_v9 = vpop.eup %11368  ;;  %v2209_v10 = vmul.f32 %v11367_v6, %v2197_v4 }
0x12ff   :  { %v2208_v11 = vmul.f32 %v11369_v9, %v2196_v7 }
0x1300   :  { %v2219_v13 = vadd.f32 %v12265_v8, %v2209_v10 }
0x1301   :  { %v2218_v12 = vadd.f32 %v12265_v8, %v2208_v11 }
0x1303   :  { %10003 = vmatprep.mubr.msk.f32.mxu1 %vm101_vm0, %v2218_v12 }
0x1304   :  { %10004 = vmatmul.mubr.msk.f32.gmra.mrb[24].mxu1 %vm101_vm0, %v2219_v13 }
0x1305   :  { %10024 = vmatprep.mubr.msk.f32.mxu1 %vm317_vm9, %v12308_v39 }
0x1308   :  { %10025 = vmatmul.mubr.msk.f32.vlgmr.msra.gmra.mrb[26].mxu1 %vm317_vm9, %v12315_v40 }
0x1320   :  { %v2637_v52 = vpop.permute.xlu1 %2636  ;;  %v2841_v0 = vpop.permute.xlu0 %2840 }
0x1321   :  { %10038 = vmatprep.mubr.msk.f32.mxu0 %vm317_vm9, %v2637_v52 }
0x1324   :  { %v2639_v5 = vpop.permute.xlu1 %2638 }
0x1325   :  { %10039 = vmatmul.mubr.msk.f32.vlgmr.msra.gmra.mrb[22].mxu0 %vm317_vm9, %v2639_v5 }
0x1326   :  { %10649 = vmatpush3.bf16.xpose.msk.msra.mxu0 %vm11902_vm10, %v10644_v55  ;;  %10052 = vmatprep.mubr.msk.f32.mxu0 %vm317_vm9, %v2841_v0 }
0x1328   :  { %v2843_v8 = vpop.permute.xlu1 %2842 }
0x132d   :  { %10053 = vmatmul.mubr.msk.f32.vlgmr.msra.gmra.mrb[24].mxu0 %vm317_vm9, %v2843_v8 }
0x13d7   :  { %v12349_v27 = vpop.f32.mrb[24].mxu1 }
0x13d8   :  { %v12351_v21 = vpop.f32.mrb[25].mxu1 }
0x13db   :  { %v10026_v59 = vpop.f32.mrb[26].mxu1 }
0x13dc   :  { %v2524_v28 = vmul.f32 0.35355338, %v10026_v59  ;;  %v2514_v31 = vpop.f32.mrb[27].mxu1 }
0x13dd   :  { %v2523_v33 = vmul.f32 0.35355338, %v2514_v31 }
0x13de   :  { %v2526_v34 = vadd.f32 %v2524_v28, %v12356_v30 }
0x13df   :  { %v2525_v35 = vadd.f32 %v2523_v33, %v12361_v24 }
0x13e0   :  { %v2530_v36 = vsel %vm405_vm11, %v2526_v34, -inf }
0x13e1   :  { %2531 = vmax.xlane.f32.xlu1 %v2530_v36  ;;  %v2527_v37 = vsel %vm405_vm11, %v2525_v35, -inf }
0x13e2   :  { %2528 = vmax.xlane.f32.xlu0 %v2527_v37 }
0x13f8   :  { %v10040_v38 = vpop.f32.mrb[22].mxu0 }
0x13f9   :  { %v2718_v46 = vpop.f32.mrb[23].mxu0  ;;  %v2728_v60 = vmul.f32 0.35355338, %v10040_v38 }
0x13fa   :  { %v2727_v41 = vmul.f32 0.35355338, %v2718_v46 }
0x13fb   :  { %v2730_v47 = vadd.f32 %v2728_v60, %v12356_v30 }
0x13fc   :  { %v2729_v29 = vadd.f32 %v2727_v41, %v12361_v24 }
0x13fd   :  { %v2734_v22 = vsel %vm405_vm11, %v2730_v47, -inf }
0x13fe   :  { %v2731_v45 = vsel %vm405_vm11, %v2729_v29, -inf }
0x13ff   :  { %2732 = vmax.xlane.f32.xlu0 %v2731_v45 }
0x1400   :  { %v10054_v48 = vpop.f32.mrb[24].mxu0 }
0x1401   :  { %v2932_v25 = vmul.f32 0.35355338, %v10054_v48  ;;  %v2922_v53 = vpop.f32.mrb[25].mxu0 }
0x1402   :  { %v2931_v54 = vmul.f32 0.35355338, %v2922_v53 }
0x1403   :  { %v2934_v55 = vadd.f32 %v2932_v25, %v12356_v30  ;;  %2735 = vmax.xlane.f32.xlu0 %v2734_v22 }
0x1404   :  { %v2933_v49 = vadd.f32 %v2931_v54, %v12361_v24 }
0x1405   :  { %v2938_v56 = vsel %vm405_vm11, %v2934_v55, -inf }
0x1406   :  { %2939 = vmax.xlane.f32.xlu1 %v2938_v56  ;;  %v2935_v43 = vsel %vm405_vm11, %v2933_v49, -inf }
0x1407   :  { %2936 = vmax.xlane.f32.xlu0 %v2935_v43 }
0x146e   :  { %v2532_v20 = vpop.xlane.xlu1 %2531 }
0x146f   :  { %v2534_v44 = vsub.f32 %v2526_v34, %v2532_v20  ;;  %v2529_v57 = vpop.xlane.xlu0 %2528 }
0x1470   :  { %v2533_v16 = vsub.f32 %v2525_v35, %v2529_v57 }
0x1471   :  { %v2537_v61 = vmul.f32 1.442695, %v2534_v44 }
0x1472   :  { %v2535_v62 = vmul.f32 1.442695, %v2533_v16 }
0x1473   :  { %11370 = vpow2.f32 %v2537_v61 }
0x1474   :  { %11372 = vpow2.f32 %v2535_v62 }
0x147d   :  { %v12375_v58 = vpop.eup %11370 }
0x147e   :  { %v11373_v2 = vpop.eup %11372  ;;  %v2542_v3 = vsel %vm405_vm11, %v12375_v58, 0.0 }
0x147f   :  { %2543 = vadd.xlane.f32.xlu1 %v2542_v3  ;;  %v2539_v4 = vsel %vm405_vm11, %v11373_v2, 0.0 }
0x1480   :  { %2540 = vadd.xlane.f32.xlu0 %v2539_v4 }
0x148c   :  { %v2733_v6 = vpop.xlane.xlu0 %2732 }
0x148d   :  { %v2737_v7 = vsub.f32 %v2729_v29, %v2733_v6 }
0x148f   :  { %v2739_v9 = vmul.f32 1.442695, %v2737_v7 }
0x1490   :  { %v2736_v10 = vpop.xlane.xlu0 %2735 }
0x1491   :  { %11374 = vpow2.f32 %v2739_v9  ;;  %v2738_v11 = vsub.f32 %v2730_v47, %v2736_v10 }
0x1493   :  { %v2741_v12 = vmul.f32 1.442695, %v2738_v11  ;;  %v2940_v13 = vpop.xlane.xlu1 %2939 }
0x1494   :  { %v2942_v52 = vsub.f32 %v2934_v55, %v2940_v13  ;;  %v2937_v5 = vpop.xlane.xlu0 %2936 }
0x1495   :  { %11376 = vpow2.f32 %v2741_v12  ;;  %v2941_v0 = vsub.f32 %v2933_v49, %v2937_v5 }
0x1496   :  { %v2945_v8 = vmul.f32 1.442695, %v2942_v52 }
0x1497   :  { %v2943_v18 = vmul.f32 1.442695, %v2941_v0 }
0x1498   :  { %11378 = vpow2.f32 %v2945_v8 }
0x1499   :  { %11380 = vpow2.f32 %v2943_v18 }
0x149b   :  { %v11375_v42 = vpop.eup %11374 }
0x149c   :  { %v2743_v14 = vsel %vm405_vm11, %v11375_v42, 0.0 }
0x149d   :  { %2744 = vadd.xlane.f32.xlu0 %v2743_v14 }
0x149f   :  { %v11377_v15 = vpop.eup %11376 }
0x14a0   :  { %v2746_v59 = vsel %vm405_vm11, %v11377_v15, 0.0 }
0x14a1   :  { %2747 = vadd.xlane.f32.xlu1 %v2746_v59 }
0x14a2   :  { %v12382_v28 = vpop.eup %11378 }
0x14a3   :  { %v11381_v31 = vpop.eup %11380  ;;  %v2950_v33 = vsel %vm405_vm11, %v12382_v28, 0.0 }
0x14a4   :  { %v2947_v34 = vsel %vm405_vm11, %v11381_v31, 0.0 }
0x14a5   :  { %2951 = vadd.xlane.f32.xlu1 %v2950_v33  ;;  %2948 = vadd.xlane.f32.xlu0 %v2947_v34 }
0x14b6   :  { %11070 = vrot.lane.b32.xlu1 %v12280_v50, %s13769_s26 }
0x14ba   :  { %11075 = vrot.lane.b32.xlu1 %v12280_v50, %s13755_s27 }
0x14bb   :  { %11065 = vrot.lane.b32.xlu0 %v12280_v50, %s13770_s5 }
0x14be   :  { %11080 = vrot.lane.b32.xlu1 %v12280_v50, %s13757_s0 }
0x14bf   :  { %3044 = vrot.lane.b32.xlu0 %v12308_v39, %s13757_s0 }
0x14c2   :  { %3046 = vrot.lane.b32.xlu1 %v12315_v40, %s13757_s0 }
0x150c   :  { %v2544_v38 = vpop.xlane.xlu1 %2543 }
0x150d   :  { %v2541_v35 = vpop.xlane.xlu0 %2540 }
0x150e   :  { %11382 = vrcp.f32 %v2541_v35 }
0x150f   :  { %11384 = vrcp.f32 %v2544_v38 }
0x1518   :  { %v11383_v36 = vpop.eup %11382 }
0x1519   :  { %v2547_v37 = vmul.f32 %v11383_v36, %v11373_v2  ;;  %v11385_v54 = vpop.eup %11384 }
0x151a   :  { %v2548_v20 = vmul.f32 %v11385_v54, %v12375_v58 }
0x151b   :  { %10031 = vmatprep.mubr.msk.f32.mxu1 %vm405_vm11, %v2547_v37 }
0x152a   :  { %v2745_v46 = vpop.xlane.xlu0 %2744 }
0x152b   :  { %11386 = vrcp.f32 %v2745_v46 }
0x152e   :  { %v2748_v60 = vpop.xlane.xlu1 %2747 }
0x152f   :  { %11388 = vrcp.f32 %v2748_v60 }
0x1532   :  { %v2952_v41 = vpop.xlane.xlu1 %2951  ;;  %v2949_v29 = vpop.xlane.xlu0 %2948 }
0x1533   :  { %11390 = vrcp.f32 %v2949_v29  ;;  %v12437_v29 = vadd.f32 %v12305_v19, %v12351_v21 }
0x1534   :  { %11392 = vrcp.f32 %v2952_v41 }
0x1535   :  { %v11387_v55 = vpop.eup %11386 }
0x1536   :  { %v11071_v45 = vpop.permute.xlu1 %11070  ;;  %v11066_v39 = vpop.permute.xlu0 %11065  ;;  %v2751_v16 = vmul.f32 %v11387_v55, %v11375_v42 }
0x1537   :  { %v11073_v47 = vunpack.i.h.bf16 %v11071_v45  ;;  %v11072_v48 = vunpack.i.l.bf16 %v11071_v45  ;;  %v11068_v40 = vunpack.i.h.bf16 %v11066_v39  ;;  %v11067_v25 = vunpack.i.l.bf16 %v11066_v39 }
0x1538   :  { %v12443_v45 = vadd.f32 %v12349_v27, %v12305_v19 }
0x1539   :  { %v10630_v53 = vpack.c.bf16 %v11068_v40, %v11067_v25  ;;  %v10640_v43 = vpack.c.bf16 %v11073_v47, %v11072_v48  ;;  %v11389_v44 = vpop.eup %11388 }
0x153a   :  { %v11076_v22 = vpop.permute.xlu1 %11075  ;;  %v2752_v4 = vmul.f32 %v11389_v44, %v11377_v15  ;;  %v3045_v10 = vpop.permute.xlu0 %3044 }
0x153b   :  { %v11078_v49 = vunpack.i.h.bf16 %v11076_v22  ;;  %v11077_v56 = vunpack.i.l.bf16 %v11076_v22  ;;  %10631 = vmatprep.subr.bf16.mxu1 %v10630_v53 }
0x153c   :  { %10633 = vmatpush3.bf16.msra.mxu1 %v10630_v53 }
0x153d   :  { %10641 = vmatprep.subr.bf16.mxu1 %v10640_v43  ;;  %v11391_v61 = vpop.eup %11390  ;;  %v10650_v3 = vpack.c.bf16 %v11078_v49, %v11077_v56  ;;  %v12466_v49 = vld [vmem:[%s13666_s3 + $0x10] sm:$0xff] }
0x153e   :  { %v11081_v57 = vpop.permute.xlu1 %11080  ;;  %v11393_v6 = vpop.eup %11392  ;;  %v2955_v7 = vmul.f32 %v11391_v61, %v11381_v31 }
0x153f   :  { %v11083_v62 = vunpack.i.h.bf16 %v11081_v57  ;;  %v11082_v2 = vunpack.i.l.bf16 %v11081_v57  ;;  %10032 = vmatmul.mubr.msk.f32.vlgmr.msra.gmra.mrb[28].mxu1 %vm405_vm11, %v2548_v20  ;;  %v2956_v58 = vmul.f32 %v11393_v6, %v12382_v28 }
0x1540   :  { %10643 = vmatpush3.bf16.msra.mxu1 %v10640_v43  ;;  %10045 = vmatprep.mubr.msk.f32.mxu1 %vm405_vm11, %v2751_v16 }
0x1541   :  { %10651 = vmatprep.subr.bf16.mxu1 %v10650_v3  ;;  %v10654_v9 = vpack.c.bf16 %v11083_v62, %v11082_v2 }
0x1542   :  { %v3047_v11 = vpop.permute.xlu1 %3046 }
0x1543   :  { %10046 = vmatmul.mubr.msk.f32.vlgmr.msra.gmra.mrb[30].mxu1 %vm405_vm11, %v2752_v4 }
0x1544   :  { %10653 = vmatpush3.bf16.msra.mxu1 %v10650_v3  ;;  %10059 = vmatprep.mubr.msk.f32.mxu1 %vm405_vm11, %v2955_v7 }
0x1545   :  { %10656 = vmatprep.subr.msk.bf16.mxu1 %vm11902_vm10, %v10654_v9 }
0x1547   :  { %10060 = vmatmul.mubr.msk.f32.vlgmr.msra.gmra.mrb[32].mxu1 %vm405_vm11, %v2956_v58 }
0x1548   :  { %10066 = vmatprep.mubr.msk.f32.mxu1 %vm317_vm9, %v3045_v10 }
0x154d   :  { %10659 = vmatpush3.bf16.xpose.msk.msra.mxu1 %vm11902_vm10, %v10654_v9 }
0x1554   :  { %10067 = vmatmul.mubr.msk.f32.vlgmr.msra.gmra.mrb[34].mxu1 %vm317_vm9, %v3047_v11 }
0x1612   :  { %v12413_v12 = vpop.f32.mrb[28].mxu1 }
0x1613   :  { %v12415_v13 = vpop.f32.mrb[29].mxu1 }
0x1616   :  { %v12417_v52 = vpop.f32.mrb[30].mxu1 }
0x1617   :  { %v12419_v5 = vpop.f32.mrb[31].mxu1 }
0x161a   :  { %v12421_v0 = vpop.f32.mrb[32].mxu1 }
0x161b   :  { %v12423_v8 = vpop.f32.mrb[33].mxu1 }
0x1627   :  { %v10068_v18 = vpop.f32.mrb[34].mxu1 }
0x1628   :  { %v3136_v42 = vmul.f32 0.35355338, %v10068_v18  ;;  %v3126_v14 = vpop.f32.mrb[35].mxu1 }
0x1629   :  { %v3135_v15 = vmul.f32 0.35355338, %v3126_v14 }
0x162a   :  { %v3138_v59 = vadd.f32 %v3136_v42, %v12356_v30 }
0x162b   :  { %v3137_v28 = vadd.f32 %v3135_v15, %v12361_v24 }
0x162c   :  { %v3142_v31 = vsel %vm405_vm11, %v3138_v59, -inf }
0x162d   :  { %3143 = vmax.xlane.f32.xlu1 %v3142_v31  ;;  %v3139_v33 = vsel %vm405_vm11, %v3137_v28, -inf }
0x162e   :  { %3140 = vmax.xlane.f32.xlu0 %v3139_v33 }
0x16ba   :  { %v3144_v34 = vpop.xlane.xlu1 %3143 }
0x16bb   :  { %v3146_v35 = vsub.f32 %v3138_v59, %v3144_v34  ;;  %v3141_v36 = vpop.xlane.xlu0 %3140 }
0x16bc   :  { %v3145_v37 = vsub.f32 %v3137_v28, %v3141_v36 }
0x16bd   :  { %v3149_v38 = vmul.f32 1.442695, %v3146_v35 }
0x16be   :  { %v3147_v46 = vmul.f32 1.442695, %v3145_v37 }
0x16bf   :  { %11394 = vpow2.f32 %v3149_v38 }
0x16c0   :  { %11396 = vpow2.f32 %v3147_v46 }
0x16c9   :  { %v11395_v60 = vpop.eup %11394 }
0x16ca   :  { %v3154_v41 = vsel %vm405_vm11, %v11395_v60, 0.0  ;;  %v11397_v30 = vpop.eup %11396 }
0x16cb   :  { %3155 = vadd.xlane.f32.xlu0 %v3154_v41  ;;  %v3151_v24 = vsel %vm405_vm11, %v11397_v30, 0.0 }
0x16cf   :  { %3152 = vadd.xlane.f32.xlu0 %v3151_v24 }
0x16e5   :  { %11085 = vrot.lane.b32.xlu0 %v12280_v50, %s13758_s2 }
0x16e9   :  { %11095 = vrot.lane.b32.xlu0 %v12345_v23, %s13768_s4 }
0x16ed   :  { %3478 = vrot.lane.b32.xlu0 %v12437_v29, %s13768_s4 }
0x16f1   :  { %3480 = vrot.lane.b32.xlu0 %v12443_v45, %s13768_s4 }
0x1758   :  { %v3156_v39 = vpop.xlane.xlu0 %3155 }
0x1759   :  { %11398 = vrcp.f32 %v3156_v39 }
0x175c   :  { %v3153_v50 = vpop.xlane.xlu0 %3152 }
0x175d   :  { %11400 = vrcp.f32 %v3153_v50 }
0x1760   :  { %v11086_v47 = vpop.permute.xlu0 %11085 }
0x1761   :  { %v11088_v48 = vunpack.i.h.bf16 %v11086_v47  ;;  %v11087_v40 = vunpack.i.l.bf16 %v11086_v47 }
0x1763   :  { %v10660_v25 = vpack.c.bf16 %v11088_v48, %v11087_v40  ;;  %v11399_v21 = vpop.eup %11398 }
0x1764   :  { %v3160_v27 = vmul.f32 %v11399_v21, %v11395_v60  ;;  %v11096_v14 = vpop.permute.xlu0 %11095 }
0x1765   :  { %10661 = vmatprep.subr.bf16.mxu0 %v10660_v25  ;;  %v11098_v59 = vunpack.i.h.bf16 %v11096_v14  ;;  %v11097_v28 = vunpack.i.l.bf16 %v11096_v14 }
0x1766   :  { %10663 = vmatpush3.bf16.msra.mxu0 %v10660_v25 }
0x1767   :  { %v11401_v53 = vpop.eup %11400  ;;  %10666 = vmatprep.subr.msk.bf16.mxu0 %vm11902_vm10, %v12347_v26  ;;  %v10674_v35 = vpack.c.bf16 %v11098_v59, %v11097_v28 }
0x1768   :  { %v3159_v19 = vmul.f32 %v11401_v53, %v11397_v30  ;;  %v3479_v60 = vpop.permute.xlu0 %3478 }
0x176a   :  { %10073 = vmatprep.mubr.msk.f32.mxu0 %vm405_vm11, %v3159_v19 }
0x176b   :  { %10074 = vmatmul.mubr.msk.f32.vlgmr.msra.gmra.mrb[26].mxu0 %vm405_vm11, %v3160_v27 }
0x176c   :  { %10080 = vmatprep.mubr.msk.f32.mxu0 %vm317_vm9, %v12437_v29  ;;  %v3481_v41 = vpop.permute.xlu0 %3480 }
0x176f   :  { %10669 = vmatpush3.bf16.xpose.msk.msra.mxu0 %vm11902_vm10, %v12347_v26  ;;  %v12471_v26 = vld [vmem:[%s13666_s3 + $0x18] sm:$0xff] }
0x1776   :  { %10081 = vmatmul.mubr.msk.f32.vlgmr.msra.gmra.mrb[28].mxu0 %vm317_vm9, %v12443_v45 }
0x183e   :  { %v12459_v54 = vpop.f32.mrb[26].mxu0 }
0x183f   :  { %v12461_v22 = vpop.f32.mrb[27].mxu0 }
0x1849   :  { %v10082_v55 = vpop.f32.mrb[28].mxu0 }
0x184a   :  { %v3356_v56 = vpop.f32.mrb[29].mxu0  ;;  %v3366_v43 = vmul.f32 0.35355338, %v10082_v55 }
0x184b   :  { %v3365_v20 = vmul.f32 0.35355338, %v3356_v56 }
0x184c   :  { %v3368_v57 = vadd.f32 %v3366_v43, %v12471_v26 }
0x184d   :  { %v3367_v44 = vadd.f32 %v3365_v20, %v12466_v49 }
0x184e   :  { %v3372_v61 = vsel %vm405_vm11, %v3368_v57, -inf }
0x184f   :  { %v3369_v16 = vsel %vm405_vm11, %v3367_v44, -inf }
0x1850   :  { %3370 = vmax.xlane.f32.xlu1 %v3369_v16 }
0x1854   :  { %3373 = vmax.xlane.f32.xlu1 %v3372_v61 }
0x18dd   :  { %v3371_v62 = vpop.xlane.xlu1 %3370 }
0x18de   :  { %v3375_v2 = vsub.f32 %v3367_v44, %v3371_v62 }
0x18e0   :  { %v3377_v6 = vmul.f32 1.442695, %v3375_v2 }
0x18e1   :  { %v3374_v3 = vpop.xlane.xlu1 %3373 }
0x18e2   :  { %v3376_v4 = vsub.f32 %v3368_v57, %v3374_v3 }
0x18e4   :  { %v3379_v7 = vmul.f32 1.442695, %v3376_v4 }
0x18e6   :  { %11402 = vpow2.f32 %v3379_v7 }
0x18e7   :  { %11404 = vpow2.f32 %v3377_v6 }
0x18f0   :  { %v11403_v9 = vpop.eup %11402 }
0x18f1   :  { %v3384_v58 = vsel %vm405_vm11, %v11403_v9, 0.0  ;;  %v11405_v10 = vpop.eup %11404 }
0x18f2   :  { %3385 = vadd.xlane.f32.xlu1 %v3384_v58  ;;  %v3381_v11 = vsel %vm405_vm11, %v11405_v10, 0.0 }
0x18f6   :  { %3382 = vadd.xlane.f32.xlu1 %v3381_v11 }
0x1907   :  { %11090 = vrot.lane.b32.xlu1 %v12345_v23, %s13770_s5 }
0x197f   :  { %v3386_v18 = vpop.xlane.xlu1 %3385 }
0x1980   :  { %11406 = vrcp.f32 %v3386_v18 }
0x1983   :  { %v3383_v42 = vpop.xlane.xlu1 %3382 }
0x1984   :  { %11408 = vrcp.f32 %v3383_v42 }
0x1987   :  { %v11091_v15 = vpop.permute.xlu1 %11090 }
0x1988   :  { %v11093_v31 = vunpack.i.h.bf16 %v11091_v15  ;;  %v11092_v33 = vunpack.i.l.bf16 %v11091_v15 }
0x198a   :  { %v10670_v34 = vpack.c.bf16 %v11093_v31, %v11092_v33  ;;  %v11407_v36 = vpop.eup %11406 }
0x198b   :  { %v3390_v46 = vmul.f32 %v11407_v36, %v11403_v9 }
0x198c   :  { %10671 = vmatprep.subr.bf16.mxu1 %v10670_v34 }
0x198d   :  { %10673 = vmatpush3.bf16.msra.mxu1 %v10670_v34 }
0x198e   :  { %v11409_v37 = vpop.eup %11408  ;;  %10676 = vmatprep.subr.msk.bf16.mxu1 %vm11902_vm10, %v10674_v35 }
0x198f   :  { %v3389_v38 = vmul.f32 %v11409_v37, %v11405_v10 }
0x1991   :  { %10087 = vmatprep.mubr.msk.f32.mxu1 %vm405_vm11, %v3389_v38 }
0x1992   :  { %10088 = vmatmul.mubr.msk.f32.vlgmr.msra.gmra.mrb[36].mxu1 %vm405_vm11, %v3390_v46 }
0x1993   :  { %10094 = vmatprep.mubr.msk.f32.mxu1 %vm317_vm9, %v3479_v60 }
0x1996   :  { %10679 = vmatpush3.bf16.xpose.msk.msra.mxu1 %vm11902_vm10, %v10674_v35 }
0x199d   :  { %10095 = vmatmul.mubr.msk.f32.vlgmr.msra.gmra.mrb[38].mxu1 %vm317_vm9, %v3481_v41 }
0x1a65   :  { %v12489_v30 = vpop.f32.mrb[36].mxu1 }
0x1a66   :  { %v12491_v24 = vpop.f32.mrb[37].mxu1 }
0x1a70   :  { %v10096_v39 = vpop.f32.mrb[38].mxu1 }
0x1a71   :  { %v3570_v50 = vmul.f32 0.35355338, %v10096_v39  ;;  %v3560_v47 = vpop.f32.mrb[39].mxu1 }
0x1a72   :  { %v3569_v48 = vmul.f32 0.35355338, %v3560_v47 }
0x1a73   :  { %v3572_v40 = vadd.f32 %v3570_v50, %v12471_v26 }
0x1a74   :  { %v3571_v25 = vadd.f32 %v3569_v48, %v12466_v49 }
0x1a75   :  { %v3576_v21 = vsel %vm405_vm11, %v3572_v40, -inf }
0x1a76   :  { %3577 = vmax.xlane.f32.xlu0 %v3576_v21  ;;  %v3573_v53 = vsel %vm405_vm11, %v3571_v25, -inf }
0x1a77   :  { %3574 = vmax.xlane.f32.xlu1 %v3573_v53 }
0x1a88   :  { %11100 = vrot.lane.b32.xlu1 %v12345_v23, %s13769_s26 }
0x1a8c   :  { %3682 = vrot.lane.b32.xlu1 %v12437_v29, %s13767_s28 }
0x1a90   :  { %3684 = vrot.lane.b32.xlu1 %v12443_v45, %s13767_s28 }
0x1b03   :  { %v3578_v19 = vpop.xlane.xlu0 %3577 }
0x1b04   :  { %v3580_v27 = vsub.f32 %v3572_v40, %v3578_v19  ;;  %v3575_v55 = vpop.xlane.xlu1 %3574 }
0x1b05   :  { %v3579_v56 = vsub.f32 %v3571_v25, %v3575_v55 }
0x1b06   :  { %v3583_v43 = vmul.f32 1.442695, %v3580_v27 }
0x1b07   :  { %v3581_v20 = vmul.f32 1.442695, %v3579_v56 }
0x1b08   :  { %11410 = vpow2.f32 %v3583_v43  ;;  %v11101_v44 = vpop.permute.xlu1 %11100 }
0x1b09   :  { %v11103_v57 = vunpack.i.h.bf16 %v11101_v44  ;;  %v11102_v16 = vunpack.i.l.bf16 %v11101_v44  ;;  %11412 = vpow2.f32 %v3581_v20 }
0x1b0b   :  { %v10680_v61 = vpack.c.bf16 %v11103_v57, %v11102_v16 }
0x1b0c   :  { %v3683_v59 = vpop.permute.xlu1 %3682 }
0x1b0d   :  { %10681 = vmatprep.subr.bf16.mxu0 %v10680_v61 }
0x1b0e   :  { %10683 = vmatpush3.bf16.msra.mxu0 %v10680_v61 }
0x1b10   :  { %v3685_v28 = vpop.permute.xlu1 %3684 }
0x1b12   :  { %v11411_v62 = vpop.eup %11410 }
0x1b13   :  { %v3588_v2 = vsel %vm405_vm11, %v11411_v62, 0.0  ;;  %v11413_v3 = vpop.eup %11412 }
0x1b14   :  { %3589 = vadd.xlane.f32.xlu0 %v3588_v2  ;;  %v3585_v4 = vsel %vm405_vm11, %v11413_v3, 0.0 }
0x1b18   :  { %3586 = vadd.xlane.f32.xlu0 %v3585_v4 }
0x1b2e   :  { %11105 = vrot.lane.b32.xlu0 %v12345_v23, %s13767_s28 }
0x1ba1   :  { %v3590_v6 = vpop.xlane.xlu0 %3589 }
0x1ba2   :  { %11414 = vrcp.f32 %v3590_v6 }
0x1ba5   :  { %v3587_v7 = vpop.xlane.xlu0 %3586 }
0x1ba6   :  { %11416 = vrcp.f32 %v3587_v7 }
0x1ba9   :  { %v11106_v9 = vpop.permute.xlu0 %11105 }
0x1baa   :  { %v11108_v58 = vunpack.i.h.bf16 %v11106_v9  ;;  %v11107_v10 = vunpack.i.l.bf16 %v11106_v9 }
0x1bac   :  { %v10684_v11 = vpack.c.bf16 %v11108_v58, %v11107_v10  ;;  %v11415_v18 = vpop.eup %11414 }
0x1bad   :  { %v3594_v15 = vmul.f32 %v11415_v18, %v11411_v62 }
0x1bae   :  { %10686 = vmatprep.subr.msk.bf16.mxu0 %vm11902_vm10, %v10684_v11 }
0x1bb0   :  { %v11417_v42 = vpop.eup %11416 }
0x1bb1   :  { %v3593_v14 = vmul.f32 %v11417_v42, %v11413_v3 }
0x1bb3   :  { %10101 = vmatprep.mubr.msk.f32.mxu0 %vm405_vm11, %v3593_v14 }
0x1bb4   :  { %10102 = vmatmul.mubr.msk.f32.vlgmr.msra.gmra.mrb[30].mxu0 %vm405_vm11, %v3594_v15 }
0x1bb5   :  { %10689 = vmatpush3.bf16.xpose.msk.msra.mxu0 %vm11902_vm10, %v10684_v11  ;;  %10108 = vmatprep.mubr.msk.f32.mxu0 %vm317_vm9, %v3683_v59 }
0x1bbc   :  { %10109 = vmatmul.mubr.msk.f32.vlgmr.msra.gmra.mrb[32].mxu0 %vm317_vm9, %v3685_v28 }
0x1c87   :  { %v12515_v31 = vpop.f32.mrb[30].mxu0 }
0x1c88   :  { %v12517_v33 = vpop.f32.mrb[31].mxu0 }
0x1c8f   :  { %v10110_v34 = vpop.f32.mrb[32].mxu0 }
0x1c90   :  { %v3774_v35 = vmul.f32 0.35355338, %v10110_v34  ;;  %v3764_v36 = vpop.f32.mrb[33].mxu0 }
0x1c91   :  { %v3773_v37 = vmul.f32 0.35355338, %v3764_v36 }
0x1c92   :  { %v3776_v38 = vadd.f32 %v3774_v35, %v12471_v26 }
0x1c93   :  { %v3775_v46 = vadd.f32 %v3773_v37, %v12466_v49 }
0x1c94   :  { %v3780_v60 = vsel %vm405_vm11, %v3776_v38, -inf }
0x1c95   :  { %3781 = vmax.xlane.f32.xlu0 %v3780_v60  ;;  %v3777_v41 = vsel %vm405_vm11, %v3775_v46, -inf  ;;  %v4120_v60 = vld [vmem:[%s13667_s16] sm:$0xff] }
0x1c96   :  { %3778 = vmax.xlane.f32.xlu1 %v3777_v41  ;;  %v4121_v41 = vld [vmem:[%s13667_s16 + $0x8] sm:$0xff] }
0x1ca7   :  { %11110 = vrot.lane.b32.xlu1 %v12345_v23, %s13755_s27 }
0x1cab   :  { %3886 = vrot.lane.b32.xlu1 %v12437_v29, %s13757_s0 }
0x1caf   :  { %3888 = vrot.lane.b32.xlu1 %v12443_v45, %s13757_s0 }
0x1d22   :  { %v3782_v39 = vpop.xlane.xlu0 %3781 }
0x1d23   :  { %v3784_v50 = vsub.f32 %v3776_v38, %v3782_v39  ;;  %v3779_v47 = vpop.xlane.xlu1 %3778  ;;  %v10704_v39 = vpack.c.bf16 %v4121_v41, %v4120_v60  ;;  %v4341_v60 = vld [vmem:[%s13669_s20 + $0x18] sm:$0xff] }
0x1d24   :  { %v3783_v48 = vsub.f32 %v3775_v46, %v3779_v47 }
0x1d25   :  { %v3787_v40 = vmul.f32 1.442695, %v3784_v50 }
0x1d26   :  { %v3785_v25 = vmul.f32 1.442695, %v3783_v48 }
0x1d27   :  { %11418 = vpow2.f32 %v3787_v40  ;;  %v11111_v21 = vpop.permute.xlu1 %11110 }
0x1d28   :  { %v11113_v53 = vunpack.i.h.bf16 %v11111_v21  ;;  %v11112_v19 = vunpack.i.l.bf16 %v11111_v21  ;;  %11420 = vpow2.f32 %v3785_v25 }
0x1d2a   :  { %v10690_v27 = vpack.c.bf16 %v11113_v53, %v11112_v19 }
0x1d2b   :  { %v3887_v6 = vpop.permute.xlu1 %3886 }
0x1d2c   :  { %10691 = vmatprep.subr.bf16.mxu1 %v10690_v27 }
0x1d2d   :  { %10693 = vmatpush3.bf16.msra.mxu1 %v10690_v27 }
0x1d2f   :  { %v3889_v7 = vpop.permute.xlu1 %3888 }
0x1d31   :  { %v11419_v55 = vpop.eup %11418 }
0x1d32   :  { %v3792_v29 = vsel %vm405_vm11, %v11419_v55, 0.0  ;;  %v11421_v56 = vpop.eup %11420 }
0x1d33   :  { %3793 = vadd.xlane.f32.xlu0 %v3792_v29  ;;  %v3789_v45 = vsel %vm405_vm11, %v11421_v56, 0.0 }
0x1d37   :  { %3790 = vadd.xlane.f32.xlu0 %v3789_v45 }
0x1d4d   :  { %11115 = vrot.lane.b32.xlu0 %v12345_v23, %s13757_s0 }
0x1dc0   :  { %v3794_v43 = vpop.xlane.xlu0 %3793 }
0x1dc1   :  { %11422 = vrcp.f32 %v3794_v43 }
0x1dc4   :  { %v3791_v20 = vpop.xlane.xlu0 %3790 }
0x1dc5   :  { %11424 = vrcp.f32 %v3791_v20 }
0x1dc8   :  { %v11116_v44 = vpop.permute.xlu0 %11115 }
0x1dc9   :  { %v11118_v57 = vunpack.i.h.bf16 %v11116_v44  ;;  %v11117_v16 = vunpack.i.l.bf16 %v11116_v44 }
0x1dcb   :  { %v10694_v61 = vpack.c.bf16 %v11118_v57, %v11117_v16  ;;  %v11423_v62 = vpop.eup %11422 }
0x1dcc   :  { %v3798_v4 = vmul.f32 %v11423_v62, %v11419_v55 }
0x1dcd   :  { %10696 = vmatprep.subr.msk.bf16.mxu1 %vm11902_vm10, %v10694_v61 }
0x1dcf   :  { %v11425_v2 = vpop.eup %11424 }
0x1dd0   :  { %v3797_v3 = vmul.f32 %v11425_v2, %v11421_v56  ;;  %v12595_v2 = vld [vmem:[%s13668_s17] ss:$0 sm:$0xff] }
0x1dd2   :  { %10115 = vmatprep.mubr.msk.f32.mxu1 %vm405_vm11, %v3797_v3 }
0x1dd3   :  { %10116 = vmatmul.mubr.msk.f32.vlgmr.msra.gmra.mrb[40].mxu1 %vm405_vm11, %v3798_v4 }
0x1dd4   :  { %10699 = vmatpush3.bf16.xpose.msk.msra.mxu1 %vm11902_vm10, %v10694_v61  ;;  %10122 = vmatprep.mubr.msk.f32.mxu1 %vm317_vm9, %v3887_v6 }
0x1ddb   :  { %10123 = vmatmul.mubr.msk.f32.vlgmr.msra.gmra.mrb[42].mxu1 %vm317_vm9, %v3889_v7 }
0x1ea6   :  { %v10117_v9 = vpop.f32.mrb[40].mxu1 }
0x1ea7   :  { %v3877_v58 = vpop.f32.mrb[41].mxu1 }
0x1eae   :  { %v10124_v10 = vpop.f32.mrb[42].mxu1 }
0x1eaf   :  { %v3978_v11 = vmul.f32 0.35355338, %v10124_v10  ;;  %v3968_v18 = vpop.f32.mrb[43].mxu1 }
0x1eb0   :  { %v3977_v42 = vmul.f32 0.35355338, %v3968_v18 }
0x1eb1   :  { %v3980_v14 = vadd.f32 %v3978_v11, %v12471_v26 }
0x1eb2   :  { %v3979_v15 = vadd.f32 %v3977_v42, %v12466_v49 }
0x1eb3   :  { %v3984_v59 = vsel %vm405_vm11, %v3980_v14, -inf }
0x1eb4   :  { %3985 = vmax.xlane.f32.xlu0 %v3984_v59  ;;  %v3981_v28 = vsel %vm405_vm11, %v3979_v15, -inf }
0x1eb5   :  { %3982 = vmax.xlane.f32.xlu1 %v3981_v28 }
0x1ec6   :  { %11120 = vrot.lane.b32.xlu1 %v12345_v23, %s13758_s2 }
0x1eca   :  { %3252 = vrot.lane.b32.xlu1 %v12417_v52, %s13771_s14 }
0x1ece   :  { %3258 = vrot.lane.b32.xlu1 %v12423_v8, %s13762_s7 }
0x1ed2   :  { %3260 = vrot.lane.b32.xlu1 %v12421_v0, %s13762_s7 }
0x1ed6   :  { %3268 = vrot.lane.b32.xlu1 %v12459_v54, %s13761_s24 }
0x1eda   :  { %4094 = vrot.lane.b32.xlu1 %v12515_v31, %s13771_s14 }
0x1f41   :  { %v3986_v49 = vpop.xlane.xlu0 %3985 }
0x1f42   :  { %v3988_v26 = vsub.f32 %v3980_v14, %v3986_v49  ;;  %v3983_v34 = vpop.xlane.xlu1 %3982 }
0x1f43   :  { %v3987_v35 = vsub.f32 %v3979_v15, %v3983_v34 }
0x1f44   :  { %v3991_v23 = vmul.f32 1.442695, %v3988_v26 }
0x1f45   :  { %v3989_v36 = vmul.f32 1.442695, %v3987_v35 }
0x1f46   :  { %11426 = vpow2.f32 %v3991_v23  ;;  %v11121_v52 = vpop.permute.xlu1 %11120 }
0x1f47   :  { %v11123_v37 = vunpack.i.h.bf16 %v11121_v52  ;;  %v11122_v38 = vunpack.i.l.bf16 %v11121_v52  ;;  %11428 = vpow2.f32 %v3989_v36 }
0x1f49   :  { %v10700_v8 = vpack.c.bf16 %v11123_v37, %v11122_v38 }
0x1f4a   :  { %v3253_v47 = vpop.permute.xlu1 %3252 }
0x1f4b   :  { %10701 = vmatprep.subr.bf16.mxu0 %v10700_v8 }
0x1f4c   :  { %10703 = vmatpush3.bf16.msra.mxu0 %v10700_v8 }
0x1f4d   :  { %10705 = vmatprep.subr.bf16.mxu0 %v10704_v39 }
0x1f4e   :  { %v3259_v40 = vpop.permute.xlu1 %3258 }
0x1f50   :  { %v11427_v0 = vpop.eup %11426 }
0x1f51   :  { %v3996_v54 = vsel %vm405_vm11, %v11427_v0, 0.0  ;;  %v11429_v46 = vpop.eup %11428 }
0x1f52   :  { %3997 = vadd.xlane.f32.xlu0 %v3996_v54  ;;  %v3993_v31 = vsel %vm405_vm11, %v11429_v46, 0.0  ;;  %v3261_v55 = vpop.permute.xlu1 %3260  ;;  %v4339_v54 = vld [vmem:[%s13669_s20 + $0x8] sm:$0xff] }
0x1f56   :  { %3994 = vadd.xlane.f32.xlu0 %v3993_v31  ;;  %v3269_v20 = vpop.permute.xlu1 %3268 }
0x1f5a   :  { %v4095_v15 = vpop.permute.xlu1 %4094 }
0x1f5b   :  { %v4115_v49 = vsel %vm317_vm9, %v12489_v30, %v4095_v15  ;;  %v4454_v15 = vld [vmem:[%s13672_s22 + $0x20] sm:$0xff] }
0x1f6c   :  { %3250 = vrot.lane.b32.xlu0 %v12419_v5, %s13771_s14 }
0x1f70   :  { %3266 = vrot.lane.b32.xlu0 %v12461_v22, %s13761_s24  ;;  %v4122_v22 = vld [vmem:[%s13667_s16 + $0x10] sm:$0xff] }
0x1f74   :  { %4092 = vrot.lane.b32.xlu0 %v12517_v33, %s13771_s14  ;;  %v4123_v33 = vld [vmem:[%s13667_s16 + $0x18] sm:$0xff] }
0x1f75   :  { %v10708_v56 = vpack.c.bf16 %v4123_v33, %v4122_v22 }
0x1f78   :  { %4100 = vrot.lane.b32.xlu0 %v3877_v58, %s13762_s7 }
0x1f7c   :  { %4102 = vrot.lane.b32.xlu0 %v10117_v9, %s13762_s7 }
0x1fdf   :  { %v3998_v5 = vpop.xlane.xlu0 %3997 }
0x1fe0   :  { %11430 = vrcp.f32 %v3998_v5 }
0x1fe3   :  { %v3995_v50 = vpop.xlane.xlu0 %3994 }
0x1fe4   :  { %11432 = vrcp.f32 %v3995_v50 }
0x1fe7   :  { %v3251_v48 = vpop.permute.xlu0 %3250 }
0x1fe8   :  { %v3272_v53 = vsel %vm317_vm9, %v12415_v13, %v3251_v48  ;;  %v3273_v13 = vsel %vm317_vm9, %v12413_v12, %v3253_v47 }
0x1fe9   :  { %v3274_v45 = vsel %vm405_vm11, %v3272_v53, %v3259_v40  ;;  %v3275_v44 = vsel %vm405_vm11, %v3273_v13, %v3261_v55  ;;  %v12639_v53 = vld [vmem:[%s13670_s18] ss:$0 sm:$0xff] }
0x1fea   :  { %v11431_v25 = vpop.eup %11430  ;;  %v3277_v57 = vsel %vm1155_vm12, %v3275_v44, %v3269_v20  ;;  %v12645_v55 = vld [vmem:[%s13671_s19] ss:$0 sm:$0xff]  ;;  %s13775_s19 = sld [smem:[#allocation5_spill]] }
0x1feb   :  { %v3267_v19 = vpop.permute.xlu0 %3266  ;;  %v4002_v29 = vmul.f32 %v11431_v25, %v11427_v0  ;;  %v4338_v0 = vld [vmem:[%s13669_s20] sm:$0xff] }
0x1fec   :  { %v3276_v43 = vsel %vm1155_vm12, %v3274_v45, %v3267_v19  ;;  %v10712_v31 = vpack.c.bf16 %v4339_v54, %v4338_v0  ;;  %v9282_v54 = vld [vmem:[%s13673_s21] ss:$0 sm:$0xff] }
0x1fee   :  { %v11433_v21 = vpop.eup %11432  ;;  %10713 = vmatprep.subr.bf16.mxu1 %v10712_v31 }
0x1fef   :  { %v4001_v27 = vmul.f32 %v11433_v21, %v11429_v46  ;;  %v4093_v10 = vpop.permute.xlu0 %4092  ;;  %v4340_v46 = vld [vmem:[%s13669_s20 + $0x10] sm:$0xff]  ;;  %10715 = vmatpush3.bf16.msra.mxu1 %v10712_v31  ;;  %s13779_s20 = smov 64  }
0x1ff0   :  { %v4114_v18 = vsel %vm317_vm9, %v12491_v24, %v4093_v10  ;;  %v10716_v41 = vpack.c.bf16 %v4341_v60, %v4340_v46 }
0x1ff1   :  { %10129 = vmatprep.mubr.msk.f32.mxu0 %vm405_vm11, %v4001_v27 }
0x1ff2   :  { %10130 = vmatmul.mubr.msk.f32.vlgmr.msra.gmra.mrb[34].mxu0 %vm405_vm11, %v4002_v29  ;;  %10717 = vmatprep.subr.bf16.mxu1 %v10716_v41 }
0x1ff3   :  { %10707 = vmatpush3.bf16.msra.mxu0 %v10704_v39  ;;  %10140 = vmatprep.mubr.msk.f32.mxu0 %vm101_vm0, %v3276_v43 }
0x1ff4   :  { %10709 = vmatprep.subr.bf16.mxu0 %v10708_v56  ;;  %10719 = vmatpush3.bf16.msra.mxu1 %v10716_v41 }
0x1ff7   :  { %10711 = vmatpush3.bf16.msra.mxu0 %v10708_v56 }
0x1ffa   :  { %10141 = vmatmul.mubr.msk.f32.vlgmr.msra.gmra.mrb[36].mxu0 %vm101_vm0, %v3277_v57 }
0x20c5   :  { %v10131_v16 = vpop.f32.mrb[34].mxu0 }
0x20c6   :  { %v4081_v61 = vpop.f32.mrb[35].mxu0 }
0x20c7   :  { %4108 = vrot.lane.b32.xlu0 %v4081_v61, %s13761_s24 }
0x20cd   :  { %v10142_v62 = vpop.f32.mrb[36].mxu0 }
0x20ce   :  { %v4202_v3 = vpop.f32.mrb[37].mxu0  ;;  %v4222_v7 = vadd.f32 %v10142_v62, %v12179_v1 }
0x20cf   :  { %v4221_v12 = vadd.f32 %v4202_v3, %v12176_v63  ;;  %v4101_v63 = vpop.permute.xlu0 %4100 }
0x20d0   :  { %v12605_v9 = vadd.f32 %v12595_v2, %v4222_v7  ;;  %v4116_v42 = vsel %vm405_vm11, %v4114_v18, %v4101_v63 }
0x20d1   :  { %v12599_v4 = vadd.f32 %v12595_v2, %v4221_v12 }
0x20d2   :  { %v4241_v58 = vsel %vm101_vm0, %v12605_v9, 0.0 }
0x20d3   :  { %v4238_v6 = vsel %vm101_vm0, %v12599_v4, 0.0  ;;  %v4103_v11 = vpop.permute.xlu0 %4102 }
0x20d4   :  { %4239 = vadd.xlane.f32.xlu1 %v4238_v6  ;;  %v4117_v34 = vsel %vm405_vm11, %v4115_v49, %v4103_v11  ;;  %v4456_v49 = vld [vmem:[%s13672_s22 + $0x30] sm:$0xff] }
0x20e5   :  { %4110 = vrot.lane.b32.xlu1 %v10131_v16, %s13761_s24 }
0x20e6   :  { %4242 = vadd.xlane.f32.xlu0 %v4241_v58 }
0x2139   :  { %v4109_v14 = vpop.permute.xlu0 %4108 }
0x213a   :  { %v4118_v1 = vsel %vm1155_vm12, %v4116_v42, %v4109_v14  ;;  %v4453_v14 = vld [vmem:[%s13672_s22 + $0x18] sm:$0xff] }
0x213b   :  { %10143 = vmatprep.mubr.msk.f32.mxu0 %vm101_vm0, %v4118_v1 }
0x2161   :  { %v4240_v59 = vpop.xlane.xlu1 %4239 }
0x2162   :  { %v4250_v28 = vmul.f32 0.03125, %v4240_v59  ;;  %v4455_v59 = vld [vmem:[%s13672_s22 + $0x28] sm:$0xff] }
0x2164   :  { %v4254_v26 = vsub.f32 %v12599_v4, %v4250_v28  ;;  %v10728_v28 = vpack.c.bf16 %v4455_v59, %v4454_v15 }
0x2165   :  { %v4111_v35 = vpop.permute.xlu1 %4110 }
0x2166   :  { %v4119_v24 = vsel %vm1155_vm12, %v4117_v34, %v4111_v35  ;;  %v4258_v23 = vmul.f32 %v4254_v26, %v4254_v26  ;;  %v4312_v19 = vmul.f32 %v12639_v53, %v4254_v26  ;;  %v4457_v26 = vld [vmem:[%s13672_s22 + $0x38] sm:$0xff] }
0x2167   :  { %10144 = vmatmul.mubr.msk.f32.gmra.mrb[38].mxu0 %vm101_vm0, %v4119_v24  ;;  %v10732_v34 = vpack.c.bf16 %v4457_v26, %v4456_v49 }
0x2168   :  { %v4262_v36 = vsel %vm101_vm0, %v4258_v23, 0.0 }
0x2169   :  { %4263 = vadd.xlane.f32.xlu0 %v4262_v36 }
0x2173   :  { %v4243_v52 = vpop.xlane.xlu0 %4242 }
0x2174   :  { %v4251_v37 = vmul.f32 0.03125, %v4243_v52 }
0x2176   :  { %v4255_v38 = vsub.f32 %v12605_v9, %v4251_v37 }
0x2178   :  { %v4259_v8 = vmul.f32 %v4255_v38, %v4255_v38  ;;  %v4313_v16 = vmul.f32 %v12639_v53, %v4255_v38 }
0x217a   :  { %v4265_v30 = vsel %vm101_vm0, %v4259_v8, 0.0 }
0x217b   :  { %4266 = vadd.xlane.f32.xlu0 %v4265_v30 }
0x21f6   :  { %v4264_v39 = vpop.xlane.xlu0 %4263 }
0x21f7   :  { %v4274_v5 = vmul.f32 0.032258064, %v4264_v39 }
0x21f9   :  { %11434 = vrsqrt.f32 %v4274_v5  ;;  %vm4280_vm6 = vcmp.eq.f32.partialorder %v4274_v5, inf  ;;  %v4283_v48 = vand.u32 2147483648, %v4274_v5  ;;  %vm4282_vm7 = vcmp.eq.f32.partialorder %v4274_v5, 0.0 }
0x2203   :  { %v11435_v50 = vpop.eup %11434 }
0x2204   :  { %v4279_v47 = vmul.f32 %v11435_v50, %v4274_v5 }
0x2206   :  { %v4281_v40 = vsel %vm4280_vm6, %v4274_v5, %v4279_v47 }
0x2207   :  { %v4284_v25 = vsel %vm4282_vm7, %v4283_v48, %v4281_v40 }
0x2208   :  { %v4267_v22 = vpop.xlane.xlu0 %4266  ;;  %v4316_v33 = vadd.f32 1e-06, %v4284_v25 }
0x2209   :  { %v4275_v21 = vmul.f32 0.032258064, %v4267_v22 }
0x220a   :  { %11436 = vrcp.f32 %v4316_v33 }
0x220b   :  { %11438 = vrsqrt.f32 %v4275_v21  ;;  %vm4287_vm8 = vcmp.eq.f32.partialorder %v4275_v21, inf  ;;  %v4290_v43 = vand.u32 2147483648, %v4275_v21  ;;  %vm4289_vm13 = vcmp.eq.f32.partialorder %v4275_v21, 0.0 }
0x2214   :  { %v11437_v27 = vpop.eup %11436 }
0x2215   :  { %v11439_v29 = vpop.eup %11438  ;;  %v4324_v56 = vmul.f32 %v11437_v27, %v4312_v19 }
0x2216   :  { %v4286_v45 = vmul.f32 %v11439_v29, %v4275_v21 }
0x2217   :  { %v4334_v20 = vadd.f32 %v12645_v55, %v4324_v56 }
0x2218   :  { %v4288_v13 = vsel %vm4287_vm8, %v4275_v21, %v4286_v45 }
0x2219   :  { %v4291_v44 = vsel %vm4289_vm13, %v4290_v43, %v4288_v13  ;;  %10154 = vmatprep.mubr.msk.f32.mxu1 %vm101_vm0, %v4334_v20 }
0x221a   :  { %v4317_v57 = vadd.f32 1e-06, %v4291_v44 }
0x221c   :  { %11440 = vrcp.f32 %v4317_v57 }
0x2226   :  { %v11441_v61 = vpop.eup %11440 }
0x2227   :  { %v4325_v62 = vmul.f32 %v11441_v61, %v4313_v16 }
0x2229   :  { %v4335_v3 = vadd.f32 %v12645_v55, %v4325_v62 }
0x222b   :  { %10155 = vmatmul.mubr.msk.f32.vlgmr.msra.gmra.mrb[44].mxu1 %vm101_vm0, %v4335_v3 }
0x223a   :  { %v10145_v12 = vpop.f32.mrb[38].mxu0 }
0x223b   :  { %v4212_v6 = vpop.f32.mrb[39].mxu0  ;;  %v4224_v7 = vadd.f32 %v10145_v12, %v12246_v51  ;;  %v4450_v51 = vld [vmem:[%s13672_s22] sm:$0xff] }
0x223c   :  { %v4223_v58 = vadd.f32 %v4212_v6, %v12249_v17  ;;  %v4451_v17 = vld [vmem:[%s13672_s22 + $0x8] sm:$0xff] }
0x223d   :  { %v12658_v63 = vadd.f32 %v12595_v2, %v4224_v7  ;;  %v10720_v42 = vpack.c.bf16 %v4451_v17, %v4450_v51 }
0x223e   :  { %v12655_v10 = vadd.f32 %v12595_v2, %v4223_v58  ;;  %v4452_v2 = vld [vmem:[%s13672_s22 + $0x10] sm:$0xff]  ;;  %v12706_v58 = vld [vmem:[%s13772_s6] ss:$0 sm:$0xff] }
0x223f   :  { %v4247_v18 = vsel %vm101_vm0, %v12658_v63, 0.0  ;;  %v10724_v1 = vpack.c.bf16 %v4453_v14, %v4452_v2  ;;  %10721 = vmatprep.subr.bf16.mxu0 %v10720_v42 }
0x2240   :  { %v4244_v11 = vsel %vm101_vm0, %v12655_v10, 0.0  ;;  %10723 = vmatpush3.bf16.msra.mxu0 %v10720_v42 }
0x2241   :  { %4245 = vadd.xlane.f32.xlu0 %v4244_v11  ;;  %10725 = vmatprep.subr.bf16.mxu0 %v10724_v1 }
0x2244   :  { %10727 = vmatpush3.bf16.msra.mxu0 %v10724_v1 }
0x2245   :  { %4248 = vadd.xlane.f32.xlu0 %v4247_v18  ;;  %10729 = vmatprep.subr.bf16.mxu0 %v10728_v28 }
0x2248   :  { %10731 = vmatpush3.bf16.msra.mxu0 %v10728_v28 }
0x2249   :  { %10733 = vmatprep.subr.bf16.mxu0 %v10732_v34 }
0x224c   :  { %10735 = vmatpush3.bf16.msra.mxu0 %v10732_v34 }
0x22ce   :  { %v4246_v35 = vpop.xlane.xlu0 %4245 }
0x22cf   :  { %v4252_v24 = vmul.f32 0.03125, %v4246_v35 }
0x22d1   :  { %v4256_v23 = vsub.f32 %v12655_v10, %v4252_v24 }
0x22d2   :  { %v4249_v36 = vpop.xlane.xlu0 %4248 }
0x22d3   :  { %v4253_v52 = vmul.f32 0.03125, %v4249_v36  ;;  %v4260_v37 = vmul.f32 %v4256_v23, %v4256_v23  ;;  %v4314_v44 = vmul.f32 %v12639_v53, %v4256_v23 }
0x22d5   :  { %v4257_v38 = vsub.f32 %v12658_v63, %v4253_v52  ;;  %v4268_v8 = vsel %vm101_vm0, %v4260_v37, 0.0  ;;  %v9296_v37 = vld [vmem:[%s13773_s12 + $0x20] sm:$0xff] }
0x22d6   :  { %4269 = vadd.xlane.f32.xlu1 %v4268_v8  ;;  %v9298_v8 = vld [vmem:[%s13773_s12 + $0x30] sm:$0xff] }
0x22d7   :  { %v4261_v30 = vmul.f32 %v4257_v38, %v4257_v38  ;;  %v4315_v61 = vmul.f32 %v12639_v53, %v4257_v38  ;;  %v9297_v38 = vld [vmem:[%s13773_s12 + $0x28] sm:$0xff] }
0x22d9   :  { %v4271_v0 = vsel %vm101_vm0, %v4261_v30, 0.0  ;;  %v10736_v30 = vpack.c.bf16 %v9297_v38, %v9296_v37 }
0x22da   :  { %4272 = vadd.xlane.f32.xlu0 %v4271_v0  ;;  %v9299_v0 = vld [vmem:[%s13773_s12 + $0x38] sm:$0xff]  ;;  %s13774_s12 = sld [smem:[#allocation4_spill]] }
0x22db   :  { %10737 = vmatprep.subr.bf16.mxu1 %v10736_v30 }
0x22dc   :  { %10739 = vmatpush3.bf16.msra.mxu1 %v10736_v30 }
0x22fe   :  { %v10156_v46 = vpop.f32.mrb[44].mxu1 }
0x22ff   :  { %v4433_v31 = vadd.f32 %v10156_v46, %v9282_v54  ;;  %v4427_v60 = vpop.f32.mrb[45].mxu1 }
0x2300   :  { %v4428_v41 = vadd.f32 %v9282_v54, %v4427_v60 }
0x2301   :  { %v4447_v5 = vmax.f32 %v4433_v31, 0.0 }
0x2302   :  { %v4446_v39 = vmax.f32 %v4428_v41, 0.0 }
0x2304   :  { %10176 = vmatprep.mubr.msk.f32.mxu0 %vm4458_vm14, %v4446_v39 }
0x2305   :  { %10177 = vmatmul.mubr.msk.f32.vlgmr.msra.gmra.mrb[40].mxu0 %vm4458_vm14, %v4447_v5 }
0x2363   :  { %v4270_v50 = vpop.xlane.xlu1 %4269 }
0x2364   :  { %v4276_v47 = vmul.f32 0.032258064, %v4270_v50 }
0x2366   :  { %11442 = vrsqrt.f32 %v4276_v47  ;;  %vm4294_vm15 = vcmp.eq.f32.partialorder %v4276_v47, inf  ;;  %v4297_v33 = vand.u32 2147483648, %v4276_v47  ;;  %vm4296_vm1 = vcmp.eq.f32.partialorder %v4276_v47, 0.0 }
0x2367   :  { %v4273_v48 = vpop.xlane.xlu0 %4272 }
0x2368   :  { %v4277_v40 = vmul.f32 0.032258064, %v4273_v48 }
0x236a   :  { %11444 = vrsqrt.f32 %v4277_v40  ;;  %vm4301_vm2 = vcmp.eq.f32.partialorder %v4277_v40, inf  ;;  %v4304_v45 = vand.u32 2147483648, %v4277_v40  ;;  %vm4303_vm3 = vcmp.eq.f32.partialorder %v4277_v40, 0.0 }
0x2370   :  { %v11443_v25 = vpop.eup %11442 }
0x2371   :  { %v4293_v22 = vmul.f32 %v11443_v25, %v4276_v47 }
0x2373   :  { %v4295_v21 = vsel %vm4294_vm15, %v4276_v47, %v4293_v22 }
0x2374   :  { %v11445_v19 = vpop.eup %11444  ;;  %v4298_v27 = vsel %vm4296_vm1, %v4297_v33, %v4295_v21 }
0x2375   :  { %v4300_v29 = vmul.f32 %v11445_v19, %v4277_v40  ;;  %v4318_v56 = vadd.f32 1e-06, %v4298_v27 }
0x2377   :  { %v4302_v43 = vsel %vm4301_vm2, %v4277_v40, %v4300_v29  ;;  %11446 = vrcp.f32 %v4318_v56  ;;  %v12741_v29 = vld [vmem:[%s13774_s12 + $0x1] ss:$0 sm:$0xff]  ;;  %s13777_s12 = sld [smem:[#allocation7_spill]] }
0x2378   :  { %v4305_v20 = vsel %vm4303_vm3, %v4304_v45, %v4302_v43  ;;  %v12747_v43 = vld [vmem:[%s13775_s19 + $0x1] ss:$0 sm:$0xff]  ;;  %s13778_s19 = smov 56  }
0x2379   :  { %v4319_v13 = vadd.f32 1e-06, %v4305_v20 }
0x237b   :  { %11448 = vrcp.f32 %v4319_v13 }
0x2381   :  { %v11447_v57 = vpop.eup %11446 }
0x2382   :  { %v4326_v16 = vmul.f32 %v11447_v57, %v4314_v44 }
0x2384   :  { %v4336_v62 = vadd.f32 %v12645_v55, %v4326_v16 }
0x2385   :  { %v11449_v3 = vpop.eup %11448 }
0x2386   :  { %10157 = vmatprep.mubr.msk.f32.mxu1 %vm101_vm0, %v4336_v62  ;;  %v4327_v12 = vmul.f32 %v11449_v3, %v4315_v61 }
0x2388   :  { %v4337_v6 = vadd.f32 %v12645_v55, %v4327_v12 }
0x238a   :  { %10158 = vmatmul.mubr.msk.f32.gmra.mrb[46].mxu1 %vm101_vm0, %v4337_v6 }
0x23d8   :  { %v10178_v7 = vpop.f32.mrb[40].mxu0 }
0x23d9   :  { %v4537_v11 = vpop.f32.mrb[41].mxu0  ;;  %v4557_v18 = vadd.f32 %v10178_v7, %v12605_v9 }
0x23da   :  { %v4556_v53 = vadd.f32 %v4537_v11, %v12599_v4 }
0x23db   :  { %v12714_v17 = vadd.f32 %v12706_v58, %v4557_v18 }
0x23dc   :  { %v12711_v51 = vadd.f32 %v12706_v58, %v4556_v53 }
0x23dd   :  { %v4578_v2 = vsel %vm101_vm0, %v12714_v17, 0.0 }
0x23de   :  { %v4575_v55 = vsel %vm101_vm0, %v12711_v51, 0.0 }
0x23df   :  { %4576 = vadd.xlane.f32.xlu0 %v4575_v55 }
0x23e3   :  { %4579 = vadd.xlane.f32.xlu0 %v4578_v2 }
0x245d   :  { %v10159_v42 = vpop.f32.mrb[46].mxu1 }
0x245e   :  { %v4443_v14 = vadd.f32 %v10159_v42, %v9282_v54  ;;  %v4437_v1 = vpop.f32.mrb[47].mxu1 }
0x245f   :  { %v4438_v9 = vadd.f32 %v9282_v54, %v4437_v1  ;;  %v10740_v54 = vpack.c.bf16 %v9299_v0, %v9298_v8 }
0x2460   :  { %v4449_v4 = vmax.f32 %v4443_v14, 0.0 }
0x2461   :  { %v4448_v15 = vmax.f32 %v4438_v9, 0.0  ;;  %10741 = vmatprep.subr.bf16.mxu1 %v10740_v54 }
0x2462   :  { %10743 = vmatpush3.bf16.msra.mxu1 %v10740_v54 }
0x2463   :  { %10179 = vmatprep.mubr.msk.f32.mxu0 %vm4458_vm14, %v4448_v15 }
0x2464   :  { %10180 = vmatmul.mubr.msk.f32.gmra.mrb[42].mxu0 %vm4458_vm14, %v4449_v4  ;;  %v12781_v4 = vld [vmem:[%s13776_s1 + $0x1] ss:$0 sm:$0xff]  ;;  %s13781_s1 = smov 40  }
0x246c   :  { %v4577_v59 = vpop.xlane.xlu0 %4576 }
0x246d   :  { %v4587_v28 = vmul.f32 0.03125, %v4577_v59 }
0x246f   :  { %v4591_v49 = vsub.f32 %v12711_v51, %v4587_v28 }
0x2470   :  { %v4580_v26 = vpop.xlane.xlu0 %4579 }
0x2471   :  { %v4588_v34 = vmul.f32 0.03125, %v4580_v26  ;;  %v4595_v35 = vmul.f32 %v4591_v49, %v4591_v49  ;;  %v4649_v56 = vmul.f32 %v12741_v29, %v4591_v49 }
0x2473   :  { %v4592_v24 = vsub.f32 %v12714_v17, %v4588_v34  ;;  %v4599_v23 = vsel %vm101_vm0, %v4595_v35, 0.0 }
0x2474   :  { %4600 = vadd.xlane.f32.xlu0 %v4599_v23 }
0x2475   :  { %v4596_v36 = vmul.f32 %v4592_v24, %v4592_v24  ;;  %v4650_v13 = vmul.f32 %v12741_v29, %v4592_v24 }
0x2477   :  { %v4602_v52 = vsel %vm101_vm0, %v4596_v36, 0.0 }
0x2478   :  { %4603 = vadd.xlane.f32.xlu0 %v4602_v52 }
0x2501   :  { %v4601_v46 = vpop.xlane.xlu0 %4600 }
0x2502   :  { %v4611_v31 = vmul.f32 0.032258064, %v4601_v46 }
0x2504   :  { %11450 = vrsqrt.f32 %v4611_v31  ;;  %vm4617_vm4 = vcmp.eq.f32.partialorder %v4611_v31, inf  ;;  %v4620_v50 = vand.u32 2147483648, %v4611_v31  ;;  %vm4619_vm5 = vcmp.eq.f32.partialorder %v4611_v31, 0.0 }
0x2505   :  { %v4604_v60 = vpop.xlane.xlu0 %4603 }
0x2506   :  { %v4612_v41 = vmul.f32 0.032258064, %v4604_v60 }
0x2508   :  { %11452 = vrsqrt.f32 %v4612_v41  ;;  %vm4624_vm6 = vcmp.eq.f32.partialorder %v4612_v41, inf  ;;  %v4627_v33 = vand.u32 2147483648, %v4612_v41  ;;  %vm4626_vm7 = vcmp.eq.f32.partialorder %v4612_v41, 0.0 }
0x250e   :  { %v11451_v39 = vpop.eup %11450 }
0x250f   :  { %v4616_v5 = vmul.f32 %v11451_v39, %v4611_v31 }
0x2511   :  { %v4618_v47 = vsel %vm4617_vm4, %v4611_v31, %v4616_v5 }
0x2512   :  { %v11453_v48 = vpop.eup %11452  ;;  %v4621_v40 = vsel %vm4619_vm5, %v4620_v50, %v4618_v47 }
0x2513   :  { %v4623_v25 = vmul.f32 %v11453_v48, %v4612_v41  ;;  %v4653_v22 = vadd.f32 1e-06, %v4621_v40 }
0x2515   :  { %v4625_v21 = vsel %vm4624_vm6, %v4612_v41, %v4623_v25  ;;  %11454 = vrcp.f32 %v4653_v22 }
0x2516   :  { %v4628_v19 = vsel %vm4626_vm7, %v4627_v33, %v4625_v21 }
0x2517   :  { %v4654_v27 = vadd.f32 1e-06, %v4628_v19 }
0x2519   :  { %11456 = vrcp.f32 %v4654_v27 }
0x251f   :  { %v11455_v45 = vpop.eup %11454 }
0x2520   :  { %v4661_v20 = vmul.f32 %v11455_v45, %v4649_v56 }
0x2522   :  { %v4671_v44 = vadd.f32 %v12747_v43, %v4661_v20 }
0x2523   :  { %v11457_v57 = vpop.eup %11456 }
0x2524   :  { %10190 = vmatprep.mubr.msk.f32.mxu1 %vm101_vm0, %v4671_v44  ;;  %v4662_v16 = vmul.f32 %v11457_v57, %v4650_v13 }
0x2526   :  { %v4672_v61 = vadd.f32 %v12747_v43, %v4662_v16 }
0x2528   :  { %10191 = vmatmul.mubr.msk.f32.vlgmr.msra.gmra.mrb[48].mxu1 %vm101_vm0, %v4672_v61 }
0x2537   :  { %v10181_v62 = vpop.f32.mrb[42].mxu0 }
0x2538   :  { %v4547_v3 = vpop.f32.mrb[43].mxu0  ;;  %v4559_v12 = vadd.f32 %v10181_v62, %v12658_v63 }
0x2539   :  { %v4558_v6 = vadd.f32 %v4547_v3, %v12655_v10 }
0x253a   :  { %v12760_v11 = vadd.f32 %v12706_v58, %v4559_v12 }
0x253b   :  { %v12757_v7 = vadd.f32 %v12706_v58, %v4558_v6 }
0x253c   :  { %v4584_v53 = vsel %vm101_vm0, %v12760_v11, 0.0 }
0x253d   :  { %v4581_v18 = vsel %vm101_vm0, %v12757_v7, 0.0 }
0x253e   :  { %4582 = vadd.xlane.f32.xlu0 %v4581_v18 }
0x2542   :  { %4585 = vadd.xlane.f32.xlu0 %v4584_v53 }
0x25cb   :  { %v4583_v55 = vpop.xlane.xlu0 %4582 }
0x25cc   :  { %v4589_v2 = vmul.f32 0.03125, %v4583_v55 }
0x25ce   :  { %v12767_v63 = vsub.f32 %v12757_v7, %v4589_v2 }
0x25cf   :  { %v4586_v10 = vpop.xlane.xlu0 %4585 }
0x25d0   :  { %v4590_v42 = vmul.f32 0.03125, %v4586_v10  ;;  %v4597_v14 = vmul.f32 %v12767_v63, %v12767_v63  ;;  %v4651_v45 = vmul.f32 %v12741_v29, %v12767_v63 }
0x25d2   :  { %v12772_v58 = vsub.f32 %v12760_v11, %v4590_v42  ;;  %v4605_v1 = vsel %vm101_vm0, %v4597_v14, 0.0 }
0x25d3   :  { %4606 = vadd.xlane.f32.xlu0 %v4605_v1 }
0x25d4   :  { %v4598_v9 = vmul.f32 %v12772_v58, %v12772_v58  ;;  %v4652_v61 = vmul.f32 %v12741_v29, %v12772_v58 }
0x25d6   :  { %v4608_v15 = vsel %vm101_vm0, %v4598_v9, 0.0 }
0x25d7   :  { %4609 = vadd.xlane.f32.xlu0 %v4608_v15  ;;  %v12842_v15 = vld [vmem:[%s13777_s12 + $0x8] sm:$0xff] }
0x25fb   :  { %v10192_v59 = vpop.f32.mrb[48].mxu1 }
0x25fc   :  { %v12784_v28 = vadd.f32 %v10192_v59, %v12781_v4  ;;  %v4766_v49 = vpop.f32.mrb[49].mxu1 }
0x25fd   :  { %v12787_v26 = vadd.f32 %v12781_v4, %v4766_v49  ;;  %v12848_v49 = vld [vmem:[%s13777_s12] sm:$0xff] }
0x25ff   :  { %v12791_v34 = vpack.i.bf16 %v12784_v28, %v12787_v26 }
0x2601   :  { %11125 = vrot.lane.b32.xlu1 %v12791_v34, %s13770_s5  ;;  %11130 = vrot.lane.b32.xlu0 %v12791_v34, %s13769_s26 }
0x2605   :  { %4987 = vrot.lane.b32.xlu1 %v12787_v26, %s13768_s4  ;;  %4989 = vrot.lane.b32.xlu0 %v12784_v28, %s13768_s4 }
0x2609   :  { %11135 = vrot.lane.b32.xlu1 %v12791_v34, %s13755_s27  ;;  %5193 = vrot.lane.b32.xlu0 %v12784_v28, %s13767_s28 }
0x260d   :  { %5191 = vrot.lane.b32.xlu1 %v12787_v26, %s13767_s28 }
0x2660   :  { %v4607_v35 = vpop.xlane.xlu0 %4606 }
0x2661   :  { %v4613_v24 = vmul.f32 0.032258064, %v4607_v35 }
0x2663   :  { %11458 = vrsqrt.f32 %v4613_v24  ;;  %vm4631_vm8 = vcmp.eq.f32.partialorder %v4613_v24, inf  ;;  %v4634_v38 = vand.u32 2147483648, %v4613_v24  ;;  %vm4633_vm13 = vcmp.eq.f32.partialorder %v4613_v24, 0.0 }
0x2664   :  { %v4610_v23 = vpop.xlane.xlu0 %4609 }
0x2665   :  { %v4614_v36 = vmul.f32 0.032258064, %v4610_v23 }
0x2667   :  { %11460 = vrsqrt.f32 %v4614_v36  ;;  %vm4638_vm15 = vcmp.eq.f32.partialorder %v4614_v36, inf  ;;  %vm4640_vm1 = vcmp.eq.f32.partialorder %v4614_v36, 0.0  ;;  %v4641_v31 = vand.u32 2147483648, %v4614_v36 }
0x266d   :  { %v11459_v52 = vpop.eup %11458 }
0x266e   :  { %v4630_v37 = vmul.f32 %v11459_v52, %v4613_v24 }
0x2670   :  { %v4632_v8 = vsel %vm4631_vm8, %v4613_v24, %v4630_v37 }
0x2671   :  { %v11461_v30 = vpop.eup %11460  ;;  %v4635_v0 = vsel %vm4633_vm13, %v4634_v38, %v4632_v8 }
0x2672   :  { %v4637_v54 = vmul.f32 %v11461_v30, %v4614_v36  ;;  %v4655_v46 = vadd.f32 1e-06, %v4635_v0 }
0x2673   :  { %v11126_v60 = vpop.permute.xlu1 %11125  ;;  %v11131_v41 = vpop.permute.xlu0 %11130 }
0x2674   :  { %v4639_v39 = vsel %vm4638_vm15, %v4614_v36, %v4637_v54  ;;  %v11128_v5 = vunpack.i.h.bf16 %v11126_v60  ;;  %v11127_v50 = vunpack.i.l.bf16 %v11126_v60  ;;  %v11133_v47 = vunpack.i.h.bf16 %v11131_v41 }
0x2675   :  { %v11132_v48 = vunpack.i.l.bf16 %v11131_v41  ;;  %11462 = vrcp.f32 %v4655_v46  ;;  %v4642_v40 = vsel %vm4640_vm1, %v4641_v31, %v4639_v39 }
0x2676   :  { %v10744_v25 = vpack.c.bf16 %v11128_v5, %v11127_v50  ;;  %v4656_v22 = vadd.f32 1e-06, %v4642_v40 }
0x2677   :  { %v10754_v33 = vpack.c.bf16 %v11133_v47, %v11132_v48  ;;  %v4988_v21 = vpop.permute.xlu1 %4987  ;;  %v4990_v57 = vpop.permute.xlu0 %4989 }
0x2678   :  { %10746 = vmatprep.subr.msk.bf16.mxu1 %vm11902_vm10, %v10744_v25  ;;  %10214 = vmatprep.mubr.msk.f32.mxu0 %vm317_vm9, %v4988_v21  ;;  %11464 = vrcp.f32 %v4656_v22 }
0x2679   :  { %10756 = vmatprep.subr.msk.bf16.mxu0 %vm11902_vm10, %v10754_v33  ;;  %10749 = vmatpush3.bf16.xpose.msk.msra.mxu1 %vm11902_vm10, %v10744_v25 }
0x267a   :  { %10759 = vmatpush3.bf16.xpose.msk.msra.mxu0 %vm11902_vm10, %v10754_v33 }
0x267b   :  { %v11136_v19 = vpop.permute.xlu1 %11135  ;;  %v5194_v18 = vpop.permute.xlu0 %5193 }
0x267c   :  { %v11138_v27 = vunpack.i.h.bf16 %v11136_v19  ;;  %v11137_v56 = vunpack.i.l.bf16 %v11136_v19 }
0x267e   :  { %v10764_v20 = vpack.c.bf16 %v11138_v27, %v11137_v56 }
0x267f   :  { %v11463_v13 = vpop.eup %11462  ;;  %v5192_v44 = vpop.permute.xlu1 %5191 }
0x2680   :  { %10766 = vmatprep.subr.msk.bf16.mxu0 %vm11902_vm10, %v10764_v20  ;;  %v4663_v16 = vmul.f32 %v11463_v13, %v4651_v45 }
0x2681   :  { %10215 = vmatmul.mubr.msk.f32.vlgmr.msra.gmra.mrb[44].mxu0 %vm317_vm9, %v4990_v57 }
0x2682   :  { %v11465_v62 = vpop.eup %11464  ;;  %10769 = vmatpush3.bf16.xpose.msk.msra.mxu0 %vm11902_vm10, %v10764_v20  ;;  %10228 = vmatprep.mubr.msk.f32.mxu0 %vm317_vm9, %v5192_v44  ;;  %v4673_v3 = vadd.f32 %v12747_v43, %v4663_v16 }
0x2683   :  { %v4664_v12 = vmul.f32 %v11465_v62, %v4652_v61 }
0x2684   :  { %10193 = vmatprep.mubr.msk.f32.mxu1 %vm101_vm0, %v4673_v3 }
0x2685   :  { %v4674_v6 = vadd.f32 %v12747_v43, %v4664_v12 }
0x2687   :  { %10194 = vmatmul.mubr.msk.f32.gmra.mrb[50].mxu1 %vm101_vm0, %v4674_v6 }
0x2688   :  { %10200 = vmatprep.mubr.msk.f32.mxu1 %vm317_vm9, %v12787_v26 }
0x2689   :  { %10229 = vmatmul.mubr.msk.f32.vlgmr.msra.gmra.mrb[46].mxu0 %vm317_vm9, %v5194_v18 }
0x268b   :  { %10201 = vmatmul.mubr.msk.f32.vlgmr.msra.gmra.mrb[52].mxu1 %vm317_vm9, %v12784_v28 }
0x2754   :  { %v10216_v29 = vpop.f32.mrb[44].mxu0 }
0x2755   :  { %v5069_v53 = vpop.f32.mrb[45].mxu0  ;;  %v5079_v1 = vmul.f32 0.35355338, %v10216_v29 }
0x2756   :  { %v5078_v42 = vmul.f32 0.35355338, %v5069_v53 }
0x2757   :  { %v5081_v52 = vadd.f32 %v12842_v15, %v5079_v1 }
0x2758   :  { %v5080_v24 = vadd.f32 %v12848_v49, %v5078_v42 }
0x2759   :  { %v5085_v54 = vsel %vm405_vm11, %v5081_v52, -inf }
0x275a   :  { %v12835_v55 = vpop.f32.mrb[50].mxu1  ;;  %v5082_v30 = vsel %vm405_vm11, %v5080_v24, -inf }
0x275b   :  { %v12837_v2 = vpop.f32.mrb[51].mxu1 }
0x275c   :  { %v10230_v63 = vpop.f32.mrb[46].mxu0 }
0x275d   :  { %v5273_v10 = vpop.f32.mrb[47].mxu0  ;;  %v5283_v37 = vmul.f32 0.35355338, %v10230_v63 }
0x275e   :  { %v10202_v43 = vpop.f32.mrb[52].mxu1  ;;  %v5282_v23 = vmul.f32 0.35355338, %v5273_v10 }
0x275f   :  { %v4875_v14 = vmul.f32 0.35355338, %v10202_v43  ;;  %v4865_v58 = vpop.f32.mrb[53].mxu1  ;;  %v5285_v0 = vadd.f32 %v12842_v15, %v5283_v37 }
0x2760   :  { %v4874_v9 = vmul.f32 0.35355338, %v4865_v58  ;;  %v5284_v8 = vadd.f32 %v12848_v49, %v5282_v23 }
0x2761   :  { %v4877_v59 = vadd.f32 %v12842_v15, %v4875_v14  ;;  %v5289_v31 = vsel %vm405_vm11, %v5285_v0, -inf }
0x2762   :  { %v4876_v35 = vadd.f32 %v12848_v49, %v4874_v9  ;;  %v5286_v46 = vsel %vm405_vm11, %v5284_v8, -inf }
0x2763   :  { %v4881_v36 = vsel %vm405_vm11, %v4877_v59, -inf }
0x2764   :  { %4882 = vmax.xlane.f32.xlu0 %v4881_v36  ;;  %v4878_v38 = vsel %vm405_vm11, %v4876_v35, -inf }
0x2765   :  { %4879 = vmax.xlane.f32.xlu1 %v4878_v38 }
0x2768   :  { %5083 = vmax.xlane.f32.xlu0 %v5082_v30 }
0x2769   :  { %5086 = vmax.xlane.f32.xlu1 %v5085_v54 }
0x276c   :  { %5287 = vmax.xlane.f32.xlu0 %v5286_v46 }
0x276d   :  { %5290 = vmax.xlane.f32.xlu1 %v5289_v31 }
0x277e   :  { %11145 = vrot.lane.b32.xlu1 %v12791_v34, %s13778_s19 }
0x2782   :  { %11140 = vrot.lane.b32.xlu0 %v12791_v34, %s13779_s20 }
0x27f1   :  { %v4883_v60 = vpop.xlane.xlu0 %4882 }
0x27f2   :  { %v4885_v41 = vsub.f32 %v4877_v59, %v4883_v60  ;;  %v4880_v39 = vpop.xlane.xlu1 %4879 }
0x27f3   :  { %v4884_v5 = vsub.f32 %v4876_v35, %v4880_v39 }
0x27f4   :  { %v4888_v50 = vmul.f32 1.442695, %v4885_v41 }
0x27f5   :  { %v4886_v47 = vmul.f32 1.442695, %v4884_v5  ;;  %v5084_v48 = vpop.xlane.xlu0 %5083 }
0x27f6   :  { %11466 = vpow2.f32 %v4888_v50  ;;  %v5088_v40 = vsub.f32 %v5080_v24, %v5084_v48  ;;  %v5087_v25 = vpop.xlane.xlu1 %5086 }
0x27f7   :  { %11468 = vpow2.f32 %v4886_v47  ;;  %v5089_v22 = vsub.f32 %v5081_v52, %v5087_v25 }
0x27f8   :  { %v5090_v33 = vmul.f32 1.442695, %v5088_v40 }
0x27f9   :  { %v5092_v21 = vmul.f32 1.442695, %v5089_v22  ;;  %v5288_v19 = vpop.xlane.xlu0 %5287 }
0x27fa   :  { %11470 = vpow2.f32 %v5090_v33  ;;  %v5292_v27 = vsub.f32 %v5284_v8, %v5288_v19  ;;  %v5291_v56 = vpop.xlane.xlu1 %5290 }
0x27fb   :  { %11472 = vpow2.f32 %v5092_v21  ;;  %v5293_v58 = vsub.f32 %v5285_v0, %v5291_v56 }
0x27fc   :  { %v5294_v45 = vmul.f32 1.442695, %v5292_v27 }
0x27fd   :  { %v11141_v20 = vpop.permute.xlu0 %11140  ;;  %v5296_v1 = vmul.f32 1.442695, %v5293_v58 }
0x27fe   :  { %11474 = vpow2.f32 %v5294_v45  ;;  %v11143_v13 = vunpack.i.h.bf16 %v11141_v20  ;;  %v11142_v44 = vunpack.i.l.bf16 %v11141_v20  ;;  %v11146_v57 = vpop.permute.xlu1 %11145 }
0x27ff   :  { %v11148_v16 = vunpack.i.h.bf16 %v11146_v57  ;;  %v11147_v61 = vunpack.i.l.bf16 %v11146_v57  ;;  %11476 = vpow2.f32 %v5296_v1  ;;  %v12911_v1 = vadd.f32 %v12835_v55, %v12781_v4 }
0x2800   :  { %v11467_v62 = vpop.eup %11466  ;;  %v10750_v3 = vpack.c.bf16 %v11143_v13, %v11142_v44 }
0x2801   :  { %v11469_v12 = vpop.eup %11468  ;;  %v4893_v6 = vsel %vm405_vm11, %v11467_v62, 0.0  ;;  %v10760_v18 = vpack.c.bf16 %v11148_v16, %v11147_v61 }
0x2802   :  { %4894 = vadd.xlane.f32.xlu1 %v4893_v6  ;;  %10751 = vmatprep.subr.bf16.mxu1 %v10750_v3  ;;  %v4890_v29 = vsel %vm405_vm11, %v11469_v12, 0.0 }
0x2803   :  { %4891 = vadd.xlane.f32.xlu0 %v4890_v29  ;;  %10753 = vmatpush3.bf16.msra.mxu1 %v10750_v3 }
0x2804   :  { %v11471_v53 = vpop.eup %11470  ;;  %10761 = vmatprep.subr.bf16.mxu1 %v10760_v18 }
0x2805   :  { %v11473_v63 = vpop.eup %11472  ;;  %v5094_v10 = vsel %vm405_vm11, %v11471_v53, 0.0 }
0x2806   :  { %v5097_v43 = vsel %vm405_vm11, %v11473_v63, 0.0 }
0x2807   :  { %5098 = vadd.xlane.f32.xlu1 %v5097_v43  ;;  %5095 = vadd.xlane.f32.xlu0 %v5094_v10 }
0x2808   :  { %v11475_v42 = vpop.eup %11474 }
0x2809   :  { %v5298_v14 = vsel %vm405_vm11, %v11475_v42, 0.0  ;;  %v11477_v9 = vpop.eup %11476 }
0x280a   :  { %v5301_v59 = vsel %vm405_vm11, %v11477_v9, 0.0 }
0x280b   :  { %5299 = vadd.xlane.f32.xlu0 %v5298_v14 }
0x2818   :  { %11150 = vrot.lane.b32.xlu1 %v12791_v34, %s13780_s8 }
0x2821   :  { %11155 = vrot.lane.b32.xlu0 %v12791_v34, %s13758_s2 }
0x2825   :  { %5397 = vrot.lane.b32.xlu0 %v12784_v28, %s13757_s0 }
0x283c   :  { %5302 = vadd.xlane.f32.xlu1 %v5301_v59 }
0x284d   :  { %5395 = vrot.lane.b32.xlu1 %v12787_v26, %s13757_s0 }
0x288f   :  { %v4895_v35 = vpop.xlane.xlu1 %4894 }
0x2890   :  { %11478 = vrcp.f32 %v4895_v35  ;;  %v4892_v24 = vpop.xlane.xlu0 %4891 }
0x2891   :  { %11480 = vrcp.f32 %v4892_v24 }
0x2894   :  { %v5099_v23 = vpop.xlane.xlu1 %5098  ;;  %v5096_v36 = vpop.xlane.xlu0 %5095 }
0x2895   :  { %11482 = vrcp.f32 %v5099_v23 }
0x2896   :  { %11484 = vrcp.f32 %v5096_v36 }
0x2898   :  { %v11151_v52 = vpop.permute.xlu1 %11150  ;;  %v5300_v28 = vpop.xlane.xlu0 %5299 }
0x2899   :  { %11486 = vrcp.f32 %v5300_v28  ;;  %v11153_v8 = vunpack.i.h.bf16 %v11151_v52  ;;  %v11152_v30 = vunpack.i.l.bf16 %v11151_v52 }
0x289a   :  { %v11479_v37 = vpop.eup %11478 }
0x289b   :  { %v11481_v38 = vpop.eup %11480  ;;  %v4899_v46 = vmul.f32 %v11479_v37, %v11467_v62  ;;  %v10770_v31 = vpack.c.bf16 %v11153_v8, %v11152_v30 }
0x289c   :  { %v4898_v0 = vmul.f32 %v11481_v38, %v11469_v12  ;;  %v11156_v54 = vpop.permute.xlu0 %11155 }
0x289d   :  { %v11158_v41 = vunpack.i.h.bf16 %v11156_v54  ;;  %v11157_v39 = vunpack.i.l.bf16 %v11156_v54 }
0x289e   :  { %10207 = vmatprep.mubr.msk.f32.mxu1 %vm405_vm11, %v4898_v0 }
0x289f   :  { %v11483_v26 = vpop.eup %11482  ;;  %10208 = vmatmul.mubr.msk.f32.vlgmr.msra.gmra.mrb[54].mxu1 %vm405_vm11, %v4899_v46  ;;  %v10774_v48 = vpack.c.bf16 %v11158_v41, %v11157_v39  ;;  %v12942_v41 = vld [vmem:[%s13777_s12 + $0x18] sm:$0xff] }
0x28a0   :  { %v11485_v60 = vpop.eup %11484  ;;  %10763 = vmatpush3.bf16.msra.mxu1 %v10760_v18  ;;  %v5103_v5 = vmul.f32 %v11483_v26, %v11473_v63  ;;  %v5398_v19 = vpop.permute.xlu0 %5397 }
0x28a1   :  { %10771 = vmatprep.subr.bf16.mxu1 %v10770_v31  ;;  %v5102_v50 = vmul.f32 %v11485_v60, %v11471_v53 }
0x28a3   :  { %v11487_v47 = vpop.eup %11486  ;;  %10221 = vmatprep.mubr.msk.f32.mxu1 %vm405_vm11, %v5102_v50 }
0x28a4   :  { %10222 = vmatmul.mubr.msk.f32.vlgmr.msra.gmra.mrb[56].mxu1 %vm405_vm11, %v5103_v5  ;;  %v5306_v40 = vmul.f32 %v11487_v47, %v11475_v42  ;;  %v12948_v5 = vld [vmem:[%s13777_s12 + $0x10] sm:$0xff] }
0x28a5   :  { %10773 = vmatpush3.bf16.msra.mxu1 %v10770_v31 }
0x28a6   :  { %10776 = vmatprep.subr.msk.bf16.mxu1 %vm11902_vm10, %v10774_v48  ;;  %10235 = vmatprep.mubr.msk.f32.mxu1 %vm405_vm11, %v5306_v40 }
0x28c9   :  { %v5303_v25 = vpop.xlane.xlu1 %5302 }
0x28ca   :  { %11488 = vrcp.f32 %v5303_v25 }
0x28cd   :  { %v5396_v21 = vpop.permute.xlu1 %5395 }
0x28d4   :  { %v11489_v22 = vpop.eup %11488 }
0x28d5   :  { %v5307_v33 = vmul.f32 %v11489_v22, %v11477_v9  ;;  %v12915_v9 = vadd.f32 %v12781_v4, %v12837_v2 }
0x28d7   :  { %10236 = vmatmul.mubr.msk.f32.vlgmr.msra.gmra.mrb[58].mxu1 %vm405_vm11, %v5307_v33  ;;  %v12919_v59 = vpack.i.bf16 %v12911_v1, %v12915_v9 }
0x28d8   :  { %10779 = vmatpush3.bf16.xpose.msk.msra.mxu1 %vm11902_vm10, %v10774_v48  ;;  %10242 = vmatprep.mubr.msk.f32.mxu1 %vm317_vm9, %v5396_v21 }
0x28df   :  { %10243 = vmatmul.mubr.msk.f32.vlgmr.msra.gmra.mrb[60].mxu1 %vm317_vm9, %v5398_v19 }
0x2972   :  { %v12891_v27 = vpop.f32.mrb[54].mxu1 }
0x2973   :  { %v12893_v56 = vpop.f32.mrb[55].mxu1 }
0x2977   :  { %v12895_v45 = vpop.f32.mrb[56].mxu1 }
0x2978   :  { %v12897_v20 = vpop.f32.mrb[57].mxu1 }
0x29aa   :  { %v12899_v13 = vpop.f32.mrb[58].mxu1 }
0x29ab   :  { %v12901_v44 = vpop.f32.mrb[59].mxu1 }
0x29b2   :  { %v10244_v57 = vpop.f32.mrb[60].mxu1 }
0x29b3   :  { %v5487_v16 = vmul.f32 0.35355338, %v10244_v57  ;;  %v5477_v61 = vpop.f32.mrb[61].mxu1 }
0x29b4   :  { %v5486_v62 = vmul.f32 0.35355338, %v5477_v61 }
0x29b5   :  { %v5489_v3 = vadd.f32 %v12842_v15, %v5487_v16 }
0x29b6   :  { %v5488_v12 = vadd.f32 %v12848_v49, %v5486_v62 }
0x29b7   :  { %v5493_v6 = vsel %vm405_vm11, %v5489_v3, -inf }
0x29b8   :  { %5494 = vmax.xlane.f32.xlu0 %v5493_v6  ;;  %v5490_v18 = vsel %vm405_vm11, %v5488_v12, -inf }
0x29b9   :  { %5491 = vmax.xlane.f32.xlu1 %v5490_v18 }
0x2a45   :  { %v5495_v29 = vpop.xlane.xlu0 %5494 }
0x2a46   :  { %v5497_v53 = vsub.f32 %v5489_v3, %v5495_v29  ;;  %v5492_v63 = vpop.xlane.xlu1 %5491 }
0x2a47   :  { %v5496_v10 = vsub.f32 %v5488_v12, %v5492_v63 }
0x2a48   :  { %v5500_v43 = vmul.f32 1.442695, %v5497_v53 }
0x2a49   :  { %v5498_v42 = vmul.f32 1.442695, %v5496_v10 }
0x2a4a   :  { %11490 = vpow2.f32 %v5500_v43 }
0x2a4b   :  { %11492 = vpow2.f32 %v5498_v42 }
0x2a54   :  { %v11491_v14 = vpop.eup %11490 }
0x2a55   :  { %v11493_v58 = vpop.eup %11492  ;;  %v5505_v15 = vsel %vm405_vm11, %v11491_v14, 0.0 }
0x2a56   :  { %5506 = vadd.xlane.f32.xlu1 %v5505_v15  ;;  %v5502_v49 = vsel %vm405_vm11, %v11493_v58, 0.0 }
0x2a57   :  { %5503 = vadd.xlane.f32.xlu0 %v5502_v49 }
0x2a67   :  { %11165 = vrot.lane.b32.xlu1 %v12919_v59, %s13770_s5 }
0x2a6d   :  { %11160 = vrot.lane.b32.xlu0 %v12791_v34, %s13781_s1 }
0x2ae3   :  { %v5507_v35 = vpop.xlane.xlu1 %5506 }
0x2ae4   :  { %11494 = vrcp.f32 %v5507_v35  ;;  %v5504_v24 = vpop.xlane.xlu0 %5503 }
0x2ae5   :  { %11496 = vrcp.f32 %v5504_v24 }
0x2ae7   :  { %v11166_v55 = vpop.permute.xlu1 %11165 }
0x2ae8   :  { %v11161_v23 = vpop.permute.xlu0 %11160  ;;  %v11168_v36 = vunpack.i.h.bf16 %v11166_v55  ;;  %v11167_v52 = vunpack.i.l.bf16 %v11166_v55 }
0x2ae9   :  { %v11163_v4 = vunpack.i.h.bf16 %v11161_v23  ;;  %v11162_v2 = vunpack.i.l.bf16 %v11161_v23 }
0x2aea   :  { %v10784_v37 = vpack.c.bf16 %v11168_v36, %v11167_v52 }
0x2aeb   :  { %v10780_v28 = vpack.c.bf16 %v11163_v4, %v11162_v2 }
0x2aed   :  { %10781 = vmatprep.subr.bf16.mxu0 %v10780_v28 }
0x2aee   :  { %v11495_v38 = vpop.eup %11494  ;;  %10783 = vmatpush3.bf16.msra.mxu0 %v10780_v28 }
0x2aef   :  { %v11497_v8 = vpop.eup %11496  ;;  %10786 = vmatprep.subr.msk.bf16.mxu0 %vm11902_vm10, %v10784_v37  ;;  %v5511_v30 = vmul.f32 %v11495_v38, %v11491_v14 }
0x2af0   :  { %v5510_v34 = vmul.f32 %v11497_v8, %v11493_v58 }
0x2af2   :  { %10249 = vmatprep.mubr.msk.f32.mxu0 %vm405_vm11, %v5510_v34 }
0x2af3   :  { %10250 = vmatmul.mubr.msk.f32.vlgmr.msra.gmra.mrb[48].mxu0 %vm405_vm11, %v5511_v30 }
0x2af4   :  { %10256 = vmatprep.mubr.msk.f32.mxu0 %vm317_vm9, %v12915_v9 }
0x2af7   :  { %10789 = vmatpush3.bf16.xpose.msk.msra.mxu0 %vm11902_vm10, %v10784_v37 }
0x2afe   :  { %10257 = vmatmul.mubr.msk.f32.vlgmr.msra.gmra.mrb[50].mxu0 %vm317_vm9, %v12911_v1 }
0x2bc6   :  { %v12935_v0 = vpop.f32.mrb[48].mxu0 }
0x2bc7   :  { %v12937_v54 = vpop.f32.mrb[49].mxu0 }
0x2bd1   :  { %v10258_v46 = vpop.f32.mrb[50].mxu0 }
0x2bd2   :  { %v5719_v26 = vmul.f32 0.35355338, %v10258_v46  ;;  %v5709_v31 = vpop.f32.mrb[51].mxu0 }
0x2bd3   :  { %v5718_v60 = vmul.f32 0.35355338, %v5709_v31 }
0x2bd4   :  { %v5721_v39 = vadd.f32 %v12942_v41, %v5719_v26 }
0x2bd5   :  { %v5720_v50 = vadd.f32 %v12948_v5, %v5718_v60 }
0x2bd6   :  { %v5725_v47 = vsel %vm405_vm11, %v5721_v39, -inf }
0x2bd7   :  { %5726 = vmax.xlane.f32.xlu0 %v5725_v47  ;;  %v5722_v48 = vsel %vm405_vm11, %v5720_v50, -inf }
0x2bd8   :  { %5723 = vmax.xlane.f32.xlu1 %v5722_v48 }
0x2c64   :  { %v5727_v40 = vpop.xlane.xlu0 %5726 }
0x2c65   :  { %v5729_v25 = vsub.f32 %v5721_v39, %v5727_v40  ;;  %v5724_v22 = vpop.xlane.xlu1 %5723 }
0x2c66   :  { %v5728_v33 = vsub.f32 %v5720_v50, %v5724_v22 }
0x2c67   :  { %v5732_v21 = vmul.f32 1.442695, %v5729_v25 }
0x2c68   :  { %v5730_v19 = vmul.f32 1.442695, %v5728_v33 }
0x2c69   :  { %11498 = vpow2.f32 %v5732_v21 }
0x2c6a   :  { %11500 = vpow2.f32 %v5730_v19 }
0x2c73   :  { %v11499_v57 = vpop.eup %11498 }
0x2c74   :  { %v11501_v16 = vpop.eup %11500  ;;  %v5737_v61 = vsel %vm405_vm11, %v11499_v57, 0.0 }
0x2c75   :  { %5738 = vadd.xlane.f32.xlu1 %v5737_v61  ;;  %v5734_v62 = vsel %vm405_vm11, %v11501_v16, 0.0 }
0x2c76   :  { %5735 = vadd.xlane.f32.xlu0 %v5734_v62 }
0x2c86   :  { %11175 = vrot.lane.b32.xlu1 %v12919_v59, %s13769_s26 }
0x2c8a   :  { %5831 = vrot.lane.b32.xlu1 %v12915_v9, %s13768_s4 }
0x2c8c   :  { %11170 = vrot.lane.b32.xlu0 %v12919_v59, %s13779_s20  ;;  %s13782_s20 = sld [smem:[#allocation8_spill]] }
0x2c90   :  { %5833 = vrot.lane.b32.xlu0 %v12911_v1, %s13768_s4 }
0x2d02   :  { %v5739_v3 = vpop.xlane.xlu1 %5738 }
0x2d03   :  { %11502 = vrcp.f32 %v5739_v3  ;;  %v5736_v12 = vpop.xlane.xlu0 %5735 }
0x2d04   :  { %11504 = vrcp.f32 %v5736_v12 }
0x2d06   :  { %v11176_v6 = vpop.permute.xlu1 %11175 }
0x2d07   :  { %v11171_v18 = vpop.permute.xlu0 %11170  ;;  %v11178_v29 = vunpack.i.h.bf16 %v11176_v6  ;;  %v11177_v53 = vunpack.i.l.bf16 %v11176_v6 }
0x2d08   :  { %v11173_v63 = vunpack.i.h.bf16 %v11171_v18  ;;  %v11172_v10 = vunpack.i.l.bf16 %v11171_v18 }
0x2d09   :  { %v10794_v42 = vpack.c.bf16 %v11178_v29, %v11177_v53 }
0x2d0a   :  { %v10790_v43 = vpack.c.bf16 %v11173_v63, %v11172_v10  ;;  %v5832_v35 = vpop.permute.xlu1 %5831 }
0x2d0b   :  { %v5834_v24 = vpop.permute.xlu0 %5833 }
0x2d0c   :  { %10791 = vmatprep.subr.bf16.mxu1 %v10790_v43 }
0x2d0d   :  { %v11503_v14 = vpop.eup %11502  ;;  %10793 = vmatpush3.bf16.msra.mxu1 %v10790_v43 }
0x2d0e   :  { %v11505_v58 = vpop.eup %11504  ;;  %10796 = vmatprep.subr.msk.bf16.mxu1 %vm11902_vm10, %v10794_v42  ;;  %v5743_v49 = vmul.f32 %v11503_v14, %v11499_v57 }
0x2d0f   :  { %v5742_v15 = vmul.f32 %v11505_v58, %v11501_v16 }
0x2d11   :  { %10263 = vmatprep.mubr.msk.f32.mxu1 %vm405_vm11, %v5742_v15 }
0x2d12   :  { %10264 = vmatmul.mubr.msk.f32.vlgmr.msra.gmra.mrb[62].mxu1 %vm405_vm11, %v5743_v49 }
0x2d13   :  { %10270 = vmatprep.mubr.msk.f32.mxu1 %vm317_vm9, %v5832_v35 }
0x2d16   :  { %10799 = vmatpush3.bf16.xpose.msk.msra.mxu1 %vm11902_vm10, %v10794_v42 }
0x2d1d   :  { %10271 = vmatmul.mubr.msk.f32.vlgmr.msra.gmra.mrb[64].mxu1 %vm317_vm9, %v5834_v24 }
0x2de5   :  { %v12971_v55 = vpop.f32.mrb[62].mxu1 }
0x2de6   :  { %v12973_v23 = vpop.f32.mrb[63].mxu1 }
0x2df0   :  { %v10272_v36 = vpop.f32.mrb[64].mxu1 }
0x2df1   :  { %v5923_v52 = vmul.f32 0.35355338, %v10272_v36  ;;  %v5913_v4 = vpop.f32.mrb[65].mxu1 }
0x2df2   :  { %v5922_v2 = vmul.f32 0.35355338, %v5913_v4 }
0x2df3   :  { %v5925_v28 = vadd.f32 %v12942_v41, %v5923_v52 }
0x2df4   :  { %v5924_v37 = vadd.f32 %v12948_v5, %v5922_v2 }
0x2df5   :  { %v5929_v38 = vsel %vm405_vm11, %v5925_v28, -inf }
0x2df6   :  { %5930 = vmax.xlane.f32.xlu0 %v5929_v38  ;;  %v5926_v8 = vsel %vm405_vm11, %v5924_v37, -inf }
0x2df7   :  { %5927 = vmax.xlane.f32.xlu1 %v5926_v8 }
0x2e83   :  { %v5931_v34 = vpop.xlane.xlu0 %5930 }
0x2e84   :  { %v5933_v30 = vsub.f32 %v5925_v28, %v5931_v34  ;;  %v5928_v46 = vpop.xlane.xlu1 %5927 }
0x2e85   :  { %v5932_v26 = vsub.f32 %v5924_v37, %v5928_v46 }
0x2e86   :  { %v5936_v31 = vmul.f32 1.442695, %v5933_v30 }
0x2e87   :  { %v5934_v60 = vmul.f32 1.442695, %v5932_v26 }
0x2e88   :  { %11506 = vpow2.f32 %v5936_v31 }
0x2e89   :  { %11508 = vpow2.f32 %v5934_v60 }
0x2e92   :  { %v11507_v39 = vpop.eup %11506 }
0x2e93   :  { %v11509_v50 = vpop.eup %11508  ;;  %v5941_v47 = vsel %vm405_vm11, %v11507_v39, 0.0 }
0x2e94   :  { %5942 = vadd.xlane.f32.xlu1 %v5941_v47  ;;  %v5938_v48 = vsel %vm405_vm11, %v11509_v50, 0.0 }
0x2e95   :  { %5939 = vadd.xlane.f32.xlu0 %v5938_v48 }
0x2ea5   :  { %11185 = vrot.lane.b32.xlu1 %v12919_v59, %s13755_s27 }
0x2ea9   :  { %6035 = vrot.lane.b32.xlu1 %v12915_v9, %s13767_s28 }
0x2eab   :  { %11180 = vrot.lane.b32.xlu0 %v12919_v59, %s13778_s19  ;;  %s13786_s19 = sld [smem:[#allocation16_spill]] }
0x2eaf   :  { %6037 = vrot.lane.b32.xlu0 %v12911_v1, %s13767_s28 }
0x2f21   :  { %v5943_v40 = vpop.xlane.xlu1 %5942 }
0x2f22   :  { %11510 = vrcp.f32 %v5943_v40  ;;  %v5940_v25 = vpop.xlane.xlu0 %5939 }
0x2f23   :  { %11512 = vrcp.f32 %v5940_v25 }
0x2f25   :  { %v11186_v22 = vpop.permute.xlu1 %11185 }
0x2f26   :  { %v11181_v33 = vpop.permute.xlu0 %11180  ;;  %v11188_v21 = vunpack.i.h.bf16 %v11186_v22  ;;  %v11187_v19 = vunpack.i.l.bf16 %v11186_v22 }
0x2f27   :  { %v11183_v57 = vunpack.i.h.bf16 %v11181_v33  ;;  %v11182_v16 = vunpack.i.l.bf16 %v11181_v33 }
0x2f28   :  { %v10804_v62 = vpack.c.bf16 %v11188_v21, %v11187_v19 }
0x2f29   :  { %v10800_v61 = vpack.c.bf16 %v11183_v57, %v11182_v16  ;;  %v6036_v29 = vpop.permute.xlu1 %6035 }
0x2f2a   :  { %v6038_v53 = vpop.permute.xlu0 %6037 }
0x2f2b   :  { %10801 = vmatprep.subr.bf16.mxu0 %v10800_v61 }
0x2f2c   :  { %v11511_v3 = vpop.eup %11510  ;;  %10803 = vmatpush3.bf16.msra.mxu0 %v10800_v61 }
0x2f2d   :  { %v11513_v12 = vpop.eup %11512  ;;  %10806 = vmatprep.subr.msk.bf16.mxu0 %vm11902_vm10, %v10804_v62  ;;  %v5947_v18 = vmul.f32 %v11511_v3, %v11507_v39 }
0x2f2e   :  { %v5946_v6 = vmul.f32 %v11513_v12, %v11509_v50 }
0x2f30   :  { %10277 = vmatprep.mubr.msk.f32.mxu0 %vm405_vm11, %v5946_v6 }
0x2f31   :  { %10278 = vmatmul.mubr.msk.f32.vlgmr.msra.gmra.mrb[52].mxu0 %vm405_vm11, %v5947_v18 }
0x2f32   :  { %10284 = vmatprep.mubr.msk.f32.mxu0 %vm317_vm9, %v6036_v29 }
0x2f35   :  { %10809 = vmatpush3.bf16.xpose.msk.msra.mxu0 %vm11902_vm10, %v10804_v62 }
0x2f3c   :  { %10285 = vmatmul.mubr.msk.f32.vlgmr.msra.gmra.mrb[54].mxu0 %vm317_vm9, %v6038_v53 }
0x3004   :  { %v12997_v63 = vpop.f32.mrb[52].mxu0 }
0x3005   :  { %v12999_v10 = vpop.f32.mrb[53].mxu0 }
0x300f   :  { %v10286_v43 = vpop.f32.mrb[54].mxu0 }
0x3010   :  { %v6127_v42 = vmul.f32 0.35355338, %v10286_v43  ;;  %v6117_v14 = vpop.f32.mrb[55].mxu0 }
0x3011   :  { %v6126_v58 = vmul.f32 0.35355338, %v6117_v14 }
0x3012   :  { %v6129_v15 = vadd.f32 %v12942_v41, %v6127_v42 }
0x3013   :  { %v6128_v49 = vadd.f32 %v12948_v5, %v6126_v58 }
0x3014   :  { %v6133_v35 = vsel %vm405_vm11, %v6129_v15, -inf }
0x3015   :  { %6134 = vmax.xlane.f32.xlu0 %v6133_v35  ;;  %v6130_v24 = vsel %vm405_vm11, %v6128_v49, -inf }
0x3016   :  { %6131 = vmax.xlane.f32.xlu1 %v6130_v24 }
0x30a2   :  { %v6135_v36 = vpop.xlane.xlu0 %6134 }
0x30a3   :  { %v6137_v52 = vsub.f32 %v6129_v15, %v6135_v36  ;;  %v6132_v4 = vpop.xlane.xlu1 %6131 }
0x30a4   :  { %v6136_v2 = vsub.f32 %v6128_v49, %v6132_v4 }
0x30a5   :  { %v6140_v28 = vmul.f32 1.442695, %v6137_v52  ;;  %v9354_v52 = vld [vmem:[%s13782_s20 + $0x20] sm:$0xff] }
0x30a6   :  { %v6138_v37 = vmul.f32 1.442695, %v6136_v2 }
0x30a7   :  { %11514 = vpow2.f32 %v6140_v28 }
0x30a8   :  { %11516 = vpow2.f32 %v6138_v37  ;;  %v9356_v37 = vld [vmem:[%s13782_s20 + $0x30] sm:$0xff] }
0x30b1   :  { %v11515_v38 = vpop.eup %11514 }
0x30b2   :  { %v11517_v8 = vpop.eup %11516  ;;  %v6145_v34 = vsel %vm405_vm11, %v11515_v38, 0.0 }
0x30b3   :  { %6146 = vadd.xlane.f32.xlu1 %v6145_v34  ;;  %v6142_v30 = vsel %vm405_vm11, %v11517_v8, 0.0 }
0x30b4   :  { %6143 = vadd.xlane.f32.xlu0 %v6142_v30 }
0x30c4   :  { %11195 = vrot.lane.b32.xlu1 %v12919_v59, %s13758_s2 }
0x30c8   :  { %6239 = vrot.lane.b32.xlu1 %v12915_v9, %s13757_s0 }
0x30ca   :  { %11190 = vrot.lane.b32.xlu0 %v12919_v59, %s13780_s8  ;;  %s13790_s8 = sld [smem:[#allocation20_spill]] }
0x30ce   :  { %6241 = vrot.lane.b32.xlu0 %v12911_v1, %s13757_s0 }
0x3140   :  { %v6147_v46 = vpop.xlane.xlu1 %6146 }
0x3141   :  { %11518 = vrcp.f32 %v6147_v46  ;;  %v6144_v26 = vpop.xlane.xlu0 %6143 }
0x3142   :  { %11520 = vrcp.f32 %v6144_v26 }
0x3144   :  { %v11196_v31 = vpop.permute.xlu1 %11195 }
0x3145   :  { %v11191_v60 = vpop.permute.xlu0 %11190  ;;  %v11198_v39 = vunpack.i.h.bf16 %v11196_v31  ;;  %v11197_v50 = vunpack.i.l.bf16 %v11196_v31 }
0x3146   :  { %v11193_v47 = vunpack.i.h.bf16 %v11191_v60  ;;  %v11192_v48 = vunpack.i.l.bf16 %v11191_v60 }
0x3147   :  { %v10814_v25 = vpack.c.bf16 %v11198_v39, %v11197_v50 }
0x3148   :  { %v10810_v40 = vpack.c.bf16 %v11193_v47, %v11192_v48  ;;  %v6240_v21 = vpop.permute.xlu1 %6239 }
0x3149   :  { %v6242_v19 = vpop.permute.xlu0 %6241 }
0x314a   :  { %10811 = vmatprep.subr.bf16.mxu1 %v10810_v40 }
0x314b   :  { %v11519_v9 = vpop.eup %11518  ;;  %10813 = vmatpush3.bf16.msra.mxu1 %v10810_v40 }
0x314c   :  { %v11521_v22 = vpop.eup %11520  ;;  %10816 = vmatprep.subr.msk.bf16.mxu1 %vm11902_vm10, %v10814_v25  ;;  %v6151_v33 = vmul.f32 %v11519_v9, %v11515_v38  ;;  %v9357_v38 = vld [vmem:[%s13782_s20 + $0x38] sm:$0xff] }
0x314d   :  { %v6150_v1 = vmul.f32 %v11521_v22, %v11517_v8  ;;  %v10828_v31 = vpack.c.bf16 %v9357_v38, %v9356_v37  ;;  %v9371_v37 = vld [vmem:[%s13766_s23 + $0x38] sm:$0xff] }
0x314f   :  { %10291 = vmatprep.mubr.msk.f32.mxu1 %vm405_vm11, %v6150_v1 }
0x3150   :  { %10292 = vmatmul.mubr.msk.f32.vlgmr.msra.gmra.mrb[66].mxu1 %vm405_vm11, %v6151_v33 }
0x3151   :  { %10298 = vmatprep.mubr.msk.f32.mxu1 %vm317_vm9, %v6240_v21 }
0x3154   :  { %10819 = vmatpush3.bf16.xpose.msk.msra.mxu1 %vm11902_vm10, %v10814_v25 }
0x315b   :  { %10299 = vmatmul.mubr.msk.f32.vlgmr.msra.gmra.mrb[68].mxu1 %vm317_vm9, %v6242_v19 }
0x3223   :  { %v10293_v57 = vpop.f32.mrb[66].mxu1 }
0x3224   :  { %v6230_v16 = vpop.f32.mrb[67].mxu1 }
0x322e   :  { %v10300_v61 = vpop.f32.mrb[68].mxu1 }
0x322f   :  { %v6331_v62 = vmul.f32 0.35355338, %v10300_v61  ;;  %v6321_v3 = vpop.f32.mrb[69].mxu1 }
0x3230   :  { %v6330_v12 = vmul.f32 0.35355338, %v6321_v3 }
0x3231   :  { %v6333_v6 = vadd.f32 %v12942_v41, %v6331_v62 }
0x3232   :  { %v6332_v18 = vadd.f32 %v12948_v5, %v6330_v12 }
0x3233   :  { %v6337_v29 = vsel %vm405_vm11, %v6333_v6, -inf }
0x3234   :  { %6338 = vmax.xlane.f32.xlu0 %v6337_v29  ;;  %v6334_v53 = vsel %vm405_vm11, %v6332_v18, -inf }
0x3235   :  { %6335 = vmax.xlane.f32.xlu1 %v6334_v53 }
0x3246   :  { %5601 = vrot.lane.b32.xlu1 %v12897_v20, %s13771_s14 }
0x324a   :  { %11200 = vrot.lane.b32.xlu0 %v12919_v59, %s13781_s1  ;;  %5603 = vrot.lane.b32.xlu1 %v12895_v45, %s13771_s14 }
0x32c1   :  { %v6339_v43 = vpop.xlane.xlu0 %6338 }
0x32c2   :  { %v6341_v42 = vsub.f32 %v6333_v6, %v6339_v43  ;;  %v6336_v41 = vpop.xlane.xlu1 %6335 }
0x32c3   :  { %v6340_v14 = vsub.f32 %v6332_v18, %v6336_v41 }
0x32c4   :  { %v6344_v5 = vmul.f32 1.442695, %v6341_v42 }
0x32c5   :  { %v6342_v58 = vmul.f32 1.442695, %v6340_v14  ;;  %v11201_v15 = vpop.permute.xlu0 %11200 }
0x32c6   :  { %11522 = vpow2.f32 %v6344_v5  ;;  %v11203_v49 = vunpack.i.h.bf16 %v11201_v15  ;;  %v11202_v35 = vunpack.i.l.bf16 %v11201_v15 }
0x32c7   :  { %11524 = vpow2.f32 %v6342_v58 }
0x32c8   :  { %v10820_v24 = vpack.c.bf16 %v11203_v49, %v11202_v35 }
0x32ca   :  { %10821 = vmatprep.subr.bf16.mxu0 %v10820_v24 }
0x32cb   :  { %10823 = vmatpush3.bf16.msra.mxu0 %v10820_v24 }
0x32d0   :  { %v11523_v20 = vpop.eup %11522 }
0x32d1   :  { %v11525_v36 = vpop.eup %11524  ;;  %v6349_v59 = vsel %vm405_vm11, %v11523_v20, 0.0 }
0x32d2   :  { %6350 = vadd.xlane.f32.xlu1 %v6349_v59  ;;  %v6346_v45 = vsel %vm405_vm11, %v11525_v36, 0.0  ;;  %v9379_v59 = vld [vmem:[%s13764_s25 + $0x28] sm:$0xff] }
0x32d3   :  { %6347 = vadd.xlane.f32.xlu0 %v6346_v45 }
0x32e3   :  { %5611 = vrot.lane.b32.xlu1 %v12899_v13, %s13762_s7  ;;  %v9355_v13 = vld [vmem:[%s13782_s20 + $0x28] sm:$0xff]  ;;  %s13783_s20 = sld [smem:[#allocation9_spill]] }
0x32e4   :  { %v10824_v4 = vpack.c.bf16 %v9355_v13, %v9354_v52  ;;  %v9380_v52 = vld [vmem:[%s13764_s25 + $0x30] sm:$0xff]  ;;  %v9381_v13 = vld [vmem:[%s13764_s25 + $0x38] sm:$0xff] }
0x32e6   :  { %10825 = vmatprep.subr.bf16.mxu0 %v10824_v4 }
0x32e7   :  { %5619 = vrot.lane.b32.xlu1 %v12935_v0, %s13761_s24 }
0x32e9   :  { %5609 = vrot.lane.b32.xlu0 %v12901_v44, %s13762_s7  ;;  %v5602_v44 = vpop.permute.xlu1 %5601 }
0x32ea   :  { %v5623_v30 = vsel %vm317_vm9, %v12893_v56, %v5602_v44  ;;  %v11651_v44 = vld [vmem:[%s13765_s30 + $0x8] sm:$0xff] }
0x32eb   :  { %6447 = vrot.lane.b32.xlu1 %v12997_v63, %s13771_s14 }
0x32ed   :  { %5617 = vrot.lane.b32.xlu0 %v12937_v54, %s13761_s24  ;;  %v5604_v0 = vpop.permute.xlu1 %5603 }
0x32ee   :  { %v5624_v47 = vsel %vm317_vm9, %v12891_v27, %v5604_v0  ;;  %v13079_v27 = vld [vmem:[%s13783_s20 + $0x1] ss:$0 sm:$0xff]  ;;  %s13789_s20 = sld [smem:[#allocation19_spill]] }
0x32ef   :  { %6455 = vrot.lane.b32.xlu1 %v10293_v57, %s13762_s7  ;;  %v9368_v0 = vld [vmem:[%s13766_s23 + $0x20] sm:$0xff] }
0x32f1   :  { %6445 = vrot.lane.b32.xlu0 %v12999_v10, %s13771_s14 }
0x32f5   :  { %6453 = vrot.lane.b32.xlu0 %v6230_v16, %s13762_s7 }
0x335f   :  { %v6351_v54 = vpop.xlane.xlu1 %6350 }
0x3360   :  { %11526 = vrcp.f32 %v6351_v54  ;;  %v6348_v63 = vpop.xlane.xlu0 %6347  ;;  %v9369_v54 = vld [vmem:[%s13766_s23 + $0x28] sm:$0xff] }
0x3361   :  { %11528 = vrcp.f32 %v6348_v63  ;;  %v9370_v63 = vld [vmem:[%s13766_s23 + $0x30] sm:$0xff] }
0x3362   :  { %v10836_v38 = vpack.c.bf16 %v9371_v37, %v9370_v63 }
0x3363   :  { %v5612_v46 = vpop.permute.xlu1 %5611 }
0x3364   :  { %v5610_v2 = vpop.permute.xlu0 %5609  ;;  %v5626_v56 = vsel %vm405_vm11, %v5624_v47, %v5612_v46 }
0x3365   :  { %v5625_v60 = vsel %vm405_vm11, %v5623_v30, %v5610_v2  ;;  %v11652_v2 = vld [vmem:[%s13765_s30 + $0x10] sm:$0xff] }
0x3367   :  { %v5620_v50 = vpop.permute.xlu1 %5619 }
0x3368   :  { %v5618_v10 = vpop.permute.xlu0 %5617  ;;  %v5628_v48 = vsel %vm1155_vm12, %v5626_v56, %v5620_v50 }
0x3369   :  { %v5627_v39 = vsel %vm1155_vm12, %v5625_v60, %v5618_v10 }
0x336a   :  { %v11527_v28 = vpop.eup %11526 }
0x336b   :  { %v11529_v8 = vpop.eup %11528  ;;  %v6355_v26 = vmul.f32 %v11527_v28, %v11523_v20  ;;  %v6448_v16 = vpop.permute.xlu1 %6447  ;;  %v10832_v28 = vpack.c.bf16 %v9369_v54, %v9368_v0 }
0x336c   :  { %v6354_v34 = vmul.f32 %v11529_v8, %v11525_v36  ;;  %v6446_v61 = vpop.permute.xlu0 %6445  ;;  %v6468_v6 = vsel %vm317_vm9, %v12971_v55, %v6448_v16  ;;  %v9378_v36 = vld [vmem:[%s13764_s25 + $0x20] sm:$0xff]  ;;  %v11653_v8 = vld [vmem:[%s13765_s30 + $0x18] sm:$0xff] }
0x336d   :  { %v10840_v45 = vpack.c.bf16 %v9379_v59, %v9378_v36  ;;  %10833 = vmatprep.subr.bf16.mxu1 %v10832_v28 }
0x336e   :  { %10305 = vmatprep.mubr.msk.f32.mxu0 %vm405_vm11, %v6354_v34  ;;  %10835 = vmatpush3.bf16.msra.mxu1 %v10832_v28 }
0x336f   :  { %10306 = vmatmul.mubr.msk.f32.vlgmr.msra.gmra.mrb[56].mxu0 %vm405_vm11, %v6355_v26  ;;  %v6456_v62 = vpop.permute.xlu1 %6455  ;;  %10837 = vmatprep.subr.bf16.mxu1 %v10836_v38 }
0x3370   :  { %10827 = vmatpush3.bf16.msra.mxu0 %v10824_v4  ;;  %10316 = vmatprep.mubr.msk.f32.mxu0 %vm101_vm0, %v5627_v39  ;;  %v6454_v3 = vpop.permute.xlu0 %6453  ;;  %v6470_v53 = vsel %vm405_vm11, %v6468_v6, %v6456_v62  ;;  %v10844_v4 = vpack.c.bf16 %v9381_v13, %v9380_v52 }
0x3371   :  { %10829 = vmatprep.subr.bf16.mxu0 %v10828_v31 }
0x3372   :  { %10839 = vmatpush3.bf16.msra.mxu1 %v10836_v38 }
0x3374   :  { %10831 = vmatpush3.bf16.msra.mxu0 %v10828_v31 }
0x3375   :  { %10841 = vmatprep.subr.bf16.mxu0 %v10840_v45 }
0x3377   :  { %10317 = vmatmul.mubr.msk.f32.vlgmr.msra.gmra.mrb[58].mxu0 %vm101_vm0, %v5628_v48 }
0x3378   :  { %10843 = vmatpush3.bf16.msra.mxu0 %v10840_v45 }
0x3379   :  { %10845 = vmatprep.subr.bf16.mxu0 %v10844_v4 }
0x337c   :  { %10847 = vmatpush3.bf16.msra.mxu0 %v10844_v4  ;;  %v13208_v4 = vld [vmem:[%s13665_s13 + $0x1] ss:$0 sm:$0xff]  ;;  %s13787_s13 = sld [smem:[#allocation15_spill]] }
0x3442   :  { %v10307_v40 = vpop.f32.mrb[56].mxu0 }
0x3443   :  { %6463 = vrot.lane.b32.xlu1 %v10307_v40, %s13761_s24  ;;  %v6434_v25 = vpop.f32.mrb[57].mxu0 }
0x3444   :  { %6461 = vrot.lane.b32.xlu0 %v6434_v25, %s13761_s24 }
0x344a   :  { %v10318_v9 = vpop.f32.mrb[58].mxu0 }
0x344b   :  { %v6556_v22 = vpop.f32.mrb[59].mxu0  ;;  %v6576_v33 = vadd.f32 %v10318_v9, %v12714_v17  ;;  %v6467_v17 = vsel %vm317_vm9, %v12973_v23, %v6446_v61  ;;  %v11650_v23 = vld [vmem:[%s13765_s30] sm:$0xff]  ;;  %s13785_s30 = sld [smem:[#allocation14_spill]] }
0x344c   :  { %v6575_v1 = vadd.f32 %v6556_v22, %v12711_v51  ;;  %v6469_v18 = vsel %vm405_vm11, %v6467_v17, %v6454_v3  ;;  %v13169_v61 = vld [vmem:[%s13662_s10 + $0x1] ss:$0 sm:$0xff] }
0x344d   :  { %v13086_v19 = vadd.f32 %v13079_v27, %v6576_v33  ;;  %v13176_v17 = vld [vmem:[%s13663_s11 + $0x1] ss:$0 sm:$0xff]  ;;  %s13788_s11 = sld [smem:[#allocation18_spill]] }
0x344e   :  { %v13083_v21 = vadd.f32 %v13079_v27, %v6575_v1 }
0x344f   :  { %v6598_v51 = vsel %vm101_vm0, %v13086_v19, 0.0 }
0x3450   :  { %v6595_v57 = vsel %vm101_vm0, %v13083_v21, 0.0 }
0x3463   :  { %6596 = vadd.xlane.f32.xlu0 %v6595_v57 }
0x3467   :  { %6599 = vadd.xlane.f32.xlu1 %v6598_v51 }
0x34b5   :  { %v6464_v12 = vpop.permute.xlu1 %6463 }
0x34b6   :  { %v6462_v29 = vpop.permute.xlu0 %6461  ;;  %v6472_v42 = vsel %vm1155_vm12, %v6470_v53, %v6464_v12 }
0x34b7   :  { %v6471_v43 = vsel %vm1155_vm12, %v6469_v18, %v6462_v29 }
0x34b8   :  { %10319 = vmatprep.mubr.msk.f32.mxu0 %vm101_vm0, %v6471_v43 }
0x34b9   :  { %10320 = vmatmul.mubr.msk.f32.gmra.mrb[60].mxu0 %vm101_vm0, %v6472_v42  ;;  %v13187_v42 = vld [vmem:[%s13664_s15 + $0x1] ss:$0 sm:$0xff] }
0x34ba   :  { %10344 = vmatprep.mubr.msk.f32.mxu0 %vm101_vm0, %v11650_v23 }
0x34bd   :  { %10345 = vmatmul.mubr.msk.f32.vlgmr.msra.gmra.mrb[62].mxu0 %vm101_vm0, %v11651_v44 }
0x34be   :  { %10347 = vmatprep.mubr.msk.f32.mxu0 %vm101_vm0, %v11652_v2 }
0x34c1   :  { %10348 = vmatmul.mubr.msk.f32.gmra.mrb[64].mxu0 %vm101_vm0, %v11653_v8 }
0x34f0   :  { %v6597_v55 = vpop.xlane.xlu0 %6596 }
0x34f1   :  { %v6607_v41 = vmul.f32 0.03125, %v6597_v55 }
0x34f3   :  { %v13107_v14 = vsub.f32 %v13083_v21, %v6607_v41 }
0x34f4   :  { %v6600_v5 = vpop.xlane.xlu1 %6599 }
0x34f5   :  { %v6608_v58 = vmul.f32 0.03125, %v6600_v5  ;;  %v6615_v15 = vmul.f32 %v13107_v14, %v13107_v14  ;;  %v6669_v62 = vmul.f32 %v13169_v61, %v13107_v14 }
0x34f7   :  { %v13112_v49 = vsub.f32 %v13086_v19, %v6608_v58  ;;  %v6619_v35 = vsel %vm101_vm0, %v6615_v15, 0.0 }
0x34f8   :  { %6620 = vadd.xlane.f32.xlu0 %v6619_v35 }
0x34f9   :  { %v6616_v24 = vmul.f32 %v13112_v49, %v13112_v49  ;;  %v6670_v6 = vmul.f32 %v13169_v61, %v13112_v49 }
0x34fb   :  { %v6622_v20 = vsel %vm101_vm0, %v6616_v24, 0.0 }
0x34fc   :  { %6623 = vadd.xlane.f32.xlu0 %v6622_v20 }
0x3585   :  { %v6621_v10 = vpop.xlane.xlu0 %6620 }
0x3586   :  { %v6631_v34 = vmul.f32 0.032258064, %v6621_v10 }
0x3588   :  { %11530 = vrsqrt.f32 %v6631_v34  ;;  %vm6637_vm2 = vcmp.eq.f32.partialorder %v6631_v34, inf  ;;  %vm6639_vm3 = vcmp.eq.f32.partialorder %v6631_v34, 0.0 }
0x3589   :  { %v6624_v30 = vpop.xlane.xlu0 %6623 }
0x358a   :  { %v6632_v46 = vmul.f32 0.032258064, %v6624_v30 }
0x358c   :  { %11532 = vrsqrt.f32 %v6632_v46  ;;  %v10321_v26 = vpop.f32.mrb[60].mxu0  ;;  %vm6644_vm4 = vcmp.eq.f32.partialorder %v6632_v46, inf  ;;  %vm6646_vm5 = vcmp.eq.f32.partialorder %v6632_v46, 0.0 }
0x358d   :  { %v6578_v31 = vadd.f32 %v10321_v26, %v12760_v11  ;;  %v6566_v60 = vpop.f32.mrb[61].mxu0  ;;  %v6640_v11 = vand.u32 2147483648, %v6631_v34 }
0x358e   :  { %v6577_v39 = vadd.f32 %v6566_v60, %v12757_v7 }
0x358f   :  { %v13157_v50 = vadd.f32 %v13079_v27, %v6578_v31 }
0x3590   :  { %v13160_v47 = vadd.f32 %v13079_v27, %v6577_v39  ;;  %v6647_v27 = vand.u32 2147483648, %v6632_v46  ;;  %v10346_v23 = vpop.f32.mrb[62].mxu0 }
0x3591   :  { %v6604_v56 = vsel %vm101_vm0, %v13157_v50, 0.0  ;;  %v6890_v55 = vadd.f32 %v10346_v23, %v13187_v42  ;;  %v6884_v41 = vpop.f32.mrb[63].mxu0 }
0x3592   :  { %v11531_v48 = vpop.eup %11530  ;;  %6605 = vadd.xlane.f32.xlu0 %v6604_v56  ;;  %v6601_v40 = vsel %vm101_vm0, %v13160_v47, 0.0  ;;  %v6885_v14 = vadd.f32 %v13187_v42, %v6884_v41 }
0x3593   :  { %v6636_v25 = vmul.f32 %v11531_v48, %v6631_v34  ;;  %6602 = vadd.xlane.f32.xlu1 %v6601_v40 }
0x3594   :  { %v13191_v5 = vpack.i.bf16 %v6890_v55, %v6885_v14  ;;  %v10848_v58 = vpack.c.bf16 %v6890_v55, %v6885_v14 }
0x3595   :  { %v6638_v9 = vsel %vm6637_vm2, %v6631_v34, %v6636_v25 }
0x3596   :  { %v11533_v7 = vpop.eup %11532  ;;  %v6641_v22 = vsel %vm6639_vm3, %v6640_v11, %v6638_v9  ;;  %10850 = vmatprep.subr.msk.bf16.mxu1 %vm11902_vm10, %v10848_v58 }
0x3597   :  { %v6643_v1 = vmul.f32 %v11533_v7, %v6632_v46  ;;  %v6673_v33 = vadd.f32 1e-06, %v6641_v22 }
0x3599   :  { %v6645_v57 = vsel %vm6644_vm4, %v6632_v46, %v6643_v1  ;;  %11534 = vrcp.f32 %v6673_v33 }
0x359a   :  { %v6648_v51 = vsel %vm6646_vm5, %v6647_v27, %v6645_v57 }
0x359b   :  { %v6674_v16 = vadd.f32 1e-06, %v6648_v51 }
0x359d   :  { %11536 = vrcp.f32 %v6674_v16 }
0x35a3   :  { %v11535_v3 = vpop.eup %11534 }
0x35a4   :  { %v6681_v12 = vmul.f32 %v11535_v3, %v6669_v62 }
0x35a6   :  { %v6691_v18 = vadd.f32 %v13176_v17, %v6681_v12 }
0x35a7   :  { %v11537_v29 = vpop.eup %11536 }
0x35a8   :  { %10330 = vmatprep.mubr.msk.f32.mxu1 %vm101_vm0, %v6691_v18  ;;  %v6682_v53 = vmul.f32 %v11537_v29, %v6670_v6 }
0x35aa   :  { %v6692_v43 = vadd.f32 %v13176_v17, %v6682_v53 }
0x35ac   :  { %10331 = vmatmul.mubr.msk.f32.vlgmr.msra.gmra.mrb[70].mxu1 %vm101_vm0, %v6692_v43  ;;  %v10349_v43 = vpop.f32.mrb[64].mxu0 }
0x35ad   :  { %10853 = vmatpush3.bf16.xpose.msk.msra.mxu1 %vm11902_vm10, %v10848_v58  ;;  %v6894_v23 = vpop.f32.mrb[65].mxu0  ;;  %v6900_v55 = vadd.f32 %v10349_v43, %v13187_v42 }
0x35ae   :  { %v6895_v41 = vadd.f32 %v13187_v42, %v6894_v23  ;;  %v13265_v42 = vld [vmem:[%s13666_s3] sm:$0xff] }
0x35b0   :  { %v13248_v14 = vpack.i.bf16 %v6900_v55, %v6895_v41  ;;  %v13250_v58 = vpack.c.bf16 %v6900_v55, %v6895_v41 }
0x361f   :  { %v6606_v15 = vpop.xlane.xlu0 %6605 }
0x3620   :  { %v6610_v49 = vmul.f32 0.03125, %v6606_v15  ;;  %v6603_v35 = vpop.xlane.xlu1 %6602 }
0x3621   :  { %v6609_v24 = vmul.f32 0.03125, %v6603_v35 }
0x3622   :  { %v6614_v20 = vsub.f32 %v13157_v50, %v6610_v49 }
0x3623   :  { %v6613_v36 = vsub.f32 %v13160_v47, %v6609_v24 }
0x3624   :  { %v6618_v59 = vmul.f32 %v6614_v20, %v6614_v20  ;;  %v6672_v57 = vmul.f32 %v13169_v61, %v6614_v20 }
0x3625   :  { %v6617_v45 = vmul.f32 %v6613_v36, %v6613_v36  ;;  %v6671_v16 = vmul.f32 %v13169_v61, %v6613_v36 }
0x3626   :  { %v6628_v52 = vsel %vm101_vm0, %v6618_v59, 0.0  ;;  %v13259_v59 = vld [vmem:[%s13666_s3 + $0x8] sm:$0xff] }
0x3627   :  { %6629 = vadd.xlane.f32.xlu0 %v6628_v52  ;;  %v6625_v13 = vsel %vm101_vm0, %v6617_v45, 0.0 }
0x3628   :  { %6626 = vadd.xlane.f32.xlu1 %v6625_v13 }
0x3639   :  { %11205 = vrot.lane.b32.xlu1 %v13191_v5, %s13768_s4 }
0x363d   :  { %11210 = vrot.lane.b32.xlu1 %v13191_v5, %s13767_s28 }
0x367f   :  { %v10332_v44 = vpop.f32.mrb[70].mxu1 }
0x3680   :  { %v13211_v0 = vadd.f32 %v10332_v44, %v13208_v4  ;;  %v6786_v54 = vpop.f32.mrb[71].mxu1 }
0x3681   :  { %v13214_v63 = vadd.f32 %v13208_v4, %v6786_v54 }
0x3682   :  { %7105 = vrot.lane.b32.xlu1 %v13211_v0, %s13768_s4 }
0x3683   :  { %7103 = vrot.lane.b32.xlu0 %v13214_v63, %s13768_s4 }
0x3686   :  { %7309 = vrot.lane.b32.xlu1 %v13211_v0, %s13767_s28 }
0x3687   :  { %7307 = vrot.lane.b32.xlu0 %v13214_v63, %s13767_s28 }
0x36b4   :  { %v6630_v2 = vpop.xlane.xlu0 %6629 }
0x36b5   :  { %v6634_v28 = vmul.f32 0.032258064, %v6630_v2  ;;  %v6627_v37 = vpop.xlane.xlu1 %6626 }
0x36b6   :  { %v6633_v38 = vmul.f32 0.032258064, %v6627_v37 }
0x36b7   :  { %11538 = vrsqrt.f32 %v6634_v28  ;;  %vm6658_vm6 = vcmp.eq.f32.partialorder %v6634_v28, inf  ;;  %v6661_v40 = vand.u32 2147483648, %v6634_v28  ;;  %vm6660_vm7 = vcmp.eq.f32.partialorder %v6634_v28, 0.0 }
0x36b8   :  { %11540 = vrsqrt.f32 %v6633_v38  ;;  %vm6651_vm8 = vcmp.eq.f32.partialorder %v6633_v38, inf  ;;  %v6654_v9 = vand.u32 2147483648, %v6633_v38  ;;  %vm6653_vm13 = vcmp.eq.f32.partialorder %v6633_v38, 0.0 }
0x36b9   :  { %v11206_v8 = vpop.permute.xlu1 %11205 }
0x36ba   :  { %v11208_v10 = vunpack.i.h.bf16 %v11206_v8  ;;  %v11207_v34 = vunpack.i.l.bf16 %v11206_v8 }
0x36bc   :  { %v10858_v30 = vpack.c.bf16 %v11208_v10, %v11207_v34 }
0x36bd   :  { %v11211_v46 = vpop.permute.xlu1 %11210 }
0x36be   :  { %v11213_v26 = vunpack.i.h.bf16 %v11211_v46  ;;  %v11212_v31 = vunpack.i.l.bf16 %v11211_v46  ;;  %10860 = vmatprep.subr.msk.bf16.mxu0 %vm11902_vm10, %v10858_v30 }
0x36bf   :  { %10863 = vmatpush3.bf16.xpose.msk.msra.mxu0 %vm11902_vm10, %v10858_v30 }
0x36c0   :  { %v10868_v60 = vpack.c.bf16 %v11213_v26, %v11212_v31 }
0x36c1   :  { %v11539_v39 = vpop.eup %11538 }
0x36c2   :  { %v11541_v56 = vpop.eup %11540  ;;  %v6657_v48 = vmul.f32 %v11539_v39, %v6634_v28  ;;  %10870 = vmatprep.subr.msk.bf16.mxu0 %vm11902_vm10, %v10868_v60 }
0x36c3   :  { %v6650_v25 = vmul.f32 %v11541_v56, %v6633_v38 }
0x36c4   :  { %v6659_v11 = vsel %vm6658_vm6, %v6634_v28, %v6657_v48 }
0x36c5   :  { %v6662_v7 = vsel %vm6660_vm7, %v6661_v40, %v6659_v11  ;;  %v6652_v22 = vsel %vm6651_vm8, %v6633_v38, %v6650_v25 }
0x36c6   :  { %v6655_v1 = vsel %vm6653_vm13, %v6654_v9, %v6652_v22  ;;  %v6676_v33 = vadd.f32 1e-06, %v6662_v7 }
0x36c7   :  { %v6675_v27 = vadd.f32 1e-06, %v6655_v1 }
0x36c8   :  { %11542 = vrcp.f32 %v6676_v33 }
0x36c9   :  { %11544 = vrcp.f32 %v6675_v27 }
0x36d2   :  { %v11543_v51 = vpop.eup %11542 }
0x36d3   :  { %v11545_v62 = vpop.eup %11544  ;;  %v6684_v3 = vmul.f32 %v11543_v51, %v6672_v57 }
0x36d4   :  { %v6683_v12 = vmul.f32 %v11545_v62, %v6671_v16 }
0x36d5   :  { %v6694_v18 = vadd.f32 %v13176_v17, %v6684_v3 }
0x36d6   :  { %v6693_v6 = vadd.f32 %v13176_v17, %v6683_v12 }
0x36d8   :  { %10333 = vmatprep.mubr.msk.f32.mxu1 %vm101_vm0, %v6693_v6 }
0x36d9   :  { %10334 = vmatmul.mubr.msk.f32.gmra.mrb[72].mxu1 %vm101_vm0, %v6694_v18 }
0x36da   :  { %10354 = vmatprep.mubr.msk.f32.mxu1 %vm317_vm9, %v13214_v63 }
0x36dd   :  { %10355 = vmatmul.mubr.msk.f32.vlgmr.msra.gmra.mrb[74].mxu1 %vm317_vm9, %v13211_v0 }
0x36f4   :  { %v7106_v53 = vpop.permute.xlu1 %7105 }
0x36f5   :  { %v7104_v29 = vpop.permute.xlu0 %7103 }
0x36f6   :  { %10368 = vmatprep.mubr.msk.f32.mxu0 %vm317_vm9, %v7104_v29 }
0x36f7   :  { %10369 = vmatmul.mubr.msk.f32.vlgmr.msra.gmra.mrb[66].mxu0 %vm317_vm9, %v7106_v53 }
0x36f8   :  { %10873 = vmatpush3.bf16.xpose.msk.msra.mxu0 %vm11902_vm10, %v10868_v60  ;;  %v7310_v17 = vpop.permute.xlu1 %7309 }
0x36f9   :  { %v7308_v61 = vpop.permute.xlu0 %7307 }
0x36fa   :  { %10382 = vmatprep.mubr.msk.f32.mxu0 %vm317_vm9, %v7308_v61 }
0x36ff   :  { %10383 = vmatmul.mubr.msk.f32.vlgmr.msra.gmra.mrb[68].mxu0 %vm317_vm9, %v7310_v17 }
0x37ac   :  { %v13252_v15 = vpop.f32.mrb[72].mxu1 }
0x37ad   :  { %v13254_v49 = vpop.f32.mrb[73].mxu1 }
0x37b0   :  { %v10356_v35 = vpop.f32.mrb[74].mxu1 }
0x37b1   :  { %v6991_v24 = vmul.f32 0.35355338, %v10356_v35  ;;  %v6981_v20 = vpop.f32.mrb[75].mxu1 }
0x37b2   :  { %v6990_v36 = vmul.f32 0.35355338, %v6981_v20 }
0x37b3   :  { %v6993_v45 = vadd.f32 %v13259_v59, %v6991_v24 }
0x37b4   :  { %v6992_v52 = vadd.f32 %v13265_v42, %v6990_v36 }
0x37b5   :  { %v6997_v13 = vsel %vm405_vm11, %v6993_v45, -inf }
0x37b6   :  { %6998 = vmax.xlane.f32.xlu1 %v6997_v13  ;;  %v6994_v44 = vsel %vm405_vm11, %v6992_v52, -inf }
0x37b7   :  { %6995 = vmax.xlane.f32.xlu0 %v6994_v44 }
0x37ca   :  { %v10370_v54 = vpop.f32.mrb[66].mxu0 }
0x37cb   :  { %v7185_v2 = vpop.f32.mrb[67].mxu0  ;;  %v7195_v28 = vmul.f32 0.35355338, %v10370_v54 }
0x37cc   :  { %v7194_v37 = vmul.f32 0.35355338, %v7185_v2 }
0x37cd   :  { %v7197_v8 = vadd.f32 %v13259_v59, %v7195_v28 }
0x37ce   :  { %v7196_v38 = vadd.f32 %v13265_v42, %v7194_v37 }
0x37cf   :  { %v7201_v31 = vsel %vm405_vm11, %v7197_v8, -inf }
0x37d0   :  { %v7198_v10 = vsel %vm405_vm11, %v7196_v38, -inf }
0x37d1   :  { %7199 = vmax.xlane.f32.xlu0 %v7198_v10 }
0x37d2   :  { %v10384_v34 = vpop.f32.mrb[68].mxu0 }
0x37d3   :  { %v7399_v30 = vmul.f32 0.35355338, %v10384_v34  ;;  %v7389_v46 = vpop.f32.mrb[69].mxu0 }
0x37d4   :  { %v7398_v26 = vmul.f32 0.35355338, %v7389_v46 }
0x37d5   :  { %v7401_v60 = vadd.f32 %v13259_v59, %v7399_v30  ;;  %7202 = vmax.xlane.f32.xlu0 %v7201_v31 }
0x37d6   :  { %v7400_v39 = vadd.f32 %v13265_v42, %v7398_v26 }
0x37d7   :  { %v7405_v48 = vsel %vm405_vm11, %v7401_v60, -inf }
0x37d8   :  { %v7402_v56 = vsel %vm405_vm11, %v7400_v39, -inf }
0x37d9   :  { %7403 = vmax.xlane.f32.xlu1 %v7402_v56  ;;  %7406 = vmax.xlane.f32.xlu0 %v7405_v48 }
0x37ea   :  { %11215 = vrot.lane.b32.xlu1 %v13191_v5, %s13770_s5 }
0x3843   :  { %v6999_v40 = vpop.xlane.xlu1 %6998 }
0x3844   :  { %v7001_v25 = vsub.f32 %v6993_v45, %v6999_v40  ;;  %v6996_v11 = vpop.xlane.xlu0 %6995 }
0x3845   :  { %v7000_v9 = vsub.f32 %v6992_v52, %v6996_v11 }
0x3846   :  { %v7004_v7 = vmul.f32 1.442695, %v7001_v25 }
0x3847   :  { %v7002_v22 = vmul.f32 1.442695, %v7000_v9 }
0x3848   :  { %11546 = vpow2.f32 %v7004_v7 }
0x3849   :  { %11548 = vpow2.f32 %v7002_v22 }
0x3852   :  { %v11547_v1 = vpop.eup %11546 }
0x3853   :  { %v11549_v33 = vpop.eup %11548  ;;  %v7009_v27 = vsel %vm405_vm11, %v11547_v1, 0.0 }
0x3854   :  { %7010 = vadd.xlane.f32.xlu0 %v7009_v27  ;;  %v7006_v57 = vsel %vm405_vm11, %v11549_v33, 0.0 }
0x3855   :  { %7007 = vadd.xlane.f32.xlu1 %v7006_v57 }
0x385e   :  { %v7200_v51 = vpop.xlane.xlu0 %7199 }
0x385f   :  { %v7204_v16 = vsub.f32 %v7196_v38, %v7200_v51 }
0x3861   :  { %v7206_v62 = vmul.f32 1.442695, %v7204_v16 }
0x3862   :  { %v7203_v3 = vpop.xlane.xlu0 %7202 }
0x3863   :  { %11550 = vpow2.f32 %v7206_v62  ;;  %v7205_v12 = vsub.f32 %v7197_v8, %v7203_v3 }
0x3865   :  { %v7208_v6 = vmul.f32 1.442695, %v7205_v12 }
0x3866   :  { %v7404_v18 = vpop.xlane.xlu1 %7403  ;;  %v7407_v29 = vpop.xlane.xlu0 %7406 }
0x3867   :  { %11552 = vpow2.f32 %v7208_v6  ;;  %v7409_v53 = vsub.f32 %v7401_v60, %v7407_v29  ;;  %v7408_v52 = vsub.f32 %v7400_v39, %v7404_v18 }
0x3869   :  { %v7412_v61 = vmul.f32 1.442695, %v7409_v53  ;;  %v7410_v13 = vmul.f32 1.442695, %v7408_v52 }
0x386a   :  { %v11216_v17 = vpop.permute.xlu1 %11215 }
0x386b   :  { %v11218_v43 = vunpack.i.h.bf16 %v11216_v17  ;;  %v11217_v23 = vunpack.i.l.bf16 %v11216_v17  ;;  %11554 = vpow2.f32 %v7412_v61 }
0x386c   :  { %11556 = vpow2.f32 %v7410_v13 }
0x386d   :  { %v11551_v55 = vpop.eup %11550  ;;  %v10854_v41 = vpack.c.bf16 %v11218_v43, %v11217_v23 }
0x386e   :  { %v7210_v35 = vsel %vm405_vm11, %v11551_v55, 0.0 }
0x386f   :  { %10855 = vmatprep.subr.bf16.mxu1 %v10854_v41  ;;  %7211 = vadd.xlane.f32.xlu1 %v7210_v35 }
0x3870   :  { %10857 = vmatpush3.bf16.msra.mxu1 %v10854_v41 }
0x3871   :  { %v11553_v24 = vpop.eup %11552 }
0x3872   :  { %v7213_v20 = vsel %vm405_vm11, %v11553_v24, 0.0 }
0x3873   :  { %7214 = vadd.xlane.f32.xlu0 %v7213_v20 }
0x3875   :  { %v11555_v36 = vpop.eup %11554 }
0x3876   :  { %v7417_v45 = vsel %vm405_vm11, %v11555_v36, 0.0  ;;  %v11557_v44 = vpop.eup %11556 }
0x3877   :  { %7418 = vadd.xlane.f32.xlu0 %v7417_v45  ;;  %v7414_v54 = vsel %vm405_vm11, %v11557_v44, 0.0  ;;  %v13330_v45 = vadd.f32 %v13208_v4, %v13254_v49 }
0x3880   :  { %11225 = vrot.lane.b32.xlu1 %v13191_v5, %s13755_s27 }
0x3884   :  { %11230 = vrot.lane.b32.xlu1 %v13191_v5, %s13757_s0 }
0x388d   :  { %11220 = vrot.lane.b32.xlu0 %v13191_v5, %s13769_s26 }
0x3891   :  { %7511 = vrot.lane.b32.xlu0 %v13214_v63, %s13757_s0 }
0x38a8   :  { %7415 = vadd.xlane.f32.xlu1 %v7414_v54 }
0x38b9   :  { %7513 = vrot.lane.b32.xlu1 %v13211_v0, %s13757_s0 }
0x38e1   :  { %v7011_v2 = vpop.xlane.xlu0 %7010 }
0x38e2   :  { %11558 = vrcp.f32 %v7011_v2  ;;  %v7008_v28 = vpop.xlane.xlu1 %7007 }
0x38e3   :  { %11560 = vrcp.f32 %v7008_v28 }
0x38ec   :  { %v11559_v37 = vpop.eup %11558 }
0x38ed   :  { %v11561_v38 = vpop.eup %11560  ;;  %v7015_v10 = vmul.f32 %v11559_v37, %v11547_v1 }
0x38ee   :  { %v7014_v8 = vmul.f32 %v11561_v38, %v11549_v33 }
0x38f0   :  { %10361 = vmatprep.mubr.msk.f32.mxu1 %vm405_vm11, %v7014_v8 }
0x38f1   :  { %10362 = vmatmul.mubr.msk.f32.vlgmr.msra.gmra.mrb[76].mxu1 %vm405_vm11, %v7015_v10 }
0x38fc   :  { %v7212_v63 = vpop.xlane.xlu1 %7211 }
0x38fd   :  { %11562 = vrcp.f32 %v7212_v63 }
0x3900   :  { %v7215_v34 = vpop.xlane.xlu0 %7214  ;;  %v11226_v30 = vpop.permute.xlu1 %11225 }
0x3901   :  { %11564 = vrcp.f32 %v7215_v34  ;;  %v11228_v60 = vunpack.i.h.bf16 %v11226_v30  ;;  %v11227_v39 = vunpack.i.l.bf16 %v11226_v30 }
0x3903   :  { %v10874_v9 = vpack.c.bf16 %v11228_v60, %v11227_v39 }
0x3904   :  { %v7419_v46 = vpop.xlane.xlu0 %7418  ;;  %v11231_v40 = vpop.permute.xlu1 %11230 }
0x3905   :  { %v11233_v7 = vunpack.i.h.bf16 %v11231_v40  ;;  %v11232_v22 = vunpack.i.l.bf16 %v11231_v40  ;;  %11566 = vrcp.f32 %v7419_v46 }
0x3907   :  { %v11563_v26 = vpop.eup %11562  ;;  %v10878_v33 = vpack.c.bf16 %v11233_v7, %v11232_v22  ;;  %v13361_v7 = vld [vmem:[%s13666_s3 + $0x10] sm:$0xff]  ;;  %v13367_v22 = vld [vmem:[%s13666_s3 + $0x18] sm:$0xff] }
0x3908   :  { %v7218_v0 = vmul.f32 %v11563_v26, %v11551_v55  ;;  %v11221_v31 = vpop.permute.xlu0 %11220 }
0x3909   :  { %v11223_v56 = vunpack.i.h.bf16 %v11221_v31  ;;  %v11222_v48 = vunpack.i.l.bf16 %v11221_v31 }
0x390a   :  { %10375 = vmatprep.mubr.msk.f32.mxu1 %vm405_vm11, %v7218_v0 }
0x390b   :  { %v10864_v25 = vpack.c.bf16 %v11223_v56, %v11222_v48  ;;  %v11565_v11 = vpop.eup %11564 }
0x390c   :  { %v7219_v1 = vmul.f32 %v11565_v11, %v11553_v24  ;;  %v7512_v3 = vpop.permute.xlu0 %7511 }
0x390d   :  { %10865 = vmatprep.subr.bf16.mxu1 %v10864_v25 }
0x390e   :  { %10867 = vmatpush3.bf16.msra.mxu1 %v10864_v25 }
0x390f   :  { %10875 = vmatprep.subr.bf16.mxu1 %v10874_v9  ;;  %v11567_v57 = vpop.eup %11566 }
0x3910   :  { %v7423_v62 = vmul.f32 %v11567_v57, %v11555_v36 }
0x3911   :  { %10376 = vmatmul.mubr.msk.f32.vlgmr.msra.gmra.mrb[78].mxu1 %vm405_vm11, %v7219_v1 }
0x3912   :  { %10877 = vmatpush3.bf16.msra.mxu1 %v10874_v9 }
0x3913   :  { %10880 = vmatprep.subr.msk.bf16.mxu1 %vm11902_vm10, %v10878_v33 }
0x3935   :  { %v7416_v27 = vpop.xlane.xlu1 %7415 }
0x3936   :  { %11568 = vrcp.f32 %v7416_v27 }
0x3939   :  { %v7514_v12 = vpop.permute.xlu1 %7513 }
0x3940   :  { %v11569_v51 = vpop.eup %11568 }
0x3941   :  { %v7422_v16 = vmul.f32 %v11569_v51, %v11557_v44 }
0x3943   :  { %10389 = vmatprep.mubr.msk.f32.mxu1 %vm405_vm11, %v7422_v16 }
0x3944   :  { %10390 = vmatmul.mubr.msk.f32.vlgmr.msra.gmra.mrb[80].mxu1 %vm405_vm11, %v7423_v62 }
0x3945   :  { %10883 = vmatpush3.bf16.xpose.msk.msra.mxu1 %vm11902_vm10, %v10878_v33  ;;  %10396 = vmatprep.mubr.msk.f32.mxu1 %vm317_vm9, %v7512_v3 }
0x394c   :  { %10397 = vmatmul.mubr.msk.f32.vlgmr.msra.gmra.mrb[82].mxu1 %vm317_vm9, %v7514_v12 }
0x39c4   :  { %v13308_v6 = vpop.f32.mrb[76].mxu1 }
0x39c5   :  { %v13310_v18 = vpop.f32.mrb[77].mxu1 }
0x39e4   :  { %v13312_v29 = vpop.f32.mrb[78].mxu1 }
0x39e5   :  { %v13314_v53 = vpop.f32.mrb[79].mxu1 }
0x3a17   :  { %v13316_v61 = vpop.f32.mrb[80].mxu1 }
0x3a18   :  { %v13318_v17 = vpop.f32.mrb[81].mxu1 }
0x3a1f   :  { %v10398_v43 = vpop.f32.mrb[82].mxu1 }
0x3a20   :  { %v7603_v23 = vmul.f32 0.35355338, %v10398_v43  ;;  %v7593_v55 = vpop.f32.mrb[83].mxu1 }
0x3a21   :  { %v7602_v41 = vmul.f32 0.35355338, %v7593_v55 }
0x3a22   :  { %v7605_v35 = vadd.f32 %v13259_v59, %v7603_v23  ;;  %v13336_v59 = vadd.f32 %v13252_v15, %v13208_v4 }
0x3a23   :  { %v7604_v24 = vadd.f32 %v13265_v42, %v7602_v41 }
0x3a24   :  { %v7609_v20 = vsel %vm405_vm11, %v7605_v35, -inf }
0x3a25   :  { %7610 = vmax.xlane.f32.xlu1 %v7609_v20  ;;  %v7606_v36 = vsel %vm405_vm11, %v7604_v24, -inf }
0x3a26   :  { %7607 = vmax.xlane.f32.xlu0 %v7606_v36 }
0x3a36   :  { %11235 = vrot.lane.b32.xlu1 %v13191_v5, %s13758_s2 }
0x3a3a   :  { %11240 = vrot.lane.b32.xlu1 %v13248_v14, %s13770_s5 }
0x3a3e   :  { %7945 = vrot.lane.b32.xlu1 %v13330_v45, %s13768_s4 }
0x3a42   :  { %7947 = vrot.lane.b32.xlu1 %v13336_v59, %s13768_s4 }
0x3ab2   :  { %v7611_v42 = vpop.xlane.xlu1 %7610 }
0x3ab3   :  { %v7613_v52 = vsub.f32 %v7605_v35, %v7611_v42  ;;  %v7608_v5 = vpop.xlane.xlu0 %7607 }
0x3ab4   :  { %v7612_v13 = vsub.f32 %v7604_v24, %v7608_v5 }
0x3ab5   :  { %v7616_v44 = vmul.f32 1.442695, %v7613_v52 }
0x3ab6   :  { %v7614_v54 = vmul.f32 1.442695, %v7612_v13  ;;  %v11236_v2 = vpop.permute.xlu1 %11235 }
0x3ab7   :  { %v11238_v28 = vunpack.i.h.bf16 %v11236_v2  ;;  %v11237_v49 = vunpack.i.l.bf16 %v11236_v2 }
0x3ab8   :  { %11570 = vpow2.f32 %v7614_v54 }
0x3ab9   :  { %v10884_v37 = vpack.c.bf16 %v11238_v28, %v11237_v49  ;;  %11572 = vpow2.f32 %v7616_v44 }
0x3aba   :  { %v11241_v38 = vpop.permute.xlu1 %11240 }
0x3abb   :  { %v11243_v8 = vunpack.i.h.bf16 %v11241_v38  ;;  %v11242_v10 = vunpack.i.l.bf16 %v11241_v38  ;;  %10885 = vmatprep.subr.bf16.mxu0 %v10884_v37 }
0x3abc   :  { %10887 = vmatpush3.bf16.msra.mxu0 %v10884_v37 }
0x3abd   :  { %v10894_v4 = vpack.c.bf16 %v11243_v8, %v11242_v10  ;;  %10890 = vmatprep.subr.msk.bf16.mxu0 %vm11902_vm10, %v13250_v58 }
0x3abe   :  { %v7946_v2 = vpop.permute.xlu1 %7945 }
0x3abf   :  { %10895 = vmatprep.subr.bf16.mxu1 %v10894_v4 }
0x3ac0   :  { %10897 = vmatpush3.bf16.msra.mxu1 %v10894_v4 }
0x3ac2   :  { %v11571_v15 = vpop.eup %11570  ;;  %v7948_v28 = vpop.permute.xlu1 %7947 }
0x3ac3   :  { %v7618_v63 = vsel %vm405_vm11, %v11571_v15, 0.0  ;;  %v11573_v34 = vpop.eup %11572 }
0x3ac4   :  { %7619 = vadd.xlane.f32.xlu0 %v7618_v63  ;;  %v7621_v30 = vsel %vm405_vm11, %v11573_v34, 0.0 }
0x3ac8   :  { %7622 = vadd.xlane.f32.xlu0 %v7621_v30 }
0x3b51   :  { %v7620_v46 = vpop.xlane.xlu0 %7619 }
0x3b52   :  { %11574 = vrcp.f32 %v7620_v46 }
0x3b55   :  { %v7623_v26 = vpop.xlane.xlu0 %7622 }
0x3b56   :  { %11576 = vrcp.f32 %v7623_v26 }
0x3b5c   :  { %v11575_v0 = vpop.eup %11574 }
0x3b5d   :  { %v7626_v31 = vmul.f32 %v11575_v0, %v11571_v15 }
0x3b5f   :  { %10403 = vmatprep.mubr.msk.f32.mxu0 %vm405_vm11, %v7626_v31 }
0x3b60   :  { %v11577_v60 = vpop.eup %11576 }
0x3b61   :  { %v7627_v39 = vmul.f32 %v11577_v60, %v11573_v34 }
0x3b63   :  { %10404 = vmatmul.mubr.msk.f32.vlgmr.msra.gmra.mrb[70].mxu0 %vm405_vm11, %v7627_v39 }
0x3b64   :  { %10893 = vmatpush3.bf16.xpose.msk.msra.mxu0 %vm11902_vm10, %v13250_v58  ;;  %10410 = vmatprep.mubr.msk.f32.mxu0 %vm317_vm9, %v13330_v45 }
0x3b6b   :  { %10411 = vmatmul.mubr.msk.f32.vlgmr.msra.gmra.mrb[72].mxu0 %vm317_vm9, %v13336_v59 }
0x3c36   :  { %v13354_v56 = vpop.f32.mrb[70].mxu0 }
0x3c37   :  { %v13356_v48 = vpop.f32.mrb[71].mxu0 }
0x3c3e   :  { %v10412_v40 = vpop.f32.mrb[72].mxu0 }
0x3c3f   :  { %v7823_v25 = vpop.f32.mrb[73].mxu0  ;;  %v7833_v11 = vmul.f32 0.35355338, %v10412_v40 }
0x3c40   :  { %v7832_v9 = vmul.f32 0.35355338, %v7823_v25 }
0x3c41   :  { %v7835_v1 = vadd.f32 %v13367_v22, %v7833_v11 }
0x3c42   :  { %v7834_v58 = vadd.f32 %v13361_v7, %v7832_v9 }
0x3c43   :  { %v7839_v27 = vsel %vm405_vm11, %v7835_v1, -inf }
0x3c44   :  { %v7836_v33 = vsel %vm405_vm11, %v7834_v58, -inf }
0x3c45   :  { %7837 = vmax.xlane.f32.xlu0 %v7836_v33 }
0x3c49   :  { %7840 = vmax.xlane.f32.xlu0 %v7839_v27 }
0x3cd2   :  { %v7838_v57 = vpop.xlane.xlu0 %7837 }
0x3cd3   :  { %v7842_v51 = vsub.f32 %v7834_v58, %v7838_v57 }
0x3cd5   :  { %v7844_v3 = vmul.f32 1.442695, %v7842_v51 }
0x3cd6   :  { %v7841_v16 = vpop.xlane.xlu0 %7840 }
0x3cd7   :  { %v7843_v62 = vsub.f32 %v7835_v1, %v7841_v16 }
0x3cd9   :  { %v7846_v12 = vmul.f32 1.442695, %v7843_v62 }
0x3cdb   :  { %11578 = vpow2.f32 %v7846_v12 }
0x3cdc   :  { %11580 = vpow2.f32 %v7844_v3 }
0x3ce5   :  { %v11579_v43 = vpop.eup %11578 }
0x3ce6   :  { %v7851_v23 = vsel %vm405_vm11, %v11579_v43, 0.0  ;;  %v11581_v55 = vpop.eup %11580 }
0x3ce7   :  { %7852 = vadd.xlane.f32.xlu0 %v7851_v23  ;;  %v7848_v41 = vsel %vm405_vm11, %v11581_v55, 0.0 }
0x3ceb   :  { %7849 = vadd.xlane.f32.xlu0 %v7848_v41 }
0x3d01   :  { %11245 = vrot.lane.b32.xlu0 %v13248_v14, %s13768_s4 }
0x3d74   :  { %v7853_v35 = vpop.xlane.xlu0 %7852 }
0x3d75   :  { %11582 = vrcp.f32 %v7853_v35 }
0x3d78   :  { %v7850_v24 = vpop.xlane.xlu0 %7849 }
0x3d79   :  { %11584 = vrcp.f32 %v7850_v24 }
0x3d7c   :  { %v11246_v20 = vpop.permute.xlu0 %11245 }
0x3d7d   :  { %v11248_v36 = vunpack.i.h.bf16 %v11246_v20  ;;  %v11247_v42 = vunpack.i.l.bf16 %v11246_v20 }
0x3d7f   :  { %v10898_v52 = vpack.c.bf16 %v11248_v36, %v11247_v42  ;;  %v11583_v5 = vpop.eup %11582 }
0x3d80   :  { %v7857_v54 = vmul.f32 %v11583_v5, %v11579_v43 }
0x3d81   :  { %10900 = vmatprep.subr.msk.bf16.mxu1 %vm11902_vm10, %v10898_v52 }
0x3d83   :  { %v11585_v13 = vpop.eup %11584 }
0x3d84   :  { %v7856_v44 = vmul.f32 %v11585_v13, %v11581_v55 }
0x3d86   :  { %10417 = vmatprep.mubr.msk.f32.mxu1 %vm405_vm11, %v7856_v44 }
0x3d87   :  { %10418 = vmatmul.mubr.msk.f32.vlgmr.msra.gmra.mrb[84].mxu1 %vm405_vm11, %v7857_v54 }
0x3d88   :  { %10903 = vmatpush3.bf16.xpose.msk.msra.mxu1 %vm11902_vm10, %v10898_v52  ;;  %10424 = vmatprep.mubr.msk.f32.mxu1 %vm317_vm9, %v7946_v2 }
0x3d8f   :  { %10425 = vmatmul.mubr.msk.f32.vlgmr.msra.gmra.mrb[86].mxu1 %vm317_vm9, %v7948_v28 }
0x3e5a   :  { %v13384_v49 = vpop.f32.mrb[84].mxu1 }
0x3e5b   :  { %v13386_v37 = vpop.f32.mrb[85].mxu1 }
0x3e62   :  { %v10426_v38 = vpop.f32.mrb[86].mxu1 }
0x3e63   :  { %v8037_v8 = vmul.f32 0.35355338, %v10426_v38  ;;  %v8027_v10 = vpop.f32.mrb[87].mxu1 }
0x3e64   :  { %v8036_v4 = vmul.f32 0.35355338, %v8027_v10 }
0x3e65   :  { %v8039_v15 = vadd.f32 %v13367_v22, %v8037_v8 }
0x3e66   :  { %v8038_v63 = vadd.f32 %v13361_v7, %v8036_v4 }
0x3e67   :  { %v8043_v34 = vsel %vm405_vm11, %v8039_v15, -inf }
0x3e68   :  { %8044 = vmax.xlane.f32.xlu0 %v8043_v34  ;;  %v8040_v30 = vsel %vm405_vm11, %v8038_v63, -inf }
0x3e69   :  { %8041 = vmax.xlane.f32.xlu1 %v8040_v30 }
0x3e7a   :  { %11255 = vrot.lane.b32.xlu1 %v13248_v14, %s13767_s28 }
0x3e7e   :  { %11250 = vrot.lane.b32.xlu0 %v13248_v14, %s13769_s26 }
0x3e82   :  { %8151 = vrot.lane.b32.xlu0 %v13336_v59, %s13767_s28 }
0x3ef5   :  { %v8045_v46 = vpop.xlane.xlu0 %8044 }
0x3ef6   :  { %v8047_v26 = vsub.f32 %v8039_v15, %v8045_v46  ;;  %v8042_v0 = vpop.xlane.xlu1 %8041 }
0x3ef7   :  { %v8046_v31 = vsub.f32 %v8038_v63, %v8042_v0 }
0x3ef8   :  { %v8050_v60 = vmul.f32 1.442695, %v8047_v26 }
0x3ef9   :  { %v8048_v39 = vmul.f32 1.442695, %v8046_v31  ;;  %v11251_v40 = vpop.permute.xlu0 %11250 }
0x3efa   :  { %11586 = vpow2.f32 %v8050_v60  ;;  %v11253_v25 = vunpack.i.h.bf16 %v11251_v40  ;;  %v11252_v11 = vunpack.i.l.bf16 %v11251_v40  ;;  %v11256_v9 = vpop.permute.xlu1 %11255 }
0x3efb   :  { %v11258_v58 = vunpack.i.h.bf16 %v11256_v9  ;;  %v11257_v1 = vunpack.i.l.bf16 %v11256_v9  ;;  %11588 = vpow2.f32 %v8048_v39 }
0x3efc   :  { %v10904_v33 = vpack.c.bf16 %v11253_v25, %v11252_v11 }
0x3efd   :  { %v10908_v27 = vpack.c.bf16 %v11258_v58, %v11257_v1  ;;  %v8152_v24 = vpop.permute.xlu0 %8151 }
0x3efe   :  { %10905 = vmatprep.subr.bf16.mxu0 %v10904_v33 }
0x3eff   :  { %10907 = vmatpush3.bf16.msra.mxu0 %v10904_v33 }
0x3f00   :  { %10910 = vmatprep.subr.msk.bf16.mxu0 %vm11902_vm10, %v10908_v27 }
0x3f04   :  { %v11587_v57 = vpop.eup %11586 }
0x3f05   :  { %v8055_v51 = vsel %vm405_vm11, %v11587_v57, 0.0  ;;  %v11589_v16 = vpop.eup %11588 }
0x3f06   :  { %8056 = vadd.xlane.f32.xlu1 %v8055_v51  ;;  %v8052_v62 = vsel %vm405_vm11, %v11589_v16, 0.0 }
0x3f0a   :  { %8053 = vadd.xlane.f32.xlu1 %v8052_v62 }
0x3f1b   :  { %8149 = vrot.lane.b32.xlu1 %v13330_v45, %s13767_s28 }
0x3f93   :  { %v8057_v3 = vpop.xlane.xlu1 %8056 }
0x3f94   :  { %11590 = vrcp.f32 %v8057_v3 }
0x3f97   :  { %v8054_v12 = vpop.xlane.xlu1 %8053 }
0x3f98   :  { %11592 = vrcp.f32 %v8054_v12 }
0x3f9b   :  { %v8150_v35 = vpop.permute.xlu1 %8149 }
0x3f9e   :  { %v11591_v43 = vpop.eup %11590 }
0x3f9f   :  { %v8061_v41 = vmul.f32 %v11591_v43, %v11587_v57 }
0x3fa2   :  { %v11593_v23 = vpop.eup %11592 }
0x3fa3   :  { %v8060_v55 = vmul.f32 %v11593_v23, %v11589_v16 }
0x3fa5   :  { %10431 = vmatprep.mubr.msk.f32.mxu0 %vm405_vm11, %v8060_v55 }
0x3fa6   :  { %10432 = vmatmul.mubr.msk.f32.vlgmr.msra.gmra.mrb[74].mxu0 %vm405_vm11, %v8061_v41 }
0x3fa7   :  { %10913 = vmatpush3.bf16.xpose.msk.msra.mxu0 %vm11902_vm10, %v10908_v27  ;;  %10438 = vmatprep.mubr.msk.f32.mxu0 %vm317_vm9, %v8150_v35 }
0x3fae   :  { %10439 = vmatmul.mubr.msk.f32.vlgmr.msra.gmra.mrb[76].mxu0 %vm317_vm9, %v8152_v24 }
0x4079   :  { %v13410_v20 = vpop.f32.mrb[74].mxu0 }
0x407a   :  { %v13412_v36 = vpop.f32.mrb[75].mxu0 }
0x4081   :  { %v10440_v42 = vpop.f32.mrb[76].mxu0 }
0x4082   :  { %v8241_v52 = vmul.f32 0.35355338, %v10440_v42  ;;  %v8231_v5 = vpop.f32.mrb[77].mxu0 }
0x4083   :  { %v8240_v13 = vmul.f32 0.35355338, %v8231_v5 }
0x4084   :  { %v8243_v44 = vadd.f32 %v13367_v22, %v8241_v52 }
0x4085   :  { %v8242_v54 = vadd.f32 %v13361_v7, %v8240_v13 }
0x4086   :  { %v8247_v2 = vsel %vm405_vm11, %v8243_v44, -inf }
0x4087   :  { %8248 = vmax.xlane.f32.xlu0 %v8247_v2  ;;  %v8244_v28 = vsel %vm405_vm11, %v8242_v54, -inf }
0x4088   :  { %8245 = vmax.xlane.f32.xlu1 %v8244_v28 }
0x4114   :  { %v8249_v38 = vpop.xlane.xlu0 %8248 }
0x4115   :  { %v8251_v8 = vsub.f32 %v8243_v44, %v8249_v38  ;;  %v8246_v10 = vpop.xlane.xlu1 %8245 }
0x4116   :  { %v8250_v4 = vsub.f32 %v8242_v54, %v8246_v10 }
0x4117   :  { %v8254_v15 = vmul.f32 1.442695, %v8251_v8 }
0x4118   :  { %v8252_v63 = vmul.f32 1.442695, %v8250_v4 }
0x4119   :  { %11594 = vpow2.f32 %v8254_v15 }
0x411a   :  { %11596 = vpow2.f32 %v8252_v63 }
0x4123   :  { %v11595_v34 = vpop.eup %11594 }
0x4124   :  { %v11597_v30 = vpop.eup %11596  ;;  %v8259_v46 = vsel %vm405_vm11, %v11595_v34, 0.0 }
0x4125   :  { %8260 = vadd.xlane.f32.xlu1 %v8259_v46  ;;  %v8256_v26 = vsel %vm405_vm11, %v11597_v30, 0.0 }
0x4126   :  { %8257 = vadd.xlane.f32.xlu0 %v8256_v26 }
0x4136   :  { %11265 = vrot.lane.b32.xlu1 %v13248_v14, %s13757_s0 }
0x413a   :  { %8353 = vrot.lane.b32.xlu1 %v13330_v45, %s13757_s0 }
0x413c   :  { %11260 = vrot.lane.b32.xlu0 %v13248_v14, %s13755_s27 }
0x4140   :  { %8355 = vrot.lane.b32.xlu0 %v13336_v59, %s13757_s0  ;;  %s13784_s0 = sld [smem:[#allocation13_spill]] }
0x4146   :  { %v9438_v4 = vld [vmem:[%s13784_s0 + $0x30] sm:$0xff]  ;;  %v9439_v15 = vld [vmem:[%s13784_s0 + $0x38] sm:$0xff] }
0x41b2   :  { %v8261_v0 = vpop.xlane.xlu1 %8260 }
0x41b3   :  { %11598 = vrcp.f32 %v8261_v0  ;;  %v8258_v31 = vpop.xlane.xlu0 %8257 }
0x41b4   :  { %11600 = vrcp.f32 %v8258_v31  ;;  %v10932_v31 = vpack.c.bf16 %v9439_v15, %v9438_v4  ;;  %v13528_v4 = vld [vmem:[%s13670_s18 + $0x1] ss:$0 sm:$0xff] }
0x41b6   :  { %v11266_v60 = vpop.permute.xlu1 %11265 }
0x41b7   :  { %v11261_v39 = vpop.permute.xlu0 %11260  ;;  %v11268_v40 = vunpack.i.h.bf16 %v11266_v60  ;;  %v11267_v25 = vunpack.i.l.bf16 %v11266_v60 }
0x41b8   :  { %v11263_v11 = vunpack.i.h.bf16 %v11261_v39  ;;  %v11262_v9 = vunpack.i.l.bf16 %v11261_v39 }
0x41b9   :  { %v10918_v1 = vpack.c.bf16 %v11268_v40, %v11267_v25 }
0x41ba   :  { %v10914_v58 = vpack.c.bf16 %v11263_v11, %v11262_v9  ;;  %v8354_v57 = vpop.permute.xlu1 %8353 }
0x41bb   :  { %v8356_v51 = vpop.permute.xlu0 %8355 }
0x41bc   :  { %10915 = vmatprep.subr.bf16.mxu1 %v10914_v58 }
0x41bd   :  { %v11599_v45 = vpop.eup %11598  ;;  %10917 = vmatpush3.bf16.msra.mxu1 %v10914_v58 }
0x41be   :  { %v11601_v33 = vpop.eup %11600  ;;  %10920 = vmatprep.subr.msk.bf16.mxu1 %vm11902_vm10, %v10918_v1  ;;  %v8265_v27 = vmul.f32 %v11599_v45, %v11595_v34 }
0x41bf   :  { %v8264_v59 = vmul.f32 %v11601_v33, %v11597_v30 }
0x41c1   :  { %10445 = vmatprep.mubr.msk.f32.mxu1 %vm405_vm11, %v8264_v59 }
0x41c2   :  { %10446 = vmatmul.mubr.msk.f32.vlgmr.msra.gmra.mrb[88].mxu1 %vm405_vm11, %v8265_v27 }
0x41c3   :  { %10452 = vmatprep.mubr.msk.f32.mxu1 %vm317_vm9, %v8354_v57 }
0x41c6   :  { %10923 = vmatpush3.bf16.xpose.msk.msra.mxu1 %vm11902_vm10, %v10918_v1 }
0x41cd   :  { %10453 = vmatmul.mubr.msk.f32.vlgmr.msra.gmra.mrb[90].mxu1 %vm317_vm9, %v8356_v51 }
0x4295   :  { %v10447_v16 = vpop.f32.mrb[88].mxu1 }
0x4296   :  { %v8344_v62 = vpop.f32.mrb[89].mxu1 }
0x42a0   :  { %v10454_v3 = vpop.f32.mrb[90].mxu1 }
0x42a1   :  { %v8445_v12 = vmul.f32 0.35355338, %v10454_v3  ;;  %v8435_v43 = vpop.f32.mrb[91].mxu1 }
0x42a2   :  { %v8444_v23 = vmul.f32 0.35355338, %v8435_v43 }
0x42a3   :  { %v8447_v55 = vadd.f32 %v13367_v22, %v8445_v12 }
0x42a4   :  { %v8446_v41 = vadd.f32 %v13361_v7, %v8444_v23 }
0x42a5   :  { %v8451_v35 = vsel %vm405_vm11, %v8447_v55, -inf }
0x42a6   :  { %8452 = vmax.xlane.f32.xlu0 %v8451_v35  ;;  %v8448_v24 = vsel %vm405_vm11, %v8446_v41, -inf }
0x42a7   :  { %8449 = vmax.xlane.f32.xlu1 %v8448_v24 }
0x4333   :  { %v8453_v32 = vpop.xlane.xlu0 %8452 }
0x4334   :  { %v8455_v42 = vsub.f32 %v8447_v55, %v8453_v32  ;;  %v8450_v52 = vpop.xlane.xlu1 %8449 }
0x4335   :  { %v8454_v5 = vsub.f32 %v8446_v41, %v8450_v52 }
0x4336   :  { %v8458_v13 = vmul.f32 1.442695, %v8455_v42 }
0x4337   :  { %v8456_v44 = vmul.f32 1.442695, %v8454_v5 }
0x4338   :  { %11602 = vpow2.f32 %v8458_v13 }
0x4339   :  { %11604 = vpow2.f32 %v8456_v44 }
0x4342   :  { %v11603_v54 = vpop.eup %11602 }
0x4343   :  { %v11605_v2 = vpop.eup %11604  ;;  %v8463_v22 = vsel %vm405_vm11, %v11603_v54, 0.0 }
0x4344   :  { %8464 = vadd.xlane.f32.xlu1 %v8463_v22  ;;  %v8460_v7 = vsel %vm405_vm11, %v11605_v2, 0.0 }
0x4345   :  { %8461 = vadd.xlane.f32.xlu0 %v8460_v7 }
0x4355   :  { %7717 = vrot.lane.b32.xlu1 %v13314_v53, %s13771_s14 }
0x4359   :  { %7719 = vrot.lane.b32.xlu1 %v13312_v29, %s13771_s14 }
0x435b   :  { %11270 = vrot.lane.b32.xlu0 %v13248_v14, %s13758_s2 }
0x435d   :  { %7727 = vrot.lane.b32.xlu1 %v13316_v61, %s13762_s7 }
0x435f   :  { %7725 = vrot.lane.b32.xlu0 %v13318_v17, %s13762_s7  ;;  %v9436_v17 = vld [vmem:[%s13784_s0 + $0x20] sm:$0xff] }
0x4361   :  { %7735 = vrot.lane.b32.xlu1 %v13354_v56, %s13761_s24  ;;  %v9437_v56 = vld [vmem:[%s13784_s0 + $0x28] sm:$0xff] }
0x4362   :  { %v10928_v38 = vpack.c.bf16 %v9437_v56, %v9436_v17 }
0x4363   :  { %7733 = vrot.lane.b32.xlu0 %v13356_v48, %s13761_s24 }
0x4365   :  { %8561 = vrot.lane.b32.xlu1 %v13410_v20, %s13771_s14 }
0x4367   :  { %8559 = vrot.lane.b32.xlu0 %v13412_v36, %s13771_s14 }
0x4369   :  { %8569 = vrot.lane.b32.xlu1 %v10447_v16, %s13762_s7 }
0x436b   :  { %8567 = vrot.lane.b32.xlu0 %v8344_v62, %s13762_s7 }
0x43d1   :  { %v8465_v14 = vpop.xlane.xlu1 %8464 }
0x43d2   :  { %11606 = vrcp.f32 %v8465_v14  ;;  %v8462_v29 = vpop.xlane.xlu0 %8461 }
0x43d3   :  { %11608 = vrcp.f32 %v8462_v29 }
0x43d5   :  { %v7718_v53 = vpop.permute.xlu1 %7717 }
0x43d6   :  { %v11271_v61 = vpop.permute.xlu0 %11270  ;;  %v7739_v26 = vsel %vm317_vm9, %v13310_v18, %v7718_v53 }
0x43d7   :  { %v11273_v48 = vunpack.i.h.bf16 %v11271_v61  ;;  %v11272_v20 = vunpack.i.l.bf16 %v11271_v61 }
0x43d9   :  { %v10924_v36 = vpack.c.bf16 %v11273_v48, %v11272_v20  ;;  %v7720_v28 = vpop.permute.xlu1 %7719 }
0x43da   :  { %v7726_v8 = vpop.permute.xlu0 %7725  ;;  %v7740_v25 = vsel %vm317_vm9, %v13308_v6, %v7720_v28  ;;  %v9445_v6 = vld [vmem:[%s13785_s30 + $0x1] ss:$0 sm:$0xff] }
0x43db   :  { %10925 = vmatprep.subr.bf16.mxu0 %v10924_v36  ;;  %v7741_v60 = vsel %vm405_vm11, %v7739_v26, %v7726_v8  ;;  %v9450_v26 = vld [vmem:[%s13787_s13 + $0x20] sm:$0xff] }
0x43dc   :  { %v11607_v10 = vpop.eup %11606  ;;  %10927 = vmatpush3.bf16.msra.mxu0 %v10924_v36 }
0x43dd   :  { %v11609_v63 = vpop.eup %11608  ;;  %10929 = vmatprep.subr.bf16.mxu0 %v10928_v38  ;;  %v8469_v46 = vmul.f32 %v11607_v10, %v11603_v54  ;;  %v7728_v0 = vpop.permute.xlu1 %7727 }
0x43de   :  { %v7734_v34 = vpop.permute.xlu0 %7733  ;;  %v8468_v30 = vmul.f32 %v11609_v63, %v11605_v2  ;;  %v7742_v18 = vsel %vm405_vm11, %v7740_v25, %v7728_v0  ;;  %v9451_v0 = vld [vmem:[%s13787_s13 + $0x28] sm:$0xff] }
0x43df   :  { %v7743_v39 = vsel %vm1155_vm12, %v7741_v60, %v7734_v34  ;;  %v13534_v34 = vld [vmem:[%s13786_s19 + $0x1] ss:$0 sm:$0xff]  ;;  %v10936_v60 = vpack.c.bf16 %v9451_v0, %v9450_v26 }
0x43e0   :  { %10459 = vmatprep.mubr.msk.f32.mxu0 %vm405_vm11, %v8468_v30 }
0x43e1   :  { %10460 = vmatmul.mubr.msk.f32.vlgmr.msra.gmra.mrb[78].mxu0 %vm405_vm11, %v8469_v46  ;;  %v7736_v40 = vpop.permute.xlu1 %7735  ;;  %10937 = vmatprep.subr.bf16.mxu1 %v10936_v60 }
0x43e2   :  { %10931 = vmatpush3.bf16.msra.mxu0 %v10928_v38  ;;  %10470 = vmatprep.mubr.msk.f32.mxu0 %vm101_vm0, %v7743_v39  ;;  %v7744_v11 = vsel %vm1155_vm12, %v7742_v18, %v7736_v40  ;;  %v9453_v39 = vld [vmem:[%s13787_s13 + $0x38] sm:$0xff] }
0x43e3   :  { %10933 = vmatprep.subr.bf16.mxu0 %v10932_v31  ;;  %10939 = vmatpush3.bf16.msra.mxu1 %v10936_v60 }
0x43e5   :  { %v8562_v62 = vpop.permute.xlu1 %8561 }
0x43e6   :  { %10935 = vmatpush3.bf16.msra.mxu0 %v10932_v31  ;;  %v8582_v23 = vsel %vm317_vm9, %v13384_v49, %v8562_v62  ;;  %v9452_v31 = vld [vmem:[%s13787_s13 + $0x30] sm:$0xff] }
0x43e7   :  { %v10940_v40 = vpack.c.bf16 %v9453_v39, %v9452_v31 }
0x43e9   :  { %10471 = vmatmul.mubr.msk.f32.vlgmr.msra.gmra.mrb[80].mxu0 %vm101_vm0, %v7744_v11  ;;  %v8570_v3 = vpop.permute.xlu1 %8569  ;;  %10941 = vmatprep.subr.bf16.mxu1 %v10940_v40 }
0x43ea   :  { %v8584_v35 = vsel %vm405_vm11, %v8582_v23, %v8570_v3  ;;  %10943 = vmatpush3.bf16.msra.mxu1 %v10940_v40 }
0x44b4   :  { %v10461_v9 = vpop.f32.mrb[78].mxu0 }
0x44b5   :  { %8577 = vrot.lane.b32.xlu1 %v10461_v9, %s13761_s24  ;;  %v8548_v58 = vpop.f32.mrb[79].mxu0 }
0x44b6   :  { %8575 = vrot.lane.b32.xlu0 %v8548_v58, %s13761_s24 }
0x44bc   :  { %v10472_v1 = vpop.f32.mrb[80].mxu0 }
0x44bd   :  { %v8670_v45 = vpop.f32.mrb[81].mxu0  ;;  %v8690_v59 = vadd.f32 %v10472_v1, %v13086_v19 }
0x44be   :  { %v8689_v33 = vadd.f32 %v8670_v45, %v13083_v21  ;;  %v8560_v21 = vpop.permute.xlu0 %8559 }
0x44bf   :  { %v13495_v57 = vadd.f32 %v9445_v6, %v8690_v59  ;;  %v8581_v43 = vsel %vm317_vm9, %v13386_v37, %v8560_v21 }
0x44c0   :  { %v13493_v27 = vadd.f32 %v9445_v6, %v8689_v33 }
0x44c1   :  { %v8712_v16 = vsel %vm101_vm0, %v13495_v57, 0.0 }
0x44c2   :  { %v8709_v51 = vsel %vm101_vm0, %v13493_v27, 0.0  ;;  %v8568_v12 = vpop.permute.xlu0 %8567 }
0x44c3   :  { %v8583_v55 = vsel %vm405_vm11, %v8581_v43, %v8568_v12 }
0x44d5   :  { %8710 = vadd.xlane.f32.xlu0 %v8709_v51 }
0x44d9   :  { %8713 = vadd.xlane.f32.xlu1 %v8712_v16 }
0x4527   :  { %v8578_v19 = vpop.permute.xlu1 %8577 }
0x4528   :  { %v8576_v41 = vpop.permute.xlu0 %8575  ;;  %v8586_v32 = vsel %vm1155_vm12, %v8584_v35, %v8578_v19 }
0x4529   :  { %v8585_v24 = vsel %vm1155_vm12, %v8583_v55, %v8576_v41 }
0x452a   :  { %10473 = vmatprep.mubr.msk.f32.mxu0 %vm101_vm0, %v8585_v24  ;;  %v9460_v24 = vld [vmem:[%s13672_s22 + $0x40] sm:$0xff] }
0x452b   :  { %10474 = vmatmul.mubr.msk.f32.gmra.mrb[82].mxu0 %vm101_vm0, %v8586_v32  ;;  %v9461_v32 = vld [vmem:[%s13672_s22 + $0x48] sm:$0xff] }
0x4562   :  { %v8711_v42 = vpop.xlane.xlu0 %8710 }
0x4563   :  { %v8721_v52 = vmul.f32 0.03125, %v8711_v42  ;;  %v9462_v42 = vld [vmem:[%s13672_s22 + $0x50] sm:$0xff] }
0x4565   :  { %v8725_v37 = vsub.f32 %v13493_v27, %v8721_v52  ;;  %v10944_v52 = vpack.c.bf16 %v9461_v32, %v9460_v24 }
0x4566   :  { %v8714_v13 = vpop.xlane.xlu1 %8713 }
0x4567   :  { %v8729_v5 = vmul.f32 %v8725_v37, %v8725_v37  ;;  %v8722_v7 = vmul.f32 0.03125, %v8714_v13  ;;  %v8783_v15 = vmul.f32 %v13528_v4, %v8725_v37  ;;  %v9463_v37 = vld [vmem:[%s13672_s22 + $0x58] sm:$0xff]  ;;  %v9465_v13 = vld [vmem:[%s13672_s22 + $0x68] sm:$0xff]  ;;  %10945 = vmatprep.subr.bf16.mxu0 %v10944_v52 }
0x4568   :  { %10947 = vmatpush3.bf16.msra.mxu0 %v10944_v52 }
0x4569   :  { %v8733_v49 = vsel %vm101_vm0, %v8729_v5, 0.0  ;;  %v8726_v17 = vsub.f32 %v13495_v57, %v8722_v7  ;;  %v10948_v5 = vpack.c.bf16 %v9463_v37, %v9462_v42 }
0x456a   :  { %8734 = vadd.xlane.f32.xlu1 %v8733_v49  ;;  %v9464_v49 = vld [vmem:[%s13672_s22 + $0x60] sm:$0xff] }
0x456b   :  { %v8784_v23 = vmul.f32 %v13528_v4, %v8726_v17  ;;  %10949 = vmatprep.subr.bf16.mxu0 %v10948_v5 }
0x456c   :  { %10951 = vmatpush3.bf16.msra.mxu0 %v10948_v5 }
0x45f7   :  { %v8735_v44 = vpop.xlane.xlu1 %8734 }
0x45f8   :  { %v8745_v54 = vmul.f32 0.032258064, %v8735_v44  ;;  %v10952_v44 = vpack.c.bf16 %v9465_v13, %v9464_v49 }
0x45fa   :  { %11610 = vrsqrt.f32 %v8745_v54  ;;  %vm8751_vm9 = vcmp.eq.f32.partialorder %v8745_v54, inf  ;;  %v8754_v36 = vand.u32 2147483648, %v8745_v54  ;;  %vm8753_vm10 = vcmp.eq.f32.partialorder %v8745_v54, 0.0  ;;  %10953 = vmatprep.subr.bf16.mxu0 %v10952_v44 }
0x45fb   :  { %10955 = vmatpush3.bf16.msra.mxu0 %v10952_v44 }
0x45fe   :  { %v10475_v2 = vpop.f32.mrb[82].mxu0 }
0x45ff   :  { %v8680_v22 = vpop.f32.mrb[83].mxu0  ;;  %v8692_v14 = vadd.f32 %v10475_v2, %v13157_v50  ;;  %v9467_v2 = vld [vmem:[%s13672_s22 + $0x78] sm:$0xff] }
0x4600   :  { %v8691_v29 = vadd.f32 %v8680_v22, %v13160_v47  ;;  %v8730_v47 = vmul.f32 %v8726_v17, %v8726_v17 }
0x4601   :  { %v13518_v56 = vadd.f32 %v9445_v6, %v8692_v14 }
0x4602   :  { %v13515_v53 = vadd.f32 %v9445_v6, %v8691_v29  ;;  %v8736_v10 = vsel %vm101_vm0, %v8730_v47, 0.0 }
0x4603   :  { %v8718_v50 = vsel %vm101_vm0, %v13518_v56, 0.0 }
0x4604   :  { %v11611_v61 = vpop.eup %11610  ;;  %v8715_v48 = vsel %vm101_vm0, %v13515_v53, 0.0 }
0x4605   :  { %v8750_v20 = vmul.f32 %v11611_v61, %v8745_v54  ;;  %8716 = vadd.xlane.f32.xlu0 %v8715_v48 }
0x4607   :  { %v8752_v28 = vsel %vm8751_vm9, %v8745_v54, %v8750_v20  ;;  %v9466_v54 = vld [vmem:[%s13672_s22 + $0x70] sm:$0xff] }
0x4608   :  { %v8755_v38 = vsel %vm8753_vm10, %v8754_v36, %v8752_v28  ;;  %v10956_v22 = vpack.c.bf16 %v9467_v2, %v9466_v54 }
0x4609   :  { %8719 = vadd.xlane.f32.xlu0 %v8718_v50  ;;  %v8787_v8 = vadd.f32 1e-06, %v8755_v38 }
0x460a   :  { %10957 = vmatprep.subr.bf16.mxu0 %v10956_v22 }
0x460b   :  { %11612 = vrcp.f32 %v8787_v8  ;;  %10959 = vmatpush3.bf16.msra.mxu0 %v10956_v22 }
0x460d   :  { %8737 = vadd.xlane.f32.xlu0 %v8736_v10 }
0x4615   :  { %v11613_v63 = vpop.eup %11612 }
0x4616   :  { %v8795_v30 = vmul.f32 %v11613_v63, %v8783_v15 }
0x4618   :  { %v8805_v46 = vadd.f32 %v13534_v34, %v8795_v30 }
0x461a   :  { %10484 = vmatprep.mubr.msk.f32.mxu1 %vm101_vm0, %v8805_v46 }
0x4692   :  { %v8717_v25 = vpop.xlane.xlu0 %8716 }
0x4693   :  { %v8723_v18 = vmul.f32 0.03125, %v8717_v25  ;;  %v9455_v25 = vld [vmem:[%s13673_s21 + $0x1] ss:$0 sm:$0xff] }
0x4695   :  { %v13551_v11 = vsub.f32 %v13515_v53, %v8723_v18 }
0x4696   :  { %v8720_v9 = vpop.xlane.xlu0 %8719 }
0x4697   :  { %v8724_v58 = vmul.f32 0.03125, %v8720_v9  ;;  %v8731_v1 = vmul.f32 %v13551_v11, %v13551_v11  ;;  %v8785_v30 = vmul.f32 %v13528_v4, %v13551_v11 }
0x4699   :  { %v13556_v45 = vsub.f32 %v13518_v56, %v8724_v58  ;;  %v8739_v33 = vsel %vm101_vm0, %v8731_v1, 0.0 }
0x469a   :  { %8740 = vadd.xlane.f32.xlu1 %v8739_v33  ;;  %v8738_v6 = vpop.xlane.xlu0 %8737 }
0x469b   :  { %v8746_v59 = vmul.f32 0.032258064, %v8738_v6  ;;  %v8732_v51 = vmul.f32 %v13556_v45, %v13556_v45  ;;  %v8786_v31 = vmul.f32 %v13528_v4, %v13556_v45 }
0x469d   :  { %11614 = vrsqrt.f32 %v8746_v59  ;;  %v8742_v16 = vsel %vm101_vm0, %v8732_v51, 0.0  ;;  %vm8758_vm11 = vcmp.eq.f32.partialorder %v8746_v59, inf  ;;  %v8761_v3 = vand.u32 2147483648, %v8746_v59 }
0x469e   :  { %8743 = vadd.xlane.f32.xlu0 %v8742_v16  ;;  %vm8760_vm12 = vcmp.eq.f32.partialorder %v8746_v59, 0.0 }
0x46a7   :  { %v11615_v62 = vpop.eup %11614 }
0x46a8   :  { %v8757_v21 = vmul.f32 %v11615_v62, %v8746_v59  ;;  %v9473_v62 = vld [vmem:[%s13772_s6 + $0x1] ss:$0 sm:$0xff] }
0x46aa   :  { %v8759_v12 = vsel %vm8758_vm11, %v8746_v59, %v8757_v21 }
0x46ab   :  { %v8762_v43 = vsel %vm8760_vm12, %v8761_v3, %v8759_v12 }
0x46ac   :  { %v8788_v19 = vadd.f32 1e-06, %v8762_v43 }
0x46ae   :  { %11616 = vrcp.f32 %v8788_v19 }
0x46b8   :  { %v11617_v55 = vpop.eup %11616 }
0x46b9   :  { %v8796_v41 = vmul.f32 %v11617_v55, %v8784_v23 }
0x46bb   :  { %v8806_v35 = vadd.f32 %v13534_v34, %v8796_v41 }
0x46bd   :  { %10485 = vmatmul.mubr.msk.f32.vlgmr.msra.gmra.mrb[92].mxu1 %vm101_vm0, %v8806_v35 }
0x4727   :  { %v8741_v7 = vpop.xlane.xlu1 %8740 }
0x4728   :  { %v8747_v14 = vmul.f32 0.032258064, %v8741_v7 }
0x472a   :  { %11618 = vrsqrt.f32 %v8747_v14  ;;  %vm8765_vm15 = vcmp.eq.f32.partialorder %v8747_v14, inf  ;;  %v8768_v20 = vand.u32 2147483648, %v8747_v14  ;;  %vm8767_vm1 = vcmp.eq.f32.partialorder %v8747_v14, 0.0 }
0x472b   :  { %v8744_v29 = vpop.xlane.xlu0 %8743 }
0x472c   :  { %v8748_v61 = vmul.f32 0.032258064, %v8744_v29 }
0x472e   :  { %11620 = vrsqrt.f32 %v8748_v61  ;;  %vm8772_vm2 = vcmp.eq.f32.partialorder %v8748_v61, inf  ;;  %v8775_v8 = vand.u32 2147483648, %v8748_v61  ;;  %vm8774_vm3 = vcmp.eq.f32.partialorder %v8748_v61, 0.0 }
0x4734   :  { %v11619_v17 = vpop.eup %11618 }
0x4735   :  { %v8764_v48 = vmul.f32 %v11619_v17, %v8747_v14 }
0x4737   :  { %v8766_v36 = vsel %vm8765_vm15, %v8747_v14, %v8764_v48 }
0x4738   :  { %v8769_v28 = vsel %vm8767_vm1, %v8768_v20, %v8766_v36  ;;  %v11621_v38 = vpop.eup %11620 }
0x4739   :  { %v8789_v50 = vadd.f32 1e-06, %v8769_v28  ;;  %v8771_v47 = vmul.f32 %v11621_v38, %v8748_v61 }
0x473b   :  { %11622 = vrcp.f32 %v8789_v50  ;;  %v8773_v10 = vsel %vm8772_vm2, %v8748_v61, %v8771_v47 }
0x473c   :  { %v8776_v15 = vsel %vm8774_vm3, %v8775_v8, %v8773_v10 }
0x473d   :  { %v8790_v63 = vadd.f32 1e-06, %v8776_v15 }
0x473f   :  { %11624 = vrcp.f32 %v8790_v63 }
0x4745   :  { %v11623_v46 = vpop.eup %11622 }
0x4746   :  { %v8797_v26 = vmul.f32 %v11623_v46, %v8785_v30 }
0x4748   :  { %v8807_v0 = vadd.f32 %v13534_v34, %v8797_v26 }
0x4749   :  { %v11625_v60 = vpop.eup %11624 }
0x474a   :  { %10487 = vmatprep.mubr.msk.f32.mxu1 %vm101_vm0, %v8807_v0  ;;  %v8798_v39 = vmul.f32 %v11625_v60, %v8786_v31 }
0x474c   :  { %v8808_v40 = vadd.f32 %v13534_v34, %v8798_v39 }
0x474e   :  { %10488 = vmatmul.mubr.msk.f32.gmra.mrb[94].mxu1 %vm101_vm0, %v8808_v40 }
0x4790   :  { %v10486_v18 = vpop.f32.mrb[92].mxu1 }
0x4791   :  { %v8906_v11 = vadd.f32 %v10486_v18, %v9455_v25  ;;  %v8900_v9 = vpop.f32.mrb[93].mxu1 }
0x4792   :  { %v8901_v58 = vadd.f32 %v9455_v25, %v8900_v9 }
0x4793   :  { %v8920_v33 = vmax.f32 %v8906_v11, 0.0  ;;  %v9474_v11 = vld [vmem:[%s13788_s11] ss:$0 sm:$0xff] }
0x4794   :  { %v8919_v1 = vmax.f32 %v8901_v58, 0.0 }
0x4796   :  { %10506 = vmatprep.mubr.msk.f32.mxu0 %vm4458_vm14, %v8919_v1 }
0x4797   :  { %10507 = vmatmul.mubr.msk.f32.vlgmr.msra.gmra.mrb[84].mxu0 %vm4458_vm14, %v8920_v33  ;;  %v9475_v33 = vld [vmem:[%s13789_s20] ss:$0 sm:$0xff] }
0x4821   :  { %v10489_v4 = vpop.f32.mrb[94].mxu1 }
0x4822   :  { %v8916_v45 = vadd.f32 %v10489_v4, %v9455_v25  ;;  %v8910_v6 = vpop.f32.mrb[95].mxu1 }
0x4823   :  { %v8911_v34 = vadd.f32 %v9455_v25, %v8910_v6 }
0x4824   :  { %v8922_v51 = vmax.f32 %v8916_v45, 0.0 }
0x4825   :  { %v8921_v59 = vmax.f32 %v8911_v34, 0.0 }
0x4827   :  { %10509 = vmatprep.mubr.msk.f32.mxu0 %vm4458_vm14, %v8921_v59 }
0x4828   :  { %10510 = vmatmul.mubr.msk.f32.gmra.mrb[86].mxu0 %vm4458_vm14, %v8922_v51 }
0x486a   :  { %v10508_v16 = vpop.f32.mrb[84].mxu0 }
0x486b   :  { %v9030_v21 = vadd.f32 %v10508_v16, %v13495_v57  ;;  %v9010_v3 = vpop.f32.mrb[85].mxu0 }
0x486c   :  { %v9029_v12 = vadd.f32 %v9010_v3, %v13493_v27 }
0x486d   :  { %v9042_v43 = vadd.f32 %v9473_v62, %v9030_v21 }
0x486e   :  { %v9041_v19 = vadd.f32 %v9473_v62, %v9029_v12 }
0x486f   :  { %v9050_v23 = vsel %vm101_vm0, %v9042_v43, 0.0 }
0x4870   :  { %9051 = vadd.xlane.f32.xlu0 %v9050_v23  ;;  %v9047_v55 = vsel %vm101_vm0, %v9041_v19, 0.0 }
0x4871   :  { %9048 = vadd.xlane.f32.xlu1 %v9047_v55 }
0x48fb   :  { %v10511_v41 = vpop.f32.mrb[86].mxu0 }
0x48fc   :  { %v9032_v35 = vadd.f32 %v10511_v41, %v13518_v56  ;;  %v9020_v24 = vpop.f32.mrb[87].mxu0 }
0x48fd   :  { %v9052_v32 = vpop.xlane.xlu0 %9051  ;;  %v9031_v42 = vadd.f32 %v9020_v24, %v13515_v53 }
0x48fe   :  { %v9060_v52 = vmul.f32 0.03125, %v9052_v32  ;;  %v9049_v57 = vpop.xlane.xlu1 %9048  ;;  %v9044_v37 = vadd.f32 %v9473_v62, %v9032_v35 }
0x48ff   :  { %v9059_v5 = vmul.f32 0.03125, %v9049_v57  ;;  %v9043_v27 = vadd.f32 %v9473_v62, %v9031_v42 }
0x4900   :  { %v9064_v49 = vsub.f32 %v9042_v43, %v9060_v52  ;;  %v9056_v44 = vsel %vm101_vm0, %v9044_v37, 0.0 }
0x4901   :  { %v9063_v13 = vsub.f32 %v9041_v19, %v9059_v5  ;;  %9057 = vadd.xlane.f32.xlu0 %v9056_v44  ;;  %v9053_v54 = vsel %vm101_vm0, %v9043_v27, 0.0 }
0x4902   :  { %v9068_v2 = vmul.f32 %v9064_v49, %v9064_v49  ;;  %9054 = vadd.xlane.f32.xlu1 %v9053_v54  ;;  %v9122_v9 = vmul.f32 %v9474_v11, %v9064_v49 }
0x4903   :  { %v9067_v22 = vmul.f32 %v9063_v13, %v9063_v13  ;;  %v9121_v1 = vmul.f32 %v9474_v11, %v9063_v13 }
0x4904   :  { %v9074_v56 = vsel %vm101_vm0, %v9068_v2, 0.0 }
0x4905   :  { %v9071_v7 = vsel %vm101_vm0, %v9067_v22, 0.0  ;;  %9075 = vadd.xlane.f32.xlu0 %v9074_v56 }
0x4906   :  { %9072 = vadd.xlane.f32.xlu1 %v9071_v7 }
0x498e   :  { %v9058_v53 = vpop.xlane.xlu0 %9057 }
0x498f   :  { %v9062_v14 = vmul.f32 0.03125, %v9058_v53  ;;  %v9055_v29 = vpop.xlane.xlu1 %9054 }
0x4990   :  { %v9061_v61 = vmul.f32 0.03125, %v9055_v29 }
0x4991   :  { %v13617_v17 = vsub.f32 %v9044_v37, %v9062_v14 }
0x4992   :  { %v13619_v48 = vsub.f32 %v9043_v27, %v9061_v61  ;;  %v9076_v20 = vpop.xlane.xlu0 %9075 }
0x4993   :  { %v9084_v36 = vmul.f32 0.032258064, %v9076_v20  ;;  %v9073_v28 = vpop.xlane.xlu1 %9072  ;;  %v9070_v38 = vmul.f32 %v13617_v17, %v13617_v17  ;;  %v9124_v57 = vmul.f32 %v9474_v11, %v13617_v17 }
0x4994   :  { %v9083_v50 = vmul.f32 0.032258064, %v9073_v28  ;;  %v9069_v47 = vmul.f32 %v13619_v48, %v13619_v48  ;;  %v9123_v5 = vmul.f32 %v9474_v11, %v13619_v48 }
0x4995   :  { %11626 = vrsqrt.f32 %v9084_v36  ;;  %v9080_v8 = vsel %vm101_vm0, %v9070_v38, 0.0  ;;  %vm9096_vm14 = vcmp.eq.f32.partialorder %v9084_v36, inf  ;;  %v9099_v46 = vand.u32 2147483648, %v9084_v36 }
0x4996   :  { %11628 = vrsqrt.f32 %v9083_v50  ;;  %v9077_v10 = vsel %vm101_vm0, %v9069_v47, 0.0  ;;  %9081 = vadd.xlane.f32.xlu0 %v9080_v8  ;;  %vm9098_vm4 = vcmp.eq.f32.partialorder %v9084_v36, 0.0  ;;  %vm9089_vm5 = vcmp.eq.f32.partialorder %v9083_v50, inf }
0x4997   :  { %9078 = vadd.xlane.f32.xlu1 %v9077_v10  ;;  %v9092_v31 = vand.u32 2147483648, %v9083_v50  ;;  %vm9091_vm6 = vcmp.eq.f32.partialorder %v9083_v50, 0.0 }
0x499f   :  { %v11627_v15 = vpop.eup %11626 }
0x49a0   :  { %v11629_v63 = vpop.eup %11628  ;;  %v9095_v30 = vmul.f32 %v11627_v15, %v9084_v36 }
0x49a1   :  { %v9088_v26 = vmul.f32 %v11629_v63, %v9083_v50 }
0x49a2   :  { %v9097_v0 = vsel %vm9096_vm14, %v9084_v36, %v9095_v30 }
0x49a3   :  { %v9100_v60 = vsel %vm9098_vm4, %v9099_v46, %v9097_v0  ;;  %v9090_v39 = vsel %vm9089_vm5, %v9083_v50, %v9088_v26 }
0x49a4   :  { %v9126_v40 = vadd.f32 1e-06, %v9100_v60  ;;  %v9093_v25 = vsel %vm9091_vm6, %v9092_v31, %v9090_v39 }
0x49a5   :  { %v9125_v18 = vadd.f32 1e-06, %v9093_v25 }
0x49a6   :  { %11630 = vrcp.f32 %v9126_v40 }
0x49a7   :  { %11632 = vrcp.f32 %v9125_v18 }
0x49b0   :  { %v11631_v58 = vpop.eup %11630 }
0x49b1   :  { %v11633_v4 = vpop.eup %11632  ;;  %v9134_v45 = vmul.f32 %v11631_v58, %v9122_v9 }
0x49b2   :  { %v9133_v6 = vmul.f32 %v11633_v4, %v9121_v1 }
0x49b3   :  { %v9144_v34 = vadd.f32 %v9475_v33, %v9134_v45 }
0x49b4   :  { %v9143_v59 = vadd.f32 %v9475_v33, %v9133_v6 }
0x49b5   :  { %9148 = vst.msk [vmem:[%s13790_s8 + $0x8] sm:$0xff] %vm101_vm0, %v9144_v34 }
0x49b6   :  { %9147 = vst.msk [vmem:[%s13790_s8] sm:$0xff] %vm101_vm0, %v9143_v59 }
0x4a23   :  { %v9082_v51 = vpop.xlane.xlu0 %9081 }
0x4a24   :  { %v9079_v16 = vpop.xlane.xlu1 %9078  ;;  %v9086_v62 = vmul.f32 0.032258064, %v9082_v51 }
0x4a25   :  { %v9085_v21 = vmul.f32 0.032258064, %v9079_v16 }
0x4a26   :  { %11634 = vrsqrt.f32 %v9086_v62  ;;  %vm9110_vm7 = vcmp.eq.f32.partialorder %v9086_v62, inf  ;;  %v9113_v19 = vand.u32 2147483648, %v9086_v62  ;;  %vm9112_vm8 = vcmp.eq.f32.partialorder %v9086_v62, 0.0 }
0x4a27   :  { %11636 = vrsqrt.f32 %v9085_v21  ;;  %vm9103_vm13 = vcmp.eq.f32.partialorder %v9085_v21, inf  ;;  %v9106_v41 = vand.u32 2147483648, %v9085_v21  ;;  %vm9105_vm9 = vcmp.eq.f32.partialorder %v9085_v21, 0.0 }
0x4a30   :  { %v11635_v3 = vpop.eup %11634 }
0x4a31   :  { %v11637_v12 = vpop.eup %11636  ;;  %v9109_v43 = vmul.f32 %v11635_v3, %v9086_v62 }
0x4a32   :  { %v9102_v23 = vmul.f32 %v11637_v12, %v9085_v21 }
0x4a33   :  { %v9111_v55 = vsel %vm9110_vm7, %v9086_v62, %v9109_v43 }
0x4a34   :  { %v9114_v35 = vsel %vm9112_vm8, %v9113_v19, %v9111_v55  ;;  %v9104_v24 = vsel %vm9103_vm13, %v9085_v21, %v9102_v23 }
0x4a35   :  { %v9128_v32 = vadd.f32 1e-06, %v9114_v35  ;;  %v9107_v42 = vsel %vm9105_vm9, %v9106_v41, %v9104_v24 }
0x4a36   :  { %v9127_v52 = vadd.f32 1e-06, %v9107_v42 }
0x4a37   :  { %11638 = vrcp.f32 %v9128_v32 }
0x4a38   :  { %11640 = vrcp.f32 %v9127_v52 }
0x4a41   :  { %v11639_v37 = vpop.eup %11638 }
0x4a42   :  { %v11641_v27 = vpop.eup %11640  ;;  %v9136_v49 = vmul.f32 %v11639_v37, %v9124_v57 }
0x4a43   :  { %v9135_v13 = vmul.f32 %v11641_v27, %v9123_v5 }
0x4a44   :  { %v9146_v44 = vadd.f32 %v9475_v33, %v9136_v49 }
0x4a45   :  { %v9145_v54 = vadd.f32 %v9475_v33, %v9135_v13 }
0x4a46   :  { %9150 = vst.msk [vmem:[%s13790_s8 + $0x18] sm:$0xff] %vm101_vm0, %v9146_v44 }
0x4a47   :  { %9149 = vst.msk [vmem:[%s13790_s8 + $0x10] sm:$0xff] %vm101_vm0, %v9145_v54 }

</bundles_post_ra>
